<compile_context>
chip_gen: v7x
topology: tpu7x:2x2x1
jax: 0.10.0
libtpu: 0.0.40
codegen_flags: <defaults>
</compile_context>

<pallas_src>
import functools

import jax
import jax.numpy as jnp
import numpy as np
from jax import lax
from jax.experimental import pallas as pl
from jax.experimental.pallas import tpu as pltpu


def _dct_matrix(n: int) -> jnp.ndarray:
    """Orthonormal DCT-II matrix D s.t. dct(x, norm='ortho') == D @ x along the axis."""
    k = np.arange(n)[:, None]
    m = np.arange(n)[None, :]
    d = np.cos(np.pi * (2 * m + 1) * k / (2 * n)) * np.sqrt(2.0 / n)
    d[0, :] *= 1.0 / np.sqrt(2.0)
    return jnp.asarray(d, dtype=jnp.float32)


def _fourier_mixing_kernel(x_ref, d_ref, dt_ref, w_ref, p_ref, prm_ref, o_ref, *,
                           eps, ksize, channels, group_width):
    L, btc = x_ref.shape
    gw = group_width
    n_grp = btc // gw
    pad = (ksize - 1) // 2
    inv_c = 1.0 / channels

    p = p_ref[...]                                       # (gw, gw) bf16 block-diag ones

    def group_sum(v):
        # Per-C-lane-group sums (already broadcast back over the group) at ~f32 accuracy:
        # hi/lo bf16 split so the MXU's bf16 passes do not truncate the statistics.
        hi = v.astype(jnp.bfloat16)
        lo = (v - hi.astype(jnp.float32)).astype(jnp.bfloat16)
        return (jnp.dot(hi, p, preferred_element_type=jnp.float32)
                + jnp.dot(lo, p, preferred_element_type=jnp.float32))

    # ---- LayerNorm over each C-wide channel group (fused reduce+broadcast) ----
    xn_parts = []
    for g in range(n_grp):
        sl = slice(g * gw, (g + 1) * gw)
        xg = x_ref[:, sl]                                 # (L, gw) f32
        mean = group_sum(xg) * inv_c
        xc = xg - mean
        var = group_sum(xc * xc) * inv_c
        xn = xc * lax.rsqrt(var + eps) * prm_ref[0:1, sl] + prm_ref[1:2, sl]
        xn_parts.append(xn.astype(jnp.bfloat16))
    xn_bf = jnp.concatenate(xn_parts, axis=1) if n_grp > 1 else xn_parts[0]

    # ---- DCT-II (ortho) along the sequence axis: y = D @ xn (bf16 in, f32 acc) ----
    y = jnp.dot(d_ref[...], xn_bf, preferred_element_type=jnp.float32)   # (L, btc) f32

    # ---- folded 11-tap conv: per-tap sublane roll + edge mask, per-128-lane-group matmul
    row = lax.broadcasted_iota(jnp.int32, (L, btc), 0)
    accs = [jnp.zeros((L, gw), jnp.float32) + prm_ref[2:3, g * gw:(g + 1) * gw]
            for g in range(n_grp)]
    for k in range(ksize):
        off = k - pad                                     # shifted[l, :] = y[l + off, :]
        shifted = y if off == 0 else pltpu.roll(y, (-off) % L, axis=0)
        if off > 0:
            shifted = jnp.where(row < (L - off), shifted, 0.0)
        elif off < 0:
            shifted = jnp.where(row >= (-off), shifted, 0.0)
        sh_bf = shifted.astype(jnp.bfloat16)
        w_k = w_ref[k * gw:(k + 1) * gw, :]               # (gw, gw) bf16, 128-aligned slice
        for g in range(n_grp):
            accs[g] = accs[g] + jnp.dot(sh_bf[:, g * gw:(g + 1) * gw], w_k,
                                        preferred_element_type=jnp.float32)
    acc = jnp.concatenate(accs, axis=1) if n_grp > 1 else accs[0]         # (L, btc) f32

    # ---- IDCT (ortho, DCT-III): z = D^T @ acc, D^T precomputed host-side ----
    z = jnp.dot(dt_ref[...], acc.astype(jnp.bfloat16),
                preferred_element_type=jnp.float32)                        # (L, btc) f32

    # TODO(synk): nn.Dropout(p=0.1) is identity in eval mode; not applied here.
    o_ref[...] = z.astype(o_ref.dtype)


def _pick_block_batches(batch: int, channels: int, target_lanes: int = 512) -> int:
    """Largest bt dividing `batch` with bt*channels a multiple of 128 and at most
    `target_lanes` lanes per step, preferring >= 2 grid steps (keeps both v7x TensorCores
    busy).  Falls back to the whole batch (correct but not lane-dense / single-step)."""
    cands = [d for d in range(1, batch + 1)
             if batch % d == 0 and (d * channels) % 128 == 0
             and d * channels <= target_lanes]
    if not cands:
        return batch
    multi = [d for d in cands if batch // d >= 2]
    return max(multi) if multi else max(cands)


def fourier_token_mixing(x, conv_w, conv_b, gamma, beta, *, eps=1e-5):
    B, L, C = x.shape
    K = conv_w.shape[0]
    assert L >= K, "sequence length must be >= largest filter size"

    bt = _pick_block_batches(B, C)
    btc = bt * C
    gw = 128 if btc % 128 == 0 else btc            # lane width of one conv/LN weight group
    if gw % C != 0:
        # TODO(synk): d_model that does not divide the 128-lane group width needs a
        # different conv contraction layout; not implemented here.
        raise NotImplementedError("d_model must divide the 128-lane group width")
    g_per = gw // C                                # batches sharing one lane group
    n_grp = btc // gw
    grid0 = B // bt

    # Layout plumbing: (B, L, C) -> lane-dense slab (L, B*C).  Keep this layout across
    # adjacent layers in a real model so the transpose is paid once, not per call.
    x2 = jnp.transpose(x, (1, 0, 2)).reshape(L, B * C)

    d_f32 = _dct_matrix(L)
    d_bf = d_f32.astype(jnp.bfloat16)
    dt_bf = d_f32.T.astype(jnp.bfloat16)           # ship D^T -> no in-kernel transpose

    # Per-lane-group conv weights: rows ordered (tap k, batch-in-group, c_in), columns
    # (batch-in-group, c_out); block-diagonal over the g_per batches sharing the group.
    eye_g = jnp.eye(g_per, dtype=jnp.float32)
    w_grp = (conv_w[:, None, :, None, :] * eye_g[None, :, None, :, None]
             ).reshape(K * gw, gw).astype(jnp.bfloat16)

    # LayerNorm fused reduce+broadcast matrix: block-diag of ones(C, C) (exact in bf16);
    # the 1/C scale is applied in f32 inside the kernel.
    p_grp = jnp.kron(jnp.eye(g_per, dtype=jnp.float32),
                     jnp.ones((C, C), jnp.float32)).astype(jnp.bfloat16)

    # gamma / beta / summed conv bias merged into a single (8, btc) f32 input.
    prm = jnp.zeros((8, btc), jnp.float32)
    prm = prm.at[0].set(jnp.tile(gamma.astype(jnp.float32), bt))
    prm = prm.at[1].set(jnp.tile(beta.astype(jnp.float32), bt))
    prm = prm.at[2].set(jnp.tile(conv_b.astype(jnp.float32), bt))

    flops = int(grid0 * (4 * L * L * btc                      # DCT + IDCT
                         + (K + 4) * n_grp * 2 * L * gw * gw))  # conv + LN matmuls
    bytes_accessed = int(2 * x.size * 4 + w_grp.size * 2 + 2 * d_bf.size * 2
                         + p_grp.size * 2 + prm.size * 4)

    kern = functools.partial(_fourier_mixing_kernel, eps=eps, ksize=K,
                             channels=C, group_width=gw)
    out2 = pl.pallas_call(
        kern,
        out_shape=jax.ShapeDtypeStruct((L, B * C), x.dtype),
        grid=(grid0,),
        in_specs=[
            pl.BlockSpec((L, btc), lambda i: (0, i)),         # x slab
            pl.BlockSpec((L, L), lambda i: (0, 0)),           # D  (bf16)
            pl.BlockSpec((L, L), lambda i: (0, 0)),           # D^T (bf16)
            pl.BlockSpec((K * gw, gw), lambda i: (0, 0)),     # per-group conv weights
            pl.BlockSpec((gw, gw), lambda i: (0, 0)),         # LN block-diag ones
            pl.BlockSpec((8, btc), lambda i: (0, 0)),         # gamma/beta/bias (merged)
        ],
        out_specs=pl.BlockSpec((L, btc), lambda i: (0, i)),
        compiler_params=pltpu.CompilerParams(
            dimension_semantics=("parallel",),
            vmem_limit_bytes=32 * 1024 * 1024),
        cost_estimate=pl.CostEstimate(flops=flops,
                                      transcendentals=grid0 * n_grp * L * gw,
                                      bytes_accessed=bytes_accessed),
    )(x2, d_bf, dt_bf, w_grp, p_grp, prm)

    # slab (L, B*C) -> (B, L, C)
    return jnp.transpose(out2.reshape(L, B, C), (1, 0, 2))


def init_params(key, d_model):
    """Deterministic synthetic params. The 4 Conv1d layers (k=3,5,7,11, same pad) are
    folded into one 11-tap conv with W[k] shaped (C_in, C_out) and summed bias."""
    sizes = [3, 5, 7, 11]
    K = max(sizes)
    W = jnp.zeros((K, d_model, d_model), jnp.float32)
    bsum = jnp.zeros((d_model,), jnp.float32)
    keys = jax.random.split(key, 2 * len(sizes))
    for j, ks in enumerate(sizes):
        fan_in = d_model * ks
        bound = 1.0 / np.sqrt(fan_in)
        w = jax.random.uniform(keys[2 * j], (d_model, d_model, ks),
                               minval=-bound, maxval=bound)      # (C_out, C_in, ks)
        b = jax.random.uniform(keys[2 * j + 1], (d_model,),
                               minval=-bound, maxval=bound)
        off = (K - ks) // 2                                      # center the taps
        W = W.at[off:off + ks].add(jnp.transpose(w, (2, 1, 0)))  # -> (tap, C_in, C_out)
        bsum = bsum + b
    gamma = jnp.ones((d_model,), jnp.float32)   # LayerNorm defaults
    beta = jnp.zeros((d_model,), jnp.float32)
    return W, bsum, gamma, beta


def reference(x, W, bsum, gamma, beta, eps=1e-5):
    """Pure-JAX f32 reference of the same math (for correctness check)."""
    B, L, C = x.shape
    D = _dct_matrix(L)
    mean = x.mean(-1, keepdims=True)
    var = ((x - mean) ** 2).mean(-1, keepdims=True)
    xn = (x - mean) / jnp.sqrt(var + eps) * gamma + beta
    y = jnp.einsum('kn,bnc->bkc', D, xn)
    K = W.shape[0]
    pad = (K - 1) // 2
    ypad = jnp.pad(y, ((0, 0), (pad, pad), (0, 0)))
    acc = jnp.zeros_like(y) + bsum
    for k in range(K):
        acc = acc + jnp.einsum('blc,cd->bld', ypad[:, k:k + L, :], W[k])
    z = jnp.einsum('kn,bkc->bnc', D, acc)
    return z


if __name__ == "__main__":
    key = jax.random.PRNGKey(0)
    kx, kp = jax.random.split(key)

    # B=32, C=32 -> bt=16 (512 lanes / step), 2 "parallel" grid steps.
    B, L, d_model = 32, 64, 32
    x = jax.random.normal(kx, (B, L, d_model), dtype=jnp.float32)
    W, bsum, gamma, beta = init_params(kp, d_model)

    out = jax.block_until_ready(fourier_token_mixing(x, W, bsum, gamma, beta))

    ref = reference(x, W, bsum, gamma, beta)
    assert out.shape == (B, L, d_model)
    rel = float(jnp.linalg.norm(out - ref) / jnp.linalg.norm(ref))
    # bf16 matmul inputs with f32 accumulation -> expect ~1e-2 relative error max.
    assert rel < 3e-2, f"Pallas kernel does not match JAX reference (rel err {rel})"

    print("KERNEL_OK")
</pallas_src>

<mosaic_0001>
module attributes {stable_mosaic.version = 11 : i64} {
  func.func @_fourier_mixing_kernel(%arg0: i32, %arg1: memref<64x512xf32, #tpu.memory_space<vmem>>, %arg2: memref<64x64xbf16, #tpu.memory_space<vmem>>, %arg3: memref<64x64xbf16, #tpu.memory_space<vmem>>, %arg4: memref<1408x128xbf16, #tpu.memory_space<vmem>>, %arg5: memref<128x128xbf16, #tpu.memory_space<vmem>>, %arg6: memref<8x512xf32, #tpu.memory_space<vmem>>, %arg7: memref<64x512xf32, #tpu.memory_space<vmem>>) attributes {dimension_semantics = [#tpu.dimension_semantics<parallel>], iteration_bounds = array<i64: 2>, scalar_prefetch = 0 : i64, scratch_operands = 0 : i64, tpu.core_type = #tpu.core_type<tc>, window_params = [{transform_indices = @transform_0, window_bounds = array<i64: 64, 512>}, {pipeline_mode = #tpu.pipeline_mode<synchronous>, transform_indices = @transform_1, window_bounds = array<i64: 64, 64>}, {pipeline_mode = #tpu.pipeline_mode<synchronous>, transform_indices = @transform_2, window_bounds = array<i64: 64, 64>}, {pipeline_mode = #tpu.pipeline_mode<synchronous>, transform_indices = @transform_3, window_bounds = array<i64: 1408, 128>}, {pipeline_mode = #tpu.pipeline_mode<synchronous>, transform_indices = @transform_4, window_bounds = array<i64: 128, 128>}, {pipeline_mode = #tpu.pipeline_mode<synchronous>, transform_indices = @transform_5, window_bounds = array<i64: 8, 512>}, {transform_indices = @transform_6, window_bounds = array<i64: 64, 512>}]} {
    %c0 = arith.constant 0 : index
    %c0_0 = arith.constant 0 : index
    %0 = vector.load %arg5[%c0, %c0_0] : memref<128x128xbf16, #tpu.memory_space<vmem>>, vector<128x128xbf16>
    %c0_1 = arith.constant 0 : index
    %c0_2 = arith.constant 0 : index
    %1 = vector.load %arg1[%c0_1, %c0_2] : memref<64x512xf32, #tpu.memory_space<vmem>>, vector<64x128xf32>
    %2 = arith.truncf %1 : vector<64x128xf32> to vector<64x128xbf16>
    %3 = arith.extf %2 : vector<64x128xbf16> to vector<64x128xf32>
    %4 = arith.subf %1, %3 : vector<64x128xf32>
    %5 = arith.truncf %4 : vector<64x128xf32> to vector<64x128xbf16>
    %cst = arith.constant dense<0.000000e+00> : vector<64x128xf32>
    %6 = tpu.matmul %2, %0, %cst {dimension_numbers = #tpu.dot_dimension_numbers<[1], [0], [0], [1], [0, 0, 1, 1], [], []>} : vector<64x128xbf16>, vector<128x128xbf16>, vector<64x128xf32> -> vector<64x128xf32>
    %cst_3 = arith.constant dense<0.000000e+00> : vector<64x128xf32>
    %7 = tpu.matmul %5, %0, %cst_3 {dimension_numbers = #tpu.dot_dimension_numbers<[1], [0], [0], [1], [0, 0, 1, 1], [], []>} : vector<64x128xbf16>, vector<128x128xbf16>, vector<64x128xf32> -> vector<64x128xf32>
    %8 = arith.addf %6, %7 : vector<64x128xf32>
    %cst_4 = arith.constant 3.125000e-02 : f32
    %9 = vector.broadcast %cst_4 : f32 to vector<64x128xf32>
    %10 = arith.mulf %8, %9 : vector<64x128xf32>
    %11 = arith.subf %1, %10 : vector<64x128xf32>
    %12 = arith.mulf %11, %11 : vector<64x128xf32>
    %13 = arith.truncf %12 : vector<64x128xf32> to vector<64x128xbf16>
    %14 = arith.extf %13 : vector<64x128xbf16> to vector<64x128xf32>
    %15 = arith.subf %12, %14 : vector<64x128xf32>
    %16 = arith.truncf %15 : vector<64x128xf32> to vector<64x128xbf16>
    %cst_5 = arith.constant dense<0.000000e+00> : vector<64x128xf32>
    %17 = tpu.matmul %13, %0, %cst_5 {dimension_numbers = #tpu.dot_dimension_numbers<[1], [0], [0], [1], [0, 0, 1, 1], [], []>} : vector<64x128xbf16>, vector<128x128xbf16>, vector<64x128xf32> -> vector<64x128xf32>
    %cst_6 = arith.constant dense<0.000000e+00> : vector<64x128xf32>
    %18 = tpu.matmul %16, %0, %cst_6 {dimension_numbers = #tpu.dot_dimension_numbers<[1], [0], [0], [1], [0, 0, 1, 1], [], []>} : vector<64x128xbf16>, vector<128x128xbf16>, vector<64x128xf32> -> vector<64x128xf32>
    %19 = arith.addf %17, %18 : vector<64x128xf32>
    %cst_7 = arith.constant 3.125000e-02 : f32
    %20 = vector.broadcast %cst_7 : f32 to vector<64x128xf32>
    %21 = arith.mulf %19, %20 : vector<64x128xf32>
    %cst_8 = arith.constant 9.99999974E-6 : f32
    %22 = vector.broadcast %cst_8 : f32 to vector<64x128xf32>
    %23 = arith.addf %21, %22 : vector<64x128xf32>
    %24 = math.rsqrt %23 : vector<64x128xf32>
    %25 = arith.mulf %11, %24 : vector<64x128xf32>
    %c0_9 = arith.constant 0 : index
    %c0_10 = arith.constant 0 : index
    %26 = vector.load %arg6[%c0_9, %c0_10] : memref<8x512xf32, #tpu.memory_space<vmem>>, vector<1x128xf32>
    %27 = vector.broadcast %26 : vector<1x128xf32> to vector<64x128xf32>
    %28 = arith.mulf %25, %27 : vector<64x128xf32>
    %c1 = arith.constant 1 : index
    %c0_11 = arith.constant 0 : index
    %29 = vector.load %arg6[%c1, %c0_11] : memref<8x512xf32, #tpu.memory_space<vmem>>, vector<1x128xf32>
    %30 = vector.broadcast %29 : vector<1x128xf32> to vector<64x128xf32>
    %31 = arith.addf %28, %30 : vector<64x128xf32>
    %32 = arith.truncf %31 : vector<64x128xf32> to vector<64x128xbf16>
    %c0_12 = arith.constant 0 : index
    %c128 = arith.constant 128 : index
    %33 = vector.load %arg1[%c0_12, %c128] : memref<64x512xf32, #tpu.memory_space<vmem>>, vector<64x128xf32>
    %34 = arith.truncf %33 : vector<64x128xf32> to vector<64x128xbf16>
    %35 = arith.extf %34 : vector<64x128xbf16> to vector<64x128xf32>
    %36 = arith.subf %33, %35 : vector<64x128xf32>
    %37 = arith.truncf %36 : vector<64x128xf32> to vector<64x128xbf16>
    %cst_13 = arith.constant dense<0.000000e+00> : vector<64x128xf32>
    %38 = tpu.matmul %34, %0, %cst_13 {dimension_numbers = #tpu.dot_dimension_numbers<[1], [0], [0], [1], [0, 0, 1, 1], [], []>} : vector<64x128xbf16>, vector<128x128xbf16>, vector<64x128xf32> -> vector<64x128xf32>
    %cst_14 = arith.constant dense<0.000000e+00> : vector<64x128xf32>
    %39 = tpu.matmul %37, %0, %cst_14 {dimension_numbers = #tpu.dot_dimension_numbers<[1], [0], [0], [1], [0, 0, 1, 1], [], []>} : vector<64x128xbf16>, vector<128x128xbf16>, vector<64x128xf32> -> vector<64x128xf32>
    %40 = arith.addf %38, %39 : vector<64x128xf32>
    %cst_15 = arith.constant 3.125000e-02 : f32
    %41 = vector.broadcast %cst_15 : f32 to vector<64x128xf32>
    %42 = arith.mulf %40, %41 : vector<64x128xf32>
    %43 = arith.subf %33, %42 : vector<64x128xf32>
    %44 = arith.mulf %43, %43 : vector<64x128xf32>
    %45 = arith.truncf %44 : vector<64x128xf32> to vector<64x128xbf16>
    %46 = arith.extf %45 : vector<64x128xbf16> to vector<64x128xf32>
    %47 = arith.subf %44, %46 : vector<64x128xf32>
    %48 = arith.truncf %47 : vector<64x128xf32> to vector<64x128xbf16>
    %cst_16 = arith.constant dense<0.000000e+00> : vector<64x128xf32>
    %49 = tpu.matmul %45, %0, %cst_16 {dimension_numbers = #tpu.dot_dimension_numbers<[1], [0], [0], [1], [0, 0, 1, 1], [], []>} : vector<64x128xbf16>, vector<128x128xbf16>, vector<64x128xf32> -> vector<64x128xf32>
    %cst_17 = arith.constant dense<0.000000e+00> : vector<64x128xf32>
    %50 = tpu.matmul %48, %0, %cst_17 {dimension_numbers = #tpu.dot_dimension_numbers<[1], [0], [0], [1], [0, 0, 1, 1], [], []>} : vector<64x128xbf16>, vector<128x128xbf16>, vector<64x128xf32> -> vector<64x128xf32>
    %51 = arith.addf %49, %50 : vector<64x128xf32>
    %cst_18 = arith.constant 3.125000e-02 : f32
    %52 = vector.broadcast %cst_18 : f32 to vector<64x128xf32>
    %53 = arith.mulf %51, %52 : vector<64x128xf32>
    %cst_19 = arith.constant 9.99999974E-6 : f32
    %54 = vector.broadcast %cst_19 : f32 to vector<64x128xf32>
    %55 = arith.addf %53, %54 : vector<64x128xf32>
    %56 = math.rsqrt %55 : vector<64x128xf32>
    %57 = arith.mulf %43, %56 : vector<64x128xf32>
    %c0_20 = arith.constant 0 : index
    %c128_21 = arith.constant 128 : index
    %58 = vector.load %arg6[%c0_20, %c128_21] : memref<8x512xf32, #tpu.memory_space<vmem>>, vector<1x128xf32>
    %59 = vector.broadcast %58 : vector<1x128xf32> to vector<64x128xf32>
    %60 = arith.mulf %57, %59 : vector<64x128xf32>
    %c1_22 = arith.constant 1 : index
    %c128_23 = arith.constant 128 : index
    %61 = vector.load %arg6[%c1_22, %c128_23] : memref<8x512xf32, #tpu.memory_space<vmem>>, vector<1x128xf32>
    %62 = vector.broadcast %61 : vector<1x128xf32> to vector<64x128xf32>
    %63 = arith.addf %60, %62 : vector<64x128xf32>
    %64 = arith.truncf %63 : vector<64x128xf32> to vector<64x128xbf16>
    %c0_24 = arith.constant 0 : index
    %c256 = arith.constant 256 : index
    %65 = vector.load %arg1[%c0_24, %c256] : memref<64x512xf32, #tpu.memory_space<vmem>>, vector<64x128xf32>
    %66 = arith.truncf %65 : vector<64x128xf32> to vector<64x128xbf16>
    %67 = arith.extf %66 : vector<64x128xbf16> to vector<64x128xf32>
    %68 = arith.subf %65, %67 : vector<64x128xf32>
    %69 = arith.truncf %68 : vector<64x128xf32> to vector<64x128xbf16>
    %cst_25 = arith.constant dense<0.000000e+00> : vector<64x128xf32>
    %70 = tpu.matmul %66, %0, %cst_25 {dimension_numbers = #tpu.dot_dimension_numbers<[1], [0], [0], [1], [0, 0, 1, 1], [], []>} : vector<64x128xbf16>, vector<128x128xbf16>, vector<64x128xf32> -> vector<64x128xf32>
    %cst_26 = arith.constant dense<0.000000e+00> : vector<64x128xf32>
    %71 = tpu.matmul %69, %0, %cst_26 {dimension_numbers = #tpu.dot_dimension_numbers<[1], [0], [0], [1], [0, 0, 1, 1], [], []>} : vector<64x128xbf16>, vector<128x128xbf16>, vector<64x128xf32> -> vector<64x128xf32>
    %72 = arith.addf %70, %71 : vector<64x128xf32>
    %cst_27 = arith.constant 3.125000e-02 : f32
    %73 = vector.broadcast %cst_27 : f32 to vector<64x128xf32>
    %74 = arith.mulf %72, %73 : vector<64x128xf32>
    %75 = arith.subf %65, %74 : vector<64x128xf32>
    %76 = arith.mulf %75, %75 : vector<64x128xf32>
    %77 = arith.truncf %76 : vector<64x128xf32> to vector<64x128xbf16>
    %78 = arith.extf %77 : vector<64x128xbf16> to vector<64x128xf32>
    %79 = arith.subf %76, %78 : vector<64x128xf32>
    %80 = arith.truncf %79 : vector<64x128xf32> to vector<64x128xbf16>
    %cst_28 = arith.constant dense<0.000000e+00> : vector<64x128xf32>
    %81 = tpu.matmul %77, %0, %cst_28 {dimension_numbers = #tpu.dot_dimension_numbers<[1], [0], [0], [1], [0, 0, 1, 1], [], []>} : vector<64x128xbf16>, vector<128x128xbf16>, vector<64x128xf32> -> vector<64x128xf32>
    %cst_29 = arith.constant dense<0.000000e+00> : vector<64x128xf32>
    %82 = tpu.matmul %80, %0, %cst_29 {dimension_numbers = #tpu.dot_dimension_numbers<[1], [0], [0], [1], [0, 0, 1, 1], [], []>} : vector<64x128xbf16>, vector<128x128xbf16>, vector<64x128xf32> -> vector<64x128xf32>
    %83 = arith.addf %81, %82 : vector<64x128xf32>
    %cst_30 = arith.constant 3.125000e-02 : f32
    %84 = vector.broadcast %cst_30 : f32 to vector<64x128xf32>
    %85 = arith.mulf %83, %84 : vector<64x128xf32>
    %cst_31 = arith.constant 9.99999974E-6 : f32
    %86 = vector.broadcast %cst_31 : f32 to vector<64x128xf32>
    %87 = arith.addf %85, %86 : vector<64x128xf32>
    %88 = math.rsqrt %87 : vector<64x128xf32>
    %89 = arith.mulf %75, %88 : vector<64x128xf32>
    %c0_32 = arith.constant 0 : index
    %c256_33 = arith.constant 256 : index
    %90 = vector.load %arg6[%c0_32, %c256_33] : memref<8x512xf32, #tpu.memory_space<vmem>>, vector<1x128xf32>
    %91 = vector.broadcast %90 : vector<1x128xf32> to vector<64x128xf32>
    %92 = arith.mulf %89, %91 : vector<64x128xf32>
    %c1_34 = arith.constant 1 : index
    %c256_35 = arith.constant 256 : index
    %93 = vector.load %arg6[%c1_34, %c256_35] : memref<8x512xf32, #tpu.memory_space<vmem>>, vector<1x128xf32>
    %94 = vector.broadcast %93 : vector<1x128xf32> to vector<64x128xf32>
    %95 = arith.addf %92, %94 : vector<64x128xf32>
    %96 = arith.truncf %95 : vector<64x128xf32> to vector<64x128xbf16>
    %c0_36 = arith.constant 0 : index
    %c384 = arith.constant 384 : index
    %97 = vector.load %arg1[%c0_36, %c384] : memref<64x512xf32, #tpu.memory_space<vmem>>, vector<64x128xf32>
    %98 = arith.truncf %97 : vector<64x128xf32> to vector<64x128xbf16>
    %99 = arith.extf %98 : vector<64x128xbf16> to vector<64x128xf32>
    %100 = arith.subf %97, %99 : vector<64x128xf32>
    %101 = arith.truncf %100 : vector<64x128xf32> to vector<64x128xbf16>
    %cst_37 = arith.constant dense<0.000000e+00> : vector<64x128xf32>
    %102 = tpu.matmul %98, %0, %cst_37 {dimension_numbers = #tpu.dot_dimension_numbers<[1], [0], [0], [1], [0, 0, 1, 1], [], []>} : vector<64x128xbf16>, vector<128x128xbf16>, vector<64x128xf32> -> vector<64x128xf32>
    %cst_38 = arith.constant dense<0.000000e+00> : vector<64x128xf32>
    %103 = tpu.matmul %101, %0, %cst_38 {dimension_numbers = #tpu.dot_dimension_numbers<[1], [0], [0], [1], [0, 0, 1, 1], [], []>} : vector<64x128xbf16>, vector<128x128xbf16>, vector<64x128xf32> -> vector<64x128xf32>
    %104 = arith.addf %102, %103 : vector<64x128xf32>
    %cst_39 = arith.constant 3.125000e-02 : f32
    %105 = vector.broadcast %cst_39 : f32 to vector<64x128xf32>
    %106 = arith.mulf %104, %105 : vector<64x128xf32>
    %107 = arith.subf %97, %106 : vector<64x128xf32>
    %108 = arith.mulf %107, %107 : vector<64x128xf32>
    %109 = arith.truncf %108 : vector<64x128xf32> to vector<64x128xbf16>
    %110 = arith.extf %109 : vector<64x128xbf16> to vector<64x128xf32>
    %111 = arith.subf %108, %110 : vector<64x128xf32>
    %112 = arith.truncf %111 : vector<64x128xf32> to vector<64x128xbf16>
    %cst_40 = arith.constant dense<0.000000e+00> : vector<64x128xf32>
    %113 = tpu.matmul %109, %0, %cst_40 {dimension_numbers = #tpu.dot_dimension_numbers<[1], [0], [0], [1], [0, 0, 1, 1], [], []>} : vector<64x128xbf16>, vector<128x128xbf16>, vector<64x128xf32> -> vector<64x128xf32>
    %cst_41 = arith.constant dense<0.000000e+00> : vector<64x128xf32>
    %114 = tpu.matmul %112, %0, %cst_41 {dimension_numbers = #tpu.dot_dimension_numbers<[1], [0], [0], [1], [0, 0, 1, 1], [], []>} : vector<64x128xbf16>, vector<128x128xbf16>, vector<64x128xf32> -> vector<64x128xf32>
    %115 = arith.addf %113, %114 : vector<64x128xf32>
    %cst_42 = arith.constant 3.125000e-02 : f32
    %116 = vector.broadcast %cst_42 : f32 to vector<64x128xf32>
    %117 = arith.mulf %115, %116 : vector<64x128xf32>
    %cst_43 = arith.constant 9.99999974E-6 : f32
    %118 = vector.broadcast %cst_43 : f32 to vector<64x128xf32>
    %119 = arith.addf %117, %118 : vector<64x128xf32>
    %120 = math.rsqrt %119 : vector<64x128xf32>
    %121 = arith.mulf %107, %120 : vector<64x128xf32>
    %c0_44 = arith.constant 0 : index
    %c384_45 = arith.constant 384 : index
    %122 = vector.load %arg6[%c0_44, %c384_45] : memref<8x512xf32, #tpu.memory_space<vmem>>, vector<1x128xf32>
    %123 = vector.broadcast %122 : vector<1x128xf32> to vector<64x128xf32>
    %124 = arith.mulf %121, %123 : vector<64x128xf32>
    %c1_46 = arith.constant 1 : index
    %c384_47 = arith.constant 384 : index
    %125 = vector.load %arg6[%c1_46, %c384_47] : memref<8x512xf32, #tpu.memory_space<vmem>>, vector<1x128xf32>
    %126 = vector.broadcast %125 : vector<1x128xf32> to vector<64x128xf32>
    %127 = arith.addf %124, %126 : vector<64x128xf32>
    %128 = arith.truncf %127 : vector<64x128xf32> to vector<64x128xbf16>
    %129 = tpu.concatenate %32, %64, %96, %128 in 1 : vector<64x128xbf16>, vector<64x128xbf16>, vector<64x128xbf16>, vector<64x128xbf16> -> vector<64x512xbf16>
    %c0_48 = arith.constant 0 : index
    %c0_49 = arith.constant 0 : index
    %130 = vector.load %arg2[%c0_48, %c0_49] : memref<64x64xbf16, #tpu.memory_space<vmem>>, vector<64x64xbf16>
    %cst_50 = arith.constant dense<0.000000e+00> : vector<64x512xf32>
    %131 = tpu.matmul %130, %129, %cst_50 {dimension_numbers = #tpu.dot_dimension_numbers<[1], [0], [0], [1], [0, 0, 1, 1], [], []>} : vector<64x64xbf16>, vector<64x512xbf16>, vector<64x512xf32> -> vector<64x512xf32>
    %132 = tpu.iota {dimensions = array<i32: 0>} : vector<64x512xi32>
    %cst_51 = arith.constant 0.000000e+00 : f32
    %133 = vector.broadcast %cst_51 : f32 to vector<64x128xf32>
    %c2 = arith.constant 2 : index
    %c0_52 = arith.constant 0 : index
    %134 = vector.load %arg6[%c2, %c0_52] : memref<8x512xf32, #tpu.memory_space<vmem>>, vector<1x128xf32>
    %135 = vector.broadcast %134 : vector<1x128xf32> to vector<64x128xf32>
    %136 = arith.addf %133, %135 : vector<64x128xf32>
    %cst_53 = arith.constant 0.000000e+00 : f32
    %137 = vector.broadcast %cst_53 : f32 to vector<64x128xf32>
    %c2_54 = arith.constant 2 : index
    %c128_55 = arith.constant 128 : index
    %138 = vector.load %arg6[%c2_54, %c128_55] : memref<8x512xf32, #tpu.memory_space<vmem>>, vector<1x128xf32>
    %139 = vector.broadcast %138 : vector<1x128xf32> to vector<64x128xf32>
    %140 = arith.addf %137, %139 : vector<64x128xf32>
    %cst_56 = arith.constant 0.000000e+00 : f32
    %141 = vector.broadcast %cst_56 : f32 to vector<64x128xf32>
    %c2_57 = arith.constant 2 : index
    %c256_58 = arith.constant 256 : index
    %142 = vector.load %arg6[%c2_57, %c256_58] : memref<8x512xf32, #tpu.memory_space<vmem>>, vector<1x128xf32>
    %143 = vector.broadcast %142 : vector<1x128xf32> to vector<64x128xf32>
    %144 = arith.addf %141, %143 : vector<64x128xf32>
    %cst_59 = arith.constant 0.000000e+00 : f32
    %145 = vector.broadcast %cst_59 : f32 to vector<64x128xf32>
    %c2_60 = arith.constant 2 : index
    %c384_61 = arith.constant 384 : index
    %146 = vector.load %arg6[%c2_60, %c384_61] : memref<8x512xf32, #tpu.memory_space<vmem>>, vector<1x128xf32>
    %147 = vector.broadcast %146 : vector<1x128xf32> to vector<64x128xf32>
    %148 = arith.addf %145, %147 : vector<64x128xf32>
    %c5_i32 = arith.constant 5 : i32
    %149 = tpu.dynamic_rotate %131 by %c5_i32 dim 0 : vector<64x512xf32>, i32 -> vector<64x512xf32>
    %c5_i32_62 = arith.constant 5 : i32
    %150 = vector.broadcast %c5_i32_62 : i32 to vector<64x512xi32>
    %151 = arith.cmpi sge, %132, %150 : vector<64x512xi32>
    %cst_63 = arith.constant 0.000000e+00 : f32
    %152 = vector.broadcast %cst_63 : f32 to vector<64x512xf32>
    %153 = arith.select %151, %149, %152 : vector<64x512xi1>, vector<64x512xf32>
    %154 = arith.truncf %153 : vector<64x512xf32> to vector<64x512xbf16>
    %c0_64 = arith.constant 0 : index
    %c0_65 = arith.constant 0 : index
    %155 = vector.load %arg4[%c0_64, %c0_65] : memref<1408x128xbf16, #tpu.memory_space<vmem>>, vector<128x128xbf16>
    %156 = vector.extract_strided_slice %154 {offsets = [0, 0], sizes = [64, 128], strides = [1, 1]} : vector<64x512xbf16> to vector<64x128xbf16>
    %cst_66 = arith.constant dense<0.000000e+00> : vector<64x128xf32>
    %157 = tpu.matmul %156, %155, %cst_66 {dimension_numbers = #tpu.dot_dimension_numbers<[1], [0], [0], [1], [0, 0, 1, 1], [], []>} : vector<64x128xbf16>, vector<128x128xbf16>, vector<64x128xf32> -> vector<64x128xf32>
    %158 = arith.addf %136, %157 : vector<64x128xf32>
    %159 = vector.extract_strided_slice %154 {offsets = [0, 128], sizes = [64, 128], strides = [1, 1]} : vector<64x512xbf16> to vector<64x128xbf16>
    %cst_67 = arith.constant dense<0.000000e+00> : vector<64x128xf32>
    %160 = tpu.matmul %159, %155, %cst_67 {dimension_numbers = #tpu.dot_dimension_numbers<[1], [0], [0], [1], [0, 0, 1, 1], [], []>} : vector<64x128xbf16>, vector<128x128xbf16>, vector<64x128xf32> -> vector<64x128xf32>
    %161 = arith.addf %140, %160 : vector<64x128xf32>
    %162 = vector.extract_strided_slice %154 {offsets = [0, 256], sizes = [64, 128], strides = [1, 1]} : vector<64x512xbf16> to vector<64x128xbf16>
    %cst_68 = arith.constant dense<0.000000e+00> : vector<64x128xf32>
    %163 = tpu.matmul %162, %155, %cst_68 {dimension_numbers = #tpu.dot_dimension_numbers<[1], [0], [0], [1], [0, 0, 1, 1], [], []>} : vector<64x128xbf16>, vector<128x128xbf16>, vector<64x128xf32> -> vector<64x128xf32>
    %164 = arith.addf %144, %163 : vector<64x128xf32>
    %165 = vector.extract_strided_slice %154 {offsets = [0, 384], sizes = [64, 128], strides = [1, 1]} : vector<64x512xbf16> to vector<64x128xbf16>
    %cst_69 = arith.constant dense<0.000000e+00> : vector<64x128xf32>
    %166 = tpu.matmul %165, %155, %cst_69 {dimension_numbers = #tpu.dot_dimension_numbers<[1], [0], [0], [1], [0, 0, 1, 1], [], []>} : vector<64x128xbf16>, vector<128x128xbf16>, vector<64x128xf32> -> vector<64x128xf32>
    %167 = arith.addf %148, %166 : vector<64x128xf32>
    %c4_i32 = arith.constant 4 : i32
    %168 = tpu.dynamic_rotate %131 by %c4_i32 dim 0 : vector<64x512xf32>, i32 -> vector<64x512xf32>
    %c4_i32_70 = arith.constant 4 : i32
    %169 = vector.broadcast %c4_i32_70 : i32 to vector<64x512xi32>
    %170 = arith.cmpi sge, %132, %169 : vector<64x512xi32>
    %cst_71 = arith.constant 0.000000e+00 : f32
    %171 = vector.broadcast %cst_71 : f32 to vector<64x512xf32>
    %172 = arith.select %170, %168, %171 : vector<64x512xi1>, vector<64x512xf32>
    %173 = arith.truncf %172 : vector<64x512xf32> to vector<64x512xbf16>
    %c128_72 = arith.constant 128 : index
    %c0_73 = arith.constant 0 : index
    %174 = vector.load %arg4[%c128_72, %c0_73] : memref<1408x128xbf16, #tpu.memory_space<vmem>>, vector<128x128xbf16>
    %175 = vector.extract_strided_slice %173 {offsets = [0, 0], sizes = [64, 128], strides = [1, 1]} : vector<64x512xbf16> to vector<64x128xbf16>
    %cst_74 = arith.constant dense<0.000000e+00> : vector<64x128xf32>
    %176 = tpu.matmul %175, %174, %cst_74 {dimension_numbers = #tpu.dot_dimension_numbers<[1], [0], [0], [1], [0, 0, 1, 1], [], []>} : vector<64x128xbf16>, vector<128x128xbf16>, vector<64x128xf32> -> vector<64x128xf32>
    %177 = arith.addf %158, %176 : vector<64x128xf32>
    %178 = vector.extract_strided_slice %173 {offsets = [0, 128], sizes = [64, 128], strides = [1, 1]} : vector<64x512xbf16> to vector<64x128xbf16>
    %cst_75 = arith.constant dense<0.000000e+00> : vector<64x128xf32>
    %179 = tpu.matmul %178, %174, %cst_75 {dimension_numbers = #tpu.dot_dimension_numbers<[1], [0], [0], [1], [0, 0, 1, 1], [], []>} : vector<64x128xbf16>, vector<128x128xbf16>, vector<64x128xf32> -> vector<64x128xf32>
    %180 = arith.addf %161, %179 : vector<64x128xf32>
    %181 = vector.extract_strided_slice %173 {offsets = [0, 256], sizes = [64, 128], strides = [1, 1]} : vector<64x512xbf16> to vector<64x128xbf16>
    %cst_76 = arith.constant dense<0.000000e+00> : vector<64x128xf32>
    %182 = tpu.matmul %181, %174, %cst_76 {dimension_numbers = #tpu.dot_dimension_numbers<[1], [0], [0], [1], [0, 0, 1, 1], [], []>} : vector<64x128xbf16>, vector<128x128xbf16>, vector<64x128xf32> -> vector<64x128xf32>
    %183 = arith.addf %164, %182 : vector<64x128xf32>
    %184 = vector.extract_strided_slice %173 {offsets = [0, 384], sizes = [64, 128], strides = [1, 1]} : vector<64x512xbf16> to vector<64x128xbf16>
    %cst_77 = arith.constant dense<0.000000e+00> : vector<64x128xf32>
    %185 = tpu.matmul %184, %174, %cst_77 {dimension_numbers = #tpu.dot_dimension_numbers<[1], [0], [0], [1], [0, 0, 1, 1], [], []>} : vector<64x128xbf16>, vector<128x128xbf16>, vector<64x128xf32> -> vector<64x128xf32>
    %186 = arith.addf %167, %185 : vector<64x128xf32>
    %c3_i32 = arith.constant 3 : i32
    %187 = tpu.dynamic_rotate %131 by %c3_i32 dim 0 : vector<64x512xf32>, i32 -> vector<64x512xf32>
    %c3_i32_78 = arith.constant 3 : i32
    %188 = vector.broadcast %c3_i32_78 : i32 to vector<64x512xi32>
    %189 = arith.cmpi sge, %132, %188 : vector<64x512xi32>
    %cst_79 = arith.constant 0.000000e+00 : f32
    %190 = vector.broadcast %cst_79 : f32 to vector<64x512xf32>
    %191 = arith.select %189, %187, %190 : vector<64x512xi1>, vector<64x512xf32>
    %192 = arith.truncf %191 : vector<64x512xf32> to vector<64x512xbf16>
    %c256_80 = arith.constant 256 : index
    %c0_81 = arith.constant 0 : index
    %193 = vector.load %arg4[%c256_80, %c0_81] : memref<1408x128xbf16, #tpu.memory_space<vmem>>, vector<128x128xbf16>
    %194 = vector.extract_strided_slice %192 {offsets = [0, 0], sizes = [64, 128], strides = [1, 1]} : vector<64x512xbf16> to vector<64x128xbf16>
    %cst_82 = arith.constant dense<0.000000e+00> : vector<64x128xf32>
    %195 = tpu.matmul %194, %193, %cst_82 {dimension_numbers = #tpu.dot_dimension_numbers<[1], [0], [0], [1], [0, 0, 1, 1], [], []>} : vector<64x128xbf16>, vector<128x128xbf16>, vector<64x128xf32> -> vector<64x128xf32>
    %196 = arith.addf %177, %195 : vector<64x128xf32>
    %197 = vector.extract_strided_slice %192 {offsets = [0, 128], sizes = [64, 128], strides = [1, 1]} : vector<64x512xbf16> to vector<64x128xbf16>
    %cst_83 = arith.constant dense<0.000000e+00> : vector<64x128xf32>
    %198 = tpu.matmul %197, %193, %cst_83 {dimension_numbers = #tpu.dot_dimension_numbers<[1], [0], [0], [1], [0, 0, 1, 1], [], []>} : vector<64x128xbf16>, vector<128x128xbf16>, vector<64x128xf32> -> vector<64x128xf32>
    %199 = arith.addf %180, %198 : vector<64x128xf32>
    %200 = vector.extract_strided_slice %192 {offsets = [0, 256], sizes = [64, 128], strides = [1, 1]} : vector<64x512xbf16> to vector<64x128xbf16>
    %cst_84 = arith.constant dense<0.000000e+00> : vector<64x128xf32>
    %201 = tpu.matmul %200, %193, %cst_84 {dimension_numbers = #tpu.dot_dimension_numbers<[1], [0], [0], [1], [0, 0, 1, 1], [], []>} : vector<64x128xbf16>, vector<128x128xbf16>, vector<64x128xf32> -> vector<64x128xf32>
    %202 = arith.addf %183, %201 : vector<64x128xf32>
    %203 = vector.extract_strided_slice %192 {offsets = [0, 384], sizes = [64, 128], strides = [1, 1]} : vector<64x512xbf16> to vector<64x128xbf16>
    %cst_85 = arith.constant dense<0.000000e+00> : vector<64x128xf32>
    %204 = tpu.matmul %203, %193, %cst_85 {dimension_numbers = #tpu.dot_dimension_numbers<[1], [0], [0], [1], [0, 0, 1, 1], [], []>} : vector<64x128xbf16>, vector<128x128xbf16>, vector<64x128xf32> -> vector<64x128xf32>
    %205 = arith.addf %186, %204 : vector<64x128xf32>
    %c2_i32 = arith.constant 2 : i32
    %206 = tpu.dynamic_rotate %131 by %c2_i32 dim 0 : vector<64x512xf32>, i32 -> vector<64x512xf32>
    %c2_i32_86 = arith.constant 2 : i32
    %207 = vector.broadcast %c2_i32_86 : i32 to vector<64x512xi32>
    %208 = arith.cmpi sge, %132, %207 : vector<64x512xi32>
    %cst_87 = arith.constant 0.000000e+00 : f32
    %209 = vector.broadcast %cst_87 : f32 to vector<64x512xf32>
    %210 = arith.select %208, %206, %209 : vector<64x512xi1>, vector<64x512xf32>
    %211 = arith.truncf %210 : vector<64x512xf32> to vector<64x512xbf16>
    %c384_88 = arith.constant 384 : index
    %c0_89 = arith.constant 0 : index
    %212 = vector.load %arg4[%c384_88, %c0_89] : memref<1408x128xbf16, #tpu.memory_space<vmem>>, vector<128x128xbf16>
    %213 = vector.extract_strided_slice %211 {offsets = [0, 0], sizes = [64, 128], strides = [1, 1]} : vector<64x512xbf16> to vector<64x128xbf16>
    %cst_90 = arith.constant dense<0.000000e+00> : vector<64x128xf32>
    %214 = tpu.matmul %213, %212, %cst_90 {dimension_numbers = #tpu.dot_dimension_numbers<[1], [0], [0], [1], [0, 0, 1, 1], [], []>} : vector<64x128xbf16>, vector<128x128xbf16>, vector<64x128xf32> -> vector<64x128xf32>
    %215 = arith.addf %196, %214 : vector<64x128xf32>
    %216 = vector.extract_strided_slice %211 {offsets = [0, 128], sizes = [64, 128], strides = [1, 1]} : vector<64x512xbf16> to vector<64x128xbf16>
    %cst_91 = arith.constant dense<0.000000e+00> : vector<64x128xf32>
    %217 = tpu.matmul %216, %212, %cst_91 {dimension_numbers = #tpu.dot_dimension_numbers<[1], [0], [0], [1], [0, 0, 1, 1], [], []>} : vector<64x128xbf16>, vector<128x128xbf16>, vector<64x128xf32> -> vector<64x128xf32>
    %218 = arith.addf %199, %217 : vector<64x128xf32>
    %219 = vector.extract_strided_slice %211 {offsets = [0, 256], sizes = [64, 128], strides = [1, 1]} : vector<64x512xbf16> to vector<64x128xbf16>
    %cst_92 = arith.constant dense<0.000000e+00> : vector<64x128xf32>
    %220 = tpu.matmul %219, %212, %cst_92 {dimension_numbers = #tpu.dot_dimension_numbers<[1], [0], [0], [1], [0, 0, 1, 1], [], []>} : vector<64x128xbf16>, vector<128x128xbf16>, vector<64x128xf32> -> vector<64x128xf32>
    %221 = arith.addf %202, %220 : vector<64x128xf32>
    %222 = vector.extract_strided_slice %211 {offsets = [0, 384], sizes = [64, 128], strides = [1, 1]} : vector<64x512xbf16> to vector<64x128xbf16>
    %cst_93 = arith.constant dense<0.000000e+00> : vector<64x128xf32>
    %223 = tpu.matmul %222, %212, %cst_93 {dimension_numbers = #tpu.dot_dimension_numbers<[1], [0], [0], [1], [0, 0, 1, 1], [], []>} : vector<64x128xbf16>, vector<128x128xbf16>, vector<64x128xf32> -> vector<64x128xf32>
    %224 = arith.addf %205, %223 : vector<64x128xf32>
    %c1_i32 = arith.constant 1 : i32
    %225 = tpu.dynamic_rotate %131 by %c1_i32 dim 0 : vector<64x512xf32>, i32 -> vector<64x512xf32>
    %c1_i32_94 = arith.constant 1 : i32
    %226 = vector.broadcast %c1_i32_94 : i32 to vector<64x512xi32>
    %227 = arith.cmpi sge, %132, %226 : vector<64x512xi32>
    %cst_95 = arith.constant 0.000000e+00 : f32
    %228 = vector.broadcast %cst_95 : f32 to vector<64x512xf32>
    %229 = arith.select %227, %225, %228 : vector<64x512xi1>, vector<64x512xf32>
    %230 = arith.truncf %229 : vector<64x512xf32> to vector<64x512xbf16>
    %c512 = arith.constant 512 : index
    %c0_96 = arith.constant 0 : index
    %231 = vector.load %arg4[%c512, %c0_96] : memref<1408x128xbf16, #tpu.memory_space<vmem>>, vector<128x128xbf16>
    %232 = vector.extract_strided_slice %230 {offsets = [0, 0], sizes = [64, 128], strides = [1, 1]} : vector<64x512xbf16> to vector<64x128xbf16>
    %cst_97 = arith.constant dense<0.000000e+00> : vector<64x128xf32>
    %233 = tpu.matmul %232, %231, %cst_97 {dimension_numbers = #tpu.dot_dimension_numbers<[1], [0], [0], [1], [0, 0, 1, 1], [], []>} : vector<64x128xbf16>, vector<128x128xbf16>, vector<64x128xf32> -> vector<64x128xf32>
    %234 = arith.addf %215, %233 : vector<64x128xf32>
    %235 = vector.extract_strided_slice %230 {offsets = [0, 128], sizes = [64, 128], strides = [1, 1]} : vector<64x512xbf16> to vector<64x128xbf16>
    %cst_98 = arith.constant dense<0.000000e+00> : vector<64x128xf32>
    %236 = tpu.matmul %235, %231, %cst_98 {dimension_numbers = #tpu.dot_dimension_numbers<[1], [0], [0], [1], [0, 0, 1, 1], [], []>} : vector<64x128xbf16>, vector<128x128xbf16>, vector<64x128xf32> -> vector<64x128xf32>
    %237 = arith.addf %218, %236 : vector<64x128xf32>
    %238 = vector.extract_strided_slice %230 {offsets = [0, 256], sizes = [64, 128], strides = [1, 1]} : vector<64x512xbf16> to vector<64x128xbf16>
    %cst_99 = arith.constant dense<0.000000e+00> : vector<64x128xf32>
    %239 = tpu.matmul %238, %231, %cst_99 {dimension_numbers = #tpu.dot_dimension_numbers<[1], [0], [0], [1], [0, 0, 1, 1], [], []>} : vector<64x128xbf16>, vector<128x128xbf16>, vector<64x128xf32> -> vector<64x128xf32>
    %240 = arith.addf %221, %239 : vector<64x128xf32>
    %241 = vector.extract_strided_slice %230 {offsets = [0, 384], sizes = [64, 128], strides = [1, 1]} : vector<64x512xbf16> to vector<64x128xbf16>
    %cst_100 = arith.constant dense<0.000000e+00> : vector<64x128xf32>
    %242 = tpu.matmul %241, %231, %cst_100 {dimension_numbers = #tpu.dot_dimension_numbers<[1], [0], [0], [1], [0, 0, 1, 1], [], []>} : vector<64x128xbf16>, vector<128x128xbf16>, vector<64x128xf32> -> vector<64x128xf32>
    %243 = arith.addf %224, %242 : vector<64x128xf32>
    %244 = arith.truncf %131 : vector<64x512xf32> to vector<64x512xbf16>
    %c640 = arith.constant 640 : index
    %c0_101 = arith.constant 0 : index
    %245 = vector.load %arg4[%c640, %c0_101] : memref<1408x128xbf16, #tpu.memory_space<vmem>>, vector<128x128xbf16>
    %246 = vector.extract_strided_slice %244 {offsets = [0, 0], sizes = [64, 128], strides = [1, 1]} : vector<64x512xbf16> to vector<64x128xbf16>
    %cst_102 = arith.constant dense<0.000000e+00> : vector<64x128xf32>
    %247 = tpu.matmul %246, %245, %cst_102 {dimension_numbers = #tpu.dot_dimension_numbers<[1], [0], [0], [1], [0, 0, 1, 1], [], []>} : vector<64x128xbf16>, vector<128x128xbf16>, vector<64x128xf32> -> vector<64x128xf32>
    %248 = arith.addf %234, %247 : vector<64x128xf32>
    %249 = vector.extract_strided_slice %244 {offsets = [0, 128], sizes = [64, 128], strides = [1, 1]} : vector<64x512xbf16> to vector<64x128xbf16>
    %cst_103 = arith.constant dense<0.000000e+00> : vector<64x128xf32>
    %250 = tpu.matmul %249, %245, %cst_103 {dimension_numbers = #tpu.dot_dimension_numbers<[1], [0], [0], [1], [0, 0, 1, 1], [], []>} : vector<64x128xbf16>, vector<128x128xbf16>, vector<64x128xf32> -> vector<64x128xf32>
    %251 = arith.addf %237, %250 : vector<64x128xf32>
    %252 = vector.extract_strided_slice %244 {offsets = [0, 256], sizes = [64, 128], strides = [1, 1]} : vector<64x512xbf16> to vector<64x128xbf16>
    %cst_104 = arith.constant dense<0.000000e+00> : vector<64x128xf32>
    %253 = tpu.matmul %252, %245, %cst_104 {dimension_numbers = #tpu.dot_dimension_numbers<[1], [0], [0], [1], [0, 0, 1, 1], [], []>} : vector<64x128xbf16>, vector<128x128xbf16>, vector<64x128xf32> -> vector<64x128xf32>
    %254 = arith.addf %240, %253 : vector<64x128xf32>
    %255 = vector.extract_strided_slice %244 {offsets = [0, 384], sizes = [64, 128], strides = [1, 1]} : vector<64x512xbf16> to vector<64x128xbf16>
    %cst_105 = arith.constant dense<0.000000e+00> : vector<64x128xf32>
    %256 = tpu.matmul %255, %245, %cst_105 {dimension_numbers = #tpu.dot_dimension_numbers<[1], [0], [0], [1], [0, 0, 1, 1], [], []>} : vector<64x128xbf16>, vector<128x128xbf16>, vector<64x128xf32> -> vector<64x128xf32>
    %257 = arith.addf %243, %256 : vector<64x128xf32>
    %c63_i32 = arith.constant 63 : i32
    %258 = tpu.dynamic_rotate %131 by %c63_i32 dim 0 : vector<64x512xf32>, i32 -> vector<64x512xf32>
    %c63_i32_106 = arith.constant 63 : i32
    %259 = vector.broadcast %c63_i32_106 : i32 to vector<64x512xi32>
    %260 = arith.cmpi slt, %132, %259 : vector<64x512xi32>
    %cst_107 = arith.constant 0.000000e+00 : f32
    %261 = vector.broadcast %cst_107 : f32 to vector<64x512xf32>
    %262 = arith.select %260, %258, %261 : vector<64x512xi1>, vector<64x512xf32>
    %263 = arith.truncf %262 : vector<64x512xf32> to vector<64x512xbf16>
    %c768 = arith.constant 768 : index
    %c0_108 = arith.constant 0 : index
    %264 = vector.load %arg4[%c768, %c0_108] : memref<1408x128xbf16, #tpu.memory_space<vmem>>, vector<128x128xbf16>
    %265 = vector.extract_strided_slice %263 {offsets = [0, 0], sizes = [64, 128], strides = [1, 1]} : vector<64x512xbf16> to vector<64x128xbf16>
    %cst_109 = arith.constant dense<0.000000e+00> : vector<64x128xf32>
    %266 = tpu.matmul %265, %264, %cst_109 {dimension_numbers = #tpu.dot_dimension_numbers<[1], [0], [0], [1], [0, 0, 1, 1], [], []>} : vector<64x128xbf16>, vector<128x128xbf16>, vector<64x128xf32> -> vector<64x128xf32>
    %267 = arith.addf %248, %266 : vector<64x128xf32>
    %268 = vector.extract_strided_slice %263 {offsets = [0, 128], sizes = [64, 128], strides = [1, 1]} : vector<64x512xbf16> to vector<64x128xbf16>
    %cst_110 = arith.constant dense<0.000000e+00> : vector<64x128xf32>
    %269 = tpu.matmul %268, %264, %cst_110 {dimension_numbers = #tpu.dot_dimension_numbers<[1], [0], [0], [1], [0, 0, 1, 1], [], []>} : vector<64x128xbf16>, vector<128x128xbf16>, vector<64x128xf32> -> vector<64x128xf32>
    %270 = arith.addf %251, %269 : vector<64x128xf32>
    %271 = vector.extract_strided_slice %263 {offsets = [0, 256], sizes = [64, 128], strides = [1, 1]} : vector<64x512xbf16> to vector<64x128xbf16>
    %cst_111 = arith.constant dense<0.000000e+00> : vector<64x128xf32>
    %272 = tpu.matmul %271, %264, %cst_111 {dimension_numbers = #tpu.dot_dimension_numbers<[1], [0], [0], [1], [0, 0, 1, 1], [], []>} : vector<64x128xbf16>, vector<128x128xbf16>, vector<64x128xf32> -> vector<64x128xf32>
    %273 = arith.addf %254, %272 : vector<64x128xf32>
    %274 = vector.extract_strided_slice %263 {offsets = [0, 384], sizes = [64, 128], strides = [1, 1]} : vector<64x512xbf16> to vector<64x128xbf16>
    %cst_112 = arith.constant dense<0.000000e+00> : vector<64x128xf32>
    %275 = tpu.matmul %274, %264, %cst_112 {dimension_numbers = #tpu.dot_dimension_numbers<[1], [0], [0], [1], [0, 0, 1, 1], [], []>} : vector<64x128xbf16>, vector<128x128xbf16>, vector<64x128xf32> -> vector<64x128xf32>
    %276 = arith.addf %257, %275 : vector<64x128xf32>
    %c62_i32 = arith.constant 62 : i32
    %277 = tpu.dynamic_rotate %131 by %c62_i32 dim 0 : vector<64x512xf32>, i32 -> vector<64x512xf32>
    %c62_i32_113 = arith.constant 62 : i32
    %278 = vector.broadcast %c62_i32_113 : i32 to vector<64x512xi32>
    %279 = arith.cmpi slt, %132, %278 : vector<64x512xi32>
    %cst_114 = arith.constant 0.000000e+00 : f32
    %280 = vector.broadcast %cst_114 : f32 to vector<64x512xf32>
    %281 = arith.select %279, %277, %280 : vector<64x512xi1>, vector<64x512xf32>
    %282 = arith.truncf %281 : vector<64x512xf32> to vector<64x512xbf16>
    %c896 = arith.constant 896 : index
    %c0_115 = arith.constant 0 : index
    %283 = vector.load %arg4[%c896, %c0_115] : memref<1408x128xbf16, #tpu.memory_space<vmem>>, vector<128x128xbf16>
    %284 = vector.extract_strided_slice %282 {offsets = [0, 0], sizes = [64, 128], strides = [1, 1]} : vector<64x512xbf16> to vector<64x128xbf16>
    %cst_116 = arith.constant dense<0.000000e+00> : vector<64x128xf32>
    %285 = tpu.matmul %284, %283, %cst_116 {dimension_numbers = #tpu.dot_dimension_numbers<[1], [0], [0], [1], [0, 0, 1, 1], [], []>} : vector<64x128xbf16>, vector<128x128xbf16>, vector<64x128xf32> -> vector<64x128xf32>
    %286 = arith.addf %267, %285 : vector<64x128xf32>
    %287 = vector.extract_strided_slice %282 {offsets = [0, 128], sizes = [64, 128], strides = [1, 1]} : vector<64x512xbf16> to vector<64x128xbf16>
    %cst_117 = arith.constant dense<0.000000e+00> : vector<64x128xf32>
    %288 = tpu.matmul %287, %283, %cst_117 {dimension_numbers = #tpu.dot_dimension_numbers<[1], [0], [0], [1], [0, 0, 1, 1], [], []>} : vector<64x128xbf16>, vector<128x128xbf16>, vector<64x128xf32> -> vector<64x128xf32>
    %289 = arith.addf %270, %288 : vector<64x128xf32>
    %290 = vector.extract_strided_slice %282 {offsets = [0, 256], sizes = [64, 128], strides = [1, 1]} : vector<64x512xbf16> to vector<64x128xbf16>
    %cst_118 = arith.constant dense<0.000000e+00> : vector<64x128xf32>
    %291 = tpu.matmul %290, %283, %cst_118 {dimension_numbers = #tpu.dot_dimension_numbers<[1], [0], [0], [1], [0, 0, 1, 1], [], []>} : vector<64x128xbf16>, vector<128x128xbf16>, vector<64x128xf32> -> vector<64x128xf32>
    %292 = arith.addf %273, %291 : vector<64x128xf32>
    %293 = vector.extract_strided_slice %282 {offsets = [0, 384], sizes = [64, 128], strides = [1, 1]} : vector<64x512xbf16> to vector<64x128xbf16>
    %cst_119 = arith.constant dense<0.000000e+00> : vector<64x128xf32>
    %294 = tpu.matmul %293, %283, %cst_119 {dimension_numbers = #tpu.dot_dimension_numbers<[1], [0], [0], [1], [0, 0, 1, 1], [], []>} : vector<64x128xbf16>, vector<128x128xbf16>, vector<64x128xf32> -> vector<64x128xf32>
    %295 = arith.addf %276, %294 : vector<64x128xf32>
    %c61_i32 = arith.constant 61 : i32
    %296 = tpu.dynamic_rotate %131 by %c61_i32 dim 0 : vector<64x512xf32>, i32 -> vector<64x512xf32>
    %c61_i32_120 = arith.constant 61 : i32
    %297 = vector.broadcast %c61_i32_120 : i32 to vector<64x512xi32>
    %298 = arith.cmpi slt, %132, %297 : vector<64x512xi32>
    %cst_121 = arith.constant 0.000000e+00 : f32
    %299 = vector.broadcast %cst_121 : f32 to vector<64x512xf32>
    %300 = arith.select %298, %296, %299 : vector<64x512xi1>, vector<64x512xf32>
    %301 = arith.truncf %300 : vector<64x512xf32> to vector<64x512xbf16>
    %c1024 = arith.constant 1024 : index
    %c0_122 = arith.constant 0 : index
    %302 = vector.load %arg4[%c1024, %c0_122] : memref<1408x128xbf16, #tpu.memory_space<vmem>>, vector<128x128xbf16>
    %303 = vector.extract_strided_slice %301 {offsets = [0, 0], sizes = [64, 128], strides = [1, 1]} : vector<64x512xbf16> to vector<64x128xbf16>
    %cst_123 = arith.constant dense<0.000000e+00> : vector<64x128xf32>
    %304 = tpu.matmul %303, %302, %cst_123 {dimension_numbers = #tpu.dot_dimension_numbers<[1], [0], [0], [1], [0, 0, 1, 1], [], []>} : vector<64x128xbf16>, vector<128x128xbf16>, vector<64x128xf32> -> vector<64x128xf32>
    %305 = arith.addf %286, %304 : vector<64x128xf32>
    %306 = vector.extract_strided_slice %301 {offsets = [0, 128], sizes = [64, 128], strides = [1, 1]} : vector<64x512xbf16> to vector<64x128xbf16>
    %cst_124 = arith.constant dense<0.000000e+00> : vector<64x128xf32>
    %307 = tpu.matmul %306, %302, %cst_124 {dimension_numbers = #tpu.dot_dimension_numbers<[1], [0], [0], [1], [0, 0, 1, 1], [], []>} : vector<64x128xbf16>, vector<128x128xbf16>, vector<64x128xf32> -> vector<64x128xf32>
    %308 = arith.addf %289, %307 : vector<64x128xf32>
    %309 = vector.extract_strided_slice %301 {offsets = [0, 256], sizes = [64, 128], strides = [1, 1]} : vector<64x512xbf16> to vector<64x128xbf16>
    %cst_125 = arith.constant dense<0.000000e+00> : vector<64x128xf32>
    %310 = tpu.matmul %309, %302, %cst_125 {dimension_numbers = #tpu.dot_dimension_numbers<[1], [0], [0], [1], [0, 0, 1, 1], [], []>} : vector<64x128xbf16>, vector<128x128xbf16>, vector<64x128xf32> -> vector<64x128xf32>
    %311 = arith.addf %292, %310 : vector<64x128xf32>
    %312 = vector.extract_strided_slice %301 {offsets = [0, 384], sizes = [64, 128], strides = [1, 1]} : vector<64x512xbf16> to vector<64x128xbf16>
    %cst_126 = arith.constant dense<0.000000e+00> : vector<64x128xf32>
    %313 = tpu.matmul %312, %302, %cst_126 {dimension_numbers = #tpu.dot_dimension_numbers<[1], [0], [0], [1], [0, 0, 1, 1], [], []>} : vector<64x128xbf16>, vector<128x128xbf16>, vector<64x128xf32> -> vector<64x128xf32>
    %314 = arith.addf %295, %313 : vector<64x128xf32>
    %c60_i32 = arith.constant 60 : i32
    %315 = tpu.dynamic_rotate %131 by %c60_i32 dim 0 : vector<64x512xf32>, i32 -> vector<64x512xf32>
    %c60_i32_127 = arith.constant 60 : i32
    %316 = vector.broadcast %c60_i32_127 : i32 to vector<64x512xi32>
    %317 = arith.cmpi slt, %132, %316 : vector<64x512xi32>
    %cst_128 = arith.constant 0.000000e+00 : f32
    %318 = vector.broadcast %cst_128 : f32 to vector<64x512xf32>
    %319 = arith.select %317, %315, %318 : vector<64x512xi1>, vector<64x512xf32>
    %320 = arith.truncf %319 : vector<64x512xf32> to vector<64x512xbf16>
    %c1152 = arith.constant 1152 : index
    %c0_129 = arith.constant 0 : index
    %321 = vector.load %arg4[%c1152, %c0_129] : memref<1408x128xbf16, #tpu.memory_space<vmem>>, vector<128x128xbf16>
    %322 = vector.extract_strided_slice %320 {offsets = [0, 0], sizes = [64, 128], strides = [1, 1]} : vector<64x512xbf16> to vector<64x128xbf16>
    %cst_130 = arith.constant dense<0.000000e+00> : vector<64x128xf32>
    %323 = tpu.matmul %322, %321, %cst_130 {dimension_numbers = #tpu.dot_dimension_numbers<[1], [0], [0], [1], [0, 0, 1, 1], [], []>} : vector<64x128xbf16>, vector<128x128xbf16>, vector<64x128xf32> -> vector<64x128xf32>
    %324 = arith.addf %305, %323 : vector<64x128xf32>
    %325 = vector.extract_strided_slice %320 {offsets = [0, 128], sizes = [64, 128], strides = [1, 1]} : vector<64x512xbf16> to vector<64x128xbf16>
    %cst_131 = arith.constant dense<0.000000e+00> : vector<64x128xf32>
    %326 = tpu.matmul %325, %321, %cst_131 {dimension_numbers = #tpu.dot_dimension_numbers<[1], [0], [0], [1], [0, 0, 1, 1], [], []>} : vector<64x128xbf16>, vector<128x128xbf16>, vector<64x128xf32> -> vector<64x128xf32>
    %327 = arith.addf %308, %326 : vector<64x128xf32>
    %328 = vector.extract_strided_slice %320 {offsets = [0, 256], sizes = [64, 128], strides = [1, 1]} : vector<64x512xbf16> to vector<64x128xbf16>
    %cst_132 = arith.constant dense<0.000000e+00> : vector<64x128xf32>
    %329 = tpu.matmul %328, %321, %cst_132 {dimension_numbers = #tpu.dot_dimension_numbers<[1], [0], [0], [1], [0, 0, 1, 1], [], []>} : vector<64x128xbf16>, vector<128x128xbf16>, vector<64x128xf32> -> vector<64x128xf32>
    %330 = arith.addf %311, %329 : vector<64x128xf32>
    %331 = vector.extract_strided_slice %320 {offsets = [0, 384], sizes = [64, 128], strides = [1, 1]} : vector<64x512xbf16> to vector<64x128xbf16>
    %cst_133 = arith.constant dense<0.000000e+00> : vector<64x128xf32>
    %332 = tpu.matmul %331, %321, %cst_133 {dimension_numbers = #tpu.dot_dimension_numbers<[1], [0], [0], [1], [0, 0, 1, 1], [], []>} : vector<64x128xbf16>, vector<128x128xbf16>, vector<64x128xf32> -> vector<64x128xf32>
    %333 = arith.addf %314, %332 : vector<64x128xf32>
    %c59_i32 = arith.constant 59 : i32
    %334 = tpu.dynamic_rotate %131 by %c59_i32 dim 0 : vector<64x512xf32>, i32 -> vector<64x512xf32>
    %c59_i32_134 = arith.constant 59 : i32
    %335 = vector.broadcast %c59_i32_134 : i32 to vector<64x512xi32>
    %336 = arith.cmpi slt, %132, %335 : vector<64x512xi32>
    %cst_135 = arith.constant 0.000000e+00 : f32
    %337 = vector.broadcast %cst_135 : f32 to vector<64x512xf32>
    %338 = arith.select %336, %334, %337 : vector<64x512xi1>, vector<64x512xf32>
    %339 = arith.truncf %338 : vector<64x512xf32> to vector<64x512xbf16>
    %c1280 = arith.constant 1280 : index
    %c0_136 = arith.constant 0 : index
    %340 = vector.load %arg4[%c1280, %c0_136] : memref<1408x128xbf16, #tpu.memory_space<vmem>>, vector<128x128xbf16>
    %341 = vector.extract_strided_slice %339 {offsets = [0, 0], sizes = [64, 128], strides = [1, 1]} : vector<64x512xbf16> to vector<64x128xbf16>
    %cst_137 = arith.constant dense<0.000000e+00> : vector<64x128xf32>
    %342 = tpu.matmul %341, %340, %cst_137 {dimension_numbers = #tpu.dot_dimension_numbers<[1], [0], [0], [1], [0, 0, 1, 1], [], []>} : vector<64x128xbf16>, vector<128x128xbf16>, vector<64x128xf32> -> vector<64x128xf32>
    %343 = arith.addf %324, %342 : vector<64x128xf32>
    %344 = vector.extract_strided_slice %339 {offsets = [0, 128], sizes = [64, 128], strides = [1, 1]} : vector<64x512xbf16> to vector<64x128xbf16>
    %cst_138 = arith.constant dense<0.000000e+00> : vector<64x128xf32>
    %345 = tpu.matmul %344, %340, %cst_138 {dimension_numbers = #tpu.dot_dimension_numbers<[1], [0], [0], [1], [0, 0, 1, 1], [], []>} : vector<64x128xbf16>, vector<128x128xbf16>, vector<64x128xf32> -> vector<64x128xf32>
    %346 = arith.addf %327, %345 : vector<64x128xf32>
    %347 = vector.extract_strided_slice %339 {offsets = [0, 256], sizes = [64, 128], strides = [1, 1]} : vector<64x512xbf16> to vector<64x128xbf16>
    %cst_139 = arith.constant dense<0.000000e+00> : vector<64x128xf32>
    %348 = tpu.matmul %347, %340, %cst_139 {dimension_numbers = #tpu.dot_dimension_numbers<[1], [0], [0], [1], [0, 0, 1, 1], [], []>} : vector<64x128xbf16>, vector<128x128xbf16>, vector<64x128xf32> -> vector<64x128xf32>
    %349 = arith.addf %330, %348 : vector<64x128xf32>
    %350 = vector.extract_strided_slice %339 {offsets = [0, 384], sizes = [64, 128], strides = [1, 1]} : vector<64x512xbf16> to vector<64x128xbf16>
    %cst_140 = arith.constant dense<0.000000e+00> : vector<64x128xf32>
    %351 = tpu.matmul %350, %340, %cst_140 {dimension_numbers = #tpu.dot_dimension_numbers<[1], [0], [0], [1], [0, 0, 1, 1], [], []>} : vector<64x128xbf16>, vector<128x128xbf16>, vector<64x128xf32> -> vector<64x128xf32>
    %352 = arith.addf %333, %351 : vector<64x128xf32>
    %353 = tpu.concatenate %343, %346, %349, %352 in 1 : vector<64x128xf32>, vector<64x128xf32>, vector<64x128xf32>, vector<64x128xf32> -> vector<64x512xf32>
    %c0_141 = arith.constant 0 : index
    %c0_142 = arith.constant 0 : index
    %354 = vector.load %arg3[%c0_141, %c0_142] : memref<64x64xbf16, #tpu.memory_space<vmem>>, vector<64x64xbf16>
    %355 = arith.truncf %353 : vector<64x512xf32> to vector<64x512xbf16>
    %cst_143 = arith.constant dense<0.000000e+00> : vector<64x512xf32>
    %356 = tpu.matmul %354, %355, %cst_143 {dimension_numbers = #tpu.dot_dimension_numbers<[1], [0], [0], [1], [0, 0, 1, 1], [], []>} : vector<64x64xbf16>, vector<64x512xbf16>, vector<64x512xf32> -> vector<64x512xf32>
    %c0_144 = arith.constant 0 : index
    %c0_145 = arith.constant 0 : index
    %357 = vector.load %arg7[%c0_144, %c0_145] : memref<64x512xf32, #tpu.memory_space<vmem>>, vector<64x512xf32>
    tpu.vector_store %arg7[%c0_144, %c0_145], %356 {strides = array<i32>} : memref<64x512xf32, #tpu.memory_space<vmem>>, vector<64x512xf32>,
    return
  }
  func.func @transform_0(%arg0: i32) -> (i32, i32) {
    %c0_i32 = arith.constant 0 : i32
    %c0_i32_0 = arith.constant 0 : i32
    return %c0_i32, %arg0 : i32, i32
  }
  func.func @transform_1(%arg0: i32) -> (i32, i32) {
    %c0_i32 = arith.constant 0 : i32
    %c0_i32_0 = arith.constant 0 : i32
    %c0_i32_1 = arith.constant 0 : i32
    return %c0_i32, %c0_i32_0 : i32, i32
  }
  func.func @transform_2(%arg0: i32) -> (i32, i32) {
    %c0_i32 = arith.constant 0 : i32
    %c0_i32_0 = arith.constant 0 : i32
    %c0_i32_1 = arith.constant 0 : i32
    return %c0_i32, %c0_i32_0 : i32, i32
  }
  func.func @transform_3(%arg0: i32) -> (i32, i32) {
    %c0_i32 = arith.constant 0 : i32
    %c0_i32_0 = arith.constant 0 : i32
    %c0_i32_1 = arith.constant 0 : i32
    return %c0_i32, %c0_i32_0 : i32, i32
  }
  func.func @transform_4(%arg0: i32) -> (i32, i32) {
    %c0_i32 = arith.constant 0 : i32
    %c0_i32_0 = arith.constant 0 : i32
    %c0_i32_1 = arith.constant 0 : i32
    return %c0_i32, %c0_i32_0 : i32, i32
  }
  func.func @transform_5(%arg0: i32) -> (i32, i32) {
    %c0_i32 = arith.constant 0 : i32
    %c0_i32_0 = arith.constant 0 : i32
    %c0_i32_1 = arith.constant 0 : i32
    return %c0_i32, %c0_i32_0 : i32, i32
  }
  func.func @transform_6(%arg0: i32) -> (i32, i32) {
    %c0_i32 = arith.constant 0 : i32
    %c0_i32_0 = arith.constant 0 : i32
    return %c0_i32, %arg0 : i32, i32
  }
}

</mosaic_0001>

<bundles_post_ra>
// kernel: tpu_custom_call.1
= control target key start
LH: loop header
LB: loop body
LE: loop exit
PB: predicated region body
PF: predicated region fallthrough
CT: control target
= control target key end

     0   :  { %s14574_s0 = inlined_call_operand.hbm [shape: f32[64,1024], index: 0, kind: input, shape index: {}]   ;;  %s14575_s1 = inlined_call_operand.hbm [shape: bf16[64,64], index: 1, kind: input, shape index: {}]   ;;  %s14576_s2 = inlined_call_operand.hbm [shape: bf16[64,64], index: 2, kind: input, shape index: {}]   ;;  %s14577_s3 = inlined_call_operand.hbm [shape: bf16[1408,128], index: 3, kind: input, shape index: {}]   ;;  %s14578_s4 = inlined_call_operand.hbm [shape: bf16[128,128], index: 4, kind: input, shape index: {}]   ;;  %s14579_s5 = inlined_call_operand.hbm [shape: f32[8,512], index: 5, kind: input, shape index: {}]   ;;  %s14580_s6 = inlined_call_operand.hbm [shape: f32[64,1024], index: 6, kind: output, shape index: {}]  }
   0x1   :  { %14881 = sst [smem:[#allocation243_spill]] %s14575_s1 }
   0x2   :  { %11 = vsyncpa [#allocation3], 0 }
   0x3   :  { %13 = vsyncpa [#allocation3 + $0x1], 0 }
   0x4   :  { %14 = vsyncpa [#allocation6], 0 }
   0x5   :  { %15 = vsyncpa [#allocation9], 0 }
   0x6   :  { %16 = vsyncpa [#allocation12], 0 }
   0x7   :  { %17 = vsyncpa [#allocation4], 0 }
   0x8   :  { %19 = vsyncpa [#allocation4 + $0x1], 0  ;;  %s10931_s21 = smov 0   ;;  %s10933_s22 = smov 0  }
   0x9   :  { %s10935_s23 = smov 0   ;;  %s10937_s24 = smov 0  }
   0xa LB: > { %s10952_s25 = sadd.s32 4294967295, %s10877_s24   ;;  %s7504_s26 = sadd.s32 4294967294, %s10877_s24   ;;  %s10877_s24 = sphi %s10937_s24, %s15654_s24   ;;  %s10873_s23 = sphi %s10935_s23, %s15653_s23   ;;  %s10869_s22 = sphi %s10933_s22, %s15652_s22   ;;  %s10865_s21 = sphi %s10931_s21, %s15651_s21  }
   0xb   : > { %p45_p0 = scmp.ne.s32.totalorder %s10869_s22, %s10865_s21  ;;  %p14581_p1 = scmp.eq.s32.totalorder %s10952_s25, 0 }
   0xc   : > { %p180_p3 = scmp.eq.s32.totalorder %s7504_s26, 1  ;;  %p7505_p5 = scmp.ge.s32.totalorder %s10877_s24, 1 }
   0xd   : > { %p10961_p4 = por %p14581_p1, %p45_p0  ;;  %p187_p7 = scmp.lt.s32.totalorder %s10877_s24, 3 }
   0xe   : > { %p10966_p6 = por %p180_p3, %p45_p0  ;;  %s10879_s30 = smov [#allocation5]  }
   0xf   : > { %s14882_s27 = scalar_select %p10961_p4, 1, 0 }
  0x10   : > { %s14883_s28 = scalar_select %p10966_p6, 1, 0 }
  0x11   : > { %p10971_p8 = pnand %p7505_p5, %p187_p7  ;;  %s199_s7 = sshll.u32 %s10879_s30, 4  ;;  %s10975_s7 = int_to_ptr.vmem [resolvable:$true] %s199_s7 }
  0x12   : > { %s10880_s9 = smov [#allocation8]   ;;  %s10881_s11 = smov [#allocation7]  }
  0x13   : > { %s14884_s29 = scalar_select %p10971_p8, 1, 0 }
  0x14   : > { %p10370_p9 = pneg %p10971_p8  ;;  %s225_s10 = sshll.u32 %s10880_s9, 4  ;;  %s10986_s10 = int_to_ptr.vmem [resolvable:$true] %s225_s10 }
  0x15   : > { %s10988_s12 = sshll.u32 %s10881_s11, 4  ;;  %s14886_s1 = sld [smem:[#allocation243_spill]]  ;;  %s213_s12 = int_to_ptr.vmem [resolvable:$true] %s10988_s12 }
  0x16   : > { %p10982_p11 = pnand %p10370_p9, %p14581_p1 }
  0x18   : > { %p10998_p13 = pneg %p10982_p11 }
  0x1b   : > { %s10629_s15 = scalar_lea.hbm %s14886_s1, 512 }
  0x1c   : > { %p10630_p12 = scmp.ne.s32.totalorder %s14886_s1, %s10629_s15  ;;  %p10636_p5 = scmp.lt.u32.totalorder %s10629_s15, %s14886_s1 }
  0x1e   : > { %p10632_p0 = pnand %p10998_p13, %p10630_p12 }
  0x20   : > { %p10633_p3 = pneg %p10632_p0 }
  0x22   : > { %p10638_p7 = pnand %p10636_p5, %p10633_p3 }
  0x24   : > { %10641 = shalt.err (!%p10638_p7)
}
  0x25   : > { %s10642_s26 = scalar_lea.vmem %s10975_s7, 512  ;;  %p10650_p2 = scmp.lt.s32.totalorder %s10975_s7, %s10975_s7 }
  0x26   : > { %p10643_p9 = scmp.ne.s32.totalorder %s10975_s7, %s10642_s26  ;;  %p10651_p6 = scmp.lt.s32.totalorder %s10642_s26, %s10642_s26 }
  0x28   : > { %p10645_p10 = pnand %p10643_p9, %p10998_p13  ;;  %p10652_p12 = por %p10651_p6, %p10650_p2 }
  0x2a   : > { %p10646_p1 = pneg %p10645_p10 }
  0x2c   : > { %p10653_p0 = pnand %p10652_p12, %p10646_p1 }
  0x2e   : > { %10656 = shalt.err (!%p10653_p0)
}
  0x2f   : > { %s10882_s30 = smov 64   ;;  %s10883_s9 = smov 4  }
  0x30   : > { %10373 = dma.hbm_to_vmem [thread:$0]  (!%p10982_p11), %s14886_s1, 512, %s10975_s7, [#allocation6], %s10882_s30, %s10882_s30, %s10883_s9  }
  0x31   : > { %s10657_s16 = scalar_lea.hbm %s14577_s3, 11264 }
  0x32   : > { %p10658_p1 = scmp.ne.s32.totalorder %s14577_s3, %s10657_s16  ;;  %p10664_p10 = scmp.lt.u32.totalorder %s10657_s16, %s14577_s3 }
  0x34   : > { %p10660_p2 = pnand %p10658_p1, %p10998_p13 }
  0x36   : > { %p10661_p6 = pneg %p10660_p2 }
  0x38   : > { %p10666_p3 = pnand %p10664_p10, %p10661_p6 }
  0x3a   : > { %10669 = shalt.err (!%p10666_p3)
}
  0x3b   : > { %s10670_s7 = scalar_lea.vmem %s10986_s10, 11264  ;;  %p10678_p12 = scmp.lt.s32.totalorder %s10986_s10, %s10986_s10 }
  0x3c   : > { %p10671_p5 = scmp.ne.s32.totalorder %s10986_s10, %s10670_s7  ;;  %p10679_p0 = scmp.lt.s32.totalorder %s10670_s7, %s10670_s7 }
  0x3e   : > { %p10673_p7 = pnand %p10671_p5, %p10998_p13  ;;  %p10680_p1 = por %p10679_p0, %p10678_p12 }
  0x40   : > { %p10674_p9 = pneg %p10673_p7 }
  0x42   : > { %p10681_p2 = pnand %p10680_p1, %p10674_p9 }
  0x44   : > { %10684 = shalt.err (!%p10681_p2)
}
  0x45   : > { %10379 = dma.hbm_to_vmem [thread:$0]  (!%p10982_p11), %s14577_s3, 11264, %s10986_s10, [#allocation9], %s10882_s30, %s10882_s30, %s10883_s9  }
  0x46   : > { %s10685_s16 = scalar_lea.hbm %s14576_s2, 512 }
  0x47   : > { %p10686_p6 = scmp.ne.s32.totalorder %s14576_s2, %s10685_s16  ;;  %p10692_p5 = scmp.lt.u32.totalorder %s10685_s16, %s14576_s2 }
  0x49   : > { %p10688_p10 = pnand %p10686_p6, %p10998_p13 }
  0x4b   : > { %p10689_p3 = pneg %p10688_p10 }
  0x4d   : > { %p10694_p7 = pnand %p10692_p5, %p10689_p3 }
  0x4f   : > { %10697 = shalt.err (!%p10694_p7)
}
  0x50   : > { %s10698_s7 = scalar_lea.vmem %s213_s12, 512  ;;  %p10706_p1 = scmp.lt.s32.totalorder %s213_s12, %s213_s12 }
  0x51   : > { %p10699_p9 = scmp.ne.s32.totalorder %s213_s12, %s10698_s7  ;;  %p10707_p2 = scmp.lt.s32.totalorder %s10698_s7, %s10698_s7 }
  0x53   : > { %p10701_p12 = pnand %p10699_p9, %p10998_p13  ;;  %p10708_p4 = por %p10707_p2, %p10706_p1 }
  0x55   : > { %p10702_p0 = pneg %p10701_p12 }
  0x57   : > { %p10709_p8 = pnand %p10708_p4, %p10702_p0 }
  0x59   : > { %10712 = shalt.err (!%p10709_p8)
}
  0x5a   : > { %10376 = dma.hbm_to_vmem [thread:$0]  (!%p10982_p11), %s14576_s2, 512, %s213_s12, [#allocation6], %s10882_s30, %s10882_s30, %s10883_s9  }
  0x5b   : > { %s10884_s13 = smov [#allocation10]   ;;  %s10885_s15 = smov [#allocation11]  }
  0x5c   : > { %s238_s14 = sshll.u32 %s10884_s13, 4  ;;  %s252_s16 = sshll.u32 %s10885_s15, 4  ;;  %s239_s14 = int_to_ptr.vmem [resolvable:$true] %s238_s14  ;;  %s253_s16 = int_to_ptr.vmem [resolvable:$true] %s252_s16 }
  0x5d   : > { %s10713_s20 = scalar_lea.hbm %s14578_s4, 1024 }
  0x5e   : > { %p10714_p4 = scmp.ne.s32.totalorder %s14578_s4, %s10713_s20  ;;  %p10720_p10 = scmp.lt.u32.totalorder %s10713_s20, %s14578_s4 }
  0x60   : > { %p10716_p8 = pnand %p10714_p4, %p10998_p13 }
  0x62   : > { %p10717_p6 = pneg %p10716_p8 }
  0x64   : > { %p10722_p3 = pnand %p10720_p10, %p10717_p6 }
  0x66   : > { %10725 = shalt.err (!%p10722_p3)
}
  0x67   : > { %s10726_s12 = scalar_lea.vmem %s239_s14, 1024  ;;  %p10734_p12 = scmp.lt.s32.totalorder %s239_s14, %s239_s14 }
  0x68   : > { %p10727_p5 = scmp.ne.s32.totalorder %s239_s14, %s10726_s12  ;;  %p10735_p0 = scmp.lt.s32.totalorder %s10726_s12, %s10726_s12 }
  0x6a   : > { %p10729_p7 = pnand %p10727_p5, %p10998_p13  ;;  %p10736_p1 = por %p10735_p0, %p10734_p12 }
  0x6c   : > { %p10730_p9 = pneg %p10729_p7 }
  0x6e   : > { %p10737_p2 = pnand %p10736_p1, %p10730_p9 }
  0x70   : > { %10740 = shalt.err (!%p10737_p2)
}
  0x71   : > { %10382 = dma.hbm_to_vmem [thread:$0]  (!%p10982_p11), %s14578_s4, 1024, %s239_s14, [#allocation9], %s10882_s30, %s10882_s30, %s10883_s9  }
  0x72   : > { %s10741_s17 = scalar_lea.hbm %s14579_s5, 512 }
  0x73   : > { %p10742_p4 = scmp.ne.s32.totalorder %s14579_s5, %s10741_s17  ;;  %p10748_p10 = scmp.lt.u32.totalorder %s10741_s17, %s14579_s5 }
  0x75   : > { %p10744_p8 = pnand %p10742_p4, %p10998_p13 }
  0x77   : > { %p10745_p6 = pneg %p10744_p8 }
  0x79   : > { %p10750_p3 = pnand %p10748_p10, %p10745_p6 }
  0x7b   : > { %10753 = shalt.err (!%p10750_p3)
}
  0x7c   : > { %s10754_s10 = scalar_lea.vmem %s253_s16, 512  ;;  %p10762_p12 = scmp.lt.s32.totalorder %s253_s16, %s253_s16 }
  0x7d   : > { %p10755_p5 = scmp.ne.s32.totalorder %s253_s16, %s10754_s10  ;;  %p10763_p0 = scmp.lt.s32.totalorder %s10754_s10, %s10754_s10 }
  0x7f   : > { %p10757_p7 = pnand %p10755_p5, %p10998_p13  ;;  %p10764_p1 = por %p10763_p0, %p10762_p12 }
  0x81   : > { %p10758_p9 = pneg %p10757_p7 }
  0x83   : > { %p10765_p2 = pnand %p10764_p1, %p10758_p9 }
  0x85   : > { %10768 = shalt.err (!%p10765_p2)
}
  0x86   : > { %10385 = dma.hbm_to_vmem [thread:$0]  (!%p10982_p11), %s14579_s5, 512, %s253_s16, [#allocation12]  }
  0x87   : > { %s11110_s18 = sadd.s32 1, %s10877_s24   ;;  %s32_s8 = sadd.s32 1, %s10873_s23 }
  0x88   : > { %s29_s14 = ssub.s32 %s10877_s24, %s11110_s18  ;;  %p39_p4 = scmp.ne.s32.totalorder %s10873_s23, %s10869_s22 }
  0x89   : > { %p30_p13 = scmp.eq.s32.totalorder %s29_s14, 0  ;;  %p40_p8 = scmp.eq.s32.totalorder %s10877_s24, 0 }
  0x8a   : > { %p10399_p6 = scmp.lt.s32.totalorder %s10877_s24, 2  ;;  %p14888_p3 = scmp.eq.s32.totalorder %s10952_s25, 1 }
  0x8b   : > { %s11120_s12 = scalar_select %p30_p13, %s10873_s23, %s32_s8  }
  0x8c   : > { %p41_p10 = por %p40_p8, %p39_p4  ;;  %p11124_p5 = por %p14888_p3, %p39_p4 }
  0x8d   : > { %s263_s11 = sand.u32 1, %s10873_s23   ;;  %s7768_s13 = sshll.u32 %s10877_s24, 9 }
  0x8e   : > { %s7512_s16 = sshll.u32 %s263_s11, 8  ;;  %s11133_s19 = scalar_lea.hbm %s14574_s0, %s7768_s13 }
  0x8f   : > { %s267_s20 = scalar_lea.vmem [#allocation2], %s7512_s16  ;;  %p11135_p11 = pnand %p10399_p6, %p41_p10 }
  0x90   : > { %s274_s26 = sshll.u32 %s267_s20, 4  ;;  %s11141_s10 = scalar_lea.sflag [#allocation3], %s263_s11  ;;  %s11139_s26 = int_to_ptr.vmem [resolvable:$true] %s274_s26 }
  0x91   : > { %s10769_s30 = scalar_lea.hbm %s11133_s19, 4096  ;;  %p10771_p9 = pneg %p11135_p11 }
  0x92   : > { %p10770_p7 = scmp.ne.s32.totalorder %s11133_s19, %s10769_s30  ;;  %s10774_s8 = scalar_lea.hbm %s14574_s0, 8192 }
  0x93   : > { %p10775_p1 = scmp.lt.u32.totalorder %s11133_s19, %s14574_s0  ;;  %p10776_p2 = scmp.lt.u32.totalorder %s10774_s8, %s10769_s30 }
  0x94   : > { %p10772_p12 = pnand %p10771_p9, %p10770_p7  ;;  %p10778_p4 = scmp.lt.u32.totalorder %s10769_s30, %s11133_s19 }
  0x95   : > { %p10777_p13 = por %p10776_p2, %p10775_p1 }
  0x96   : > { %p10773_p0 = pneg %p10772_p12 }
  0x97   : > { %p10779_p8 = por %p10778_p4, %p10777_p13 }
  0x99   : > { %p10780_p6 = pnand %p10779_p8, %p10773_p0 }
  0x9b   : > { %10783 = shalt.err (!%p10780_p6)
}
  0x9c   : > { %s10784_s11 = scalar_lea.vmem %s11139_s26, 4096  ;;  %s10886_s15 = smov [#allocation2]  }
  0x9d   : > { %p10785_p10 = scmp.ne.s32.totalorder %s11139_s26, %s10784_s11  ;;  %s10789_s17 = sshll.u32 %s10886_s15, 4  ;;  %s10790_s17 = int_to_ptr.vmem [resolvable:$false] %s10789_s17 }
  0x9e   : > { %s10791_s20 = scalar_lea.vmem %s10790_s17, 8192  ;;  %p10792_p12 = scmp.lt.s32.totalorder %s11139_s26, %s10790_s17 }
  0x9f   : > { %p10787_p3 = pnand %p10785_p10, %p10771_p9  ;;  %p10793_p1 = scmp.lt.s32.totalorder %s10791_s20, %s10784_s11 }
  0xa1   : > { %p10788_p7 = pneg %p10787_p3  ;;  %p10794_p2 = por %p10793_p1, %p10792_p12 }
  0xa3   : > { %p10795_p13 = pnand %p10794_p2, %p10788_p7 }
  0xa5   : > { %10798 = shalt.err (!%p10795_p13)
}
  0xa6   : > { %s10887_s30 = smov 1024   ;;  %s10888_s9 = smov 512  }
  0xa7   : > { %s10889_s14 = smov 32   ;;  %p14891_p9 = scmp.ne.s32.totalorder %s14884_s29, 0 }
  0xa8   : > { %10389 = dma.hbm_to_vmem [thread:$0]  (!%p11135_p11), %s11133_s19, 4096, %s11139_s26, %s11141_s10, %s10887_s30, %s10888_s9, %s10889_s14  }
  0xa9   : > { %286 = sbr.rel (%p14891_p9) target bundleno = 2342 (0x926), region = 44 }
  0xb0   : > { %s11172_s8 = sand.u32 1, %s10869_s22   ;;  %p14892_p0 = scmp.ne.s32.totalorder %s14882_s27, 0 }
  0xb1   : > { %s7516_s13 = sshll.u32 %s11172_s8, 8  ;;  %s289_s16 = scalar_lea.sflag [#allocation3], %s11172_s8 }
  0xb2   : > { %s11178_s11 = scalar_lea.vmem [#allocation2], %s7516_s13 }
  0xb3   : > { %10844 = dma.done.wait (%p14892_p0), %s289_s16, 4096  }
  0xb4   : > { %10846 = vsyncadd (%p14892_p0), %s289_s16, 4294963200  ;;  %p14893_p11 = scmp.eq.s32.totalorder %s10952_s25, 0 }
  0xb6   : > { %10848 = dma.done.wait (%p14893_p11), [#allocation6], 1024   ;;  %p14894_p4 = pmov %p14893_p11 }
  0xb8   : > { %10850 = vsyncadd (%p14894_p4), [#allocation6], 4294966272  ;;  %p14895_p8 = pmov %p14894_p4 }
  0xb9   : > { %p14896_p6 = pmov %p14894_p4 }
  0xba   : > { %10852 = dma.done.wait (%p14895_p8), [#allocation9], 12288  }
  0xbb   : > { %10854 = vsyncadd (%p14896_p6), [#allocation9], 4294955008  ;;  %p14897_p10 = pmov %p14894_p4 }
  0xbc   : > { %p14898_p3 = pmov %p14894_p4 }
  0xbd   : > { %10856 = dma.done.wait (%p14897_p10), [#allocation12], 512  }
  0xbe   : > { %10858 = vsyncadd (%p14898_p3), [#allocation12], 4294966784  ;;  %v11196_v0 = vld [vmem:[#allocation10] sm:$0xff]   ;;  %v11198_v1 = vld [vmem:[#allocation10 + $0x8] sm:$0xff]   ;;  %vm2012_vm0 = vcmask 523264   ;;  %vm10891_vm6 = vmmov 1  }
  0xbf   : > { %8490 = vmatprep.subr.bf16.mxu0 %v11196_v0  ;;  %8538 = vmatprep.subr.bf16.mxu1 %v11196_v0  ;;  %v11205_v2 = vld [vmem:[#allocation10 + $0x10] sm:$0xff]   ;;  %v11211_v3 = vld [vmem:[#allocation10 + $0x18] sm:$0xff]   ;;  %v11214_v4 = vld [vmem:[%s11178_s11] sm:$0xff]  ;;  %s14489_s27 = scalar_lea.vmem [#allocation13], %s7516_s13  ;;  %s7769_s29 = sshll.u32 %s10952_s25, 9 }
  0xc0   : > { %8491 = vmatpush3.bf16.msra.mxu0 %v11196_v0  ;;  %8539 = vmatpush3.bf16.msra.mxu1 %v11196_v0  ;;  %v11217_v5 = vld [vmem:[%s11178_s11 + $0x20] sm:$0xff]  ;;  %v11240_v14 = vld [vmem:[#allocation10 + $0x28] sm:$0xff]   ;;  %v11251_v18 = vld [vmem:[#allocation10 + $0x30] sm:$0xff]   ;;  %s7383_s19 = sshll.u32 %s14489_s27, 4  ;;  %s14524_s10 = scalar_lea.hbm %s14580_s6, %s7769_s29  ;;  %s14527_s19 = int_to_ptr.vmem [resolvable:$true] %s7383_s19 }
  0xc1   : > { %8492 = vmatprep.subr.bf16.mxu0 %v11198_v1  ;;  %8540 = vmatprep.subr.bf16.mxu1 %v11198_v1  ;;  %v11222_v6 = vpack.c.bf16 %v11217_v5, %v11214_v4  ;;  %v11229_v9 = vld [vmem:[#allocation10 + $0x20] sm:$0xff]   ;;  %v11267_v23 = vld [vmem:[#allocation10 + $0x38] sm:$0xff]   ;;  %v11302_v40 = vld [vmem:[%s11178_s11 + $0x8] sm:$0xff]  ;;  %s7370_s25 = scalar_lea.sflag [#allocation4], %s11172_s8  ;;  %s10799_s15 = scalar_lea.vmem %s14527_s19, 4096 }
  0xc2   : > { %v11235_v12 = vld [vmem:[%s11178_s11 + $0x40] sm:$0xff]  ;;  %v11305_v41 = vld [vmem:[%s11178_s11 + $0x28] sm:$0xff]  ;;  %p10800_p7 = scmp.ne.s32.totalorder %s14527_s19, %s10799_s15  ;;  %s10892_s17 = smov [#allocation13]  }
  0xc3   : > { %v372_v7 = vunpack.c.l.bf16 %v11222_v6  ;;  %v373_v8 = vunpack.c.h.bf16 %v11222_v6  ;;  %v11238_v13 = vld [vmem:[%s11178_s11 + $0x60] sm:$0xff]  ;;  %v810_v42 = vpack.c.bf16 %v11305_v41, %v11302_v40  ;;  %v11324_v48 = vld [vmem:[%s11178_s11 + $0x48] sm:$0xff]  ;;  %s10803_s20 = sshll.u32 %s10892_s17, 4  ;;  %s10804_s20 = int_to_ptr.vmem [resolvable:$false] %s10803_s20 }
  0xc4   : > { %8493 = vmatpush3.bf16.msra.mxu0 %v11198_v1  ;;  %8541 = vmatpush3.bf16.msra.mxu1 %v11198_v1  ;;  %v11243_v15 = vld [vmem:[%s11178_s11 + $0x80] sm:$0xff]  ;;  %v369_v19 = vpack.c.bf16 %v11238_v13, %v11235_v12  ;;  %v11327_v49 = vld [vmem:[%s11178_s11 + $0x68] sm:$0xff]  ;;  %p10801_p12 = pnand %p10800_p7, %p11124_p5  ;;  %s10805_s30 = scalar_lea.vmem %s10804_s20, 8192 }
  0xc5   : > { %8494 = vmatprep.subr.bf16.mxu0 %v11205_v2  ;;  %8542 = vmatprep.subr.bf16.mxu1 %v11205_v2  ;;  %v380_v10 = vsub.f32 %v11214_v4, %v372_v7  ;;  %v381_v11 = vsub.f32 %v11217_v5, %v373_v8  ;;  %v11246_v16 = vld [vmem:[%s11178_s11 + $0xa0] sm:$0xff]  ;;  %v814_v43 = vunpack.c.l.bf16 %v810_v42  ;;  %v815_v44 = vunpack.c.h.bf16 %v810_v42  ;;  %v11332_v50 = vld [vmem:[%s11178_s11 + $0x88] sm:$0xff]  ;;  %p10806_p2 = scmp.lt.s32.totalorder %s14527_s19, %s10804_s20  ;;  %p10807_p13 = scmp.lt.s32.totalorder %s10805_s30, %s10799_s15 }
  0xc6   : > { %v370_v20 = vpack.c.bf16 %v11246_v16, %v11243_v15  ;;  %v11261_v21 = vld [vmem:[%s11178_s11 + $0xc0] sm:$0xff]  ;;  %v374_v24 = vunpack.c.l.bf16 %v369_v19  ;;  %v375_v25 = vunpack.c.h.bf16 %v369_v19  ;;  %v11335_v51 = vld [vmem:[%s11178_s11 + $0xa8] sm:$0xff]  ;;  %v811_v52 = vpack.c.bf16 %v11327_v49, %v11324_v48  ;;  %p10802_p1 = pneg %p10801_p12 }
  0xc7   : > { %v388_v17 = vpack.c.bf16 %v381_v11, %v380_v10  ;;  %v11264_v22 = vld [vmem:[%s11178_s11 + $0xe0] sm:$0xff]  ;;  %v822_v45 = vsub.f32 %v11302_v40, %v814_v43  ;;  %v823_v46 = vsub.f32 %v11305_v41, %v815_v44  ;;  %v812_v53 = vpack.c.bf16 %v11335_v51, %v11332_v50  ;;  %v11345_v58 = vld [vmem:[%s11178_s11 + $0xc8] sm:$0xff]  ;;  %v11417_v44 = vld [vmem:[%s11178_s11 + $0xd0] sm:$0xff]  ;;  %p10808_p9 = por %p10807_p13, %p10806_p2 }
  0xc8   : > { %8495 = vmatpush3.bf16.msra.mxu0 %v11205_v2  ;;  %8543 = vmatpush3.bf16.msra.mxu1 %v11205_v2  ;;  %v376_v26 = vunpack.c.l.bf16 %v370_v20  ;;  %v377_v27 = vunpack.c.h.bf16 %v370_v20  ;;  %v382_v28 = vsub.f32 %v11235_v12, %v374_v24  ;;  %v383_v29 = vsub.f32 %v11238_v13, %v375_v25  ;;  %v11348_v59 = vld [vmem:[%s11178_s11 + $0xe8] sm:$0xff]  ;;  %v11376_v24 = vld [vmem:[%s11178_s11 + $0x10] sm:$0xff] }
  0xc9   : > { %8496 = vmatprep.subr.bf16.mxu0 %v11211_v3  ;;  %8544 = vmatprep.subr.bf16.mxu1 %v11211_v3  ;;  %v371_v30 = vpack.c.bf16 %v11264_v22, %v11261_v21  ;;  %v830_v47 = vpack.c.bf16 %v823_v46, %v822_v45  ;;  %v816_v54 = vunpack.c.l.bf16 %v811_v52  ;;  %v817_v55 = vunpack.c.h.bf16 %v811_v52  ;;  %v11379_v25 = vld [vmem:[%s11178_s11 + $0x30] sm:$0xff]  ;;  %p10809_p0 = pnand %p10808_p9, %p10802_p1 }
  0xca   : > { %8506 = vmatprep.mubr.bf16.mxu0 %v388_v17  ;;  %v384_v31 = vsub.f32 %v11243_v15, %v376_v26  ;;  %v385_v32 = vsub.f32 %v11246_v16, %v377_v27  ;;  %v389_v33 = vpack.c.bf16 %v383_v29, %v382_v28  ;;  %v818_v56 = vunpack.c.l.bf16 %v812_v53  ;;  %v11420_v45 = vld [vmem:[%s11178_s11 + $0xf0] sm:$0xff] }
  0xcb   : > { %v378_v34 = vunpack.c.l.bf16 %v371_v30  ;;  %v379_v35 = vunpack.c.h.bf16 %v371_v30  ;;  %v819_v57 = vunpack.c.h.bf16 %v812_v53  ;;  %v824_v60 = vsub.f32 %v11324_v48, %v816_v54 }
  0xcc   : > { %8497 = vmatpush3.bf16.msra.mxu0 %v11211_v3  ;;  %8545 = vmatpush3.bf16.msra.mxu1 %v11211_v3  ;;  %v390_v36 = vpack.c.bf16 %v385_v32, %v384_v31  ;;  %v825_v61 = vsub.f32 %v11327_v49, %v817_v55  ;;  %v813_v62 = vpack.c.bf16 %v11348_v59, %v11345_v58  ;;  %v11397_v32 = vld [vmem:[%s11178_s11 + $0x50] sm:$0xff] }
  0xcd   : > { %8498 = vmatprep.subr.bf16.mxu0 %v11229_v9  ;;  %8546 = vmatprep.subr.bf16.mxu1 %v11229_v9  ;;  %v386_v37 = vsub.f32 %v11261_v21, %v378_v34  ;;  %v387_v38 = vsub.f32 %v11264_v22, %v379_v35  ;;  %v826_v63 = vsub.f32 %v11332_v50, %v818_v56  ;;  %v11404_v34 = vld [vmem:[%s11178_s11 + $0x90] sm:$0xff] }
  0xce   : > { %v831_v7 = vpack.c.bf16 %v825_v61, %v824_v60  ;;  %v820_v8 = vunpack.c.l.bf16 %v813_v62  ;;  %v821_v10 = vunpack.c.h.bf16 %v813_v62  ;;  %v1204_v26 = vpack.c.bf16 %v11379_v25, %v11376_v24  ;;  %v11407_v35 = vld [vmem:[%s11178_s11 + $0xb0] sm:$0xff] }
  0xcf   : > { %v391_v39 = vpack.c.bf16 %v387_v38, %v386_v37  ;;  %v1206_v37 = vpack.c.bf16 %v11407_v35, %v11404_v34 }
  0xd0   : > { %8499 = vmatpush3.bf16.msra.mxu0 %v11229_v9  ;;  %8547 = vmatpush3.bf16.msra.mxu1 %v11229_v9  ;;  %v828_v17 = vsub.f32 %v11345_v58, %v820_v8  ;;  %v1208_v27 = vunpack.c.l.bf16 %v1204_v26  ;;  %v1209_v28 = vunpack.c.h.bf16 %v1204_v26 }
  0xd1   : > { %8500 = vmatprep.subr.bf16.mxu0 %v11240_v14  ;;  %8548 = vmatprep.subr.bf16.mxu1 %v11240_v14  ;;  %v1213_v43 = vunpack.c.h.bf16 %v1206_v37 }
  0xd2   : > { %v1216_v29 = vsub.f32 %v11376_v24, %v1208_v27  ;;  %v11472_v27 = vld [vmem:[%s11178_s11 + $0x78] sm:$0xff] }
  0xd3   : > { %v1221_v54 = vsub.f32 %v11407_v35, %v1213_v43  ;;  %v11492_v43 = vld [vmem:[%s11178_s11 + $0xf8] sm:$0xff] }
  0xd4   : > { %8501 = vmatpush3.bf16.msra.mxu0 %v11240_v14  ;;  %8549 = vmatpush3.bf16.msra.mxu1 %v11240_v14 }
  0xd5   : > { %8502 = vmatprep.subr.bf16.mxu0 %v11251_v18  ;;  %8550 = vmatprep.subr.bf16.mxu1 %v11251_v18 }
  0xd8   : > { %8503 = vmatpush3.bf16.msra.mxu0 %v11251_v18  ;;  %8551 = vmatpush3.bf16.msra.mxu1 %v11251_v18 }
  0xd9   : > { %8504 = vmatprep.subr.bf16.mxu0 %v11267_v23  ;;  %8552 = vmatprep.subr.bf16.mxu1 %v11267_v23 }
  0xdc   : > { %8505 = vmatpush3.bf16.msra.mxu0 %v11267_v23  ;;  %8553 = vmatpush3.bf16.msra.mxu1 %v11267_v23 }
  0xdd   : > { %8514 = vmatprep.subr.bf16.mxu0 %v11196_v0  ;;  %8562 = vmatprep.subr.bf16.mxu1 %v11196_v0 }
  0xdf   : > { %8507 = vmatmul.mubr.bf16.vlgmr.msra.gmra.mrb[0].mxu0 %v389_v33  ;;  %v11400_v33 = vld [vmem:[%s11178_s11 + $0x70] sm:$0xff] }
  0xe0   : > { %8515 = vmatpush3.bf16.msra.mxu0 %v11196_v0  ;;  %8510 = vmatprep.mubr.bf16.mxu0 %v390_v36  ;;  %v1205_v36 = vpack.c.bf16 %v11400_v33, %v11397_v32 }
  0xe1   : > { %8516 = vmatprep.subr.bf16.mxu0 %v11198_v1 }
  0xe2   : > { %v1210_v38 = vunpack.c.l.bf16 %v1205_v36 }
  0xe4   : > { %8517 = vmatpush3.bf16.msra.mxu0 %v11198_v1  ;;  %v1218_v46 = vsub.f32 %v11397_v32, %v1210_v38 }
  0xe5   : > { %8518 = vmatprep.subr.bf16.mxu0 %v11205_v2 }
  0xe7   : > { %8511 = vmatmul.mubr.bf16.gmra.mrb[4].mxu0 %v391_v39  ;;  %v1211_v39 = vunpack.c.h.bf16 %v1205_v36 }
  0xe8   : > { %8519 = vmatpush3.bf16.msra.mxu0 %v11205_v2  ;;  %8530 = vmatprep.mubr.bf16.mxu0 %v11222_v6  ;;  %v827_v6 = vsub.f32 %v11335_v51, %v819_v57 }
  0xe9   : > { %8520 = vmatprep.subr.bf16.mxu0 %v11211_v3 }
  0xea   : > { %v832_v11 = vpack.c.bf16 %v827_v6, %v826_v63  ;;  %v11448_v6 = vld [vmem:[%s11178_s11 + $0x18] sm:$0xff] }
  0xec   : > { %8521 = vmatpush3.bf16.msra.mxu0 %v11211_v3 }
  0xed   : > { %8522 = vmatprep.subr.bf16.mxu0 %v11229_v9 }
  0xf0   : > { %8523 = vmatpush3.bf16.msra.mxu0 %v11229_v9 }
  0xf1   : > { %8524 = vmatprep.subr.bf16.mxu0 %v11240_v14 }
  0xf4   : > { %8525 = vmatpush3.bf16.msra.mxu0 %v11240_v14 }
  0xf5   : > { %8526 = vmatprep.subr.bf16.mxu0 %v11251_v18 }
  0xf8   : > { %8527 = vmatpush3.bf16.msra.mxu0 %v11251_v18 }
  0xf9   : > { %8528 = vmatprep.subr.bf16.mxu0 %v11267_v23 }
  0xfc   : > { %8529 = vmatpush3.bf16.msra.mxu0 %v11267_v23 }
  0xfd   : > { %8586 = vmatprep.subr.bf16.mxu0 %v11196_v0 }
  0xff   : > { %8531 = vmatmul.mubr.bf16.vlgmr.msra.gmra.mrb[0].mxu0 %v369_v19  ;;  %v829_v19 = vsub.f32 %v11348_v59, %v821_v10 }
 0x100   : > { %8587 = vmatpush3.bf16.msra.mxu0 %v11196_v0  ;;  %8534 = vmatprep.mubr.bf16.mxu0 %v370_v20 }
 0x101   : > { %8588 = vmatprep.subr.bf16.mxu0 %v11198_v1  ;;  %v833_v20 = vpack.c.bf16 %v829_v19, %v828_v17 }
 0x104   : > { %8589 = vmatpush3.bf16.msra.mxu0 %v11198_v1 }
 0x105   : > { %8590 = vmatprep.subr.bf16.mxu0 %v11205_v2 }
 0x107   : > { %8535 = vmatmul.mubr.bf16.gmra.mrb[4].mxu0 %v371_v30  ;;  %v1217_v30 = vsub.f32 %v11379_v25, %v1209_v28  ;;  %v11476_v28 = vld [vmem:[%s11178_s11 + $0x98] sm:$0xff] }
 0x108   : > { %8591 = vmatpush3.bf16.msra.mxu0 %v11205_v2  ;;  %8602 = vmatprep.mubr.bf16.mxu0 %v830_v47  ;;  %v1219_v47 = vsub.f32 %v11400_v33, %v1211_v39 }
 0x109   : > { %8592 = vmatprep.subr.bf16.mxu0 %v11211_v3  ;;  %v1224_v31 = vpack.c.bf16 %v1217_v30, %v1216_v29  ;;  %v11479_v29 = vld [vmem:[%s11178_s11 + $0xb8] sm:$0xff] }
 0x10a   : > { %v1225_v55 = vpack.c.bf16 %v1219_v47, %v1218_v46 }
 0x10c   : > { %8593 = vmatpush3.bf16.msra.mxu0 %v11211_v3 }
 0x10d   : > { %8594 = vmatprep.subr.bf16.mxu0 %v11229_v9 }
 0x110   : > { %8595 = vmatpush3.bf16.msra.mxu0 %v11229_v9 }
 0x111   : > { %8596 = vmatprep.subr.bf16.mxu0 %v11240_v14 }
 0x114   : > { %8597 = vmatpush3.bf16.msra.mxu0 %v11240_v14 }
 0x115   : > { %8598 = vmatprep.subr.bf16.mxu0 %v11251_v18 }
 0x118   : > { %8599 = vmatpush3.bf16.msra.mxu0 %v11251_v18 }
 0x119   : > { %8600 = vmatprep.subr.bf16.mxu0 %v11267_v23 }
 0x11c   : > { %8601 = vmatpush3.bf16.msra.mxu0 %v11267_v23 }
 0x11d   : > { %8610 = vmatprep.subr.bf16.mxu0 %v11196_v0 }
 0x11f   : > { %8603 = vmatmul.mubr.bf16.vlgmr.msra.gmra.mrb[8].mxu0 %v831_v7  ;;  %v11451_v7 = vld [vmem:[%s11178_s11 + $0x38] sm:$0xff] }
 0x120   : > { %8611 = vmatpush3.bf16.msra.mxu0 %v11196_v0  ;;  %8606 = vmatprep.mubr.bf16.mxu0 %v832_v11  ;;  %v1598_v8 = vpack.c.bf16 %v11451_v7, %v11448_v6 }
 0x121   : > { %8612 = vmatprep.subr.bf16.mxu0 %v11198_v1 }
 0x122   : > { %v1602_v10 = vunpack.c.l.bf16 %v1598_v8  ;;  %v1603_v11 = vunpack.c.h.bf16 %v1598_v8 }
 0x124   : > { %8613 = vmatpush3.bf16.msra.mxu0 %v11198_v1  ;;  %v1610_v17 = vsub.f32 %v11448_v6, %v1602_v10  ;;  %v1611_v19 = vsub.f32 %v11451_v7, %v1603_v11 }
 0x125   : > { %8614 = vmatprep.subr.bf16.mxu0 %v11205_v2 }
 0x127   : > { %8607 = vmatmul.mubr.bf16.gmra.mrb[12].mxu0 %v833_v20  ;;  %v1618_v20 = vpack.c.bf16 %v1611_v19, %v1610_v17 }
 0x128   : > { %8615 = vmatpush3.bf16.msra.mxu0 %v11205_v2  ;;  %8626 = vmatprep.mubr.bf16.mxu0 %v810_v42  ;;  %v1212_v42 = vunpack.c.l.bf16 %v1206_v37 }
 0x129   : > { %8616 = vmatprep.subr.bf16.mxu0 %v11211_v3 }
 0x12c   : > { %8617 = vmatpush3.bf16.msra.mxu0 %v11211_v3 }
 0x12d   : > { %8618 = vmatprep.subr.bf16.mxu0 %v11229_v9 }
 0x130   : > { %8619 = vmatpush3.bf16.msra.mxu0 %v11229_v9 }
 0x131   : > { %8620 = vmatprep.subr.bf16.mxu0 %v11240_v14 }
 0x134   : > { %8621 = vmatpush3.bf16.msra.mxu0 %v11240_v14 }
 0x135   : > { %8622 = vmatprep.subr.bf16.mxu0 %v11251_v18 }
 0x138   : > { %8623 = vmatpush3.bf16.msra.mxu0 %v11251_v18 }
 0x139   : > { %8624 = vmatprep.subr.bf16.mxu0 %v11267_v23 }
 0x13c   : > { %8625 = vmatpush3.bf16.msra.mxu0 %v11267_v23 }
 0x13d   : > { %8682 = vmatprep.subr.bf16.mxu0 %v11196_v0 }
 0x13f   : > { %8627 = vmatmul.mubr.bf16.vlgmr.msra.gmra.mrb[8].mxu0 %v811_v52  ;;  %v1207_v52 = vpack.c.bf16 %v11420_v45, %v11417_v44 }
 0x140   : > { %8683 = vmatpush3.bf16.msra.mxu0 %v11196_v0  ;;  %8630 = vmatprep.mubr.bf16.mxu0 %v812_v53  ;;  %v1220_v53 = vsub.f32 %v11404_v34, %v1212_v42  ;;  %v11489_v42 = vld [vmem:[%s11178_s11 + $0xd8] sm:$0xff] }
 0x141   : > { %8684 = vmatprep.subr.bf16.mxu0 %v11198_v1  ;;  %v1214_v56 = vunpack.c.l.bf16 %v1207_v52  ;;  %v1215_v57 = vunpack.c.h.bf16 %v1207_v52 }
 0x142   : > { %v1226_v60 = vpack.c.bf16 %v1221_v54, %v1220_v53 }
 0x143   : > { %v1222_v61 = vsub.f32 %v11417_v44, %v1214_v56 }
 0x144   : > { %8685 = vmatpush3.bf16.msra.mxu0 %v11198_v1 }
 0x145   : > { %8686 = vmatprep.subr.bf16.mxu0 %v11205_v2 }
 0x147   : > { %8631 = vmatmul.mubr.bf16.gmra.mrb[12].mxu0 %v813_v62  ;;  %v1223_v62 = vsub.f32 %v11420_v45, %v1215_v57 }
 0x148   : > { %8687 = vmatpush3.bf16.msra.mxu0 %v11205_v2  ;;  %8698 = vmatprep.mubr.bf16.mxu0 %v1224_v31  ;;  %v1600_v31 = vpack.c.bf16 %v11479_v29, %v11476_v28 }
 0x149   : > { %8688 = vmatprep.subr.bf16.mxu0 %v11211_v3  ;;  %v1227_v63 = vpack.c.bf16 %v1223_v62, %v1222_v61 }
 0x14a   : > { %v1606_v38 = vunpack.c.l.bf16 %v1600_v31  ;;  %v1607_v39 = vunpack.c.h.bf16 %v1600_v31 }
 0x14c   : > { %8689 = vmatpush3.bf16.msra.mxu0 %v11211_v3  ;;  %v1614_v53 = vsub.f32 %v11476_v28, %v1606_v38  ;;  %v1615_v54 = vsub.f32 %v11479_v29, %v1607_v39 }
 0x14d   : > { %8690 = vmatprep.subr.bf16.mxu0 %v11229_v9 }
 0x150   : > { %8691 = vmatpush3.bf16.msra.mxu0 %v11229_v9 }
 0x151   : > { %8692 = vmatprep.subr.bf16.mxu0 %v11240_v14 }
 0x154   : > { %8693 = vmatpush3.bf16.msra.mxu0 %v11240_v14 }
 0x155   : > { %8694 = vmatprep.subr.bf16.mxu0 %v11251_v18 }
 0x158   : > { %8695 = vmatpush3.bf16.msra.mxu0 %v11251_v18 }
 0x159   : > { %8696 = vmatprep.subr.bf16.mxu0 %v11267_v23 }
 0x15c   : > { %8697 = vmatpush3.bf16.msra.mxu0 %v11267_v23 }
 0x15d   : > { %8706 = vmatprep.subr.bf16.mxu0 %v11196_v0 }
 0x15f   : > { %8699 = vmatmul.mubr.bf16.vlgmr.msra.gmra.mrb[16].mxu0 %v1225_v55 }
 0x160   : > { %8707 = vmatpush3.bf16.msra.mxu0 %v11196_v0  ;;  %8702 = vmatprep.mubr.bf16.mxu0 %v1226_v60  ;;  %v1620_v60 = vpack.c.bf16 %v1615_v54, %v1614_v53 }
 0x161   : > { %8708 = vmatprep.subr.bf16.mxu0 %v11198_v1 }
 0x164   : > { %8709 = vmatpush3.bf16.msra.mxu0 %v11198_v1 }
 0x165   : > { %8710 = vmatprep.subr.bf16.mxu0 %v11205_v2 }
 0x167   : > { %8703 = vmatmul.mubr.bf16.gmra.mrb[20].mxu0 %v1227_v63 }
 0x168   : > { %8711 = vmatpush3.bf16.msra.mxu0 %v11205_v2  ;;  %8722 = vmatprep.mubr.bf16.mxu0 %v1204_v26  ;;  %v11469_v26 = vld [vmem:[%s11178_s11 + $0x58] sm:$0xff] }
 0x169   : > { %8712 = vmatprep.subr.bf16.mxu0 %v11211_v3  ;;  %v1599_v30 = vpack.c.bf16 %v11472_v27, %v11469_v26 }
 0x16c   : > { %8713 = vmatpush3.bf16.msra.mxu0 %v11211_v3 }
 0x16d   : > { %8714 = vmatprep.subr.bf16.mxu0 %v11229_v9 }
 0x170   : > { %8715 = vmatpush3.bf16.msra.mxu0 %v11229_v9 }
 0x171   : > { %8716 = vmatprep.subr.bf16.mxu0 %v11240_v14 }
 0x174   : > { %8717 = vmatpush3.bf16.msra.mxu0 %v11240_v14 }
 0x175   : > { %8718 = vmatprep.subr.bf16.mxu0 %v11251_v18 }
 0x178   : > { %8719 = vmatpush3.bf16.msra.mxu0 %v11251_v18 }
 0x179   : > { %8720 = vmatprep.subr.bf16.mxu0 %v11267_v23 }
 0x17c   : > { %8721 = vmatpush3.bf16.msra.mxu0 %v11267_v23 }
 0x17d   : > { %8778 = vmatprep.subr.bf16.mxu0 %v11196_v0 }
 0x17f   : > { %8723 = vmatmul.mubr.bf16.vlgmr.msra.gmra.mrb[16].mxu0 %v1205_v36  ;;  %v1604_v36 = vunpack.c.l.bf16 %v1599_v30 }
 0x180   : > { %8779 = vmatpush3.bf16.msra.mxu0 %v11196_v0  ;;  %8726 = vmatprep.mubr.bf16.mxu0 %v1206_v37  ;;  %v1605_v37 = vunpack.c.h.bf16 %v1599_v30 }
 0x181   : > { %8780 = vmatprep.subr.bf16.mxu0 %v11198_v1  ;;  %v1612_v46 = vsub.f32 %v11469_v26, %v1604_v36 }
 0x182   : > { %v1613_v47 = vsub.f32 %v11472_v27, %v1605_v37 }
 0x184   : > { %8781 = vmatpush3.bf16.msra.mxu0 %v11198_v1  ;;  %v1619_v55 = vpack.c.bf16 %v1613_v47, %v1612_v46 }
 0x185   : > { %8782 = vmatprep.subr.bf16.mxu0 %v11205_v2 }
 0x187   : > { %8727 = vmatmul.mubr.bf16.gmra.mrb[20].mxu0 %v1207_v52  ;;  %v1601_v52 = vpack.c.bf16 %v11492_v43, %v11489_v42 }
 0x188   : > { %8783 = vmatpush3.bf16.msra.mxu0 %v11205_v2  ;;  %8794 = vmatprep.mubr.bf16.mxu0 %v1618_v20 }
 0x189   : > { %8784 = vmatprep.subr.bf16.mxu0 %v11211_v3  ;;  %v1608_v56 = vunpack.c.l.bf16 %v1601_v52  ;;  %v1609_v57 = vunpack.c.h.bf16 %v1601_v52 }
 0x18b   : > { %v1616_v61 = vsub.f32 %v11489_v42, %v1608_v56  ;;  %v1617_v62 = vsub.f32 %v11492_v43, %v1609_v57 }
 0x18c   : > { %8785 = vmatpush3.bf16.msra.mxu0 %v11211_v3 }
 0x18d   : > { %8786 = vmatprep.subr.bf16.mxu0 %v11229_v9  ;;  %v1621_v63 = vpack.c.bf16 %v1617_v62, %v1616_v61 }
 0x190   : > { %8787 = vmatpush3.bf16.msra.mxu0 %v11229_v9 }
 0x191   : > { %8788 = vmatprep.subr.bf16.mxu0 %v11240_v14 }
 0x194   : > { %8789 = vmatpush3.bf16.msra.mxu0 %v11240_v14 }
 0x195   : > { %8790 = vmatprep.subr.bf16.mxu0 %v11251_v18 }
 0x198   : > { %8791 = vmatpush3.bf16.msra.mxu0 %v11251_v18 }
 0x199   : > { %8792 = vmatprep.subr.bf16.mxu0 %v11267_v23 }
 0x19c   : > { %8793 = vmatpush3.bf16.msra.mxu0 %v11267_v23 }
 0x19d   : > { %8802 = vmatprep.subr.bf16.mxu0 %v11196_v0 }
 0x19f   : > { %8795 = vmatmul.mubr.bf16.vlgmr.msra.gmra.mrb[24].mxu0 %v1619_v55 }
 0x1a0   : > { %8803 = vmatpush3.bf16.msra.mxu0 %v11196_v0  ;;  %8798 = vmatprep.mubr.bf16.mxu0 %v1620_v60 }
 0x1a1   : > { %8804 = vmatprep.subr.bf16.mxu0 %v11198_v1 }
 0x1a4   : > { %8805 = vmatpush3.bf16.msra.mxu0 %v11198_v1 }
 0x1a5   : > { %8806 = vmatprep.subr.bf16.mxu0 %v11205_v2 }
 0x1a7   : > { %8799 = vmatmul.mubr.bf16.gmra.mrb[28].mxu0 %v1621_v63 }
 0x1a8   : > { %8807 = vmatpush3.bf16.msra.mxu0 %v11205_v2  ;;  %8818 = vmatprep.mubr.bf16.mxu0 %v1598_v8 }
 0x1a9   : > { %8808 = vmatprep.subr.bf16.mxu0 %v11211_v3 }
 0x1ac   : > { %8809 = vmatpush3.bf16.msra.mxu0 %v11211_v3 }
 0x1ad   : > { %8810 = vmatprep.subr.bf16.mxu0 %v11229_v9 }
 0x1b0   : > { %8811 = vmatpush3.bf16.msra.mxu0 %v11229_v9 }
 0x1b1   : > { %8812 = vmatprep.subr.bf16.mxu0 %v11240_v14 }
 0x1b4   : > { %8813 = vmatpush3.bf16.msra.mxu0 %v11240_v14 }
 0x1b5   : > { %8814 = vmatprep.subr.bf16.mxu0 %v11251_v18 }
 0x1b8   : > { %8815 = vmatpush3.bf16.msra.mxu0 %v11251_v18 }
 0x1b9   : > { %8816 = vmatprep.subr.bf16.mxu0 %v11267_v23 }
 0x1bc   : > { %8817 = vmatpush3.bf16.msra.mxu0 %v11267_v23 }
 0x1bf   : > { %8819 = vmatmul.mubr.bf16.vlgmr.msra.gmra.mrb[24].mxu0 %v1599_v30 }
 0x1c0   : > { %8822 = vmatprep.mubr.bf16.mxu0 %v1600_v31 }
 0x1c7   : > { %8823 = vmatmul.mubr.bf16.gmra.mrb[28].mxu0 %v1601_v52 }
 0x1d2   : > { %v8532_v0 = vpop.f32.mrb[0].mxu0 }
 0x1d3   : > { %v572_v1 = vmul.f32 0.03125, %v8532_v0  ;;  %v539_v2 = vpop.f32.mrb[1].mxu0 }
 0x1d4   : > { %v570_v3 = vmul.f32 0.03125, %v539_v2  ;;  %v8533_v9 = vpop.f32.mrb[2].mxu0 }
 0x1d5   : > { %v11523_v8 = vsub.f32 %v11235_v12, %v572_v1  ;;  %v573_v14 = vmul.f32 0.03125, %v8533_v9  ;;  %v542_v10 = vpop.f32.mrb[3].mxu0 }
 0x1d6   : > { %v11526_v11 = vsub.f32 %v11214_v4, %v570_v3  ;;  %v571_v18 = vmul.f32 0.03125, %v542_v10 }
 0x1d7   : > { %v11529_v17 = vsub.f32 %v11238_v13, %v573_v14  ;;  %v588_v20 = vmul.f32 %v11523_v8, %v11523_v8 }
 0x1d8   : > { %v11532_v19 = vsub.f32 %v11217_v5, %v571_v18  ;;  %v586_v31 = vmul.f32 %v11526_v11, %v11526_v11 }
 0x1d9   : > { %v589_v30 = vmul.f32 %v11529_v17, %v11529_v17 }
 0x1da   : > { %v8536_v12 = vpop.f32.mrb[4].mxu0  ;;  %v587_v4 = vmul.f32 %v11532_v19, %v11532_v19 }
 0x1db   : > { %v11542_v36 = vpack.c.bf16 %v589_v30, %v588_v20  ;;  %v576_v13 = vmul.f32 0.03125, %v8536_v12  ;;  %v555_v37 = vpop.f32.mrb[5].mxu0 }
 0x1dc   : > { %v574_v38 = vmul.f32 0.03125, %v555_v37  ;;  %v8537_v5 = vpop.f32.mrb[6].mxu0  ;;  %v594_v39 = vpack.c.bf16 %v587_v4, %v586_v31 }
 0x1dd   : > { %v11545_v46 = vsub.f32 %v11261_v21, %v576_v13  ;;  %v577_v47 = vmul.f32 0.03125, %v8537_v5  ;;  %v558_v52 = vpop.f32.mrb[7].mxu0  ;;  %v600_v53 = vunpack.c.l.bf16 %v11542_v36  ;;  %v601_v54 = vunpack.c.h.bf16 %v11542_v36 }
 0x1de   : > { %v11550_v55 = vsub.f32 %v11243_v15, %v574_v38  ;;  %v575_v56 = vmul.f32 0.03125, %v558_v52  ;;  %v598_v57 = vunpack.c.l.bf16 %v594_v39  ;;  %v599_v60 = vunpack.c.h.bf16 %v594_v39  ;;  %v11573_v52 = vld [vmem:[#allocation10 + $0x10] sm:$0xff]  }
 0x1df   : > { %v11553_v61 = vsub.f32 %v11264_v22, %v577_v47  ;;  %v608_v62 = vsub.f32 %v588_v20, %v600_v53  ;;  %v609_v63 = vsub.f32 %v589_v30, %v601_v54  ;;  %v592_v2 = vmul.f32 %v11545_v46, %v11545_v46  ;;  %v11566_v30 = vld [vmem:[#allocation10] sm:$0xff]   ;;  %v11577_v54 = vld [vmem:[#allocation10 + $0x18] sm:$0xff]  }
 0x1e0   : > { %v11556_v21 = vsub.f32 %v11246_v16, %v575_v56  ;;  %v606_v0 = vsub.f32 %v586_v31, %v598_v57  ;;  %v607_v1 = vsub.f32 %v587_v4, %v599_v60  ;;  %v590_v3 = vmul.f32 %v11550_v55, %v11550_v55  ;;  %v11569_v4 = vld [vmem:[#allocation10 + $0x8] sm:$0xff]   ;;  %v11581_v56 = vld [vmem:[#allocation10 + $0x20] sm:$0xff]   ;;  %v11589_v60 = vld [vmem:[#allocation10 + $0x30] sm:$0xff]  }
 0x1e1   : > { %v593_v15 = vmul.f32 %v11553_v61, %v11553_v61  ;;  %v615_v10 = vpack.c.bf16 %v609_v63, %v608_v62  ;;  %v11585_v57 = vld [vmem:[#allocation10 + $0x28] sm:$0xff]  }
 0x1e2   : > { %v591_v22 = vmul.f32 %v11556_v21, %v11556_v21  ;;  %v614_v9 = vpack.c.bf16 %v607_v1, %v606_v0 }
 0x1e3   : > { %v597_v14 = vpack.c.bf16 %v593_v15, %v592_v2 }
 0x1e4   : > { %v596_v18 = vpack.c.bf16 %v591_v22, %v590_v3  ;;  %8554 = vmatprep.mubr.bf16.mxu1 %v614_v9 }
 0x1e5   : > { %8555 = vmatmul.mubr.bf16.vlgmr.msra.gmra.mrb[0].mxu1 %v615_v10  ;;  %v604_v16 = vunpack.c.l.bf16 %v597_v14  ;;  %v605_v20 = vunpack.c.h.bf16 %v597_v14 }
 0x1e6   : > { %8563 = vmatpush3.bf16.msra.mxu1 %v11566_v30  ;;  %v602_v12 = vunpack.c.l.bf16 %v596_v18  ;;  %v603_v31 = vunpack.c.h.bf16 %v596_v18 }
 0x1e7   : > { %8564 = vmatprep.subr.bf16.mxu1 %v11569_v4  ;;  %v612_v13 = vsub.f32 %v592_v2, %v604_v16  ;;  %v613_v37 = vsub.f32 %v593_v15, %v605_v20 }
 0x1e8   : > { %v610_v38 = vsub.f32 %v590_v3, %v602_v12  ;;  %v611_v5 = vsub.f32 %v591_v22, %v603_v31 }
 0x1e9   : > { %v617_v53 = vpack.c.bf16 %v613_v37, %v612_v13 }
 0x1ea   : > { %8565 = vmatpush3.bf16.msra.mxu1 %v11569_v4  ;;  %v616_v47 = vpack.c.bf16 %v611_v5, %v610_v38 }
 0x1eb   : > { %8566 = vmatprep.subr.bf16.mxu1 %v11573_v52 }
 0x1ec   : > { %8558 = vmatprep.mubr.bf16.mxu1 %v616_v47 }
 0x1ed   : > { %8559 = vmatmul.mubr.bf16.gmra.mrb[4].mxu1 %v617_v53 }
 0x1ee   : > { %8567 = vmatpush3.bf16.msra.mxu1 %v11573_v52  ;;  %8578 = vmatprep.mubr.bf16.mxu1 %v594_v39 }
 0x1ef   : > { %8568 = vmatprep.subr.bf16.mxu1 %v11577_v54 }
 0x1f2   : > { %8569 = vmatpush3.bf16.msra.mxu1 %v11577_v54 }
 0x1f3   : > { %8570 = vmatprep.subr.bf16.mxu1 %v11581_v56 }
 0x1f6   : > { %8571 = vmatpush3.bf16.msra.mxu1 %v11581_v56 }
 0x1f7   : > { %8572 = vmatprep.subr.bf16.mxu1 %v11585_v57 }
 0x1fa   : > { %8573 = vmatpush3.bf16.msra.mxu1 %v11585_v57 }
 0x1fb   : > { %8574 = vmatprep.subr.bf16.mxu1 %v11589_v60 }
 0x1fe   : > { %8575 = vmatpush3.bf16.msra.mxu1 %v11589_v60 }
 0x1ff   : > { %8576 = vmatprep.subr.bf16.mxu1 %v11267_v23 }
 0x202   : > { %8577 = vmatpush3.bf16.msra.mxu1 %v11267_v23 }
 0x203   : > { %8634 = vmatprep.subr.bf16.mxu1 %v11566_v30 }
 0x205   : > { %8579 = vmatmul.mubr.bf16.vlgmr.msra.gmra.mrb[0].mxu1 %v11542_v36 }
 0x206   : > { %8582 = vmatprep.mubr.bf16.mxu1 %v596_v18  ;;  %8635 = vmatpush3.bf16.msra.mxu1 %v11566_v30 }
 0x207   : > { %8636 = vmatprep.subr.bf16.mxu1 %v11569_v4 }
 0x20a   : > { %8637 = vmatpush3.bf16.msra.mxu1 %v11569_v4 }
 0x20b   : > { %8638 = vmatprep.subr.bf16.mxu1 %v11573_v52 }
 0x20d   : > { %8583 = vmatmul.mubr.bf16.gmra.mrb[4].mxu1 %v597_v14 }
 0x20e   : > { %8639 = vmatpush3.bf16.msra.mxu1 %v11573_v52 }
 0x20f   : > { %8640 = vmatprep.subr.bf16.mxu1 %v11577_v54 }
 0x212   : > { %8641 = vmatpush3.bf16.msra.mxu1 %v11577_v54  ;;  %v8628_v23 = vpop.f32.mrb[8].mxu0 }
 0x213   : > { %v966_v39 = vmul.f32 0.03125, %v8628_v23  ;;  %v933_v62 = vpop.f32.mrb[9].mxu0  ;;  %8642 = vmatprep.subr.bf16.mxu1 %v11581_v56 }
 0x214   : > { %v964_v36 = vmul.f32 0.03125, %v933_v62  ;;  %v8629_v63 = vpop.f32.mrb[10].mxu0 }
 0x215   : > { %v11606_v0 = vsub.f32 %v11324_v48, %v966_v39  ;;  %v967_v1 = vmul.f32 0.03125, %v8629_v63  ;;  %v936_v2 = vpop.f32.mrb[11].mxu0 }
 0x216   : > { %v11609_v15 = vsub.f32 %v11302_v40, %v964_v36  ;;  %v965_v3 = vmul.f32 0.03125, %v936_v2  ;;  %8643 = vmatpush3.bf16.msra.mxu1 %v11581_v56  ;;  %v11643_v2 = vld [vmem:[#allocation10 + $0x38] sm:$0xff]  }
 0x217   : > { %v11613_v22 = vsub.f32 %v11327_v49, %v967_v1  ;;  %8644 = vmatprep.subr.bf16.mxu1 %v11585_v57  ;;  %v982_v48 = vmul.f32 %v11606_v0, %v11606_v0 }
 0x218   : > { %v11617_v9 = vsub.f32 %v11305_v41, %v965_v3  ;;  %v980_v40 = vmul.f32 %v11609_v15, %v11609_v15 }
 0x219   : > { %v983_v14 = vmul.f32 %v11613_v22, %v11613_v22 }
 0x21a   : > { %v981_v10 = vmul.f32 %v11617_v9, %v11617_v9  ;;  %8645 = vmatpush3.bf16.msra.mxu1 %v11585_v57  ;;  %v8632_v49 = vpop.f32.mrb[12].mxu0 }
 0x21b   : > { %v11628_v18 = vpack.c.bf16 %v983_v14, %v982_v48  ;;  %v970_v16 = vmul.f32 0.03125, %v8632_v49  ;;  %v949_v41 = vpop.f32.mrb[13].mxu0  ;;  %8646 = vmatprep.subr.bf16.mxu1 %v11589_v60 }
 0x21c   : > { %v988_v20 = vpack.c.bf16 %v981_v10, %v980_v40  ;;  %v968_v12 = vmul.f32 0.03125, %v949_v41  ;;  %v8633_v31 = vpop.f32.mrb[14].mxu0 }
 0x21d   : > { %v994_v13 = vunpack.c.l.bf16 %v11628_v18  ;;  %v995_v37 = vunpack.c.h.bf16 %v11628_v18  ;;  %v11634_v38 = vsub.f32 %v11345_v58, %v970_v16  ;;  %v971_v5 = vmul.f32 0.03125, %v8633_v31  ;;  %v952_v47 = vpop.f32.mrb[15].mxu0 }
 0x21e   : > { %v11637_v53 = vsub.f32 %v11332_v50, %v968_v12  ;;  %v969_v23 = vmul.f32 0.03125, %v952_v47  ;;  %8647 = vmatpush3.bf16.msra.mxu1 %v11589_v60  ;;  %v992_v39 = vunpack.c.l.bf16 %v988_v20  ;;  %v993_v62 = vunpack.c.h.bf16 %v988_v20 }
 0x21f   : > { %v1002_v36 = vsub.f32 %v982_v48, %v994_v13  ;;  %v1003_v63 = vsub.f32 %v983_v14, %v995_v37  ;;  %v11641_v1 = vsub.f32 %v11348_v59, %v971_v5  ;;  %8648 = vmatprep.subr.bf16.mxu1 %v11643_v2  ;;  %v986_v49 = vmul.f32 %v11634_v38, %v11634_v38 }
 0x220   : > { %v11647_v58 = vsub.f32 %v11335_v51, %v969_v23  ;;  %v1000_v3 = vsub.f32 %v980_v40, %v992_v39  ;;  %v1001_v50 = vsub.f32 %v981_v10, %v993_v62  ;;  %v984_v48 = vmul.f32 %v11637_v53, %v11637_v53 }
 0x221   : > { %v987_v16 = vmul.f32 %v11641_v1, %v11641_v1  ;;  %v1009_v41 = vpack.c.bf16 %v1003_v63, %v1002_v36 }
 0x222   : > { %v985_v59 = vmul.f32 %v11647_v58, %v11647_v58  ;;  %8649 = vmatpush3.bf16.msra.mxu1 %v11643_v2  ;;  %v1008_v14 = vpack.c.bf16 %v1001_v50, %v1000_v3 }
 0x223   : > { %v991_v51 = vpack.c.bf16 %v987_v16, %v986_v49  ;;  %8658 = vmatprep.subr.bf16.mxu1 %v11566_v30 }
 0x224   : > { %v990_v40 = vpack.c.bf16 %v985_v59, %v984_v48  ;;  %8650 = vmatprep.mubr.bf16.mxu1 %v1008_v14 }
 0x225   : > { %8651 = vmatmul.mubr.bf16.vlgmr.msra.gmra.mrb[8].mxu1 %v1009_v41  ;;  %v998_v10 = vunpack.c.l.bf16 %v991_v51  ;;  %v999_v12 = vunpack.c.h.bf16 %v991_v51 }
 0x226   : > { %8659 = vmatpush3.bf16.msra.mxu1 %v11566_v30  ;;  %v996_v31 = vunpack.c.l.bf16 %v990_v40  ;;  %v997_v13 = vunpack.c.h.bf16 %v990_v40 }
 0x227   : > { %8660 = vmatprep.subr.bf16.mxu1 %v11569_v4  ;;  %v1006_v37 = vsub.f32 %v986_v49, %v998_v10  ;;  %v1007_v5 = vsub.f32 %v987_v16, %v999_v12 }
 0x228   : > { %v1004_v47 = vsub.f32 %v984_v48, %v996_v31  ;;  %v1005_v23 = vsub.f32 %v985_v59, %v997_v13 }
 0x229   : > { %v1011_v62 = vpack.c.bf16 %v1007_v5, %v1006_v37 }
 0x22a   : > { %8661 = vmatpush3.bf16.msra.mxu1 %v11569_v4  ;;  %v1010_v39 = vpack.c.bf16 %v1005_v23, %v1004_v47 }
 0x22b   : > { %8662 = vmatprep.subr.bf16.mxu1 %v11573_v52 }
 0x22c   : > { %8654 = vmatprep.mubr.bf16.mxu1 %v1010_v39 }
 0x22d   : > { %8655 = vmatmul.mubr.bf16.gmra.mrb[12].mxu1 %v1011_v62 }
 0x22e   : > { %8663 = vmatpush3.bf16.msra.mxu1 %v11573_v52  ;;  %8674 = vmatprep.mubr.bf16.mxu1 %v988_v20 }
 0x22f   : > { %8664 = vmatprep.subr.bf16.mxu1 %v11577_v54 }
 0x232   : > { %8665 = vmatpush3.bf16.msra.mxu1 %v11577_v54 }
 0x233   : > { %8666 = vmatprep.subr.bf16.mxu1 %v11581_v56 }
 0x236   : > { %8667 = vmatpush3.bf16.msra.mxu1 %v11581_v56 }
 0x237   : > { %8668 = vmatprep.subr.bf16.mxu1 %v11585_v57 }
 0x23a   : > { %8669 = vmatpush3.bf16.msra.mxu1 %v11585_v57 }
 0x23b   : > { %8670 = vmatprep.subr.bf16.mxu1 %v11589_v60 }
 0x23e   : > { %8671 = vmatpush3.bf16.msra.mxu1 %v11589_v60 }
 0x23f   : > { %8672 = vmatprep.subr.bf16.mxu1 %v11643_v2 }
 0x242   : > { %8673 = vmatpush3.bf16.msra.mxu1 %v11643_v2 }
 0x243   : > { %8730 = vmatprep.subr.bf16.mxu1 %v11566_v30 }
 0x245   : > { %8675 = vmatmul.mubr.bf16.vlgmr.msra.gmra.mrb[8].mxu1 %v11628_v18 }
 0x246   : > { %8678 = vmatprep.mubr.bf16.mxu1 %v990_v40  ;;  %8731 = vmatpush3.bf16.msra.mxu1 %v11566_v30 }
 0x247   : > { %8732 = vmatprep.subr.bf16.mxu1 %v11569_v4 }
 0x24a   : > { %8733 = vmatpush3.bf16.msra.mxu1 %v11569_v4 }
 0x24b   : > { %8734 = vmatprep.subr.bf16.mxu1 %v11573_v52 }
 0x24d   : > { %8679 = vmatmul.mubr.bf16.gmra.mrb[12].mxu1 %v991_v51 }
 0x24e   : > { %8735 = vmatpush3.bf16.msra.mxu1 %v11573_v52 }
 0x24f   : > { %8736 = vmatprep.subr.bf16.mxu1 %v11577_v54 }
 0x252   : > { %8737 = vmatpush3.bf16.msra.mxu1 %v11577_v54  ;;  %v8724_v20 = vpop.f32.mrb[16].mxu0 }
 0x253   : > { %v1360_v36 = vmul.f32 0.03125, %v8724_v20  ;;  %v1327_v63 = vpop.f32.mrb[17].mxu0  ;;  %8738 = vmatprep.subr.bf16.mxu1 %v11581_v56 }
 0x254   : > { %v1358_v18 = vmul.f32 0.03125, %v1327_v63  ;;  %v8725_v3 = vpop.f32.mrb[18].mxu0 }
 0x255   : > { %v11685_v50 = vsub.f32 %v11397_v32, %v1360_v36  ;;  %v1361_v49 = vmul.f32 0.03125, %v8725_v3  ;;  %v1330_v16 = vpop.f32.mrb[19].mxu0 }
 0x256   : > { %v11688_v48 = vsub.f32 %v11376_v24, %v1358_v18  ;;  %v1359_v59 = vmul.f32 0.03125, %v1330_v16  ;;  %8739 = vmatpush3.bf16.msra.mxu1 %v11581_v56 }
 0x257   : > { %v11692_v14 = vsub.f32 %v11400_v33, %v1361_v49  ;;  %8740 = vmatprep.subr.bf16.mxu1 %v11585_v57  ;;  %v1376_v32 = vmul.f32 %v11685_v50, %v11685_v50 }
 0x258   : > { %v11696_v41 = vsub.f32 %v11379_v25, %v1359_v59  ;;  %v1374_v24 = vmul.f32 %v11688_v48, %v11688_v48 }
 0x259   : > { %v1377_v51 = vmul.f32 %v11692_v14, %v11692_v14 }
 0x25a   : > { %v1375_v40 = vmul.f32 %v11696_v41, %v11696_v41  ;;  %8741 = vmatpush3.bf16.msra.mxu1 %v11585_v57  ;;  %v8728_v33 = vpop.f32.mrb[20].mxu0 }
 0x25b   : > { %v11707_v10 = vpack.c.bf16 %v1377_v51, %v1376_v32  ;;  %v1364_v12 = vmul.f32 0.03125, %v8728_v33  ;;  %v1343_v25 = vpop.f32.mrb[21].mxu0  ;;  %8742 = vmatprep.subr.bf16.mxu1 %v11589_v60 }
 0x25c   : > { %v1382_v31 = vpack.c.bf16 %v1375_v40, %v1374_v24  ;;  %v1362_v13 = vmul.f32 0.03125, %v1343_v25  ;;  %v8729_v37 = vpop.f32.mrb[22].mxu0 }
 0x25d   : > { %v1388_v5 = vunpack.c.l.bf16 %v11707_v10  ;;  %v1389_v47 = vunpack.c.h.bf16 %v11707_v10  ;;  %v11713_v23 = vsub.f32 %v11417_v44, %v1364_v12  ;;  %v1365_v39 = vmul.f32 0.03125, %v8729_v37  ;;  %v1346_v62 = vpop.f32.mrb[23].mxu0 }
 0x25e   : > { %v11716_v20 = vsub.f32 %v11404_v34, %v1362_v13  ;;  %v1363_v36 = vmul.f32 0.03125, %v1346_v62  ;;  %8743 = vmatpush3.bf16.msra.mxu1 %v11589_v60  ;;  %v1386_v63 = vunpack.c.l.bf16 %v1382_v31  ;;  %v1387_v18 = vunpack.c.h.bf16 %v1382_v31 }
 0x25f   : > { %v1396_v3 = vsub.f32 %v1376_v32, %v1388_v5  ;;  %v1397_v49 = vsub.f32 %v1377_v51, %v1389_v47  ;;  %v11720_v16 = vsub.f32 %v11420_v45, %v1365_v39  ;;  %8744 = vmatprep.subr.bf16.mxu1 %v11643_v2  ;;  %v1380_v34 = vmul.f32 %v11713_v23, %v11713_v23 }
 0x260   : > { %v11724_v44 = vsub.f32 %v11407_v35, %v1363_v36  ;;  %v1394_v59 = vsub.f32 %v1374_v24, %v1386_v63  ;;  %v1395_v33 = vsub.f32 %v1375_v40, %v1387_v18  ;;  %v1378_v32 = vmul.f32 %v11716_v20, %v11716_v20 }
 0x261   : > { %v1381_v12 = vmul.f32 %v11720_v16, %v11720_v16  ;;  %v1403_v25 = vpack.c.bf16 %v1397_v49, %v1396_v3 }
 0x262   : > { %v1379_v45 = vmul.f32 %v11724_v44, %v11724_v44  ;;  %8745 = vmatpush3.bf16.msra.mxu1 %v11643_v2  ;;  %v1402_v51 = vpack.c.bf16 %v1395_v33, %v1394_v59 }
 0x263   : > { %v1385_v35 = vpack.c.bf16 %v1381_v12, %v1380_v34  ;;  %8754 = vmatprep.subr.bf16.mxu1 %v11566_v30 }
 0x264   : > { %v1384_v24 = vpack.c.bf16 %v1379_v45, %v1378_v32  ;;  %8746 = vmatprep.mubr.bf16.mxu1 %v1402_v51 }
 0x265   : > { %8747 = vmatmul.mubr.bf16.vlgmr.msra.gmra.mrb[16].mxu1 %v1403_v25  ;;  %v1392_v40 = vunpack.c.l.bf16 %v1385_v35  ;;  %v1393_v13 = vunpack.c.h.bf16 %v1385_v35 }
 0x266   : > { %8755 = vmatpush3.bf16.msra.mxu1 %v11566_v30  ;;  %v1390_v37 = vunpack.c.l.bf16 %v1384_v24  ;;  %v1391_v5 = vunpack.c.h.bf16 %v1384_v24 }
 0x267   : > { %8756 = vmatprep.subr.bf16.mxu1 %v11569_v4  ;;  %v1400_v47 = vsub.f32 %v1380_v34, %v1392_v40  ;;  %v1401_v39 = vsub.f32 %v1381_v12, %v1393_v13 }
 0x268   : > { %v1398_v62 = vsub.f32 %v1378_v32, %v1390_v37  ;;  %v1399_v36 = vsub.f32 %v1379_v45, %v1391_v5 }
 0x269   : > { %v1405_v18 = vpack.c.bf16 %v1401_v39, %v1400_v47 }
 0x26a   : > { %8757 = vmatpush3.bf16.msra.mxu1 %v11569_v4  ;;  %v1404_v63 = vpack.c.bf16 %v1399_v36, %v1398_v62 }
 0x26b   : > { %8758 = vmatprep.subr.bf16.mxu1 %v11573_v52 }
 0x26c   : > { %8750 = vmatprep.mubr.bf16.mxu1 %v1404_v63 }
 0x26d   : > { %8751 = vmatmul.mubr.bf16.gmra.mrb[20].mxu1 %v1405_v18 }
 0x26e   : > { %8759 = vmatpush3.bf16.msra.mxu1 %v11573_v52  ;;  %8770 = vmatprep.mubr.bf16.mxu1 %v1382_v31 }
 0x26f   : > { %8760 = vmatprep.subr.bf16.mxu1 %v11577_v54 }
 0x272   : > { %8761 = vmatpush3.bf16.msra.mxu1 %v11577_v54 }
 0x273   : > { %8762 = vmatprep.subr.bf16.mxu1 %v11581_v56 }
 0x276   : > { %8763 = vmatpush3.bf16.msra.mxu1 %v11581_v56 }
 0x277   : > { %8764 = vmatprep.subr.bf16.mxu1 %v11585_v57 }
 0x27a   : > { %8765 = vmatpush3.bf16.msra.mxu1 %v11585_v57 }
 0x27b   : > { %8766 = vmatprep.subr.bf16.mxu1 %v11589_v60 }
 0x27e   : > { %8767 = vmatpush3.bf16.msra.mxu1 %v11589_v60 }
 0x27f   : > { %8768 = vmatprep.subr.bf16.mxu1 %v11643_v2 }
 0x282   : > { %8769 = vmatpush3.bf16.msra.mxu1 %v11643_v2 }
 0x283   : > { %8826 = vmatprep.subr.bf16.mxu1 %v11566_v30 }
 0x285   : > { %8771 = vmatmul.mubr.bf16.vlgmr.msra.gmra.mrb[16].mxu1 %v11707_v10 }
 0x286   : > { %8774 = vmatprep.mubr.bf16.mxu1 %v1384_v24  ;;  %8827 = vmatpush3.bf16.msra.mxu1 %v11566_v30 }
 0x287   : > { %8828 = vmatprep.subr.bf16.mxu1 %v11569_v4 }
 0x28a   : > { %8829 = vmatpush3.bf16.msra.mxu1 %v11569_v4 }
 0x28b   : > { %8830 = vmatprep.subr.bf16.mxu1 %v11573_v52 }
 0x28d   : > { %8775 = vmatmul.mubr.bf16.gmra.mrb[20].mxu1 %v1385_v35 }
 0x28e   : > { %8831 = vmatpush3.bf16.msra.mxu1 %v11573_v52 }
 0x28f   : > { %8832 = vmatprep.subr.bf16.mxu1 %v11577_v54 }
 0x292   : > { %8833 = vmatpush3.bf16.msra.mxu1 %v11577_v54  ;;  %v8820_v31 = vpop.f32.mrb[24].mxu0 }
 0x293   : > { %v1754_v3 = vmul.f32 0.03125, %v8820_v31  ;;  %v1721_v49 = vpop.f32.mrb[25].mxu0  ;;  %8834 = vmatprep.subr.bf16.mxu1 %v11581_v56 }
 0x294   : > { %v1752_v10 = vmul.f32 0.03125, %v1721_v49  ;;  %v8821_v59 = vpop.f32.mrb[26].mxu0 }
 0x295   : > { %v11762_v33 = vsub.f32 %v11469_v26, %v1754_v3  ;;  %v1755_v34 = vmul.f32 0.03125, %v8821_v59  ;;  %v1724_v12 = vpop.f32.mrb[27].mxu0 }
 0x296   : > { %v11765_v32 = vsub.f32 %v11448_v6, %v1752_v10  ;;  %v1753_v45 = vmul.f32 0.03125, %v1724_v12  ;;  %8835 = vmatpush3.bf16.msra.mxu1 %v11581_v56 }
 0x297   : > { %v11769_v51 = vsub.f32 %v11472_v27, %v1755_v34  ;;  %8836 = vmatprep.subr.bf16.mxu1 %v11585_v57  ;;  %v1770_v26 = vmul.f32 %v11762_v33, %v11762_v33 }
 0x298   : > { %v11773_v25 = vsub.f32 %v11451_v7, %v1753_v45  ;;  %v1768_v6 = vmul.f32 %v11765_v32, %v11765_v32 }
 0x299   : > { %v1771_v35 = vmul.f32 %v11769_v51, %v11769_v51 }
 0x29a   : > { %v1769_v24 = vmul.f32 %v11773_v25, %v11773_v25  ;;  %8837 = vmatpush3.bf16.msra.mxu1 %v11585_v57  ;;  %v8824_v27 = vpop.f32.mrb[28].mxu0 }
 0x29b   : > { %v11784_v40 = vpack.c.bf16 %v1771_v35, %v1770_v26  ;;  %v1758_v13 = vmul.f32 0.03125, %v8824_v27  ;;  %v1737_v7 = vpop.f32.mrb[29].mxu0  ;;  %8838 = vmatprep.subr.bf16.mxu1 %v11589_v60 }
 0x29c   : > { %v1776_v37 = vpack.c.bf16 %v1769_v24, %v1768_v6  ;;  %v1756_v5 = vmul.f32 0.03125, %v1737_v7  ;;  %v8825_v47 = vpop.f32.mrb[30].mxu0 }
 0x29d   : > { %v1782_v39 = vunpack.c.l.bf16 %v11784_v40  ;;  %v1783_v62 = vunpack.c.h.bf16 %v11784_v40  ;;  %v11790_v36 = vsub.f32 %v11489_v42, %v1758_v13  ;;  %v1759_v63 = vmul.f32 0.03125, %v8825_v47  ;;  %v1740_v18 = vpop.f32.mrb[31].mxu0 }
 0x29e   : > { %v11793_v31 = vsub.f32 %v11476_v28, %v1756_v5  ;;  %v1757_v3 = vmul.f32 0.03125, %v1740_v18  ;;  %8839 = vmatpush3.bf16.msra.mxu1 %v11589_v60  ;;  %v1780_v49 = vunpack.c.l.bf16 %v1776_v37  ;;  %v1781_v10 = vunpack.c.h.bf16 %v1776_v37 }
 0x29f   : > { %v1790_v59 = vsub.f32 %v1770_v26, %v1782_v39  ;;  %v1791_v34 = vsub.f32 %v1771_v35, %v1783_v62  ;;  %v11797_v12 = vsub.f32 %v11492_v43, %v1759_v63  ;;  %8840 = vmatprep.subr.bf16.mxu1 %v11643_v2  ;;  %v1774_v28 = vmul.f32 %v11790_v36, %v11790_v36 }
 0x2a0   : > { %v11801_v42 = vsub.f32 %v11479_v29, %v1757_v3  ;;  %v1788_v45 = vsub.f32 %v1768_v6, %v1780_v49  ;;  %v1789_v27 = vsub.f32 %v1769_v24, %v1781_v10  ;;  %v1772_v26 = vmul.f32 %v11793_v31, %v11793_v31 }
 0x2a1   : > { %v1775_v13 = vmul.f32 %v11797_v12, %v11797_v12  ;;  %v1797_v7 = vpack.c.bf16 %v1791_v34, %v1790_v59 }
 0x2a2   : > { %v1773_v43 = vmul.f32 %v11801_v42, %v11801_v42  ;;  %8841 = vmatpush3.bf16.msra.mxu1 %v11643_v2  ;;  %v1796_v35 = vpack.c.bf16 %v1789_v27, %v1788_v45 }
 0x2a3   : > { %v1779_v29 = vpack.c.bf16 %v1775_v13, %v1774_v28  ;;  %8850 = vmatprep.subr.bf16.mxu1 %v11566_v30 }
 0x2a4   : > { %v1778_v6 = vpack.c.bf16 %v1773_v43, %v1772_v26  ;;  %8842 = vmatprep.mubr.bf16.mxu1 %v1796_v35 }
 0x2a5   : > { %8843 = vmatmul.mubr.bf16.vlgmr.msra.gmra.mrb[24].mxu1 %v1797_v7  ;;  %v1786_v24 = vunpack.c.l.bf16 %v1779_v29  ;;  %v1787_v5 = vunpack.c.h.bf16 %v1779_v29 }
 0x2a6   : > { %8851 = vmatpush3.bf16.msra.mxu1 %v11566_v30  ;;  %v1784_v47 = vunpack.c.l.bf16 %v1778_v6  ;;  %v1785_v39 = vunpack.c.h.bf16 %v1778_v6 }
 0x2a7   : > { %8852 = vmatprep.subr.bf16.mxu1 %v11569_v4  ;;  %v1794_v62 = vsub.f32 %v1774_v28, %v1786_v24  ;;  %v1795_v63 = vsub.f32 %v1775_v13, %v1787_v5 }
 0x2a8   : > { %v1792_v18 = vsub.f32 %v1772_v26, %v1784_v47  ;;  %v1793_v3 = vsub.f32 %v1773_v43, %v1785_v39  ;;  %v780_v39 = vld [vmem:[#allocation11] ss:$0 sm:$0xff] }
 0x2a9   : > { %v1799_v10 = vpack.c.bf16 %v1795_v63, %v1794_v62 }
 0x2aa   : > { %8853 = vmatpush3.bf16.msra.mxu1 %v11569_v4  ;;  %v1798_v49 = vpack.c.bf16 %v1793_v3, %v1792_v18 }
 0x2ab   : > { %8854 = vmatprep.subr.bf16.mxu1 %v11573_v52 }
 0x2ac   : > { %8846 = vmatprep.mubr.bf16.mxu1 %v1798_v49 }
 0x2ad   : > { %8847 = vmatmul.mubr.bf16.gmra.mrb[28].mxu1 %v1799_v10 }
 0x2ae   : > { %8855 = vmatpush3.bf16.msra.mxu1 %v11573_v52  ;;  %8866 = vmatprep.mubr.bf16.mxu1 %v1776_v37 }
 0x2af   : > { %8856 = vmatprep.subr.bf16.mxu1 %v11577_v54 }
 0x2b2   : > { %8857 = vmatpush3.bf16.msra.mxu1 %v11577_v54 }
 0x2b3   : > { %8858 = vmatprep.subr.bf16.mxu1 %v11581_v56 }
 0x2b6   : > { %8859 = vmatpush3.bf16.msra.mxu1 %v11581_v56 }
 0x2b7   : > { %8860 = vmatprep.subr.bf16.mxu1 %v11585_v57 }
 0x2ba   : > { %8861 = vmatpush3.bf16.msra.mxu1 %v11585_v57 }
 0x2bb   : > { %8862 = vmatprep.subr.bf16.mxu1 %v11589_v60 }
 0x2be   : > { %8863 = vmatpush3.bf16.msra.mxu1 %v11589_v60 }
 0x2bf   : > { %8864 = vmatprep.subr.bf16.mxu1 %v11643_v2 }
 0x2c2   : > { %8865 = vmatpush3.bf16.msra.mxu1 %v11643_v2 }
 0x2c5   : > { %8867 = vmatmul.mubr.bf16.vlgmr.msra.gmra.mrb[24].mxu1 %v11784_v40 }
 0x2c6   : > { %8870 = vmatprep.mubr.bf16.mxu1 %v1778_v6 }
 0x2cd   : > { %8871 = vmatmul.mubr.bf16.gmra.mrb[28].mxu1 %v1779_v29 }
 0x2d8   : > { %v8580_v30 = vpop.f32.mrb[0].mxu1 }
 0x2d9   : > { %v750_v4 = vmul.f32 0.03125, %v8580_v30  ;;  %v717_v52 = vpop.f32.mrb[1].mxu1 }
 0x2da   : > { %v748_v54 = vmul.f32 0.03125, %v717_v52  ;;  %v8581_v56 = vpop.f32.mrb[2].mxu1 }
 0x2db   : > { %v758_v37 = vadd.f32 1e-05, %v750_v4  ;;  %v751_v59 = vmul.f32 0.03125, %v8581_v56  ;;  %v720_v57 = vpop.f32.mrb[3].mxu1 }
 0x2dc   : > { %v756_v34 = vadd.f32 1e-05, %v748_v54  ;;  %v749_v45 = vmul.f32 0.03125, %v720_v57  ;;  %v789_v54 = vld [vmem:[#allocation11 + $0x1] ss:$0 sm:$0xff] }
 0x2dd   : > { %10557 = vrsqrt.f32 %v758_v37  ;;  %v759_v60 = vadd.f32 1e-05, %v751_v59 }
 0x2de   : > { %10559 = vrsqrt.f32 %v756_v34  ;;  %v757_v27 = vadd.f32 1e-05, %v749_v45 }
 0x2df   : > { %10561 = vrsqrt.f32 %v759_v60 }
 0x2e0   : > { %10563 = vrsqrt.f32 %v757_v27  ;;  %v8584_v2 = vpop.f32.mrb[4].mxu1 }
 0x2e1   : > { %v754_v40 = vmul.f32 0.03125, %v8584_v2  ;;  %v733_v28 = vpop.f32.mrb[5].mxu1 }
 0x2e2   : > { %v752_v13 = vmul.f32 0.03125, %v733_v28  ;;  %v8585_v26 = vpop.f32.mrb[6].mxu1 }
 0x2e3   : > { %v762_v43 = vadd.f32 1e-05, %v754_v40  ;;  %v755_v35 = vmul.f32 0.03125, %v8585_v26  ;;  %v736_v7 = vpop.f32.mrb[7].mxu1 }
 0x2e4   : > { %v760_v29 = vadd.f32 1e-05, %v752_v13  ;;  %v753_v6 = vmul.f32 0.03125, %v736_v7  ;;  %v14584_v7 = vmov 0  }
 0x2e5   : > { %10565 = vrsqrt.f32 %v762_v43  ;;  %v763_v24 = vadd.f32 1e-05, %v755_v35  ;;  %2057 = vmatprep.mubr.bf16.mxu0 %v14584_v7  ;;  %2130 = vmatprep.mubr.bf16.mxu1 %v14584_v7 }
 0x2e6   : > { %10567 = vrsqrt.f32 %v760_v29  ;;  %v761_v5 = vadd.f32 1e-05, %v753_v6 }
 0x2e7   : > { %v10558_v47 = vpop.eup %10557  ;;  %10569 = vrsqrt.f32 %v763_v24 }
 0x2e8   : > { %v10560_v62 = vpop.eup %10559  ;;  %v774_v63 = vmul.f32 %v10558_v47, %v11523_v8  ;;  %10571 = vrsqrt.f32 %v761_v5 }
 0x2e9   : > { %v10562_v18 = vpop.eup %10561  ;;  %v772_v3 = vmul.f32 %v10560_v62, %v11526_v11 }
 0x2ea   : > { %v10564_v49 = vpop.eup %10563  ;;  %v775_v10 = vmul.f32 %v10562_v18, %v11529_v17  ;;  %v783_v30 = vmul.f32 %v780_v39, %v774_v63 }
 0x2eb   : > { %v773_v4 = vmul.f32 %v10564_v49, %v11532_v19  ;;  %v781_v52 = vmul.f32 %v780_v39, %v772_v3 }
 0x2ec   : > { %v784_v56 = vmul.f32 %v780_v39, %v775_v10  ;;  %v11833_v59 = vadd.f32 %v789_v54, %v783_v30 }
 0x2ed   : > { %v782_v37 = vmul.f32 %v780_v39, %v773_v4  ;;  %v11837_v8 = vadd.f32 %v789_v54, %v781_v52 }
 0x2ee   : > { %v11835_v57 = vadd.f32 %v789_v54, %v784_v56 }
 0x2ef   : > { %v10566_v34 = vpop.eup %10565  ;;  %v11839_v45 = vadd.f32 %v789_v54, %v782_v37 }
 0x2f0   : > { %v10568_v11 = vpop.eup %10567  ;;  %v778_v60 = vmul.f32 %v10566_v34, %v11545_v46  ;;  %v799_v17 = vpack.c.bf16 %v11835_v57, %v11833_v59  ;;  %v11888_v59 = vld [vmem:[#allocation5 + $0x8] sm:$0xff]   ;;  %v11893_v57 = vld [vmem:[#allocation5 + $0x10] sm:$0xff]  }
 0x2f1   : > { %v10570_v19 = vpop.eup %10569  ;;  %v776_v27 = vmul.f32 %v10568_v11, %v11550_v55  ;;  %v798_v2 = vpack.c.bf16 %v11839_v45, %v11837_v8  ;;  %v11898_v8 = vld [vmem:[#allocation5 + $0x18] sm:$0xff]  }
 0x2f2   : > { %v10572_v40 = vpop.eup %10571  ;;  %v779_v28 = vmul.f32 %v10570_v19, %v11553_v61  ;;  %v787_v13 = vmul.f32 %v780_v39, %v778_v60 }
 0x2f3   : > { %v777_v26 = vmul.f32 %v10572_v40, %v11556_v21  ;;  %v785_v43 = vmul.f32 %v780_v39, %v776_v27 }
 0x2f4   : > { %v788_v35 = vmul.f32 %v780_v39, %v779_v28  ;;  %v11851_v29 = vadd.f32 %v789_v54, %v787_v13 }
 0x2f5   : > { %v786_v46 = vmul.f32 %v780_v39, %v777_v26  ;;  %v11855_v6 = vadd.f32 %v789_v54, %v785_v43 }
 0x2f6   : > { %v11853_v55 = vadd.f32 %v789_v54, %v788_v35  ;;  %v1174_v35 = vld [vmem:[#allocation11 + $0x8] ss:$0 sm:$0xff] }
 0x2f7   : > { %v11857_v24 = vadd.f32 %v789_v54, %v786_v46 }
 0x2f8   : > { %v801_v61 = vpack.c.bf16 %v11853_v55, %v11851_v29 }
 0x2f9   : > { %v800_v21 = vpack.c.bf16 %v11857_v24, %v11855_v6 }
 0x318   : > { %v8676_v5 = vpop.f32.mrb[8].mxu1 }
 0x319   : > { %v1144_v47 = vmul.f32 0.03125, %v8676_v5  ;;  %v1111_v62 = vpop.f32.mrb[9].mxu1 }
 0x31a   : > { %v1142_v63 = vmul.f32 0.03125, %v1111_v62  ;;  %v8677_v18 = vpop.f32.mrb[10].mxu1 }
 0x31b   : > { %v1152_v39 = vadd.f32 1e-05, %v1144_v47  ;;  %v1145_v3 = vmul.f32 0.03125, %v8677_v18  ;;  %v1114_v49 = vpop.f32.mrb[11].mxu1 }
 0x31c   : > { %v1150_v10 = vadd.f32 1e-05, %v1142_v63  ;;  %v1143_v30 = vmul.f32 0.03125, %v1114_v49 }
 0x31d   : > { %10573 = vrsqrt.f32 %v1152_v39  ;;  %v1153_v4 = vadd.f32 1e-05, %v1145_v3 }
 0x31e   : > { %10575 = vrsqrt.f32 %v1150_v10  ;;  %v1151_v52 = vadd.f32 1e-05, %v1143_v30  ;;  %v1183_v10 = vld [vmem:[#allocation11 + $0x9] ss:$0 sm:$0xff] }
 0x31f   : > { %10577 = vrsqrt.f32 %v1153_v4 }
 0x320   : > { %10579 = vrsqrt.f32 %v1151_v52  ;;  %v8680_v54 = vpop.f32.mrb[12].mxu1 }
 0x321   : > { %v1148_v56 = vmul.f32 0.03125, %v8680_v54  ;;  %v1127_v37 = vpop.f32.mrb[13].mxu1 }
 0x322   : > { %v1146_v34 = vmul.f32 0.03125, %v1127_v37  ;;  %v8681_v11 = vpop.f32.mrb[14].mxu1 }
 0x323   : > { %v1156_v60 = vadd.f32 1e-05, %v1148_v56  ;;  %v1149_v19 = vmul.f32 0.03125, %v8681_v11  ;;  %v1130_v27 = vpop.f32.mrb[15].mxu1 }
 0x324   : > { %v1154_v40 = vadd.f32 1e-05, %v1146_v34  ;;  %v1147_v28 = vmul.f32 0.03125, %v1130_v27 }
 0x325   : > { %10581 = vrsqrt.f32 %v1156_v60  ;;  %v1157_v13 = vadd.f32 1e-05, %v1149_v19 }
 0x326   : > { %10583 = vrsqrt.f32 %v1154_v40  ;;  %v1155_v26 = vadd.f32 1e-05, %v1147_v28 }
 0x327   : > { %v10574_v43 = vpop.eup %10573  ;;  %10585 = vrsqrt.f32 %v1157_v13 }
 0x328   : > { %v10576_v46 = vpop.eup %10575  ;;  %10587 = vrsqrt.f32 %v1155_v26  ;;  %v1168_v5 = vmul.f32 %v10574_v43, %v11606_v0 }
 0x329   : > { %v10578_v47 = vpop.eup %10577  ;;  %v1166_v62 = vmul.f32 %v10576_v46, %v11609_v15 }
 0x32a   : > { %v10580_v63 = vpop.eup %10579  ;;  %v1169_v18 = vmul.f32 %v10578_v47, %v11613_v22  ;;  %v1177_v39 = vmul.f32 %v1174_v35, %v1168_v5 }
 0x32b   : > { %v1167_v3 = vmul.f32 %v10580_v63, %v11617_v9  ;;  %v1175_v49 = vmul.f32 %v1174_v35, %v1166_v62 }
 0x32c   : > { %v1178_v30 = vmul.f32 %v1174_v35, %v1169_v18  ;;  %v1186_v52 = vadd.f32 %v1183_v10, %v1177_v39 }
 0x32d   : > { %v1176_v4 = vmul.f32 %v1174_v35, %v1167_v3  ;;  %v1184_v37 = vadd.f32 %v1183_v10, %v1175_v49  ;;  %v11909_v3 = vld [vmem:[#allocation8 + $0x10] sm:$0xff]  }
 0x32e   : > { %v1187_v54 = vadd.f32 %v1183_v10, %v1178_v30 }
 0x32f   : > { %v10582_v56 = vpop.eup %10581  ;;  %v1185_v34 = vadd.f32 %v1183_v10, %v1176_v4 }
 0x330   : > { %v10584_v11 = vpop.eup %10583  ;;  %v1193_v0 = vpack.c.bf16 %v1187_v54, %v1186_v52  ;;  %v1172_v60 = vmul.f32 %v10582_v56, %v11634_v38 }
 0x331   : > { %v10586_v15 = vpop.eup %10585  ;;  %v1192_v19 = vpack.c.bf16 %v1185_v34, %v1184_v37  ;;  %v1170_v22 = vmul.f32 %v10584_v11, %v11637_v53 }
 0x332   : > { %v10588_v27 = vpop.eup %10587  ;;  %v1173_v9 = vmul.f32 %v10586_v15, %v11641_v1  ;;  %v1181_v40 = vmul.f32 %v1174_v35, %v1172_v60 }
 0x333   : > { %2025 = vmatprep.subr.bf16.mxu0 %v1192_v19  ;;  %v1171_v28 = vmul.f32 %v10588_v27, %v11647_v58  ;;  %v1179_v13 = vmul.f32 %v1174_v35, %v1170_v22  ;;  %v11880_v58 = vld [vmem:[#allocation5] sm:$0xff]   ;;  %v1568_v19 = vld [vmem:[#allocation11 + $0x10] ss:$0 sm:$0xff] }
 0x334   : > { %2026 = vmatpush1.bf16.msra.mxu0 %v798_v2  ;;  %v1182_v26 = vmul.f32 %v1174_v35, %v1173_v9  ;;  %v1190_v38 = vadd.f32 %v1183_v10, %v1181_v40 }
 0x335   : > { %2027 = vmatprep.subr.bf16.mxu0 %v1193_v0  ;;  %v1180_v43 = vmul.f32 %v1174_v35, %v1171_v28  ;;  %v1188_v5 = vadd.f32 %v1183_v10, %v1179_v13  ;;  %v11904_v35 = vld [vmem:[#allocation8 + $0x8] sm:$0xff]  }
 0x336   : > { %v1191_v46 = vadd.f32 %v1183_v10, %v1182_v26 }
 0x337   : > { %v1189_v47 = vadd.f32 %v1183_v10, %v1180_v43 }
 0x338   : > { %2028 = vmatpush1.bf16.msra.mxu0 %v799_v17  ;;  %v1195_v53 = vpack.c.bf16 %v1191_v46, %v1190_v38  ;;  %v1577_v46 = vld [vmem:[#allocation11 + $0x11] ss:$0 sm:$0xff] }
 0x339   : > { %v1194_v1 = vpack.c.bf16 %v1189_v47, %v1188_v5 }
 0x33b   : > { %2029 = vmatprep.subr.bf16.mxu0 %v1194_v1 }
 0x33c   : > { %2030 = vmatpush1.bf16.msra.mxu0 %v800_v21  ;;  %v11902_v21 = vld [vmem:[#allocation8] sm:$0xff]  }
 0x33d   : > { %2031 = vmatprep.subr.bf16.mxu0 %v1195_v53 }
 0x340   : > { %2032 = vmatpush1.bf16.msra.mxu0 %v801_v61 }
 0x341   : > { %8874 = vmatprep.subr.bf16.mxu0 %v11902_v21 }
 0x343   : > { %7535 = vmatmul.mubr.msk.bf16.vlgmr.msra.gmra.mrb[32].mxu0 %vm2012_vm0, %v11880_v58 }
 0x344   : > { %2067 = vmatprep.mubr.bf16.mxu0 %v14584_v7  ;;  %8875 = vmatpush3.bf16.msra.mxu0 %v11902_v21 }
 0x345   : > { %8876 = vmatprep.subr.bf16.mxu0 %v11904_v35 }
 0x348   : > { %8877 = vmatpush3.bf16.msra.mxu0 %v11904_v35 }
 0x349   : > { %8878 = vmatprep.subr.bf16.mxu0 %v11909_v3 }
 0x34b   : > { %7536 = vmatmul.mubr.msk.bf16.gmra.mrb[36].mxu0 %vm2012_vm0, %v11888_v59 }
 0x34c   : > { %2077 = vmatprep.mubr.bf16.mxu0 %v14584_v7  ;;  %8879 = vmatpush3.bf16.msra.mxu0 %v11909_v3 }
 0x353   : > { %7537 = vmatmul.mubr.msk.bf16.gmra.mrb[40].mxu0 %vm2012_vm0, %v11893_v57 }
 0x354   : > { %2087 = vmatprep.mubr.bf16.mxu0 %v14584_v7 }
 0x358   : > { %v8772_v45 = vpop.f32.mrb[16].mxu1 }
 0x359   : > { %v1538_v17 = vmul.f32 0.03125, %v8772_v45  ;;  %v1505_v2 = vpop.f32.mrb[17].mxu1 }
 0x35a   : > { %v1536_v29 = vmul.f32 0.03125, %v1505_v2  ;;  %v8773_v55 = vpop.f32.mrb[18].mxu1 }
 0x35b   : > { %v1546_v6 = vadd.f32 1e-05, %v1538_v17  ;;  %v1539_v24 = vmul.f32 0.03125, %v8773_v55  ;;  %v1508_v61 = vpop.f32.mrb[19].mxu1  ;;  %7538 = vmatmul.mubr.msk.bf16.gmra.mrb[44].mxu0 %vm2012_vm0, %v11898_v8 }
 0x35c   : > { %v1544_v62 = vadd.f32 1e-05, %v1536_v29  ;;  %v1537_v63 = vmul.f32 0.03125, %v1508_v61 }
 0x35d   : > { %10589 = vrsqrt.f32 %v1546_v6  ;;  %v1547_v18 = vadd.f32 1e-05, %v1539_v24 }
 0x35e   : > { %10591 = vrsqrt.f32 %v1544_v62  ;;  %v1545_v39 = vadd.f32 1e-05, %v1537_v63 }
 0x35f   : > { %10593 = vrsqrt.f32 %v1547_v18 }
 0x360   : > { %10595 = vrsqrt.f32 %v1545_v39  ;;  %v8776_v49 = vpop.f32.mrb[20].mxu1 }
 0x361   : > { %v1542_v10 = vmul.f32 0.03125, %v8776_v49  ;;  %v1521_v30 = vpop.f32.mrb[21].mxu1 }
 0x362   : > { %v1540_v4 = vmul.f32 0.03125, %v1521_v30  ;;  %v8777_v52 = vpop.f32.mrb[22].mxu1 }
 0x363   : > { %v1550_v54 = vadd.f32 1e-05, %v1542_v10  ;;  %v1543_v56 = vmul.f32 0.03125, %v8777_v52  ;;  %v1524_v37 = vpop.f32.mrb[23].mxu1  ;;  %v11946_v52 = vld [vmem:[#allocation8 + $0x18] sm:$0xff]  }
 0x364   : > { %v1548_v34 = vadd.f32 1e-05, %v1540_v4  ;;  %v1541_v11 = vmul.f32 0.03125, %v1524_v37  ;;  %8880 = vmatprep.subr.bf16.mxu0 %v11946_v52 }
 0x365   : > { %10597 = vrsqrt.f32 %v1550_v54  ;;  %v1551_v0 = vadd.f32 1e-05, %v1543_v56  ;;  %8881 = vmatpush3.bf16.msra.mxu0 %v11946_v52 }
 0x366   : > { %10599 = vrsqrt.f32 %v1548_v34  ;;  %v1549_v60 = vadd.f32 1e-05, %v1541_v11 }
 0x367   : > { %v10590_v15 = vpop.eup %10589  ;;  %10601 = vrsqrt.f32 %v1551_v0 }
 0x368   : > { %v10592_v22 = vpop.eup %10591  ;;  %v1562_v27 = vmul.f32 %v10590_v15, %v11685_v50  ;;  %10603 = vrsqrt.f32 %v1549_v60 }
 0x369   : > { %v10594_v9 = vpop.eup %10593  ;;  %v1560_v40 = vmul.f32 %v10592_v22, %v11688_v48 }
 0x36a   : > { %v10596_v28 = vpop.eup %10595  ;;  %v1563_v13 = vmul.f32 %v10594_v9, %v11692_v14  ;;  %v1571_v26 = vmul.f32 %v1568_v19, %v1562_v27  ;;  %v11950_v9 = vld [vmem:[#allocation8 + $0x20] sm:$0xff]  }
 0x36b   : > { %v1561_v43 = vmul.f32 %v10596_v28, %v11696_v41  ;;  %v1569_v38 = vmul.f32 %v1568_v19, %v1560_v40  ;;  %8882 = vmatprep.subr.bf16.mxu0 %v11950_v9 }
 0x36c   : > { %v1572_v5 = vmul.f32 %v1568_v19, %v1563_v13  ;;  %v11918_v53 = vadd.f32 %v1577_v46, %v1571_v26  ;;  %8883 = vmatpush3.bf16.msra.mxu0 %v11950_v9 }
 0x36d   : > { %v1570_v47 = vmul.f32 %v1568_v19, %v1561_v43  ;;  %v11922_v50 = vadd.f32 %v1577_v46, %v1569_v38 }
 0x36e   : > { %v11920_v1 = vadd.f32 %v1577_v46, %v1572_v5 }
 0x36f   : > { %v10598_v45 = vpop.eup %10597  ;;  %v11924_v17 = vadd.f32 %v1577_v46, %v1570_v47 }
 0x370   : > { %v10600_v48 = vpop.eup %10599  ;;  %v1566_v2 = vmul.f32 %v10598_v45, %v11713_v23  ;;  %v1587_v14 = vpack.c.bf16 %v11920_v1, %v11918_v53 }
 0x371   : > { %v10602_v41 = vpop.eup %10601  ;;  %v1564_v29 = vmul.f32 %v10600_v48, %v11716_v20  ;;  %v1586_v55 = vpack.c.bf16 %v11924_v17, %v11922_v50 }
 0x372   : > { %v10604_v6 = vpop.eup %10603  ;;  %v1567_v24 = vmul.f32 %v10602_v41, %v11720_v16  ;;  %v1575_v61 = vmul.f32 %v1568_v19, %v1566_v2  ;;  %v1962_v41 = vld [vmem:[#allocation11 + $0x18] ss:$0 sm:$0xff] }
 0x373   : > { %v1565_v62 = vmul.f32 %v10604_v6, %v11724_v44  ;;  %v1573_v63 = vmul.f32 %v1568_v19, %v1564_v29 }
 0x374   : > { %v1576_v18 = vmul.f32 %v1568_v19, %v1567_v24  ;;  %v11934_v49 = vadd.f32 %v1577_v46, %v1575_v61  ;;  %v11955_v24 = vld [vmem:[#allocation8 + $0x28] sm:$0xff]  }
 0x375   : > { %v1574_v39 = vmul.f32 %v1568_v19, %v1565_v62  ;;  %v11938_v10 = vadd.f32 %v1577_v46, %v1573_v63  ;;  %8884 = vmatprep.subr.bf16.mxu0 %v11955_v24 }
 0x376   : > { %v11936_v23 = vadd.f32 %v1577_v46, %v1576_v18  ;;  %8885 = vmatpush3.bf16.msra.mxu0 %v11955_v24 }
 0x377   : > { %v11940_v30 = vadd.f32 %v1577_v46, %v1574_v39 }
 0x378   : > { %v1589_v20 = vpack.c.bf16 %v11936_v23, %v11934_v49 }
 0x379   : > { %v1588_v16 = vpack.c.bf16 %v11940_v30, %v11938_v10 }
 0x398   : > { %v8868_v4 = vpop.f32.mrb[24].mxu1 }
 0x399   : > { %v1932_v44 = vmul.f32 0.03125, %v8868_v4  ;;  %v1899_v54 = vpop.f32.mrb[25].mxu1 }
 0x39a   : > { %v1930_v56 = vmul.f32 0.03125, %v1899_v54  ;;  %v8869_v37 = vpop.f32.mrb[26].mxu1  ;;  %v1971_v54 = vld [vmem:[#allocation11 + $0x19] ss:$0 sm:$0xff] }
 0x39b   : > { %v1940_v34 = vadd.f32 1e-05, %v1932_v44  ;;  %v1933_v11 = vmul.f32 0.03125, %v8869_v37  ;;  %v1902_v0 = vpop.f32.mrb[27].mxu1 }
 0x39c   : > { %v1938_v60 = vadd.f32 1e-05, %v1930_v56  ;;  %v1931_v15 = vmul.f32 0.03125, %v1902_v0 }
 0x39d   : > { %10605 = vrsqrt.f32 %v1940_v34  ;;  %v1941_v19 = vadd.f32 1e-05, %v1933_v11 }
 0x39e   : > { %10607 = vrsqrt.f32 %v1938_v60  ;;  %v1939_v22 = vadd.f32 1e-05, %v1931_v15 }
 0x39f   : > { %10609 = vrsqrt.f32 %v1941_v19  ;;  %v11963_v19 = vld [vmem:[#allocation8 + $0x30] sm:$0xff]  }
 0x3a0   : > { %10611 = vrsqrt.f32 %v1939_v22  ;;  %v8872_v27 = vpop.f32.mrb[28].mxu1  ;;  %8886 = vmatprep.subr.bf16.mxu0 %v11963_v19 }
 0x3a1   : > { %v1936_v40 = vmul.f32 0.03125, %v8872_v27  ;;  %v1915_v28 = vpop.f32.mrb[29].mxu1  ;;  %8887 = vmatpush3.bf16.msra.mxu0 %v11963_v19 }
 0x3a2   : > { %v1934_v13 = vmul.f32 0.03125, %v1915_v28  ;;  %v8873_v26 = vpop.f32.mrb[30].mxu1 }
 0x3a3   : > { %v1944_v43 = vadd.f32 1e-05, %v1936_v40  ;;  %v1937_v38 = vmul.f32 0.03125, %v8873_v26  ;;  %v1918_v46 = vpop.f32.mrb[31].mxu1  ;;  %v11966_v40 = vld [vmem:[#allocation8 + $0x38] sm:$0xff]  }
 0x3a4   : > { %v1942_v5 = vadd.f32 1e-05, %v1934_v13  ;;  %v1935_v47 = vmul.f32 0.03125, %v1918_v46  ;;  %8888 = vmatprep.subr.bf16.mxu0 %v11966_v40 }
 0x3a5   : > { %10613 = vrsqrt.f32 %v1944_v43  ;;  %v1945_v45 = vadd.f32 1e-05, %v1937_v38  ;;  %8889 = vmatpush3.bf16.msra.mxu0 %v11966_v40 }
 0x3a6   : > { %10615 = vrsqrt.f32 %v1942_v5  ;;  %v1943_v48 = vadd.f32 1e-05, %v1935_v47  ;;  %8922 = vmatprep.subr.bf16.mxu0 %v11902_v21 }
 0x3a7   : > { %v10606_v2 = vpop.eup %10605  ;;  %10617 = vrsqrt.f32 %v1945_v45 }
 0x3a8   : > { %v10608_v29 = vpop.eup %10607  ;;  %10619 = vrsqrt.f32 %v1943_v48  ;;  %v1956_v6 = vmul.f32 %v10606_v2, %v11762_v33 }
 0x3a9   : > { %v10610_v61 = vpop.eup %10609  ;;  %v1954_v62 = vmul.f32 %v10608_v29, %v11765_v32 }
 0x3aa   : > { %v10612_v63 = vpop.eup %10611  ;;  %v1957_v18 = vmul.f32 %v10610_v61, %v11769_v51  ;;  %v1965_v39 = vmul.f32 %v1962_v41, %v1956_v6 }
 0x3ab   : > { %v1955_v4 = vmul.f32 %v10612_v63, %v11773_v25  ;;  %v1963_v44 = vmul.f32 %v1962_v41, %v1954_v62 }
 0x3ac   : > { %v1966_v56 = vmul.f32 %v1962_v41, %v1957_v18  ;;  %v1974_v33 = vadd.f32 %v1971_v54, %v1965_v39 }
 0x3ad   : > { %v1964_v37 = vmul.f32 %v1962_v41, %v1955_v4  ;;  %v1972_v0 = vadd.f32 %v1971_v54, %v1963_v44 }
 0x3ae   : > { %v1975_v34 = vadd.f32 %v1971_v54, %v1966_v56 }
 0x3af   : > { %v10614_v11 = vpop.eup %10613  ;;  %v1973_v60 = vadd.f32 %v1971_v54, %v1964_v37 }
 0x3b0   : > { %v10616_v32 = vpop.eup %10615  ;;  %v1981_v15 = vpack.c.bf16 %v1975_v34, %v1974_v33  ;;  %v1960_v51 = vmul.f32 %v10614_v11, %v11790_v36 }
 0x3b1   : > { %v10618_v22 = vpop.eup %10617  ;;  %v1980_v27 = vpack.c.bf16 %v1973_v60, %v1972_v0  ;;  %v1958_v25 = vmul.f32 %v10616_v32, %v11793_v31 }
 0x3b2   : > { %v10620_v28 = vpop.eup %10619  ;;  %v1961_v13 = vmul.f32 %v10618_v22, %v11797_v12  ;;  %v1969_v26 = vmul.f32 %v1962_v41, %v1960_v51 }
 0x3b3   : > { %2098 = vmatprep.subr.bf16.mxu1 %v1980_v27  ;;  %v1959_v43 = vmul.f32 %v10620_v28, %v11801_v42  ;;  %v1967_v38 = vmul.f32 %v1962_v41, %v1958_v25 }
 0x3b4   : > { %2099 = vmatpush1.bf16.msra.mxu1 %v1586_v55  ;;  %v1970_v36 = vmul.f32 %v1962_v41, %v1961_v13  ;;  %v1978_v46 = vadd.f32 %v1971_v54, %v1969_v26 }
 0x3b5   : > { %2100 = vmatprep.subr.bf16.mxu1 %v1981_v15  ;;  %v1968_v31 = vmul.f32 %v1962_v41, %v1959_v43  ;;  %v1976_v5 = vadd.f32 %v1971_v54, %v1967_v38 }
 0x3b6   : > { %v1979_v12 = vadd.f32 %v1971_v54, %v1970_v36 }
 0x3b7   : > { %v1977_v47 = vadd.f32 %v1971_v54, %v1968_v31 }
 0x3b8   : > { %2101 = vmatpush1.bf16.msra.mxu1 %v1587_v14  ;;  %v1983_v42 = vpack.c.bf16 %v1979_v12, %v1978_v46 }
 0x3b9   : > { %v1982_v50 = vpack.c.bf16 %v1977_v47, %v1976_v5 }
 0x3bb   : > { %2102 = vmatprep.subr.bf16.mxu1 %v1982_v50 }
 0x3bc   : > { %2103 = vmatpush1.bf16.msra.mxu1 %v1588_v16 }
 0x3bd   : > { %2104 = vmatprep.subr.bf16.mxu1 %v1983_v42 }
 0x3c0   : > { %2105 = vmatpush1.bf16.msra.mxu1 %v1589_v20 }
 0x3c1   : > { %8898 = vmatprep.subr.bf16.mxu1 %v11902_v21 }
 0x3c3   : > { %7539 = vmatmul.mubr.msk.bf16.vlgmr.msra.gmra.mrb[32].mxu1 %vm2012_vm0, %v11880_v58  ;;  %v2171_v58 = vlaneseq }
 0x3c4   : > { %2140 = vmatprep.mubr.bf16.mxu1 %v14584_v7  ;;  %8899 = vmatpush3.bf16.msra.mxu1 %v11902_v21 }
 0x3c5   : > { %8900 = vmatprep.subr.bf16.mxu1 %v11904_v35 }
 0x3c8   : > { %8901 = vmatpush3.bf16.msra.mxu1 %v11904_v35 }
 0x3c9   : > { %8902 = vmatprep.subr.bf16.mxu1 %v11909_v3 }
 0x3cb   : > { %7540 = vmatmul.mubr.msk.bf16.gmra.mrb[36].mxu1 %vm2012_vm0, %v11888_v59  ;;  %v12015_v59 = vshrl.u32 %v2171_v58, 7 }
 0x3cc   : > { %2150 = vmatprep.mubr.bf16.mxu1 %v14584_v7  ;;  %8903 = vmatpush3.bf16.msra.mxu1 %v11909_v3 }
 0x3cd   : > { %8904 = vmatprep.subr.bf16.mxu1 %v11946_v52  ;;  %vm2220_vm1 = vcmp.lt.s32.totalorder %v12015_v59, 5  ;;  %vm2697_vm2 = vcmp.lt.s32.totalorder %v12015_v59, 4  ;;  %vm3174_vm3 = vcmp.lt.s32.totalorder %v12015_v59, 3  ;;  %vm3651_vm4 = vcmp.lt.s32.totalorder %v12015_v59, 2 }
 0x3ce   : > { %vm2253_vm5 = vcmp.ge.s32.totalorder %v12015_v59, 5  ;;  %vm4128_vm8 = vcmp.lt.s32.totalorder %v12015_v59, 1  ;;  %vm4977_vm9 = vcmp.lt.s32.totalorder %v12015_v59, 7  ;;  %vm5454_vm10 = vcmp.lt.s32.totalorder %v12015_v59, 6 }
 0x3cf   : > { %vm12322_vm7 = vmpackc.low %vm10891_vm6, %vm2253_vm5  ;;  %vm2730_vm11 = vcmp.ge.s32.totalorder %v12015_v59, 4  ;;  %vm3207_vm13 = vcmp.ge.s32.totalorder %v12015_v59, 3  ;;  %vm3684_vm15 = vcmp.ge.s32.totalorder %v12015_v59, 2 }
 0x3d0   : > { %8905 = vmatpush3.bf16.msra.mxu1 %v11946_v52  ;;  %vm13362_vm12 = vmpackc.low %vm10891_vm6, %vm2730_vm11 }
 0x3d1   : > { %8906 = vmatprep.subr.bf16.mxu1 %v11950_v9  ;;  %vm13920_vm14 = vmpackc.low %vm10891_vm6, %vm3207_vm13 }
 0x3d3   : > { %7541 = vmatmul.mubr.msk.bf16.gmra.mrb[40].mxu1 %vm2012_vm0, %v11893_v57 }
 0x3d4   : > { %2160 = vmatprep.mubr.bf16.mxu1 %v14584_v7  ;;  %8907 = vmatpush3.bf16.msra.mxu1 %v11950_v9 }
 0x3d5   : > { %8908 = vmatprep.subr.bf16.mxu1 %v11955_v24 }
 0x3d8   : > { %8909 = vmatpush3.bf16.msra.mxu1 %v11955_v24 }
 0x3d9   : > { %8910 = vmatprep.subr.bf16.mxu1 %v11963_v19 }
 0x3db   : > { %7542 = vmatmul.mubr.msk.bf16.gmra.mrb[44].mxu1 %vm2012_vm0, %v11898_v8 }
 0x3dc   : > { %8911 = vmatpush3.bf16.msra.mxu1 %v11963_v19 }
 0x3dd   : > { %8912 = vmatprep.subr.bf16.mxu1 %v11966_v40 }
 0x3e0   : > { %8913 = vmatpush3.bf16.msra.mxu1 %v11966_v40 }
 0x3e1   : > { %8946 = vmatprep.subr.bf16.mxu1 %v11902_v21 }
 0x416   : > { %v12017_v57 = vpop.f32.mrb[32].mxu0 }
 0x417   : > { %14899 = vst [vmem:[#allocation19_spill] sm:$0xff] %v12017_v57  ;;  %v12023_v8 = vpop.f32.mrb[33].mxu0  ;;  %v14595_v53 = vrot.slane %v12017_v57, 3  ;;  %v14594_v1 = vrot.slane %v12017_v57, 4  ;;  %v14591_v17 = vrot.slane %v12017_v57, 5  ;;  %v14589_v14 = vrot.slane %v12017_v57, 6 }
 0x418   : > { %14900 = vst [vmem:[#allocation20_spill] sm:$0xff] %v12023_v8  ;;  %v12029_v55 = vpop.f32.mrb[34].mxu0  ;;  %v14593_v49 = vrot.slane %v12023_v8, 3  ;;  %v14592_v23 = vrot.slane %v12023_v8, 4  ;;  %v14590_v10 = vrot.slane %v12023_v8, 5  ;;  %v14586_v30 = vrot.slane %v12023_v8, 6 }
 0x419   : > { %14901 = vst [vmem:[#allocation21_spill] sm:$0xff] %v12029_v55  ;;  %v12035_v20 = vpop.f32.mrb[35].mxu0  ;;  %v2192_v16 = vrot.slane %v12029_v55, 3  ;;  %v2669_v45 = vrot.slane %v12029_v55, 4  ;;  %v3146_v48 = vrot.slane %v12029_v55, 5  ;;  %v3623_v2 = vrot.slane %v12029_v55, 6 }
 0x41a   : > { %14902 = vst [vmem:[#allocation22_spill] sm:$0xff] %v12035_v20  ;;  %v2193_v41 = vrot.slane %v12035_v20, 3  ;;  %v2670_v29 = vrot.slane %v12035_v20, 4  ;;  %v3147_v6 = vrot.slane %v12035_v20, 5  ;;  %v14587_v61 = vrot.slane %v12035_v20, 6 }
 0x41b   : > { %v12049_v62 = vsel %vm2220_vm1, %v14595_v53, %v2192_v16  ;;  %v12055_v63 = vsel %vm2697_vm2, %v14594_v1, %v2669_v45  ;;  %v12061_v18 = vsel %vm3174_vm3, %v14591_v17, %v3146_v48  ;;  %v12067_v39 = vsel %vm3651_vm4, %v14589_v14, %v3623_v2 }
 0x41c   : > { %14903 = vst [vmem:[#allocation23_spill] sm:$0xff] %v12049_v62  ;;  %14904 = vst [vmem:[#allocation24_spill] sm:$0xff] %v12055_v63  ;;  %v12073_v4 = vsel %vm2220_vm1, %v14593_v49, %v2193_v41  ;;  %v12079_v44 = vsel %vm2697_vm2, %v14592_v23, %v2670_v29  ;;  %v12085_v54 = vsel %vm3174_vm3, %v14590_v10, %v3147_v6 }
 0x41d   : > { %14905 = vst [vmem:[#allocation25_spill] sm:$0xff] %v12061_v18  ;;  %14906 = vst [vmem:[#allocation26_spill] sm:$0xff] %v12067_v39  ;;  %v12093_v56 = vsel %vm3651_vm4, %v14586_v30, %v14587_v61  ;;  %v14986_v39 = vrot.slane %v12035_v20, 6 }
 0x41e   : > { %14907 = vst [vmem:[#allocation27_spill] sm:$0xff] %v12073_v4  ;;  %14908 = vst [vmem:[#allocation28_spill] sm:$0xff] %v12079_v44  ;;  %v12095_v37 = vpop.f32.mrb[36].mxu0 }
 0x41f   : > { %14909 = vst [vmem:[#allocation29_spill] sm:$0xff] %v12085_v54  ;;  %14910 = vst [vmem:[#allocation30_spill] sm:$0xff] %v12093_v56  ;;  %v12101_v60 = vpop.f32.mrb[37].mxu0  ;;  %v2196_v32 = vrot.slane %v12095_v37, 3  ;;  %v2673_v15 = vrot.slane %v12095_v37, 4  ;;  %v3150_v51 = vrot.slane %v12095_v37, 5 }
 0x420   : > { %14911 = vst [vmem:[#allocation31_spill] sm:$0xff] %v12095_v37  ;;  %14912 = vst [vmem:[#allocation32_spill] sm:$0xff] %v12101_v60  ;;  %v14588_v22 = vrot.slane %v12095_v37, 6  ;;  %v12107_v27 = vpop.f32.mrb[38].mxu0  ;;  %v2197_v25 = vrot.slane %v12101_v60, 3  ;;  %v2674_v28 = vrot.slane %v12101_v60, 4 }
 0x421   : > { %14913 = vst [vmem:[#allocation33_spill] sm:$0xff] %v12107_v27  ;;  %v3151_v13 = vrot.slane %v12101_v60, 5  ;;  %v12113_v43 = vpop.f32.mrb[39].mxu0  ;;  %v2200_v38 = vrot.slane %v12107_v27, 3  ;;  %v12118_v36 = vsel %vm2220_vm1, %v2192_v16, %v2196_v32  ;;  %v2677_v31 = vrot.slane %v12107_v27, 4 }
 0x422   : > { %14914 = vst [vmem:[#allocation34_spill] sm:$0xff] %v12113_v43  ;;  %14915 = vst [vmem:[#allocation35_spill] sm:$0xff] %v12118_v36  ;;  %v12123_v46 = vsel %vm2697_vm2, %v2669_v45, %v2673_v15  ;;  %v2201_v12 = vrot.slane %v12113_v43, 3  ;;  %v12128_v5 = vsel %vm2220_vm1, %v2193_v41, %v2197_v25  ;;  %v2678_v47 = vrot.slane %v12113_v43, 4 }
 0x423   : > { %14916 = vst [vmem:[#allocation36_spill] sm:$0xff] %v12123_v46  ;;  %14917 = vst [vmem:[#allocation37_spill] sm:$0xff] %v12128_v5  ;;  %v12133_v42 = vsel %vm2697_vm2, %v2670_v29, %v2674_v28  ;;  %v12137_v50 = vsel %vm2220_vm1, %v2196_v32, %v2200_v38  ;;  %v12141_v58 = vsel %vm2697_vm2, %v2673_v15, %v2677_v31  ;;  %v3154_v16 = vrot.slane %v12107_v27, 5 }
 0x424   : > { %14918 = vst [vmem:[#allocation38_spill] sm:$0xff] %v12133_v42  ;;  %14919 = vst [vmem:[#allocation39_spill] sm:$0xff] %v12137_v50  ;;  %v12146_v45 = vsel %vm3174_vm3, %v3146_v48, %v3150_v51  ;;  %v12152_v29 = vsel %vm2220_vm1, %v2197_v25, %v2201_v12  ;;  %v12158_v15 = vsel %vm2697_vm2, %v2674_v28, %v2678_v47  ;;  %v3155_v25 = vrot.slane %v12113_v43, 5 }
 0x425   : > { %14920 = vst [vmem:[#allocation40_spill] sm:$0xff] %v12141_v58  ;;  %14921 = vst [vmem:[#allocation41_spill] sm:$0xff] %v12146_v45  ;;  %v12166_v11 = vsel %vm3174_vm3, %v3150_v51, %v3154_v16  ;;  %v12175_v28 = vsel %vm3174_vm3, %v3147_v6, %v3151_v13  ;;  %v12182_v48 = vsel %vm3651_vm4, %v3623_v2, %v14588_v22 }
 0x426   : > { %14922 = vst [vmem:[#allocation42_spill] sm:$0xff] %v12152_v29  ;;  %14923 = vst [vmem:[#allocation43_spill] sm:$0xff] %v12158_v15  ;;  %v12169_v0 = vpop.f32.mrb[40].mxu0  ;;  %v12191_v6 = vsel %vm3174_vm3, %v3151_v13, %v3155_v25 }
 0x427   : > { %14924 = vst [vmem:[#allocation44_spill] sm:$0xff] %v12166_v11  ;;  %14925 = vst [vmem:[#allocation45_spill] sm:$0xff] %v12169_v0  ;;  %v12184_v51 = vpop.f32.mrb[41].mxu0  ;;  %v2204_v34 = vrot.slane %v12169_v0, 3  ;;  %v2681_v30 = vrot.slane %v12169_v0, 4  ;;  %v3158_v32 = vrot.slane %v12169_v0, 5 }
 0x428   : > { %14926 = vst [vmem:[#allocation46_spill] sm:$0xff] %v12175_v28  ;;  %14927 = vst [vmem:[#allocation47_spill] sm:$0xff] %v12182_v48  ;;  %v12193_v61 = vpop.f32.mrb[42].mxu0  ;;  %v2205_v26 = vrot.slane %v12184_v51, 3  ;;  %v2682_v2 = vrot.slane %v12184_v51, 4  ;;  %v3159_v33 = vrot.slane %v12184_v51, 5 }
 0x429   : > { %14928 = vst [vmem:[#allocation48_spill] sm:$0xff] %v12184_v51  ;;  %14929 = vst [vmem:[#allocation49_spill] sm:$0xff] %v12191_v6  ;;  %v12201_v14 = vpop.f32.mrb[43].mxu0  ;;  %v2208_v10 = vrot.slane %v12193_v61, 3  ;;  %v12206_v13 = vsel %vm2220_vm1, %v2200_v38, %v2204_v34  ;;  %v2685_v17 = vrot.slane %v12193_v61, 4  ;;  %v12211_v7 = vsel %vm2697_vm2, %v2677_v31, %v2681_v30 }
 0x42a   : > { %14930 = vst [vmem:[#allocation50_spill] sm:$0xff] %v12193_v61  ;;  %14931 = vst [vmem:[#allocation51_spill] sm:$0xff] %v12201_v14  ;;  %v2209_v22 = vrot.slane %v12201_v14, 3  ;;  %v12218_v23 = vsel %vm2220_vm1, %v2201_v12, %v2205_v26  ;;  %v2686_v41 = vrot.slane %v12201_v14, 4  ;;  %v12243_v49 = vsel %vm2697_vm2, %v2678_v47, %v2682_v2 }
 0x42b   : > { %14932 = vst [vmem:[#allocation52_spill] sm:$0xff] %v12206_v13  ;;  %14933 = vst [vmem:[#allocation53_spill] sm:$0xff] %v12211_v7  ;;  %v12224_v38 = vsel %vm2220_vm1, %v2204_v34, %v2208_v10  ;;  %v12230_v1 = vsel %vm2697_vm2, %v2681_v30, %v2685_v17  ;;  %v12260_v47 = vsel %vm3174_vm3, %v3154_v16, %v3158_v32  ;;  %v14944_v15 = vrot.slane %v12193_v61, 5 }
 0x42c   : > { %14934 = vst [vmem:[#allocation54_spill] sm:$0xff] %v12218_v23  ;;  %14935 = vst [vmem:[#allocation55_spill] sm:$0xff] %v12224_v38  ;;  %v2301_v12 = vpack.c.bf16 %v12224_v38, %v12206_v13  ;;  %v12237_v53 = vsel %vm2220_vm1, %v2205_v26, %v2209_v22  ;;  %v12249_v31 = vsel %vm2697_vm2, %v2682_v2, %v2686_v41  ;;  %v14947_v45 = vrot.slane %v12201_v14, 5 }
 0x42d   : > { %14936 = vst [vmem:[#allocation56_spill] sm:$0xff] %v12230_v1  ;;  %14937 = vst [vmem:[#allocation57_spill] sm:$0xff] %v12237_v53  ;;  %v2302_v30 = vpack.c.bf16 %v12237_v53, %v12218_v23  ;;  %v12265_v2 = vsel %vm3174_vm3, %v3155_v25, %v3159_v33  ;;  %v12275_v34 = vsel %vm3174_vm3, %v3158_v32, %v14944_v15  ;;  %v14962_v53 = vrot.slane %v12023_v8, 3 }
 0x42e   : > { %14938 = vst [vmem:[#allocation58_spill] sm:$0xff] %v12243_v49  ;;  %14939 = vst [vmem:[#allocation59_spill] sm:$0xff] %v12249_v31  ;;  %v12254_v58 = vpop.f32.mrb[44].mxu0  ;;  %v12289_v31 = vsel %vm3174_vm3, %v3159_v33, %v14947_v45 }
 0x42f   : > { %14940 = vst [vmem:[#allocation60_spill] sm:$0xff] %v12254_v58  ;;  %14941 = vst [vmem:[#allocation61_spill] sm:$0xff] %v12260_v47  ;;  %v12267_v7 = vpop.f32.mrb[45].mxu0  ;;  %v2212_v13 = vrot.slane %v12254_v58, 3  ;;  %v2689_v26 = vrot.slane %v12254_v58, 4 }
 0x430   : > { %14942 = vst [vmem:[#allocation62_spill] sm:$0xff] %v12265_v2  ;;  %14943 = vst [vmem:[#allocation63_spill] sm:$0xff] %v12267_v7  ;;  %v12279_v23 = vpop.f32.mrb[46].mxu0  ;;  %v2213_v25 = vrot.slane %v12267_v7, 3  ;;  %v2690_v49 = vrot.slane %v12267_v7, 4 }
 0x431   : > { %14945 = vst [vmem:[#allocation64_spill] sm:$0xff] %v12275_v34  ;;  %14946 = vst [vmem:[#allocation65_spill] sm:$0xff] %v12279_v23  ;;  %v12291_v32 = vpop.f32.mrb[47].mxu0  ;;  %v2216_v15 = vrot.slane %v12279_v23, 3  ;;  %v12296_v16 = vsel %vm2220_vm1, %v2208_v10, %v2212_v13  ;;  %v2693_v11 = vrot.slane %v12279_v23, 4  ;;  %v12301_v1 = vsel %vm2697_vm2, %v2685_v17, %v2689_v26 }
 0x432   : > { %14948 = vst [vmem:[#allocation66_spill] sm:$0xff] %v12289_v31  ;;  %14949 = vst [vmem:[#allocation67_spill] sm:$0xff] %v12291_v32  ;;  %v2217_v28 = vrot.slane %v12291_v32, 3  ;;  %v12306_v33 = vsel %vm2220_vm1, %v2209_v22, %v2213_v25  ;;  %v2694_v45 = vrot.slane %v12291_v32, 4  ;;  %v12311_v47 = vsel %vm2697_vm2, %v2686_v41, %v2690_v49 }
 0x433   : > { %14950 = vst [vmem:[#allocation68_spill] sm:$0xff] %v12296_v16  ;;  %14951 = vst [vmem:[#allocation69_spill] sm:$0xff] %v12301_v1  ;;  %v14954_v10 = vrot.slane %v12017_v57, 3  ;;  %v12328_v22 = vsel %vm2220_vm1, %v2212_v13, %v2216_v15  ;;  %v14959_v41 = vrot.slane %v12017_v57, 4 }
 0x434   : > { %14952 = vst [vmem:[#allocation70_spill] sm:$0xff] %v12306_v33  ;;  %14953 = vst [vmem:[#allocation71_spill] sm:$0xff] %v12311_v47  ;;  %v12346_v38 = vsel %vm2220_vm1, %v2217_v28, %v14962_v53  ;;  %v2305_v13 = vpack.c.bf16 %v12328_v22, %v12296_v16 }
 0x435   : > { %v12317_v34 = vsel %vm2220_vm1, %v2216_v15, %v14954_v10  ;;  %14958 = vst [vmem:[#allocation73_spill] sm:$0xff] %v12328_v22  ;;  %v12334_v42 = vsel %vm2697_vm2, %v2693_v11, %v14959_v41  ;;  %v12338_v10 = vsel %vm2697_vm2, %v2689_v26, %v2693_v11  ;;  %14963 = vst [vmem:[#allocation76_spill] sm:$0xff] %v12346_v38  ;;  %v3170_v22 = vrot.slane %v12279_v23, 5 }
 0x436   : > { %14955 = vst [vmem:[#allocation72_spill] sm:$0xff] %v12317_v34  ;;  %14960 = vst [vmem:[#allocation74_spill] sm:$0xff] %v12334_v42  ;;  %v7552_v46 = vpack.c.bf16 %v12049_v62, %v12317_v34  ;;  %v7555_v41 = vpack.c.bf16 %v12073_v4, %v12346_v38  ;;  %v12356_v11 = vsel %vm2220_vm1, %v2213_v25, %v2217_v28  ;;  %v14965_v62 = vrot.slane %v12023_v8, 4 }
 0x437   : > { %14961 = vst [vmem:[#allocation75_spill] sm:$0xff] %v12338_v10  ;;  %14964 = vst [vmem:[#allocation77_spill] sm:$0xff] %v12356_v11  ;;  %v2306_v15 = vpack.c.bf16 %v12356_v11, %v12306_v33  ;;  %v12385_v26 = vsel %vm2697_vm2, %v2690_v49, %v2694_v45  ;;  %v3171_v28 = vrot.slane %v12291_v32, 5  ;;  %v14969_v25 = vpack.c.bf16 %v12152_v29, %v12128_v5 }
 0x438   : > { %v12364_v53 = vsel %vm2697_vm2, %v2694_v45, %v14965_v62  ;;  %8890 = vmatprep.mubr.msk.bf16.mxu0 %vm12322_vm7, %v7552_v46  ;;  %8914 = vmatprep.mubr.msk.bf16.mxu1 %vm12322_vm7, %v7555_v41  ;;  %v14967_v62 = vpack.c.bf16 %v12137_v50, %v12118_v36  ;;  %14968 = vst [vmem:[#allocation79_spill] sm:$0xff] %v12385_v26  ;;  %v3166_v49 = vrot.slane %v12254_v58, 5  ;;  %v14970_v45 = vrot.slane %v12017_v57, 5 }
 0x439   : > { %14966 = vst [vmem:[#allocation78_spill] sm:$0xff] %v12364_v53  ;;  %8915 = vmatmul.mubr.bf16.vlgmr.msra.gmra.mrb[48].mxu1 %v14969_v25  ;;  %v3167_v46 = vrot.slane %v12267_v7, 5  ;;  %v14982_v34 = vrot.slane %v12107_v27, 6  ;;  %v3635_v29 = vrot.slane %v12169_v0, 6  ;;  %v3632_v50 = vrot.slane %v12113_v43, 6 }
 0x43a   : > { %8891 = vmatmul.mubr.bf16.vlgmr.msra.gmra.mrb[48].mxu0 %v14967_v62  ;;  %8918 = vmatprep.mubr.bf16.mxu1 %v2302_v30  ;;  %v12404_v25 = vsel %vm3174_vm3, %v3170_v22, %v14970_v45  ;;  %v12423_v11 = vsel %vm3174_vm3, %v3166_v49, %v3170_v22  ;;  %v14975_v62 = vrot.slane %v12193_v61, 5  ;;  %v14978_v22 = vrot.slane %v12201_v14, 5 }
 0x43b   : > { %8894 = vmatprep.mubr.bf16.mxu0 %v2301_v12  ;;  %8923 = vmatpush3.bf16.msra.mxu0 %v11902_v21  ;;  %14971 = vst [vmem:[#allocation80_spill] sm:$0xff] %v12404_v25  ;;  %v14972_v12 = vrot.slane %v12023_v8, 5  ;;  %14974 = vst [vmem:[#allocation82_spill] sm:$0xff] %v12423_v11  ;;  %v12437_v45 = vsel %vm3174_vm3, %v3167_v46, %v3171_v28  ;;  %v14980_v30 = vrot.slane %v12017_v57, 6 }
 0x43c   : > { %8947 = vmatpush3.bf16.msra.mxu1 %v11902_v21  ;;  %8924 = vmatprep.subr.bf16.mxu0 %v11904_v35  ;;  %v12431_v21 = vsel %vm3174_vm3, %v14975_v62, %v3166_v49  ;;  %14977 = vst [vmem:[#allocation84_spill] sm:$0xff] %v12437_v45  ;;  %v12443_v38 = vsel %vm3174_vm3, %v14978_v22, %v3167_v46  ;;  %v3648_v22 = vrot.slane %v12291_v32, 6  ;;  %v14983_v62 = vrot.slane %v12095_v37, 6 }
 0x43d   : > { %v12410_v41 = vsel %vm3174_vm3, %v3171_v28, %v14972_v12  ;;  %v3647_v12 = vrot.slane %v12279_v23, 6  ;;  %8948 = vmatprep.subr.bf16.mxu1 %v11904_v35  ;;  %14976 = vst [vmem:[#allocation83_spill] sm:$0xff] %v12431_v21  ;;  %14979 = vst [vmem:[#allocation85_spill] sm:$0xff] %v12443_v38  ;;  %v3639_v46 = vrot.slane %v12193_v61, 6  ;;  %v3643_v45 = vrot.slane %v12254_v58, 6 }
 0x43e   : > { %14973 = vst [vmem:[#allocation81_spill] sm:$0xff] %v12410_v41  ;;  %v12467_v49 = vsel %vm3651_vm4, %v14983_v62, %v14982_v34 }
 0x43f   : > { %v12455_v28 = vsel %vm3651_vm4, %v3647_v12, %v14980_v30  ;;  %8925 = vmatpush3.bf16.msra.mxu0 %v11904_v35  ;;  %14984 = vst [vmem:[#allocation87_spill] sm:$0xff] %v12467_v49  ;;  %v14990_v30 = vrot.slane %v12107_v27, 6  ;;  %v3636_v49 = vrot.slane %v12184_v51, 6 }
 0x440   : > { %14981 = vst [vmem:[#allocation86_spill] sm:$0xff] %v12455_v28  ;;  %8949 = vmatpush3.bf16.msra.mxu1 %v11904_v35  ;;  %8926 = vmatprep.subr.bf16.mxu0 %v11909_v3  ;;  %v14985_v28 = vrot.slane %v12101_v60, 6  ;;  %v14988_v35 = vrot.slane %v12023_v8, 6 }
 0x441   : > { %8950 = vmatprep.subr.bf16.mxu1 %v11909_v3  ;;  %v12495_v48 = vsel %vm3651_vm4, %v14990_v30, %v3635_v29  ;;  %8919 = vmatmul.mubr.bf16.gmra.mrb[52].mxu1 %v2306_v15  ;;  %v4124_v15 = vrot.slane %v12279_v23, 7 }
 0x442   : > { %v12482_v34 = vsel %vm3651_vm4, %v14986_v39, %v14985_v28  ;;  %8895 = vmatmul.mubr.bf16.gmra.mrb[52].mxu0 %v2305_v13  ;;  %v12489_v62 = vsel %vm3651_vm4, %v3648_v22, %v14988_v35  ;;  %14991 = vst [vmem:[#allocation90_spill] sm:$0xff] %v12495_v48  ;;  %v3640_v39 = vrot.slane %v12201_v14, 6  ;;  %v12504_v28 = vsel %vm3651_vm4, %v3635_v29, %v3639_v46 }
 0x443   : > { %14987 = vst [vmem:[#allocation88_spill] sm:$0xff] %v12482_v34  ;;  %14989 = vst [vmem:[#allocation89_spill] sm:$0xff] %v12489_v62  ;;  %v14993_v35 = vrot.slane %v12101_v60, 6  ;;  %8927 = vmatpush3.bf16.msra.mxu0 %v11909_v3  ;;  %v12523_v29 = vsel %vm3651_vm4, %v3632_v50, %v3636_v49  ;;  %v3644_v48 = vrot.slane %v12267_v7, 6  ;;  %v14997_v34 = vrot.slane %v12029_v55, 7 }
 0x444   : > { %14992 = vst [vmem:[#allocation91_spill] sm:$0xff] %v12504_v28  ;;  %v12519_v13 = vsel %vm3651_vm4, %v3636_v49, %v3640_v39  ;;  %14996 = vst [vmem:[#allocation94_spill] sm:$0xff] %v12523_v29  ;;  %8951 = vmatpush3.bf16.msra.mxu1 %v11909_v3  ;;  %8928 = vmatprep.subr.bf16.mxu0 %v11946_v52  ;;  %v4125_v49 = vrot.slane %v12291_v32, 7  ;;  %v15001_v29 = vrot.slane %v12023_v8, 7 }
 0x445   : > { %v12510_v30 = vsel %vm3651_vm4, %v14993_v35, %v3632_v50  ;;  %14995 = vst [vmem:[#allocation93_spill] sm:$0xff] %v12519_v13  ;;  %8952 = vmatprep.subr.bf16.mxu1 %v11946_v52  ;;  %v14998_v50 = vrot.slane %v12017_v57, 7  ;;  %v15000_v35 = vrot.slane %v12035_v20, 7  ;;  %v12553_v28 = vsel %vm3651_vm4, %v3643_v45, %v3647_v12 }
 0x446   : > { %14994 = vst [vmem:[#allocation92_spill] sm:$0xff] %v12510_v30  ;;  %v4104_v30 = vrot.slane %v12095_v37, 7  ;;  %15003 = vst [vmem:[#allocation97_spill] sm:$0xff] %v12553_v28  ;;  %v12565_v62 = vsel %vm3651_vm4, %v3640_v39, %v3644_v48  ;;  %v15011_v12 = vrot.slane %v12029_v55, 7 }
 0x447   : > { %v12539_v3 = vsel %vm4128_vm8, %v14998_v50, %v14997_v34  ;;  %v12548_v13 = vsel %vm4128_vm8, %v15001_v29, %v15000_v35  ;;  %v12557_v34 = vsel %vm3651_vm4, %v3639_v46, %v3643_v45  ;;  %v12561_v50 = vsel %vm3651_vm4, %v3644_v48, %v3648_v22  ;;  %15006 = vst [vmem:[#allocation100_spill] sm:$0xff] %v12565_v62 }
 0x448   : > { %14999 = vst [vmem:[#allocation95_spill] sm:$0xff] %v12539_v3  ;;  %15002 = vst [vmem:[#allocation96_spill] sm:$0xff] %v12548_v13  ;;  %8929 = vmatpush3.bf16.msra.mxu0 %v11946_v52  ;;  %v15007_v35 = vrot.slane %v12017_v57, 7  ;;  %v15009_v46 = vmov %v15001_v29  ;;  %8953 = vmatpush3.bf16.msra.mxu1 %v11946_v52  ;;  %v4112_v52 = vrot.slane %v12169_v0, 7  ;;  %v4116_v29 = vrot.slane %v12193_v61, 7 }
 0x449   : > { %15004 = vst [vmem:[#allocation98_spill] sm:$0xff] %v12557_v34  ;;  %15005 = vst [vmem:[#allocation99_spill] sm:$0xff] %v12561_v50  ;;  %v12582_v48 = vsel %vm4128_vm8, %v4125_v49, %v15009_v46  ;;  %8930 = vmatprep.subr.bf16.mxu0 %v11950_v9  ;;  %v12596_v46 = vsel %vm4128_vm8, %v15011_v12, %v4104_v30  ;;  %8954 = vmatprep.subr.bf16.mxu1 %v11950_v9  ;;  %v4105_v62 = vrot.slane %v12101_v60, 7 }
 0x44a   : > { %v12576_v45 = vsel %vm4128_vm8, %v4124_v15, %v15007_v35  ;;  %15010 = vst [vmem:[#allocation102_spill] sm:$0xff] %v12582_v48  ;;  %v4108_v35 = vrot.slane %v12107_v27, 7  ;;  %15012 = vst [vmem:[#allocation103_spill] sm:$0xff] %v12596_v46  ;;  %v4109_v22 = vrot.slane %v12113_v43, 7  ;;  %v4113_v48 = vrot.slane %v12184_v51, 7 }
 0x44b   : > { %15008 = vst [vmem:[#allocation101_spill] sm:$0xff] %v12576_v45  ;;  %v4117_v13 = vrot.slane %v12201_v14, 7  ;;  %v4120_v12 = vrot.slane %v12254_v58, 7  ;;  %v12615_v3 = vsel %vm4128_vm8, %v4112_v52, %v4116_v29  ;;  %v15017_v45 = vrot.slane %v12035_v20, 7 }
 0x44c   : > { %v12605_v39 = vsel %vm4128_vm8, %v4104_v30, %v4108_v35  ;;  %8931 = vmatpush3.bf16.msra.mxu0 %v11950_v9  ;;  %15014 = vst [vmem:[#allocation105_spill] sm:$0xff] %v12615_v3  ;;  %v12619_v50 = vsel %vm4128_vm8, %v4108_v35, %v4112_v52  ;;  %v12623_v30 = vsel %vm4128_vm8, %v4105_v62, %v4109_v22  ;;  %v4121_v52 = vrot.slane %v12267_v7, 7 }
 0x44d   : > { %15013 = vst [vmem:[#allocation104_spill] sm:$0xff] %v12605_v39  ;;  %15015 = vst [vmem:[#allocation106_spill] sm:$0xff] %v12619_v50  ;;  %8955 = vmatpush3.bf16.msra.mxu1 %v11950_v9  ;;  %8932 = vmatprep.subr.bf16.mxu0 %v11955_v24  ;;  %v12633_v46 = vsel %vm4128_vm8, %v15017_v45, %v4105_v62  ;;  %v12637_v35 = vsel %vm4128_vm8, %v4113_v48, %v4117_v13  ;;  %v4957_v3 = vrot.slane %v12107_v27, 1 }
 0x44e   : > { %15016 = vst [vmem:[#allocation107_spill] sm:$0xff] %v12623_v30  ;;  %15018 = vst [vmem:[#allocation108_spill] sm:$0xff] %v12633_v46  ;;  %8956 = vmatprep.subr.bf16.mxu1 %v11955_v24  ;;  %v12645_v34 = vsel %vm4128_vm8, %v4109_v22, %v4113_v48  ;;  %v12649_v50 = vsel %vm4128_vm8, %v4120_v12, %v4124_v15  ;;  %v12653_v62 = vsel %vm4128_vm8, %v4116_v29, %v4120_v12 }
 0x44f   : > { %15019 = vst [vmem:[#allocation109_spill] sm:$0xff] %v12637_v35  ;;  %15020 = vst [vmem:[#allocation110_spill] sm:$0xff] %v12645_v34  ;;  %v12661_v9 = vsel %vm4128_vm8, %v4121_v52, %v4125_v49  ;;  %v12665_v48 = vsel %vm4128_vm8, %v4117_v13, %v4121_v52  ;;  %v4945_v29 = vrot.slane %v12017_v57, 1  ;;  %v4949_v22 = vrot.slane %v12029_v55, 1 }
 0x450   : > { %15021 = vst [vmem:[#allocation111_spill] sm:$0xff] %v12649_v50  ;;  %15022 = vst [vmem:[#allocation112_spill] sm:$0xff] %v12653_v62  ;;  %8933 = vmatpush3.bf16.msra.mxu0 %v11955_v24  ;;  %v4953_v13 = vrot.slane %v12095_v37, 1  ;;  %v4946_v49 = vrot.slane %v12023_v8, 1  ;;  %v4950_v52 = vrot.slane %v12035_v20, 1  ;;  %v4954_v15 = vrot.slane %v12101_v60, 1 }
 0x451   : > { %15023 = vst [vmem:[#allocation113_spill] sm:$0xff] %v12661_v9  ;;  %15024 = vst [vmem:[#allocation114_spill] sm:$0xff] %v12665_v48  ;;  %8957 = vmatpush3.bf16.msra.mxu1 %v11955_v24  ;;  %8934 = vmatprep.subr.bf16.mxu0 %v11963_v19  ;;  %v12704_v24 = vsel %vm4977_vm9, %v4945_v29, %v4949_v22  ;;  %v4961_v45 = vrot.slane %v12169_v0, 1  ;;  %v4965_v48 = vrot.slane %v12193_v61, 1  ;;  %v12710_v9 = vld [vmem:[#allocation8 + $0x40] sm:$0xff]   ;;  %v4969_v34 = vrot.slane %v12254_v58, 1 }
 0x452   : > { %8958 = vmatprep.subr.bf16.mxu1 %v11963_v19  ;;  %v12700_v12 = vsel %vm4977_vm9, %v4949_v22, %v4953_v13  ;;  %15026 = vst [vmem:[#allocation116_spill] sm:$0xff] %v12704_v24  ;;  %v12716_v50 = vsel %vm4977_vm9, %v4950_v52, %v4954_v15  ;;  %v12720_v22 = vsel %vm4977_vm9, %v4946_v49, %v4950_v52 }
 0x453   : > { %15025 = vst [vmem:[#allocation115_spill] sm:$0xff] %v12700_v12  ;;  %15027 = vst [vmem:[#allocation117_spill] sm:$0xff] %v12716_v50  ;;  %v12728_v35 = vsel %vm4977_vm9, %v4957_v3, %v4961_v45  ;;  %v12732_v62 = vsel %vm4977_vm9, %v4953_v13, %v4957_v3  ;;  %v12736_v24 = vsel %vm4977_vm9, %v4961_v45, %v4965_v48  ;;  %v4966_v13 = vrot.slane %v12201_v14, 1 }
 0x454   : > { %8935 = vmatpush3.bf16.msra.mxu0 %v11963_v19  ;;  %15028 = vst [vmem:[#allocation118_spill] sm:$0xff] %v12720_v22  ;;  %15029 = vst [vmem:[#allocation119_spill] sm:$0xff] %v12728_v35  ;;  %v12742_v12 = vsel %vm4977_vm9, %v4965_v48, %v4969_v34  ;;  %v4962_v22 = vrot.slane %v12184_v51, 1  ;;  %v4970_v45 = vrot.slane %v12267_v7, 1  ;;  %v4973_v50 = vrot.slane %v12279_v23, 1 }
 0x455   : > { %8959 = vmatpush3.bf16.msra.mxu1 %v11963_v19  ;;  %8936 = vmatprep.subr.bf16.mxu0 %v11966_v40  ;;  %15030 = vst [vmem:[#allocation120_spill] sm:$0xff] %v12732_v62  ;;  %15031 = vst [vmem:[#allocation121_spill] sm:$0xff] %v12736_v24  ;;  %v4958_v19 = vrot.slane %v12113_v43, 1  ;;  %v4974_v3 = vrot.slane %v12291_v32, 1  ;;  %v5422_v24 = vrot.slane %v12017_v57, 2 }
 0x456   : > { %8960 = vmatprep.subr.bf16.mxu1 %v11966_v40  ;;  %15032 = vst [vmem:[#allocation122_spill] sm:$0xff] %v12742_v12  ;;  %v12773_v62 = vsel %vm4977_vm9, %v4962_v22, %v4966_v13  ;;  %v12783_v35 = vsel %vm4977_vm9, %v4973_v50, %v4945_v29  ;;  %v5427_v29 = vrot.slane %v12035_v20, 2 }
 0x457   : > { %v12756_v48 = vsel %vm4977_vm9, %v4958_v19, %v4962_v22  ;;  %v12760_v52 = vsel %vm4977_vm9, %v4954_v15, %v4958_v19  ;;  %15036 = vst [vmem:[#allocation126_spill] sm:$0xff] %v12773_v62  ;;  %v12777_v15 = vsel %vm4977_vm9, %v4969_v34, %v4973_v50  ;;  %15038 = vst [vmem:[#allocation128_spill] sm:$0xff] %v12783_v35  ;;  %v5430_v19 = vrot.slane %v12095_v37, 2 }
 0x458   : > { %8937 = vmatpush3.bf16.msra.mxu0 %v11966_v40  ;;  %15033 = vst [vmem:[#allocation123_spill] sm:$0xff] %v12756_v48  ;;  %15034 = vst [vmem:[#allocation124_spill] sm:$0xff] %v12760_v52  ;;  %v12787_v12 = vsel %vm4977_vm9, %v4970_v45, %v4974_v3  ;;  %v12791_v52 = vsel %vm4977_vm9, %v4974_v3, %v4946_v49  ;;  %v5423_v50 = vrot.slane %v12023_v8, 2  ;;  %v5434_v62 = vrot.slane %v12107_v27, 2 }
 0x459   : > { %8961 = vmatpush3.bf16.msra.mxu1 %v11966_v40  ;;  %8970 = vmatprep.subr.bf16.mxu0 %v12710_v9  ;;  %v12769_v40 = vsel %vm4977_vm9, %v4966_v13, %v4970_v45  ;;  %15037 = vst [vmem:[#allocation127_spill] sm:$0xff] %v12777_v15  ;;  %15039 = vst [vmem:[#allocation129_spill] sm:$0xff] %v12787_v12  ;;  %v5426_v13 = vrot.slane %v12029_v55, 2  ;;  %v5431_v45 = vrot.slane %v12101_v60, 2  ;;  %v5438_v34 = vrot.slane %v12169_v0, 2 }
 0x45a   : > { %8994 = vmatprep.subr.bf16.mxu1 %v12710_v9  ;;  %15035 = vst [vmem:[#allocation125_spill] sm:$0xff] %v12769_v40  ;;  %15040 = vst [vmem:[#allocation130_spill] sm:$0xff] %v12791_v52  ;;  %v5442_v22 = vrot.slane %v12193_v61, 2  ;;  %v12821_v15 = vsel %vm5454_vm10, %v5423_v50, %v5427_v29  ;;  %v12825_v35 = vsel %vm5454_vm10, %v5430_v19, %v5434_v62  ;;  %v5446_v12 = vrot.slane %v12254_v58, 2 }
 0x45b   : > { %v12805_v49 = vsel %vm5454_vm10, %v5426_v13, %v5430_v19  ;;  %v12809_v3 = vsel %vm5454_vm10, %v5422_v24, %v5426_v13  ;;  %v12817_v52 = vsel %vm5454_vm10, %v5427_v29, %v5431_v45  ;;  %15044 = vst [vmem:[#allocation134_spill] sm:$0xff] %v12821_v15  ;;  %15045 = vst [vmem:[#allocation135_spill] sm:$0xff] %v12825_v35  ;;  %v5439_v19 = vrot.slane %v12184_v51, 2 }
 0x45c   : > { %15041 = vst [vmem:[#allocation131_spill] sm:$0xff] %v12805_v49  ;;  %15042 = vst [vmem:[#allocation132_spill] sm:$0xff] %v12809_v3  ;;  %v12831_v40 = vsel %vm5454_vm10, %v5434_v62, %v5438_v34  ;;  %v12836_v3 = vsel %vm5454_vm10, %v5438_v34, %v5442_v22  ;;  %v5435_v49 = vrot.slane %v12113_v43, 2  ;;  %v5443_v48 = vrot.slane %v12201_v14, 2 }
 0x45d   : > { %15043 = vst [vmem:[#allocation133_spill] sm:$0xff] %v12817_v52  ;;  %15046 = vst [vmem:[#allocation136_spill] sm:$0xff] %v12831_v40  ;;  %v12845_v13 = vsel %vm5454_vm10, %v5442_v22, %v5446_v12  ;;  %v5447_v62 = vrot.slane %v12267_v7, 2  ;;  %v5450_v15 = vrot.slane %v12279_v23, 2  ;;  %v5451_v34 = vrot.slane %v12291_v32, 2 }
 0x45e   : > { %15047 = vst [vmem:[#allocation137_spill] sm:$0xff] %v12836_v3  ;;  %15048 = vst [vmem:[#allocation138_spill] sm:$0xff] %v12845_v13  ;;  %v12854_v29 = vsel %vm5454_vm10, %v5435_v49, %v5439_v19  ;;  %v12858_v35 = vsel %vm5454_vm10, %v5431_v45, %v5435_v49  ;;  %v12862_v22 = vsel %vm5454_vm10, %v5439_v19, %v5443_v48 }
 0x45f   : > { %15049 = vst [vmem:[#allocation139_spill] sm:$0xff] %v12854_v29  ;;  %15050 = vst [vmem:[#allocation140_spill] sm:$0xff] %v12858_v35  ;;  %v12868_v7 = vsel %vm5454_vm10, %v5443_v48, %v5447_v62  ;;  %v12872_v52 = vsel %vm5454_vm10, %v5446_v12, %v5450_v15  ;;  %v12876_v3 = vsel %vm5454_vm10, %v5450_v15, %v5422_v24 }
 0x460   : > { %15051 = vst [vmem:[#allocation141_spill] sm:$0xff] %v12862_v22  ;;  %15052 = vst [vmem:[#allocation142_spill] sm:$0xff] %v12868_v7  ;;  %v12884_v19 = vsel %vm5454_vm10, %v5447_v62, %v5451_v34  ;;  %v12888_v48 = vsel %vm5454_vm10, %v5451_v34, %v5423_v50  ;;  %v15062_v7 = vld [vmem:[#allocation56_spill] sm:$0xff] }
 0x461   : > { %15053 = vst [vmem:[#allocation143_spill] sm:$0xff] %v12872_v52  ;;  %15054 = vst [vmem:[#allocation144_spill] sm:$0xff] %v12876_v3  ;;  %v15060_v3 = vld [vmem:[#allocation36_spill] sm:$0xff] }
 0x462   : > { %15055 = vst [vmem:[#allocation145_spill] sm:$0xff] %v12884_v19  ;;  %15056 = vst [vmem:[#allocation146_spill] sm:$0xff] %v12888_v48 }
 0x496   : > { %v12916_v52 = vpop.f32.mrb[32].mxu1 }
 0x497   : > { %v12918_v34 = vpop.f32.mrb[33].mxu1  ;;  %v15067_v40 = vrot.slane %v12916_v52, 3  ;;  %v15069_v29 = vrot.slane %v12916_v52, 4  ;;  %v15071_v32 = vrot.slane %v12916_v52, 5  ;;  %v15073_v22 = vrot.slane %v12916_v52, 6 }
 0x498   : > { %v12924_v5 = vpop.f32.mrb[34].mxu1  ;;  %v15081_v43 = vrot.slane %v12918_v34, 6  ;;  %v15129_v17 = vrot.slane %v12918_v34, 5 }
 0x499   : > { %v12930_v36 = vpop.f32.mrb[35].mxu1  ;;  %v2194_v12 = vrot.slane %v12924_v5, 3  ;;  %v2671_v24 = vrot.slane %v12924_v5, 4  ;;  %v3148_v33 = vrot.slane %v12924_v5, 5  ;;  %v3625_v4 = vrot.slane %v12924_v5, 6 }
 0x49a   : > { %v2195_v48 = vrot.slane %v12930_v36, 3  ;;  %v2672_v45 = vrot.slane %v12930_v36, 4  ;;  %v3149_v62 = vrot.slane %v12930_v36, 5 }
 0x49b   : > { %v12944_v35 = vsel %vm2220_vm1, %v15067_v40, %v2194_v12  ;;  %v12950_v13 = vsel %vm2697_vm2, %v15069_v29, %v2671_v24  ;;  %v12956_v58 = vsel %vm3174_vm3, %v15071_v32, %v3148_v33  ;;  %v12962_v23 = vsel %vm3651_vm4, %v15073_v22, %v3625_v4 }
 0x49c   : > { %15068 = vst [vmem:[#allocation147_spill] sm:$0xff] %v12944_v35  ;;  %15070 = vst [vmem:[#allocation148_spill] sm:$0xff] %v12950_v13  ;;  %v15075_v40 = vrot.slane %v12918_v34, 3  ;;  %v15076_v29 = vrot.slane %v12918_v34, 4  ;;  %v15078_v32 = vrot.slane %v12918_v34, 5  ;;  %v15080_v22 = vrot.slane %v12930_v36, 6 }
 0x49d   : > { %15072 = vst [vmem:[#allocation149_spill] sm:$0xff] %v12956_v58  ;;  %15074 = vst [vmem:[#allocation150_spill] sm:$0xff] %v12962_v23  ;;  %v15146_v23 = vrot.slane %v12930_v36, 6 }
 0x49e   : > { %v12968_v51 = vsel %vm2220_vm1, %v15075_v40, %v2195_v48  ;;  %v12974_v14 = vsel %vm2697_vm2, %v15076_v29, %v2672_v45  ;;  %v12980_v60 = vsel %vm3174_vm3, %v15078_v32, %v3149_v62  ;;  %v12988_v40 = vsel %vm3651_vm4, %v15081_v43, %v15080_v22  ;;  %v12993_v37 = vpop.f32.mrb[36].mxu1 }
 0x49f   : > { %15077 = vst [vmem:[#allocation151_spill] sm:$0xff] %v12974_v14  ;;  %15079 = vst [vmem:[#allocation152_spill] sm:$0xff] %v12980_v60  ;;  %v13001_v43 = vpop.f32.mrb[37].mxu1  ;;  %v2198_v22 = vrot.slane %v12993_v37, 3  ;;  %v2675_v0 = vrot.slane %v12993_v37, 4  ;;  %v3152_v29 = vrot.slane %v12993_v37, 5 }
 0x4a0   : > { %v13007_v57 = vpop.f32.mrb[38].mxu1  ;;  %v2199_v27 = vrot.slane %v13001_v43, 3  ;;  %v2676_v32 = vrot.slane %v13001_v43, 4  ;;  %v3153_v8 = vrot.slane %v13001_v43, 5  ;;  %v15092_v49 = vrot.slane %v12993_v37, 6 }
 0x4a1   : > { %v13013_v55 = vpop.f32.mrb[39].mxu1  ;;  %v2202_v46 = vrot.slane %v13007_v57, 3  ;;  %v13018_v30 = vsel %vm2220_vm1, %v2194_v12, %v2198_v22  ;;  %v2679_v61 = vrot.slane %v13007_v57, 4  ;;  %v13023_v39 = vsel %vm2697_vm2, %v2671_v24, %v2675_v0 }
 0x4a2   : > { %15082 = vst [vmem:[#allocation153_spill] sm:$0xff] %v13018_v30  ;;  %15083 = vst [vmem:[#allocation154_spill] sm:$0xff] %v13023_v39  ;;  %v2203_v28 = vrot.slane %v13013_v55, 3  ;;  %v13028_v56 = vsel %vm2220_vm1, %v2195_v48, %v2199_v27  ;;  %v2680_v20 = vrot.slane %v13013_v55, 4  ;;  %v13033_v38 = vsel %vm2697_vm2, %v2672_v45, %v2676_v32 }
 0x4a3   : > { %15084 = vst [vmem:[#allocation155_spill] sm:$0xff] %v13033_v38  ;;  %v13037_v12 = vsel %vm2220_vm1, %v2198_v22, %v2202_v46  ;;  %v13041_v24 = vsel %vm2697_vm2, %v2675_v0, %v2679_v61  ;;  %v3156_v21 = vrot.slane %v13007_v57, 5  ;;  %v13046_v48 = vsel %vm3174_vm3, %v3148_v33, %v3152_v29 }
 0x4a4   : > { %15085 = vst [vmem:[#allocation156_spill] sm:$0xff] %v13037_v12  ;;  %15086 = vst [vmem:[#allocation157_spill] sm:$0xff] %v13041_v24  ;;  %v13052_v45 = vsel %vm2220_vm1, %v2199_v27, %v2203_v28  ;;  %v13058_v0 = vsel %vm2697_vm2, %v2676_v32, %v2680_v20  ;;  %v3157_v27 = vrot.slane %v13013_v55, 5  ;;  %v13075_v32 = vsel %vm3174_vm3, %v3149_v62, %v3153_v8 }
 0x4a5   : > { %15087 = vst [vmem:[#allocation158_spill] sm:$0xff] %v13046_v48  ;;  %15088 = vst [vmem:[#allocation159_spill] sm:$0xff] %v13052_v45  ;;  %v13066_v11 = vsel %vm3174_vm3, %v3152_v29, %v3156_v21  ;;  %v13082_v33 = vsel %vm3651_vm4, %v3625_v4, %v15092_v49 }
 0x4a6   : > { %15089 = vst [vmem:[#allocation160_spill] sm:$0xff] %v13058_v0  ;;  %15090 = vst [vmem:[#allocation161_spill] sm:$0xff] %v13066_v11  ;;  %v13069_v31 = vpop.f32.mrb[40].mxu1  ;;  %v13091_v62 = vsel %vm3174_vm3, %v3153_v8, %v3157_v27 }
 0x4a7   : > { %15091 = vst [vmem:[#allocation162_spill] sm:$0xff] %v13075_v32  ;;  %15093 = vst [vmem:[#allocation163_spill] sm:$0xff] %v13082_v33  ;;  %v13084_v29 = vpop.f32.mrb[41].mxu1  ;;  %v2206_v6 = vrot.slane %v13069_v31, 3  ;;  %v2683_v16 = vrot.slane %v13069_v31, 4  ;;  %v3160_v22 = vrot.slane %v13069_v31, 5 }
 0x4a8   : > { %15094 = vst [vmem:[#allocation164_spill] sm:$0xff] %v13091_v62  ;;  %v13093_v15 = vpop.f32.mrb[42].mxu1  ;;  %v2207_v2 = vrot.slane %v13084_v29, 3  ;;  %v2684_v41 = vrot.slane %v13084_v29, 4  ;;  %v3161_v49 = vrot.slane %v13084_v29, 5 }
 0x4a9   : > { %v13100_v54 = vpop.f32.mrb[43].mxu1  ;;  %v2210_v25 = vrot.slane %v13093_v15, 3  ;;  %v13105_v18 = vsel %vm2220_vm1, %v2202_v46, %v2206_v6  ;;  %v2687_v8 = vrot.slane %v13093_v15, 4  ;;  %v13110_v48 = vsel %vm2697_vm2, %v2679_v61, %v2683_v16 }
 0x4aa   : > { %15095 = vst [vmem:[#allocation165_spill] sm:$0xff] %v13105_v18  ;;  %15096 = vst [vmem:[#allocation166_spill] sm:$0xff] %v13110_v48  ;;  %v2211_v4 = vrot.slane %v13100_v54, 3  ;;  %v13117_v32 = vsel %vm2220_vm1, %v2203_v28, %v2207_v2  ;;  %v2688_v38 = vrot.slane %v13100_v54, 4  ;;  %v13142_v39 = vsel %vm2697_vm2, %v2680_v20, %v2684_v41 }
 0x4ab   : > { %15097 = vst [vmem:[#allocation167_spill] sm:$0xff] %v13117_v32  ;;  %v13123_v46 = vsel %vm2220_vm1, %v2206_v6, %v2210_v25  ;;  %v13129_v47 = vsel %vm2697_vm2, %v2683_v16, %v2687_v8  ;;  %15101 = vst [vmem:[#allocation171_spill] sm:$0xff] %v13142_v39  ;;  %v13159_v20 = vsel %vm3174_vm3, %v3156_v21, %v3160_v22  ;;  %v15105_v0 = vrot.slane %v13093_v15, 5 }
 0x4ac   : > { %15098 = vst [vmem:[#allocation168_spill] sm:$0xff] %v13123_v46  ;;  %15099 = vst [vmem:[#allocation169_spill] sm:$0xff] %v13129_v47  ;;  %v2303_v28 = vpack.c.bf16 %v13123_v46, %v13105_v18  ;;  %v13136_v26 = vsel %vm2220_vm1, %v2207_v2, %v2211_v4  ;;  %v13148_v61 = vsel %vm2697_vm2, %v2684_v41, %v2688_v38  ;;  %v15107_v47 = vrot.slane %v13100_v54, 5 }
 0x4ad   : > { %15100 = vst [vmem:[#allocation170_spill] sm:$0xff] %v13136_v26  ;;  %15102 = vst [vmem:[#allocation172_spill] sm:$0xff] %v13148_v61  ;;  %v13164_v41 = vsel %vm3174_vm3, %v3157_v27, %v3161_v49  ;;  %v13174_v6 = vsel %vm3174_vm3, %v3160_v22, %v15105_v0 }
 0x4ae   : > { %v13153_v24 = vpop.f32.mrb[44].mxu1  ;;  %15103 = vst [vmem:[#allocation173_spill] sm:$0xff] %v13159_v20  ;;  %15104 = vst [vmem:[#allocation174_spill] sm:$0xff] %v13164_v41  ;;  %v13188_v46 = vsel %vm3174_vm3, %v3161_v49, %v15107_v47  ;;  %v15113_v20 = vrot.slane %v12916_v52, 3  ;;  %v3641_v41 = vrot.slane %v13093_v15, 6 }
 0x4af   : > { %v13166_v48 = vpop.f32.mrb[45].mxu1  ;;  %v2214_v18 = vrot.slane %v13153_v24, 3  ;;  %v2691_v2 = vrot.slane %v13153_v24, 4  ;;  %15106 = vst [vmem:[#allocation175_spill] sm:$0xff] %v13174_v6  ;;  %15108 = vst [vmem:[#allocation176_spill] sm:$0xff] %v13188_v46 }
 0x4b0   : > { %v13178_v16 = vpop.f32.mrb[46].mxu1  ;;  %v2215_v27 = vrot.slane %v13166_v48, 3  ;;  %v2692_v39 = vrot.slane %v13166_v48, 4 }
 0x4b1   : > { %v13190_v22 = vpop.f32.mrb[47].mxu1  ;;  %v2218_v0 = vrot.slane %v13178_v16, 3  ;;  %v13195_v21 = vsel %vm2220_vm1, %v2210_v25, %v2214_v18  ;;  %v2695_v11 = vrot.slane %v13178_v16, 4  ;;  %v13200_v1 = vsel %vm2697_vm2, %v2687_v8, %v2691_v2 }
 0x4b2   : > { %15109 = vst [vmem:[#allocation177_spill] sm:$0xff] %v13195_v21  ;;  %15110 = vst [vmem:[#allocation178_spill] sm:$0xff] %v13200_v1  ;;  %v2219_v61 = vrot.slane %v13190_v22, 3  ;;  %v13205_v47 = vsel %vm2220_vm1, %v2211_v4, %v2215_v27  ;;  %v2696_v49 = vrot.slane %v13190_v22, 4  ;;  %v13211_v25 = vsel %vm2697_vm2, %v2688_v38, %v2692_v39 }
 0x4b3   : > { %15111 = vst [vmem:[#allocation179_spill] sm:$0xff] %v13205_v47  ;;  %15112 = vst [vmem:[#allocation180_spill] sm:$0xff] %v13211_v25  ;;  %v13217_v8 = vsel %vm2220_vm1, %v2218_v0, %v15113_v20  ;;  %v13221_v6 = vsel %vm2220_vm1, %v2214_v18, %v2218_v0  ;;  %v15116_v4 = vrot.slane %v12916_v52, 4  ;;  %v13231_v38 = vsel %vm2697_vm2, %v2691_v2, %v2695_v11 }
 0x4b4   : > { %15114 = vst [vmem:[#allocation181_spill] sm:$0xff] %v13217_v8  ;;  %15115 = vst [vmem:[#allocation182_spill] sm:$0xff] %v13221_v6  ;;  %v7558_v19 = vpack.c.bf16 %v12944_v35, %v13217_v8  ;;  %v15119_v20 = vrot.slane %v12918_v34, 3  ;;  %v2307_v18 = vpack.c.bf16 %v13221_v6, %v13195_v21  ;;  %v13251_v2 = vsel %vm2220_vm1, %v2215_v27, %v2219_v61 }
 0x4b5   : > { %v13227_v10 = vsel %vm2697_vm2, %v2695_v11, %v15116_v4  ;;  %15118 = vst [vmem:[#allocation184_spill] sm:$0xff] %v13231_v38  ;;  %v13247_v11 = vld [vmem:[#allocation8 + $0x48] sm:$0xff]   ;;  %15121 = vst [vmem:[#allocation186_spill] sm:$0xff] %v13251_v2  ;;  %v15124_v35 = vpack.c.bf16 %v13037_v12, %v13018_v30  ;;  %v3172_v6 = vrot.slane %v13178_v16, 5  ;;  %v15131_v0 = vpack.c.bf16 %v13136_v26, %v13117_v32 }
 0x4b6   : > { %15117 = vst [vmem:[#allocation183_spill] sm:$0xff] %v13227_v10  ;;  %v13239_v50 = vsel %vm2220_vm1, %v2219_v61, %v15119_v20  ;;  %v15122_v20 = vrot.slane %v12918_v34, 4  ;;  %8938 = vmatprep.mubr.msk.bf16.mxu0 %vm12322_vm7, %v7558_v19  ;;  %v3173_v61 = vrot.slane %v13190_v22, 5  ;;  %v3168_v19 = vrot.slane %v13153_v24, 5  ;;  %vm13982_vm1 = vmpackc.low %vm10891_vm6, %vm3684_vm15 }
 0x4b7   : > { %15120 = vst [vmem:[#allocation185_spill] sm:$0xff] %v13239_v50  ;;  %v7561_v4 = vpack.c.bf16 %v12968_v51, %v13239_v50  ;;  %8939 = vmatmul.mubr.bf16.vlgmr.msra.gmra.mrb[56].mxu0 %v15124_v35  ;;  %v3649_v27 = vrot.slane %v13178_v16, 6  ;;  %v15133_v8 = vrot.slane %v13093_v15, 5  ;;  %v15142_v32 = vrot.slane %v13007_v57, 6 }
 0x4b8   : > { %v13259_v21 = vsel %vm2697_vm2, %v2696_v49, %v15122_v20  ;;  %v13280_v20 = vsel %vm2697_vm2, %v2692_v39, %v2696_v49  ;;  %8971 = vmatpush3.bf16.msra.mxu0 %v12710_v9  ;;  %8942 = vmatprep.mubr.bf16.mxu0 %v2303_v28  ;;  %v15126_v39 = vpack.c.bf16 %v13052_v45, %v13028_v56  ;;  %v13296_v49 = vld [vmem:[#allocation8 + $0x50] sm:$0xff]   ;;  %v15127_v28 = vrot.slane %v12916_v52, 5 }
 0x4b9   : > { %15123 = vst [vmem:[#allocation187_spill] sm:$0xff] %v13259_v21  ;;  %8962 = vmatprep.mubr.msk.bf16.mxu1 %vm12322_vm7, %v7561_v4  ;;  %15125 = vst [vmem:[#allocation188_spill] sm:$0xff] %v13280_v20  ;;  %8972 = vmatprep.subr.bf16.mxu0 %v13247_v11  ;;  %v13308_v4 = vsel %vm3174_vm3, %v3173_v61, %v15129_v17  ;;  %v13323_v17 = vsel %vm3174_vm3, %v3168_v19, %v3172_v6  ;;  %vm4161_vm2 = vcmp.ge.s32.totalorder %v12015_v59, 1 }
 0x4ba   : > { %8963 = vmatmul.mubr.bf16.vlgmr.msra.gmra.mrb[56].mxu1 %v15126_v39  ;;  %v13302_v35 = vsel %vm3174_vm3, %v3172_v6, %v15127_v28  ;;  %15130 = vst [vmem:[#allocation190_spill] sm:$0xff] %v13308_v4  ;;  %v3169_v39 = vrot.slane %v13166_v48, 5  ;;  %15132 = vst [vmem:[#allocation191_spill] sm:$0xff] %v13323_v17  ;;  %v13331_v45 = vsel %vm3174_vm3, %v15133_v8, %v3168_v19  ;;  %v15136_v6 = vrot.slane %v13100_v54, 5 }
 0x4bb   : > { %15128 = vst [vmem:[#allocation189_spill] sm:$0xff] %v13302_v35  ;;  %8995 = vmatpush3.bf16.msra.mxu1 %v12710_v9  ;;  %8966 = vmatprep.mubr.bf16.mxu1 %v15131_v0  ;;  %15134 = vst [vmem:[#allocation192_spill] sm:$0xff] %v13331_v45  ;;  %v3650_v8 = vrot.slane %v13190_v22, 6  ;;  %v3634_v19 = vrot.slane %v13013_v55, 6  ;;  %v15149_v17 = vrot.slane %v13007_v57, 6  ;;  %v3645_v35 = vrot.slane %v13153_v24, 6 }
 0x4bc   : > { %8996 = vmatprep.subr.bf16.mxu1 %v13247_v11  ;;  %v13337_v50 = vsel %vm3174_vm3, %v3169_v39, %v3173_v61  ;;  %v13343_v28 = vsel %vm3174_vm3, %v15136_v6, %v3169_v39  ;;  %8973 = vmatpush3.bf16.msra.mxu0 %v13247_v11  ;;  %v15138_v61 = vrot.slane %v12916_v52, 6  ;;  %v13366_v6 = vld [vmem:[#allocation8 + $0x58] sm:$0xff]   ;;  %v15231_v39 = vld [vmem:[#allocation168_spill] sm:$0xff]  ;;  %vm14044_vm3 = vmpackc.low %vm10891_vm6, %vm4161_vm2 }
 0x4bd   : > { %15135 = vst [vmem:[#allocation193_spill] sm:$0xff] %v13337_v50  ;;  %15137 = vst [vmem:[#allocation194_spill] sm:$0xff] %v13343_v28  ;;  %8974 = vmatprep.subr.bf16.mxu0 %v13296_v49  ;;  %v3637_v50 = vrot.slane %v13069_v31, 6 }
 0x4be   : > { %v13356_v0 = vsel %vm3651_vm4, %v3649_v27, %v15138_v61  ;;  %v15143_v61 = vrot.slane %v12993_v37, 6 }
 0x4bf   : > { %15139 = vst [vmem:[#allocation195_spill] sm:$0xff] %v13356_v0  ;;  %8997 = vmatpush3.bf16.msra.mxu1 %v13247_v11  ;;  %v15145_v0 = vrot.slane %v13001_v43, 6  ;;  %8943 = vmatmul.mubr.bf16.gmra.mrb[60].mxu0 %v2307_v18  ;;  %v13404_v33 = vsel %vm3651_vm4, %v15149_v17, %v3637_v50  ;;  %v15151_v18 = vpack.c.bf16 %v12055_v63, %v12334_v42  ;;  %v3646_v63 = vrot.slane %v13166_v48, 6 }
 0x4c0   : > { %v13377_v12 = vsel %vm3651_vm4, %v15143_v61, %v15142_v32  ;;  %8998 = vmatprep.subr.bf16.mxu1 %v13296_v49  ;;  %v15148_v32 = vrot.slane %v12918_v34, 6  ;;  %15150 = vst [vmem:[#allocation198_spill] sm:$0xff] %v13404_v33  ;;  %8975 = vmatpush3.bf16.msra.mxu0 %v13296_v49  ;;  %v15154_v42 = vpack.c.bf16 %v13251_v2, %v13205_v47  ;;  %v15239_v47 = vld [vmem:[#allocation175_spill] sm:$0xff] }
 0x4c1   : > { %15144 = vst [vmem:[#allocation196_spill] sm:$0xff] %v13377_v12  ;;  %v13391_v62 = vsel %vm3651_vm4, %v15146_v23, %v15145_v0  ;;  %v3638_v12 = vrot.slane %v13084_v29, 6  ;;  %v3642_v23 = vrot.slane %v13100_v54, 6  ;;  %8986 = vmatprep.mubr.msk.bf16.mxu0 %vm13362_vm12, %v15151_v18  ;;  %v15152_v17 = vmov %v15145_v0  ;;  %8976 = vmatprep.subr.bf16.mxu0 %v13366_v6  ;;  %v13431_v18 = vld [vmem:[#allocation8 + $0x60] sm:$0xff]  }
 0x4c2   : > { %15147 = vst [vmem:[#allocation197_spill] sm:$0xff] %v13391_v62  ;;  %v13398_v61 = vsel %vm3651_vm4, %v3650_v8, %v15148_v32  ;;  %v13418_v32 = vsel %vm3651_vm4, %v3637_v50, %v3641_v41  ;;  %v13424_v4 = vsel %vm3651_vm4, %v15152_v17, %v3634_v19  ;;  %8967 = vmatmul.mubr.bf16.gmra.mrb[60].mxu1 %v15154_v42  ;;  %v15176_v62 = vrot.slane %v12930_v36, 7 }
 0x4c3   : > { %15153 = vst [vmem:[#allocation199_spill] sm:$0xff] %v13424_v4  ;;  %v13439_v17 = vsel %vm3651_vm4, %v3638_v12, %v3642_v23  ;;  %8999 = vmatpush3.bf16.msra.mxu1 %v13296_v49  ;;  %v15156_v42 = vpack.c.bf16 %v12079_v44, %v12364_v53  ;;  %v13450_v50 = vsel %vm3651_vm4, %v3634_v19, %v3638_v12  ;;  %v4126_v12 = vrot.slane %v13178_v16, 7 }
 0x4c4   : > { %15155 = vst [vmem:[#allocation200_spill] sm:$0xff] %v13439_v17  ;;  %15157 = vst [vmem:[#allocation201_spill] sm:$0xff] %v13450_v50  ;;  %v13454_v0 = vsel %vm3651_vm4, %v3645_v35, %v3649_v27  ;;  %v13458_v2 = vsel %vm3651_vm4, %v3641_v41, %v3645_v35  ;;  %9000 = vmatprep.subr.bf16.mxu1 %v13366_v6  ;;  %v15160_v19 = vrot.slane %v12924_v5, 7  ;;  %v15161_v27 = vrot.slane %v12916_v52, 7 }
 0x4c5   : > { %9010 = vmatprep.mubr.msk.bf16.mxu1 %vm13362_vm12, %v15156_v42  ;;  %15158 = vst [vmem:[#allocation202_spill] sm:$0xff] %v13454_v0  ;;  %15159 = vst [vmem:[#allocation203_spill] sm:$0xff] %v13458_v2  ;;  %8977 = vmatpush3.bf16.msra.mxu0 %v13366_v6  ;;  %v13478_v35 = vsel %vm3651_vm4, %v3646_v63, %v3650_v8  ;;  %v13482_v53 = vsel %vm3651_vm4, %v3642_v23, %v3646_v63  ;;  %v4127_v42 = vrot.slane %v13190_v22, 7 }
 0x4c6   : > { %v13473_v41 = vsel %vm4128_vm8, %v15161_v27, %v15160_v19  ;;  %15163 = vst [vmem:[#allocation205_spill] sm:$0xff] %v13478_v35  ;;  %15164 = vst [vmem:[#allocation206_spill] sm:$0xff] %v13482_v53  ;;  %v15165_v44 = vrot.slane %v12930_v36, 7  ;;  %v15166_v2 = vrot.slane %v12918_v34, 7  ;;  %8978 = vmatprep.subr.bf16.mxu0 %v13431_v18  ;;  %v13494_v27 = vld [vmem:[#allocation8 + $0x68] sm:$0xff]   ;;  %v15168_v63 = vrot.slane %v12916_v52, 7 }
 0x4c7   : > { %15162 = vst [vmem:[#allocation204_spill] sm:$0xff] %v13473_v41  ;;  %v4106_v0 = vrot.slane %v12993_v37, 7  ;;  %v4110_v50 = vrot.slane %v13007_v57, 7  ;;  %9001 = vmatpush3.bf16.msra.mxu1 %v13366_v6  ;;  %v4114_v53 = vrot.slane %v13069_v31, 7 }
 0x4c8   : > { %v13491_v19 = vsel %vm4128_vm8, %v15166_v2, %v15165_v44  ;;  %v13502_v23 = vsel %vm4128_vm8, %v4126_v12, %v15168_v63  ;;  %v13513_v8 = vsel %vm4128_vm8, %v4127_v42, %v15166_v2  ;;  %v4118_v63 = vrot.slane %v13093_v15, 7  ;;  %9002 = vmatprep.subr.bf16.mxu1 %v13431_v18 }
 0x4c9   : > { %15167 = vst [vmem:[#allocation207_spill] sm:$0xff] %v13491_v19  ;;  %15169 = vst [vmem:[#allocation208_spill] sm:$0xff] %v13502_v23  ;;  %v13522_v17 = vsel %vm4128_vm8, %v4106_v0, %v4110_v50  ;;  %v15172_v44 = vrot.slane %v12924_v5, 7  ;;  %v4107_v2 = vrot.slane %v13001_v43, 7  ;;  %8979 = vmatpush3.bf16.msra.mxu0 %v13431_v18  ;;  %v4111_v19 = vrot.slane %v13013_v55, 7 }
 0x4ca   : > { %15170 = vst [vmem:[#allocation209_spill] sm:$0xff] %v13513_v8  ;;  %15171 = vst [vmem:[#allocation210_spill] sm:$0xff] %v13522_v17  ;;  %v13536_v35 = vsel %vm4128_vm8, %v4114_v53, %v4118_v63  ;;  %v13540_v8 = vsel %vm4128_vm8, %v4110_v50, %v4114_v53  ;;  %8980 = vmatprep.subr.bf16.mxu0 %v13494_v27  ;;  %v4119_v53 = vrot.slane %v13100_v54, 7  ;;  %v4122_v17 = vrot.slane %v13153_v24, 7 }
 0x4cb   : > { %v13528_v23 = vsel %vm4128_vm8, %v15172_v44, %v4106_v0  ;;  %15174 = vst [vmem:[#allocation212_spill] sm:$0xff] %v13536_v35  ;;  %15175 = vst [vmem:[#allocation213_spill] sm:$0xff] %v13540_v8  ;;  %v13544_v0 = vld [vmem:[#allocation8 + $0x70] sm:$0xff]   ;;  %v13552_v41 = vsel %vm4128_vm8, %v15176_v62, %v4107_v2  ;;  %9003 = vmatpush3.bf16.msra.mxu1 %v13431_v18  ;;  %v13559_v50 = vsel %vm4128_vm8, %v4107_v2, %v4111_v19 }
 0x4cc   : > { %15173 = vst [vmem:[#allocation211_spill] sm:$0xff] %v13528_v23  ;;  %15177 = vst [vmem:[#allocation214_spill] sm:$0xff] %v13552_v41  ;;  %v4115_v23 = vrot.slane %v13084_v29, 7  ;;  %v4123_v44 = vrot.slane %v13166_v48, 7  ;;  %9004 = vmatprep.subr.bf16.mxu1 %v13494_v27  ;;  %v13583_v33 = vsel %vm4128_vm8, %v4122_v17, %v4126_v12  ;;  %v13587_v62 = vsel %vm4128_vm8, %v4118_v63, %v4122_v17 }
 0x4cd   : > { %15178 = vst [vmem:[#allocation215_spill] sm:$0xff] %v13559_v50  ;;  %8981 = vmatpush3.bf16.msra.mxu0 %v13494_v27  ;;  %15181 = vst [vmem:[#allocation218_spill] sm:$0xff] %v13583_v33  ;;  %v15186_v12 = vrot.slane %v12916_v52, 1  ;;  %v4956_v63 = vrot.slane %v13001_v43, 1  ;;  %v4963_v33 = vrot.slane %v13069_v31, 1 }
 0x4ce   : > { %v13570_v35 = vsel %vm4128_vm8, %v4115_v23, %v4119_v53  ;;  %v13574_v2 = vsel %vm4128_vm8, %v4111_v19, %v4115_v23  ;;  %15182 = vst [vmem:[#allocation219_spill] sm:$0xff] %v13587_v62  ;;  %v13591_v19 = vsel %vm4128_vm8, %v4123_v44, %v4127_v42  ;;  %8982 = vmatprep.subr.bf16.mxu0 %v13544_v0  ;;  %v13594_v23 = vld [vmem:[#allocation8 + $0x78] sm:$0xff]   ;;  %v4948_v42 = vrot.slane %v12918_v34, 1 }
 0x4cf   : > { %15179 = vst [vmem:[#allocation216_spill] sm:$0xff] %v13570_v35  ;;  %15180 = vst [vmem:[#allocation217_spill] sm:$0xff] %v13574_v2  ;;  %v13600_v8 = vsel %vm4128_vm8, %v4119_v53, %v4123_v44  ;;  %9005 = vmatpush3.bf16.msra.mxu1 %v13494_v27  ;;  %v4955_v44 = vrot.slane %v12993_v37, 1  ;;  %v15185_v53 = vrot.slane %v12924_v5, 1  ;;  %v4959_v62 = vrot.slane %v13007_v57, 1 }
 0x4d0   : > { %15183 = vst [vmem:[#allocation220_spill] sm:$0xff] %v13591_v19  ;;  %15184 = vst [vmem:[#allocation221_spill] sm:$0xff] %v13600_v8  ;;  %9006 = vmatprep.subr.bf16.mxu1 %v13544_v0  ;;  %v4952_v8 = vrot.slane %v12930_v36, 1 }
 0x4d1   : > { %v13621_v17 = vsel %vm4977_vm9, %v15186_v12, %v15185_v53  ;;  %8983 = vmatpush3.bf16.msra.mxu0 %v13544_v0  ;;  %v15188_v4 = vmov %v15185_v53  ;;  %v4967_v12 = vrot.slane %v13093_v15, 1  ;;  %v13653_v50 = vsel %vm4977_vm9, %v4959_v62, %v4963_v33 }
 0x4d2   : > { %15187 = vst [vmem:[#allocation222_spill] sm:$0xff] %v13621_v17  ;;  %v13631_v19 = vsel %vm4977_vm9, %v15188_v4, %v4955_v44  ;;  %8984 = vmatprep.subr.bf16.mxu0 %v13594_v23  ;;  %v13641_v2 = vsel %vm4977_vm9, %v4952_v8, %v4956_v63  ;;  %v13645_v35 = vsel %vm4977_vm9, %v4948_v42, %v4952_v8  ;;  %v4971_v4 = vrot.slane %v13153_v24, 1 }
 0x4d3   : > { %15189 = vst [vmem:[#allocation223_spill] sm:$0xff] %v13631_v19  ;;  %15190 = vst [vmem:[#allocation224_spill] sm:$0xff] %v13641_v2  ;;  %9007 = vmatpush3.bf16.msra.mxu1 %v13544_v0  ;;  %v13657_v53 = vsel %vm4977_vm9, %v4955_v44, %v4959_v62  ;;  %v13661_v17 = vsel %vm4977_vm9, %v4963_v33, %v4967_v12  ;;  %v4964_v2 = vrot.slane %v13084_v29, 1  ;;  %v4968_v33 = vrot.slane %v13100_v54, 1 }
 0x4d4   : > { %15191 = vst [vmem:[#allocation225_spill] sm:$0xff] %v13645_v35  ;;  %15192 = vst [vmem:[#allocation226_spill] sm:$0xff] %v13653_v50  ;;  %9008 = vmatprep.subr.bf16.mxu1 %v13594_v23  ;;  %v13668_v41 = vsel %vm4977_vm9, %v4967_v12, %v4971_v4  ;;  %v4960_v35 = vrot.slane %v13013_v55, 1  ;;  %v4972_v44 = vrot.slane %v13166_v48, 1  ;;  %v4975_v19 = vrot.slane %v13178_v16, 1 }
 0x4d5   : > { %15193 = vst [vmem:[#allocation227_spill] sm:$0xff] %v13657_v53  ;;  %15194 = vst [vmem:[#allocation228_spill] sm:$0xff] %v13661_v17  ;;  %8985 = vmatpush3.bf16.msra.mxu0 %v13594_v23  ;;  %v4976_v53 = vrot.slane %v13190_v22, 1  ;;  %v13698_v50 = vsel %vm4977_vm9, %v4964_v2, %v4968_v33 }
 0x4d6   : > { %15195 = vst [vmem:[#allocation229_spill] sm:$0xff] %v13668_v41  ;;  %9018 = vmatprep.subr.bf16.mxu0 %v12710_v9  ;;  %v13681_v12 = vsel %vm4977_vm9, %v4960_v35, %v4964_v2  ;;  %v13685_v8 = vsel %vm4977_vm9, %v4956_v63, %v4960_v35  ;;  %v13694_v41 = vsel %vm4977_vm9, %v4968_v33, %v4972_v44  ;;  %15198 = vst [vmem:[#allocation232_spill] sm:$0xff] %v13698_v50  ;;  %v15200_v63 = vld [vmem:[#allocation40_spill] sm:$0xff]  ;;  %v15204_v33 = vld [vmem:[#allocation53_spill] sm:$0xff] }
 0x4d7   : > { %15196 = vst [vmem:[#allocation230_spill] sm:$0xff] %v13681_v12  ;;  %15197 = vst [vmem:[#allocation231_spill] sm:$0xff] %v13685_v8  ;;  %9009 = vmatpush3.bf16.msra.mxu1 %v13594_v23  ;;  %v13702_v35 = vsel %vm4977_vm9, %v4971_v4, %v4975_v19  ;;  %v15201_v62 = vpack.c.bf16 %v15200_v63, %v15060_v3  ;;  %v15202_v8 = vrot.slane %v12916_v52, 1  ;;  %v5428_v4 = vrot.slane %v12924_v5, 2  ;;  %v15207_v3 = vld [vmem:[#allocation38_spill] sm:$0xff] }
 0x4d8   : > { %15199 = vst [vmem:[#allocation233_spill] sm:$0xff] %v13702_v35  ;;  %9042 = vmatprep.subr.bf16.mxu1 %v12710_v9  ;;  %v13718_v2 = vsel %vm4977_vm9, %v4972_v44, %v4976_v53  ;;  %v13729_v63 = vsel %vm4977_vm9, %v4976_v53, %v4948_v42  ;;  %v15206_v44 = vld [vmem:[#allocation43_spill] sm:$0xff]  ;;  %v5429_v42 = vrot.slane %v12930_v36, 2  ;;  %v5433_v53 = vrot.slane %v13001_v43, 2  ;;  %v15212_v35 = vld [vmem:[#allocation58_spill] sm:$0xff] }
 0x4d9   : > { %8987 = vmatmul.mubr.bf16.vlgmr.msra.gmra.mrb[48].mxu0 %v15201_v62  ;;  %v13714_v12 = vsel %vm4977_vm9, %v4975_v19, %v15202_v8  ;;  %v15205_v62 = vpack.c.bf16 %v15062_v7, %v15204_v33  ;;  %v5432_v19 = vrot.slane %v12993_v37, 2  ;;  %v5425_v8 = vrot.slane %v12918_v34, 2  ;;  %v15211_v33 = vld [vmem:[#allocation59_spill] sm:$0xff] }
 0x4da   : > { %15203 = vst [vmem:[#allocation234_spill] sm:$0xff] %v13714_v12  ;;  %9019 = vmatpush3.bf16.msra.mxu0 %v12710_v9  ;;  %v15208_v50 = vpack.c.bf16 %v15206_v44, %v15207_v3  ;;  %v15209_v7 = vrot.slane %v12916_v52, 2  ;;  %v15213_v12 = vpack.c.bf16 %v15211_v33, %v15212_v35  ;;  %v5440_v44 = vrot.slane %v13069_v31, 2 }
 0x4db   : > { %8990 = vmatprep.mubr.bf16.mxu0 %v15205_v62  ;;  %9020 = vmatprep.subr.bf16.mxu0 %v13247_v11  ;;  %v5436_v62 = vrot.slane %v13007_v57, 2 }
 0x4dc   : > { %9011 = vmatmul.mubr.bf16.vlgmr.msra.gmra.mrb[48].mxu1 %v15208_v50  ;;  %v13743_v17 = vsel %vm5454_vm10, %v15209_v7, %v5428_v4  ;;  %v13753_v50 = vsel %vm5454_vm10, %v5428_v4, %v5432_v19  ;;  %v5444_v7 = vrot.slane %v13093_v15, 2  ;;  %v5448_v4 = vrot.slane %v13153_v24, 2 }
 0x4dd   : > { %15210 = vst [vmem:[#allocation235_spill] sm:$0xff] %v13743_v17  ;;  %9014 = vmatprep.mubr.bf16.mxu1 %v15213_v12  ;;  %9043 = vmatpush3.bf16.msra.mxu1 %v12710_v9  ;;  %15214 = vst [vmem:[#allocation236_spill] sm:$0xff] %v13753_v50  ;;  %v13763_v12 = vsel %vm5454_vm10, %v5429_v42, %v5433_v53  ;;  %v13767_v9 = vsel %vm5454_vm10, %v5425_v8, %v5429_v42  ;;  %v5452_v50 = vrot.slane %v13178_v16, 2  ;;  %v15221_v42 = vld [vmem:[#allocation75_spill] sm:$0xff] }
 0x4de   : > { %9044 = vmatprep.subr.bf16.mxu1 %v13247_v11  ;;  %15215 = vst [vmem:[#allocation237_spill] sm:$0xff] %v13763_v12  ;;  %15216 = vst [vmem:[#allocation238_spill] sm:$0xff] %v13767_v9  ;;  %9021 = vmatpush3.bf16.msra.mxu0 %v13247_v11  ;;  %v13775_v35 = vsel %vm5454_vm10, %v5436_v62, %v5440_v44  ;;  %v13779_v3 = vsel %vm5454_vm10, %v5432_v19, %v5436_v62  ;;  %v5437_v9 = vrot.slane %v13013_v55, 2 }
 0x4df   : > { %15217 = vst [vmem:[#allocation239_spill] sm:$0xff] %v13775_v35  ;;  %15218 = vst [vmem:[#allocation240_spill] sm:$0xff] %v13779_v3  ;;  %v13783_v17 = vsel %vm5454_vm10, %v5440_v44, %v5444_v7  ;;  %9022 = vmatprep.subr.bf16.mxu0 %v13296_v49  ;;  %v13790_v33 = vsel %vm5454_vm10, %v5444_v7, %v5448_v4  ;;  %v5441_v12 = vrot.slane %v13084_v29, 2  ;;  %v5445_v44 = vrot.slane %v13100_v54, 2  ;;  %v15222_v3 = vld [vmem:[#allocation69_spill] sm:$0xff] }
 0x4e0   : > { %15219 = vst [vmem:[#allocation241_spill] sm:$0xff] %v13783_v17  ;;  %15220 = vst [vmem:[#allocation242_spill] sm:$0xff] %v13790_v33  ;;  %v5449_v62 = vrot.slane %v13166_v48, 2  ;;  %v15223_v35 = vpack.c.bf16 %v15221_v42, %v15222_v3  ;;  %v5453_v19 = vrot.slane %v13190_v22, 2  ;;  %v15226_v33 = vld [vmem:[#allocation79_spill] sm:$0xff]  ;;  %v13839_v42 = vsel %vm5454_vm10, %v5448_v4, %v5452_v50 }
 0x4e1   : > { %9045 = vmatpush3.bf16.msra.mxu1 %v13247_v11  ;;  %v13806_v7 = vsel %vm5454_vm10, %v5437_v9, %v5441_v12  ;;  %v13810_v11 = vsel %vm5454_vm10, %v5433_v53, %v5437_v9  ;;  %v13829_v9 = vsel %vm5454_vm10, %v5441_v12, %v5445_v44  ;;  %v15227_v3 = vld [vmem:[#allocation71_spill] sm:$0xff]  ;;  %v15238_v12 = vld [vmem:[#allocation162_spill] sm:$0xff] }
 0x4e2   : > { %8991 = vmatmul.mubr.bf16.gmra.mrb[52].mxu0 %v15223_v35  ;;  %9046 = vmatprep.subr.bf16.mxu1 %v13296_v49  ;;  %v15225_v35 = vpack.c.bf16 %v12950_v13, %v13227_v10  ;;  %v13825_v53 = vsel %vm5454_vm10, %v5445_v44, %v5449_v62  ;;  %v15228_v17 = vpack.c.bf16 %v15226_v33, %v15227_v3  ;;  %v15229_v10 = vrot.slane %v12916_v52, 2  ;;  %v15236_v33 = vld [vmem:[#allocation172_spill] sm:$0xff]  ;;  %v15268_v13 = vld [vmem:[#allocation62_spill] sm:$0xff] }
 0x4e3   : > { %9023 = vmatpush3.bf16.msra.mxu0 %v13296_v49  ;;  %v13857_v4 = vsel %vm5454_vm10, %v5449_v62, %v5453_v19  ;;  %v13861_v44 = vsel %vm5454_vm10, %v5453_v19, %v5425_v8  ;;  %v15233_v62 = vld [vmem:[#allocation154_spill] sm:$0xff]  ;;  %v15234_v19 = vld [vmem:[#allocation155_spill] sm:$0xff]  ;;  %v15244_v3 = vld [vmem:[#allocation160_spill] sm:$0xff] }
 0x4e4   : > { %9034 = vmatprep.mubr.msk.bf16.mxu0 %vm13362_vm12, %v15225_v35  ;;  %9015 = vmatmul.mubr.bf16.gmra.mrb[52].mxu1 %v15228_v17  ;;  %v13845_v30 = vsel %vm5454_vm10, %v5452_v50, %v15229_v10  ;;  %v15230_v17 = vpack.c.bf16 %v12974_v14, %v13259_v21  ;;  %v15232_v50 = vld [vmem:[#allocation177_spill] sm:$0xff]  ;;  %v15242_v8 = vld [vmem:[#allocation166_spill] sm:$0xff]  ;;  %v15246_v10 = vld [vmem:[#allocation171_spill] sm:$0xff] }
 0x4e5   : > { %9024 = vmatprep.subr.bf16.mxu0 %v13366_v6  ;;  %9047 = vmatpush3.bf16.msra.mxu1 %v13296_v49  ;;  %v15235_v21 = vld [vmem:[#allocation169_spill] sm:$0xff]  ;;  %v15247_v14 = vpack.c.bf16 %v15236_v33, %v15246_v10  ;;  %v10485_v10 = vld [vmem:[#allocation8 + $0xa0] sm:$0xff]  }
 0x4e6   : > { %9058 = vmatprep.mubr.msk.bf16.mxu1 %vm13362_vm12, %v15230_v17  ;;  %9048 = vmatprep.subr.bf16.mxu1 %v13366_v6  ;;  %v15237_v17 = vld [vmem:[#allocation158_spill] sm:$0xff]  ;;  %v15240_v35 = vld [vmem:[#allocation157_spill] sm:$0xff]  ;;  %v15243_v26 = vpack.c.bf16 %v15235_v21, %v15242_v8 }
 0x4e7   : > { %9025 = vmatpush3.bf16.msra.mxu0 %v13366_v6  ;;  %v10483_v49 = vld [vmem:[#allocation8 + $0x90] sm:$0xff]  }
 0x4e8   : > { %9026 = vmatprep.subr.bf16.mxu0 %v13431_v18  ;;  %v15255_v21 = vld [vmem:[#allocation29_spill] sm:$0xff] }
 0x4e9   : > { %9049 = vmatpush3.bf16.msra.mxu1 %v13366_v6  ;;  %v10481_v6 = vld [vmem:[#allocation8 + $0x80] sm:$0xff]  }
 0x4ea   : > { %9050 = vmatprep.subr.bf16.mxu1 %v13431_v18 }
 0x4eb   : > { %9027 = vmatpush3.bf16.msra.mxu0 %v13431_v18 }
 0x4ec   : > { %9028 = vmatprep.subr.bf16.mxu0 %v13494_v27 }
 0x4ed   : > { %9051 = vmatpush3.bf16.msra.mxu1 %v13431_v18  ;;  %v10482_v18 = vld [vmem:[#allocation8 + $0x88] sm:$0xff]  }
 0x4ee   : > { %9052 = vmatprep.subr.bf16.mxu1 %v13494_v27 }
 0x4ef   : > { %9029 = vmatpush3.bf16.msra.mxu0 %v13494_v27 }
 0x4f0   : > { %9030 = vmatprep.subr.bf16.mxu0 %v13544_v0 }
 0x4f1   : > { %9053 = vmatpush3.bf16.msra.mxu1 %v13494_v27  ;;  %v15241_v27 = vpack.c.bf16 %v15240_v35, %v15233_v62  ;;  %v15256_v35 = vld [vmem:[#allocation81_spill] sm:$0xff] }
 0x4f2   : > { %9054 = vmatprep.subr.bf16.mxu1 %v13544_v0  ;;  %v15257_v8 = vpack.c.bf16 %v15255_v21, %v15256_v35  ;;  %v15259_v35 = vld [vmem:[#allocation41_spill] sm:$0xff]  ;;  %v15261_v21 = vld [vmem:[#allocation64_spill] sm:$0xff] }
 0x4f3   : > { %9031 = vmatpush3.bf16.msra.mxu0 %v13544_v0 }
 0x4f4   : > { %9032 = vmatprep.subr.bf16.mxu0 %v13594_v23 }
 0x4f5   : > { %9055 = vmatpush3.bf16.msra.mxu1 %v13544_v0  ;;  %v15245_v0 = vpack.c.bf16 %v15244_v3, %v15234_v19  ;;  %v15254_v3 = vpack.c.bf16 %v13280_v20, %v13211_v25  ;;  %v15262_v20 = vld [vmem:[#allocation61_spill] sm:$0xff]  ;;  %v15265_v25 = vld [vmem:[#allocation46_spill] sm:$0xff] }
 0x4f6   : > { %9056 = vmatprep.subr.bf16.mxu1 %v13594_v23  ;;  %v15267_v19 = vld [vmem:[#allocation66_spill] sm:$0xff] }
 0x4f7   : > { %9033 = vmatpush3.bf16.msra.mxu0 %v13594_v23  ;;  %v15269_v62 = vpack.c.bf16 %v15267_v19, %v15268_v13  ;;  %v15276_v19 = vld [vmem:[#allocation85_spill] sm:$0xff] }
 0x4f8   : > { %9066 = vmatprep.subr.bf16.mxu0 %v10481_v6 }
 0x4f9   : > { %9057 = vmatpush3.bf16.msra.mxu1 %v13594_v23  ;;  %v10484_v23 = vld [vmem:[#allocation8 + $0x98] sm:$0xff]  }
 0x4fa   : > { %9035 = vmatmul.mubr.bf16.vlgmr.msra.gmra.mrb[56].mxu0 %v15241_v27  ;;  %9090 = vmatprep.subr.bf16.mxu1 %v10481_v6  ;;  %v15250_v27 = vpack.c.bf16 %v13231_v38, %v13200_v1  ;;  %v15264_v38 = vld [vmem:[#allocation49_spill] sm:$0xff] }
 0x4fb   : > { %9038 = vmatprep.mubr.bf16.mxu0 %v15243_v26  ;;  %9067 = vmatpush3.bf16.msra.mxu0 %v10481_v6  ;;  %v15266_v1 = vpack.c.bf16 %v15264_v38, %v15265_v25 }
 0x4fc   : > { %9059 = vmatmul.mubr.bf16.vlgmr.msra.gmra.mrb[56].mxu1 %v15245_v0  ;;  %9068 = vmatprep.subr.bf16.mxu0 %v10482_v18  ;;  %v15252_v0 = vld [vmem:[#allocation80_spill] sm:$0xff] }
 0x4fd   : > { %9062 = vmatprep.mubr.bf16.mxu1 %v15247_v14  ;;  %9091 = vmatpush3.bf16.msra.mxu1 %v10481_v6  ;;  %v15251_v14 = vld [vmem:[#allocation25_spill] sm:$0xff] }
 0x4fe   : > { %9092 = vmatprep.subr.bf16.mxu1 %v10482_v18  ;;  %v15253_v33 = vpack.c.bf16 %v15251_v14, %v15252_v0  ;;  %v15263_v14 = vpack.c.bf16 %v15261_v21, %v15262_v20 }
 0x4ff   : > { %9069 = vmatpush3.bf16.msra.mxu0 %v10482_v18 }
 0x500   : > { %9070 = vmatprep.subr.bf16.mxu0 %v10483_v49 }
 0x501   : > { %9093 = vmatpush3.bf16.msra.mxu1 %v10482_v18 }
 0x502   : > { %9039 = vmatmul.mubr.bf16.gmra.mrb[60].mxu0 %v15250_v27  ;;  %9094 = vmatprep.subr.bf16.mxu1 %v10483_v49  ;;  %v10486_v27 = vld [vmem:[#allocation8 + $0xa8] sm:$0xff]  }
 0x503   : > { %9071 = vmatpush3.bf16.msra.mxu0 %v10483_v49  ;;  %9082 = vmatprep.mubr.msk.bf16.mxu0 %vm13920_vm14, %v15253_v33  ;;  %v10487_v33 = vld [vmem:[#allocation8 + $0xb0] sm:$0xff]  }
 0x504   : > { %9063 = vmatmul.mubr.bf16.gmra.mrb[60].mxu1 %v15254_v3  ;;  %9072 = vmatprep.subr.bf16.mxu0 %v10484_v23  ;;  %v10488_v3 = vld [vmem:[#allocation8 + $0xb8] sm:$0xff]  }
 0x505   : > { %9095 = vmatpush3.bf16.msra.mxu1 %v10483_v49  ;;  %9106 = vmatprep.mubr.msk.bf16.mxu1 %vm13920_vm14, %v15257_v8  ;;  %v15258_v8 = vld [vmem:[#allocation44_spill] sm:$0xff] }
 0x506   : > { %9096 = vmatprep.subr.bf16.mxu1 %v10484_v23  ;;  %v15260_v0 = vpack.c.bf16 %v15258_v8, %v15259_v35  ;;  %v15271_v8 = vld [vmem:[#allocation83_spill] sm:$0xff] }
 0x507   : > { %9073 = vmatpush3.bf16.msra.mxu0 %v10484_v23 }
 0x508   : > { %9074 = vmatprep.subr.bf16.mxu0 %v10485_v10 }
 0x509   : > { %9097 = vmatpush3.bf16.msra.mxu1 %v10484_v23 }
 0x50a   : > { %9098 = vmatprep.subr.bf16.mxu1 %v10485_v10 }
 0x50b   : > { %9075 = vmatpush3.bf16.msra.mxu0 %v10485_v10 }
 0x50c   : > { %9076 = vmatprep.subr.bf16.mxu0 %v10486_v27 }
 0x50d   : > { %9099 = vmatpush3.bf16.msra.mxu1 %v10485_v10 }
 0x50e   : > { %9100 = vmatprep.subr.bf16.mxu1 %v10486_v27 }
 0x50f   : > { %9077 = vmatpush3.bf16.msra.mxu0 %v10486_v27 }
 0x510   : > { %9078 = vmatprep.subr.bf16.mxu0 %v10487_v33 }
 0x511   : > { %9101 = vmatpush3.bf16.msra.mxu1 %v10486_v27 }
 0x512   : > { %9102 = vmatprep.subr.bf16.mxu1 %v10487_v33 }
 0x513   : > { %9079 = vmatpush3.bf16.msra.mxu0 %v10487_v33 }
 0x514   : > { %9080 = vmatprep.subr.bf16.mxu0 %v10488_v3 }
 0x515   : > { %9103 = vmatpush3.bf16.msra.mxu1 %v10487_v33 }
 0x516   : > { %9104 = vmatprep.subr.bf16.mxu1 %v10488_v3 }
 0x517   : > { %9081 = vmatpush3.bf16.msra.mxu0 %v10488_v3 }
 0x518   : > { %9114 = vmatprep.subr.bf16.mxu0 %v10481_v6 }
 0x519   : > { %9105 = vmatpush3.bf16.msra.mxu1 %v10488_v3 }
 0x51a   : > { %9083 = vmatmul.mubr.bf16.vlgmr.msra.gmra.mrb[48].mxu0 %v15260_v0  ;;  %9138 = vmatprep.subr.bf16.mxu1 %v10481_v6  ;;  %v15270_v0 = vld [vmem:[#allocation82_spill] sm:$0xff] }
 0x51b   : > { %9086 = vmatprep.mubr.bf16.mxu0 %v15263_v14  ;;  %9115 = vmatpush3.bf16.msra.mxu0 %v10481_v6  ;;  %v15272_v35 = vpack.c.bf16 %v15270_v0, %v15271_v8  ;;  %v15273_v14 = vld [vmem:[#allocation189_spill] sm:$0xff] }
 0x51c   : > { %9107 = vmatmul.mubr.bf16.vlgmr.msra.gmra.mrb[48].mxu1 %v15266_v1  ;;  %9116 = vmatprep.subr.bf16.mxu0 %v10482_v18  ;;  %v15274_v38 = vpack.c.bf16 %v12956_v58, %v15273_v14  ;;  %v15275_v1 = vld [vmem:[#allocation84_spill] sm:$0xff]  ;;  %v15293_v14 = vld [vmem:[#allocation86_spill] sm:$0xff] }
 0x51d   : > { %9110 = vmatprep.mubr.bf16.mxu1 %v15269_v62  ;;  %9139 = vmatpush3.bf16.msra.mxu1 %v10481_v6  ;;  %v15277_v62 = vpack.c.bf16 %v15275_v1, %v15276_v19  ;;  %v15278_v6 = vld [vmem:[#allocation190_spill] sm:$0xff] }
 0x51e   : > { %9140 = vmatprep.subr.bf16.mxu1 %v10482_v18  ;;  %v15310_v1 = vld [vmem:[#allocation94_spill] sm:$0xff] }
 0x51f   : > { %9117 = vmatpush3.bf16.msra.mxu0 %v10482_v18 }
 0x520   : > { %9118 = vmatprep.subr.bf16.mxu0 %v10483_v49 }
 0x521   : > { %9141 = vmatpush3.bf16.msra.mxu1 %v10482_v18  ;;  %v15279_v18 = vpack.c.bf16 %v12980_v60, %v15278_v6 }
 0x522   : > { %9087 = vmatmul.mubr.bf16.gmra.mrb[52].mxu0 %v15272_v35  ;;  %9142 = vmatprep.subr.bf16.mxu1 %v10483_v49  ;;  %v10490_v35 = vld [vmem:[#allocation8 + $0xc8] sm:$0xff]  }
 0x523   : > { %9119 = vmatpush3.bf16.msra.mxu0 %v10483_v49  ;;  %9130 = vmatprep.mubr.msk.bf16.mxu0 %vm13920_vm14, %v15274_v38  ;;  %v10489_v38 = vld [vmem:[#allocation8 + $0xc0] sm:$0xff]  }
 0x524   : > { %9111 = vmatmul.mubr.bf16.gmra.mrb[52].mxu1 %v15277_v62  ;;  %9120 = vmatprep.subr.bf16.mxu0 %v10484_v23 }
 0x525   : > { %9143 = vmatpush3.bf16.msra.mxu1 %v10483_v49  ;;  %9154 = vmatprep.mubr.msk.bf16.mxu1 %vm13920_vm14, %v15279_v18  ;;  %v15280_v49 = vld [vmem:[#allocation161_spill] sm:$0xff]  ;;  %v15286_v18 = vld [vmem:[#allocation174_spill] sm:$0xff] }
 0x526   : > { %9144 = vmatprep.subr.bf16.mxu1 %v10484_v23  ;;  %v15281_v26 = vpack.c.bf16 %v15280_v49, %v15237_v17  ;;  %v15287_v6 = vpack.c.bf16 %v13188_v46, %v15286_v18  ;;  %v15297_v49 = vld [vmem:[#allocation30_spill] sm:$0xff] }
 0x527   : > { %9121 = vmatpush3.bf16.msra.mxu0 %v10484_v23 }
 0x528   : > { %9122 = vmatprep.subr.bf16.mxu0 %v10485_v10 }
 0x529   : > { %9145 = vmatpush3.bf16.msra.mxu1 %v10484_v23 }
 0x52a   : > { %9146 = vmatprep.subr.bf16.mxu1 %v10485_v10 }
 0x52b   : > { %9123 = vmatpush3.bf16.msra.mxu0 %v10485_v10 }
 0x52c   : > { %9124 = vmatprep.subr.bf16.mxu0 %v10486_v27 }
 0x52d   : > { %9147 = vmatpush3.bf16.msra.mxu1 %v10485_v10  ;;  %v15282_v10 = vld [vmem:[#allocation173_spill] sm:$0xff] }
 0x52e   : > { %9148 = vmatprep.subr.bf16.mxu1 %v10486_v27  ;;  %v15283_v23 = vpack.c.bf16 %v15239_v47, %v15282_v10  ;;  %v10493_v47 = vld [vmem:[#allocation8 + $0xe0] sm:$0xff]   ;;  %v15298_v10 = vld [vmem:[#allocation89_spill] sm:$0xff] }
 0x52f   : > { %9125 = vmatpush3.bf16.msra.mxu0 %v10486_v27  ;;  %v15299_v60 = vpack.c.bf16 %v15297_v49, %v15298_v10  ;;  %v15301_v49 = vld [vmem:[#allocation47_spill] sm:$0xff] }
 0x530   : > { %9126 = vmatprep.subr.bf16.mxu0 %v10487_v33 }
 0x531   : > { %9149 = vmatpush3.bf16.msra.mxu1 %v10486_v27  ;;  %v15284_v27 = vld [vmem:[#allocation164_spill] sm:$0xff] }
 0x532   : > { %9150 = vmatprep.subr.bf16.mxu1 %v10487_v33  ;;  %v15285_v62 = vpack.c.bf16 %v15284_v27, %v15238_v12  ;;  %v15295_v27 = vld [vmem:[#allocation193_spill] sm:$0xff] }
 0x533   : > { %9127 = vmatpush3.bf16.msra.mxu0 %v10487_v33  ;;  %v15296_v18 = vpack.c.bf16 %v15295_v27, %v13343_v28  ;;  %v15307_v28 = vld [vmem:[#allocation88_spill] sm:$0xff]  ;;  %v15309_v12 = vld [vmem:[#allocation93_spill] sm:$0xff] }
 0x534   : > { %9128 = vmatprep.subr.bf16.mxu0 %v10488_v3  ;;  %v15311_v58 = vpack.c.bf16 %v15309_v12, %v15310_v1  ;;  %v15319_v12 = vld [vmem:[#allocation100_spill] sm:$0xff]  ;;  %v15321_v1 = vpack.c.bf16 %v12988_v40, %v13398_v61 }
 0x535   : > { %9151 = vmatpush3.bf16.msra.mxu1 %v10487_v33  ;;  %v10491_v33 = vld [vmem:[#allocation8 + $0xd0] sm:$0xff]   ;;  %v10498_v40 = vld [vmem:[#allocation8 + $0x108] sm:$0xff]  }
 0x536   : > { %9152 = vmatprep.subr.bf16.mxu1 %v10488_v3  ;;  %v15322_v61 = vld [vmem:[#allocation196_spill] sm:$0xff] }
 0x537   : > { %9129 = vmatpush3.bf16.msra.mxu0 %v10488_v3 }
 0x538   : > { %9162 = vmatprep.subr.bf16.mxu0 %v10489_v38 }
 0x539   : > { %9153 = vmatpush3.bf16.msra.mxu1 %v10488_v3 }
 0x53a   : > { %9131 = vmatmul.mubr.bf16.vlgmr.msra.gmra.mrb[56].mxu0 %v15281_v26  ;;  %9186 = vmatprep.subr.bf16.mxu1 %v10489_v38  ;;  %v10492_v26 = vld [vmem:[#allocation8 + $0xd8] sm:$0xff]  }
 0x53b   : > { %9134 = vmatprep.mubr.bf16.mxu0 %v15283_v23  ;;  %9163 = vmatpush3.bf16.msra.mxu0 %v10489_v38  ;;  %v15290_v23 = vld [vmem:[#allocation191_spill] sm:$0xff] }
 0x53c   : > { %9155 = vmatmul.mubr.bf16.vlgmr.msra.gmra.mrb[56].mxu1 %v15285_v62  ;;  %9164 = vmatprep.subr.bf16.mxu0 %v10490_v35  ;;  %v15291_v62 = vpack.c.bf16 %v15290_v23, %v13331_v45  ;;  %v15306_v23 = vld [vmem:[#allocation92_spill] sm:$0xff] }
 0x53d   : > { %9158 = vmatprep.mubr.bf16.mxu1 %v15287_v6  ;;  %9187 = vmatpush3.bf16.msra.mxu1 %v10489_v38  ;;  %v15292_v6 = vld [vmem:[#allocation26_spill] sm:$0xff]  ;;  %v15308_v45 = vpack.c.bf16 %v15306_v23, %v15307_v28  ;;  %v15328_v23 = vld [vmem:[#allocation197_spill] sm:$0xff] }
 0x53e   : > { %9188 = vmatprep.subr.bf16.mxu1 %v10490_v35  ;;  %v15294_v46 = vpack.c.bf16 %v15292_v6, %v15293_v14  ;;  %v10494_v14 = vld [vmem:[#allocation8 + $0xe8] sm:$0xff]   ;;  %v15304_v6 = vld [vmem:[#allocation90_spill] sm:$0xff] }
 0x53f   : > { %9165 = vmatpush3.bf16.msra.mxu0 %v10490_v35 }
 0x540   : > { %9166 = vmatprep.subr.bf16.mxu0 %v10491_v33 }
 0x541   : > { %9189 = vmatpush3.bf16.msra.mxu1 %v10490_v35 }
 0x542   : > { %9135 = vmatmul.mubr.bf16.gmra.mrb[60].mxu0 %v15291_v62  ;;  %9190 = vmatprep.subr.bf16.mxu1 %v10491_v33  ;;  %v15303_v62 = vld [vmem:[#allocation91_spill] sm:$0xff] }
 0x543   : > { %9167 = vmatpush3.bf16.msra.mxu0 %v10491_v33  ;;  %9178 = vmatprep.mubr.msk.bf16.mxu0 %vm13982_vm1, %v15294_v46  ;;  %v10495_v46 = vld [vmem:[#allocation8 + $0xf0] sm:$0xff]   ;;  %v15305_v27 = vpack.c.bf16 %v15303_v62, %v15304_v6  ;;  %v15316_v62 = vld [vmem:[#allocation195_spill] sm:$0xff]  ;;  %v15330_v6 = vld [vmem:[#allocation200_spill] sm:$0xff] }
 0x544   : > { %9159 = vmatmul.mubr.bf16.gmra.mrb[60].mxu1 %v15296_v18  ;;  %9168 = vmatprep.subr.bf16.mxu0 %v10492_v26  ;;  %v10496_v18 = vld [vmem:[#allocation8 + $0xf8] sm:$0xff]  }
 0x545   : > { %9191 = vmatpush3.bf16.msra.mxu1 %v10491_v33  ;;  %9202 = vmatprep.mubr.msk.bf16.mxu1 %vm13982_vm1, %v15299_v60  ;;  %v15300_v60 = vld [vmem:[#allocation87_spill] sm:$0xff] }
 0x546   : > { %9192 = vmatprep.subr.bf16.mxu1 %v10492_v26  ;;  %v15302_v10 = vpack.c.bf16 %v15300_v60, %v15301_v49  ;;  %v15312_v60 = vld [vmem:[#allocation97_spill] sm:$0xff]  ;;  %v15313_v49 = vld [vmem:[#allocation98_spill] sm:$0xff] }
 0x547   : > { %9169 = vmatpush3.bf16.msra.mxu0 %v10492_v26 }
 0x548   : > { %9170 = vmatprep.subr.bf16.mxu0 %v10493_v47 }
 0x549   : > { %9193 = vmatpush3.bf16.msra.mxu1 %v10492_v26 }
 0x54a   : > { %9194 = vmatprep.subr.bf16.mxu1 %v10493_v47 }
 0x54b   : > { %9171 = vmatpush3.bf16.msra.mxu0 %v10493_v47 }
 0x54c   : > { %9172 = vmatprep.subr.bf16.mxu0 %v10494_v14 }
 0x54d   : > { %9195 = vmatpush3.bf16.msra.mxu1 %v10493_v47 }
 0x54e   : > { %9196 = vmatprep.subr.bf16.mxu1 %v10494_v14 }
 0x54f   : > { %9173 = vmatpush3.bf16.msra.mxu0 %v10494_v14 }
 0x550   : > { %9174 = vmatprep.subr.bf16.mxu0 %v10495_v46 }
 0x551   : > { %9197 = vmatpush3.bf16.msra.mxu1 %v10494_v14 }
 0x552   : > { %9198 = vmatprep.subr.bf16.mxu1 %v10495_v46 }
 0x553   : > { %9175 = vmatpush3.bf16.msra.mxu0 %v10495_v46 }
 0x554   : > { %9176 = vmatprep.subr.bf16.mxu0 %v10496_v18 }
 0x555   : > { %9199 = vmatpush3.bf16.msra.mxu1 %v10495_v46 }
 0x556   : > { %9200 = vmatprep.subr.bf16.mxu1 %v10496_v18 }
 0x557   : > { %9177 = vmatpush3.bf16.msra.mxu0 %v10496_v18 }
 0x558   : > { %9210 = vmatprep.subr.bf16.mxu0 %v10489_v38 }
 0x559   : > { %9201 = vmatpush3.bf16.msra.mxu1 %v10496_v18 }
 0x55a   : > { %9179 = vmatmul.mubr.bf16.vlgmr.msra.gmra.mrb[48].mxu0 %v15302_v10  ;;  %9234 = vmatprep.subr.bf16.mxu1 %v10489_v38  ;;  %v15314_v10 = vpack.c.bf16 %v15312_v60, %v15313_v49  ;;  %v15331_v60 = vld [vmem:[#allocation201_spill] sm:$0xff] }
 0x55b   : > { %9182 = vmatprep.mubr.bf16.mxu0 %v15305_v27  ;;  %9211 = vmatpush3.bf16.msra.mxu0 %v10489_v38  ;;  %v15315_v27 = vld [vmem:[#allocation150_spill] sm:$0xff]  ;;  %v15332_v49 = vpack.c.bf16 %v15330_v6, %v15331_v60  ;;  %v15347_v6 = vld [vmem:[#allocation104_spill] sm:$0xff]  ;;  %v15348_v60 = vld [vmem:[#allocation103_spill] sm:$0xff] }
 0x55c   : > { %9203 = vmatmul.mubr.bf16.vlgmr.msra.gmra.mrb[48].mxu1 %v15308_v45  ;;  %9212 = vmatprep.subr.bf16.mxu0 %v10490_v35  ;;  %v15317_v28 = vpack.c.bf16 %v15315_v27, %v15316_v62  ;;  %v15318_v45 = vld [vmem:[#allocation99_spill] sm:$0xff] }
 0x55d   : > { %9206 = vmatprep.mubr.bf16.mxu1 %v15311_v58  ;;  %9235 = vmatpush3.bf16.msra.mxu1 %v10489_v38  ;;  %v15320_v58 = vpack.c.bf16 %v15318_v45, %v15319_v12  ;;  %v10497_v38 = vld [vmem:[#allocation8 + $0x100] sm:$0xff]   ;;  %v15339_v45 = vld [vmem:[#allocation101_spill] sm:$0xff] }
 0x55e   : > { %9236 = vmatprep.subr.bf16.mxu1 %v10490_v35  ;;  %v15336_v27 = vld [vmem:[#allocation203_spill] sm:$0xff] }
 0x55f   : > { %9213 = vmatpush3.bf16.msra.mxu0 %v10490_v35 }
 0x560   : > { %9214 = vmatprep.subr.bf16.mxu0 %v10491_v33 }
 0x561   : > { %9237 = vmatpush3.bf16.msra.mxu1 %v10490_v35  ;;  %v15323_v35 = vld [vmem:[#allocation163_spill] sm:$0xff] }
 0x562   : > { %9183 = vmatmul.mubr.bf16.gmra.mrb[52].mxu0 %v15314_v10  ;;  %9238 = vmatprep.subr.bf16.mxu1 %v10491_v33  ;;  %v15335_v10 = vld [vmem:[#allocation202_spill] sm:$0xff] }
 0x563   : > { %9215 = vmatpush3.bf16.msra.mxu0 %v10491_v33  ;;  %9226 = vmatprep.mubr.msk.bf16.mxu0 %vm13982_vm1, %v15317_v28  ;;  %v15337_v62 = vpack.c.bf16 %v15335_v10, %v15336_v27  ;;  %v15338_v28 = vld [vmem:[#allocation95_spill] sm:$0xff]  ;;  %v15350_v10 = vld [vmem:[#allocation105_spill] sm:$0xff]  ;;  %v15351_v27 = vld [vmem:[#allocation106_spill] sm:$0xff] }
 0x564   : > { %9207 = vmatmul.mubr.bf16.gmra.mrb[52].mxu1 %v15320_v58  ;;  %9216 = vmatprep.subr.bf16.mxu0 %v10492_v26  ;;  %v15340_v12 = vpack.c.bf16 %v15338_v28, %v15339_v45  ;;  %v15341_v58 = vld [vmem:[#allocation205_spill] sm:$0xff]  ;;  %v15353_v28 = vld [vmem:[#allocation107_spill] sm:$0xff]  ;;  %v15354_v45 = vld [vmem:[#allocation108_spill] sm:$0xff] }
 0x565   : > { %9239 = vmatpush3.bf16.msra.mxu1 %v10491_v33  ;;  %9250 = vmatprep.mubr.msk.bf16.mxu1 %vm13982_vm1, %v15321_v1  ;;  %v15324_v33 = vpack.c.bf16 %v15322_v61, %v15323_v35  ;;  %v15342_v1 = vld [vmem:[#allocation206_spill] sm:$0xff]  ;;  %v10501_v35 = vld [vmem:[#allocation8 + $0x120] sm:$0xff]  }
 0x566   : > { %9240 = vmatprep.subr.bf16.mxu1 %v10492_v26  ;;  %v15343_v61 = vpack.c.bf16 %v15341_v58, %v15342_v1  ;;  %v15356_v58 = vld [vmem:[#allocation109_spill] sm:$0xff]  ;;  %v15357_v1 = vld [vmem:[#allocation110_spill] sm:$0xff] }
 0x567   : > { %9217 = vmatpush3.bf16.msra.mxu0 %v10492_v26 }
 0x568   : > { %9218 = vmatprep.subr.bf16.mxu0 %v10493_v47 }
 0x569   : > { %9241 = vmatpush3.bf16.msra.mxu1 %v10492_v26  ;;  %v15327_v26 = vld [vmem:[#allocation199_spill] sm:$0xff] }
 0x56a   : > { %9242 = vmatprep.subr.bf16.mxu1 %v10493_v47 }
 0x56b   : > { %9219 = vmatpush3.bf16.msra.mxu0 %v10493_v47 }
 0x56c   : > { %9220 = vmatprep.subr.bf16.mxu0 %v10494_v14 }
 0x56d   : > { %9243 = vmatpush3.bf16.msra.mxu1 %v10493_v47  ;;  %v15325_v47 = vld [vmem:[#allocation198_spill] sm:$0xff] }
 0x56e   : > { %9244 = vmatprep.subr.bf16.mxu1 %v10494_v14  ;;  %v15326_v3 = vpack.c.bf16 %v13418_v32, %v15325_v47  ;;  %v15345_v47 = vld [vmem:[#allocation102_spill] sm:$0xff]  ;;  %v10506_v32 = vld [vmem:[#allocation8 + $0x148] sm:$0xff]  }
 0x56f   : > { %9221 = vmatpush3.bf16.msra.mxu0 %v10494_v14 }
 0x570   : > { %9222 = vmatprep.subr.bf16.mxu0 %v10495_v46 }
 0x571   : > { %9245 = vmatpush3.bf16.msra.mxu1 %v10494_v14  ;;  %v15329_v14 = vpack.c.bf16 %v15327_v26, %v15328_v23  ;;  %v10502_v26 = vld [vmem:[#allocation8 + $0x128] sm:$0xff]   ;;  %v10503_v23 = vld [vmem:[#allocation8 + $0x130] sm:$0xff]  }
 0x572   : > { %9246 = vmatprep.subr.bf16.mxu1 %v10495_v46 }
 0x573   : > { %9223 = vmatpush3.bf16.msra.mxu0 %v10495_v46 }
 0x574   : > { %9224 = vmatprep.subr.bf16.mxu0 %v10496_v18 }
 0x575   : > { %9247 = vmatpush3.bf16.msra.mxu1 %v10495_v46  ;;  %v10499_v46 = vld [vmem:[#allocation8 + $0x110] sm:$0xff]  }
 0x576   : > { %9248 = vmatprep.subr.bf16.mxu1 %v10496_v18 }
 0x577   : > { %9225 = vmatpush3.bf16.msra.mxu0 %v10496_v18 }
 0x578   : > { %9258 = vmatprep.subr.bf16.mxu0 %v10497_v38 }
 0x579   : > { %9249 = vmatpush3.bf16.msra.mxu1 %v10496_v18  ;;  %v10500_v18 = vld [vmem:[#allocation8 + $0x118] sm:$0xff]  }
 0x57a   : > { %9227 = vmatmul.mubr.bf16.vlgmr.msra.gmra.mrb[56].mxu0 %v15324_v33  ;;  %9282 = vmatprep.subr.bf16.mxu1 %v10497_v38  ;;  %v15344_v33 = vld [vmem:[#allocation96_spill] sm:$0xff] }
 0x57b   : > { %9230 = vmatprep.mubr.bf16.mxu0 %v15326_v3  ;;  %9259 = vmatpush3.bf16.msra.mxu0 %v10497_v38  ;;  %v15346_v3 = vpack.c.bf16 %v15344_v33, %v15345_v47  ;;  %v15359_v33 = vld [vmem:[#allocation111_spill] sm:$0xff]  ;;  %v15360_v47 = vld [vmem:[#allocation112_spill] sm:$0xff] }
 0x57c   : > { %9251 = vmatmul.mubr.bf16.vlgmr.msra.gmra.mrb[56].mxu1 %v15329_v14  ;;  %9260 = vmatprep.subr.bf16.mxu0 %v10498_v40  ;;  %v10504_v14 = vld [vmem:[#allocation8 + $0x138] sm:$0xff]  }
 0x57d   : > { %9254 = vmatprep.mubr.bf16.mxu1 %v15332_v49  ;;  %9283 = vmatpush3.bf16.msra.mxu1 %v10497_v38  ;;  %v15349_v49 = vpack.c.bf16 %v15347_v6, %v15348_v60  ;;  %v15362_v6 = vld [vmem:[#allocation204_spill] sm:$0xff] }
 0x57e   : > { %9284 = vmatprep.subr.bf16.mxu1 %v10498_v40  ;;  %v15363_v60 = vld [vmem:[#allocation208_spill] sm:$0xff] }
 0x57f   : > { %9261 = vmatpush3.bf16.msra.mxu0 %v10498_v40 }
 0x580   : > { %9262 = vmatprep.subr.bf16.mxu0 %v10499_v46 }
 0x581   : > { %9285 = vmatpush3.bf16.msra.mxu1 %v10498_v40 }
 0x582   : > { %9231 = vmatmul.mubr.bf16.gmra.mrb[60].mxu0 %v15337_v62  ;;  %9286 = vmatprep.subr.bf16.mxu1 %v10499_v46  ;;  %v15352_v62 = vpack.c.bf16 %v15350_v10, %v15351_v27  ;;  %v15365_v10 = vld [vmem:[#allocation113_spill] sm:$0xff]  ;;  %v15366_v27 = vld [vmem:[#allocation114_spill] sm:$0xff] }
 0x583   : > { %9263 = vmatpush3.bf16.msra.mxu0 %v10499_v46  ;;  %9274 = vmatprep.mubr.msk.bf16.mxu0 %vm14044_vm3, %v15340_v12  ;;  %v15355_v12 = vpack.c.bf16 %v15353_v28, %v15354_v45  ;;  %v15371_v45 = vld [vmem:[#allocation210_spill] sm:$0xff] }
 0x584   : > { %9255 = vmatmul.mubr.bf16.gmra.mrb[60].mxu1 %v15343_v61  ;;  %9264 = vmatprep.subr.bf16.mxu0 %v10500_v18  ;;  %v15358_v61 = vpack.c.bf16 %v15356_v58, %v15357_v1  ;;  %v15375_v58 = vld [vmem:[#allocation213_spill] sm:$0xff] }
 0x585   : > { %9287 = vmatpush3.bf16.msra.mxu1 %v10499_v46  ;;  %9298 = vmatprep.mubr.msk.bf16.mxu1 %vm14044_vm3, %v15346_v3  ;;  %v15361_v3 = vpack.c.bf16 %v15359_v33, %v15360_v47  ;;  %v15380_v47 = vld [vmem:[#allocation216_spill] sm:$0xff] }
 0x586   : > { %9288 = vmatprep.subr.bf16.mxu1 %v10500_v18 }
 0x587   : > { %9265 = vmatpush3.bf16.msra.mxu0 %v10500_v18 }
 0x588   : > { %9266 = vmatprep.subr.bf16.mxu0 %v10501_v35 }
 0x589   : > { %9289 = vmatpush3.bf16.msra.mxu1 %v10500_v18 }
 0x58a   : > { %9290 = vmatprep.subr.bf16.mxu1 %v10501_v35 }
 0x58b   : > { %9267 = vmatpush3.bf16.msra.mxu0 %v10501_v35 }
 0x58c   : > { %9268 = vmatprep.subr.bf16.mxu0 %v10502_v26 }
 0x58d   : > { %9291 = vmatpush3.bf16.msra.mxu1 %v10501_v35 }
 0x58e   : > { %9292 = vmatprep.subr.bf16.mxu1 %v10502_v26 }
 0x58f   : > { %9269 = vmatpush3.bf16.msra.mxu0 %v10502_v26 }
 0x590   : > { %9270 = vmatprep.subr.bf16.mxu0 %v10503_v23 }
 0x591   : > { %9293 = vmatpush3.bf16.msra.mxu1 %v10502_v26 }
 0x592   : > { %9294 = vmatprep.subr.bf16.mxu1 %v10503_v23 }
 0x593   : > { %9271 = vmatpush3.bf16.msra.mxu0 %v10503_v23 }
 0x594   : > { %9272 = vmatprep.subr.bf16.mxu0 %v10504_v14 }
 0x595   : > { %9295 = vmatpush3.bf16.msra.mxu1 %v10503_v23 }
 0x596   : > { %9296 = vmatprep.subr.bf16.mxu1 %v10504_v14 }
 0x597   : > { %9273 = vmatpush3.bf16.msra.mxu0 %v10504_v14 }
 0x598   : > { %9306 = vmatprep.subr.bf16.mxu0 %v10497_v38 }
 0x599   : > { %9297 = vmatpush3.bf16.msra.mxu1 %v10504_v14 }
 0x59a   : > { %9275 = vmatmul.mubr.bf16.vlgmr.msra.gmra.mrb[48].mxu0 %v15349_v49  ;;  %9330 = vmatprep.subr.bf16.mxu1 %v10497_v38  ;;  %v15364_v49 = vpack.c.bf16 %v15362_v6, %v15363_v60  ;;  %v15383_v60 = vld [vmem:[#allocation218_spill] sm:$0xff] }
 0x59b   : > { %9278 = vmatprep.mubr.bf16.mxu0 %v15352_v62  ;;  %9307 = vmatpush3.bf16.msra.mxu0 %v10497_v38  ;;  %v15367_v62 = vpack.c.bf16 %v15365_v10, %v15366_v27  ;;  %v15386_v27 = vld [vmem:[#allocation21_spill] sm:$0xff] }
 0x59c   : > { %9299 = vmatmul.mubr.bf16.vlgmr.msra.gmra.mrb[48].mxu1 %v15355_v12  ;;  %9308 = vmatprep.subr.bf16.mxu0 %v10498_v40 }
 0x59d   : > { %9302 = vmatprep.mubr.bf16.mxu1 %v15358_v61  ;;  %9331 = vmatpush3.bf16.msra.mxu1 %v10497_v38  ;;  %v15368_v38 = vld [vmem:[#allocation207_spill] sm:$0xff]  ;;  %v15378_v61 = vld [vmem:[#allocation214_spill] sm:$0xff] }
 0x59e   : > { %9332 = vmatprep.subr.bf16.mxu1 %v10498_v40 }
 0x59f   : > { %9309 = vmatpush3.bf16.msra.mxu0 %v10498_v40 }
 0x5a0   : > { %9310 = vmatprep.subr.bf16.mxu0 %v10499_v46 }
 0x5a1   : > { %9333 = vmatpush3.bf16.msra.mxu1 %v10498_v40  ;;  %v15369_v40 = vld [vmem:[#allocation209_spill] sm:$0xff] }
 0x5a2   : > { %9279 = vmatmul.mubr.bf16.gmra.mrb[52].mxu0 %v15361_v3  ;;  %9334 = vmatprep.subr.bf16.mxu1 %v10499_v46  ;;  %v15370_v28 = vpack.c.bf16 %v15368_v38, %v15369_v40  ;;  %v15381_v3 = vld [vmem:[#allocation217_spill] sm:$0xff]  ;;  %v15389_v40 = vld [vmem:[#allocation220_spill] sm:$0xff] }
 0x5a3   : > { %9311 = vmatpush3.bf16.msra.mxu0 %v10499_v46  ;;  %9322 = vmatprep.mubr.msk.bf16.mxu0 %vm14044_vm3, %v15364_v49  ;;  %v15382_v6 = vpack.c.bf16 %v15380_v47, %v15381_v3  ;;  %v15384_v49 = vld [vmem:[#allocation219_spill] sm:$0xff] }
 0x5a4   : > { %9303 = vmatmul.mubr.bf16.gmra.mrb[52].mxu1 %v15367_v62  ;;  %9312 = vmatprep.subr.bf16.mxu0 %v10500_v18  ;;  %v15385_v10 = vpack.c.bf16 %v15383_v60, %v15384_v49  ;;  %v15387_v62 = vld [vmem:[#allocation19_spill] sm:$0xff]  ;;  %v15399_v60 = vld [vmem:[#allocation45_spill] sm:$0xff] }
 0x5a5   : > { %9335 = vmatpush3.bf16.msra.mxu1 %v10499_v46  ;;  %9346 = vmatprep.mubr.msk.bf16.mxu1 %vm14044_vm3, %v15370_v28  ;;  %v10505_v46 = vld [vmem:[#allocation8 + $0x140] sm:$0xff]   ;;  %v15388_v38 = vpack.c.bf16 %v15386_v27, %v15387_v62  ;;  %v15390_v28 = vld [vmem:[#allocation221_spill] sm:$0xff]  ;;  %v15402_v27 = vld [vmem:[#allocation32_spill] sm:$0xff] }
 0x5a6   : > { %9336 = vmatprep.subr.bf16.mxu1 %v10500_v18  ;;  %v15396_v47 = vld [vmem:[#allocation31_spill] sm:$0xff] }
 0x5a7   : > { %9313 = vmatpush3.bf16.msra.mxu0 %v10500_v18 }
 0x5a8   : > { %9314 = vmatprep.subr.bf16.mxu0 %v10501_v35 }
 0x5a9   : > { %9337 = vmatpush3.bf16.msra.mxu1 %v10500_v18  ;;  %v15372_v18 = vld [vmem:[#allocation211_spill] sm:$0xff] }
 0x5aa   : > { %9338 = vmatprep.subr.bf16.mxu1 %v10501_v35  ;;  %v15373_v12 = vpack.c.bf16 %v15371_v45, %v15372_v18  ;;  %v15391_v45 = vpack.c.bf16 %v15389_v40, %v15390_v28  ;;  %v10509_v18 = vld [vmem:[#allocation8 + $0x160] sm:$0xff]   ;;  %v15405_v40 = vld [vmem:[#allocation48_spill] sm:$0xff] }
 0x5ab   : > { %9315 = vmatpush3.bf16.msra.mxu0 %v10501_v35 }
 0x5ac   : > { %9316 = vmatprep.subr.bf16.mxu0 %v10502_v26 }
 0x5ad   : > { %9339 = vmatpush3.bf16.msra.mxu1 %v10501_v35  ;;  %v15374_v35 = vld [vmem:[#allocation212_spill] sm:$0xff] }
 0x5ae   : > { %9340 = vmatprep.subr.bf16.mxu1 %v10502_v26  ;;  %v15376_v1 = vpack.c.bf16 %v15374_v35, %v15375_v58  ;;  %v15393_v35 = vld [vmem:[#allocation20_spill] sm:$0xff] }
 0x5af   : > { %9317 = vmatpush3.bf16.msra.mxu0 %v10502_v26 }
 0x5b0   : > { %9318 = vmatprep.subr.bf16.mxu0 %v10503_v23 }
 0x5b1   : > { %9341 = vmatpush3.bf16.msra.mxu1 %v10502_v26  ;;  %v15377_v26 = vld [vmem:[#allocation215_spill] sm:$0xff] }
 0x5b2   : > { %9342 = vmatprep.subr.bf16.mxu1 %v10503_v23  ;;  %v15379_v33 = vpack.c.bf16 %v15377_v26, %v15378_v61  ;;  %v10511_v26 = vld [vmem:[#allocation8 + $0x170] sm:$0xff]   ;;  %v10512_v61 = vld [vmem:[#allocation8 + $0x178] sm:$0xff]  }
 0x5b3   : > { %9319 = vmatpush3.bf16.msra.mxu0 %v10503_v23 }
 0x5b4   : > { %9320 = vmatprep.subr.bf16.mxu0 %v10504_v14 }
 0x5b5   : > { %9343 = vmatpush3.bf16.msra.mxu1 %v10503_v23  ;;  %v10507_v23 = vld [vmem:[#allocation8 + $0x150] sm:$0xff]  }
 0x5b6   : > { %9344 = vmatprep.subr.bf16.mxu1 %v10504_v14 }
 0x5b7   : > { %9321 = vmatpush3.bf16.msra.mxu0 %v10504_v14 }
 0x5b8   : > { %9354 = vmatprep.subr.bf16.mxu0 %v10505_v46 }
 0x5b9   : > { %9345 = vmatpush3.bf16.msra.mxu1 %v10504_v14  ;;  %v10508_v14 = vld [vmem:[#allocation8 + $0x158] sm:$0xff]  }
 0x5ba   : > { %9323 = vmatmul.mubr.bf16.vlgmr.msra.gmra.mrb[56].mxu0 %v15373_v12  ;;  %9378 = vmatprep.subr.bf16.mxu1 %v10505_v46  ;;  %v15392_v12 = vld [vmem:[#allocation22_spill] sm:$0xff] }
 0x5bb   : > { %9326 = vmatprep.mubr.bf16.mxu0 %v15376_v1  ;;  %9355 = vmatpush3.bf16.msra.mxu0 %v10505_v46  ;;  %v15394_v58 = vpack.c.bf16 %v15392_v12, %v15393_v35  ;;  %v10510_v1 = vld [vmem:[#allocation8 + $0x168] sm:$0xff]  }
 0x5bc   : > { %9347 = vmatmul.mubr.bf16.vlgmr.msra.gmra.mrb[56].mxu1 %v15379_v33  ;;  %9356 = vmatprep.subr.bf16.mxu0 %v10506_v32  ;;  %v15395_v33 = vld [vmem:[#allocation33_spill] sm:$0xff]  ;;  %v15408_v12 = vld [vmem:[#allocation60_spill] sm:$0xff] }
 0x5bd   : > { %9350 = vmatprep.mubr.bf16.mxu1 %v15382_v6  ;;  %9379 = vmatpush3.bf16.msra.mxu1 %v10505_v46  ;;  %v15397_v3 = vpack.c.bf16 %v15395_v33, %v15396_v47  ;;  %v15398_v6 = vld [vmem:[#allocation50_spill] sm:$0xff]  ;;  %v15411_v33 = vld [vmem:[#allocation67_spill] sm:$0xff] }
 0x5be   : > { %9380 = vmatprep.subr.bf16.mxu1 %v10506_v32  ;;  %v15400_v49 = vpack.c.bf16 %v15398_v6, %v15399_v60  ;;  %v15412_v47 = vld [vmem:[#allocation63_spill] sm:$0xff]  ;;  %v15430_v60 = vld [vmem:[#allocation122_spill] sm:$0xff] }
 0x5bf   : > { %9357 = vmatpush3.bf16.msra.mxu0 %v10506_v32 }
 0x5c0   : > { %9358 = vmatprep.subr.bf16.mxu0 %v10507_v23 }
 0x5c1   : > { %9381 = vmatpush3.bf16.msra.mxu1 %v10506_v32 }
 0x5c2   : > { %9327 = vmatmul.mubr.bf16.gmra.mrb[60].mxu0 %v15385_v10  ;;  %9382 = vmatprep.subr.bf16.mxu1 %v10507_v23  ;;  %v15401_v10 = vld [vmem:[#allocation34_spill] sm:$0xff] }
 0x5c3   : > { %9359 = vmatpush3.bf16.msra.mxu0 %v10507_v23  ;;  %9370 = vmatprep.mubr.bf16.mxu0 %v15388_v38  ;;  %v15403_v62 = vpack.c.bf16 %v15401_v10, %v15402_v27  ;;  %v15404_v38 = vld [vmem:[#allocation51_spill] sm:$0xff] }
 0x5c4   : > { %9351 = vmatmul.mubr.bf16.gmra.mrb[60].mxu1 %v15391_v45  ;;  %9360 = vmatprep.subr.bf16.mxu0 %v10508_v14  ;;  %v15406_v28 = vpack.c.bf16 %v15404_v38, %v15405_v40  ;;  %v15407_v45 = vld [vmem:[#allocation65_spill] sm:$0xff]  ;;  %v15433_v27 = vld [vmem:[#allocation123_spill] sm:$0xff]  ;;  %v15437_v40 = vld [vmem:[#allocation126_spill] sm:$0xff] }
 0x5c5   : > { %9383 = vmatpush3.bf16.msra.mxu1 %v10507_v23  ;;  %9394 = vmatprep.mubr.bf16.mxu1 %v15394_v58  ;;  %v15409_v35 = vpack.c.bf16 %v15407_v45, %v15408_v12  ;;  %v15410_v58 = vpack.c.bf16 %v12924_v5, %v12916_v52  ;;  %v10513_v5 = vld [vmem:[#allocation8 + $0x180] sm:$0xff]   ;;  %v15415_v52 = vpack.c.bf16 %v13007_v57, %v12993_v37  ;;  %v10516_v57 = vld [vmem:[#allocation8 + $0x198] sm:$0xff]   ;;  %v15441_v12 = vld [vmem:[#allocation128_spill] sm:$0xff] }
 0x5c6   : > { %9384 = vmatprep.subr.bf16.mxu1 %v10508_v14  ;;  %v15419_v37 = vpack.c.bf16 %v13178_v16, %v13153_v24  ;;  %v10518_v24 = vld [vmem:[#allocation8 + $0x1a8] sm:$0xff]   ;;  %v10519_v16 = vld [vmem:[#allocation8 + $0x1b0] sm:$0xff]   ;;  %v15475_v45 = vld [vmem:[#allocation135_spill] sm:$0xff] }
 0x5c7   : > { %9361 = vmatpush3.bf16.msra.mxu0 %v10508_v14 }
 0x5c8   : > { %9362 = vmatprep.subr.bf16.mxu0 %v10509_v18 }
 0x5c9   : > { %9385 = vmatpush3.bf16.msra.mxu1 %v10508_v14 }
 0x5ca   : > { %9386 = vmatprep.subr.bf16.mxu1 %v10509_v18 }
 0x5cb   : > { %9363 = vmatpush3.bf16.msra.mxu0 %v10509_v18 }
 0x5cc   : > { %9364 = vmatprep.subr.bf16.mxu0 %v10510_v1 }
 0x5cd   : > { %9387 = vmatpush3.bf16.msra.mxu1 %v10509_v18 }
 0x5ce   : > { %9388 = vmatprep.subr.bf16.mxu1 %v10510_v1 }
 0x5cf   : > { %9365 = vmatpush3.bf16.msra.mxu0 %v10510_v1 }
 0x5d0   : > { %9366 = vmatprep.subr.bf16.mxu0 %v10511_v26 }
 0x5d1   : > { %9389 = vmatpush3.bf16.msra.mxu1 %v10510_v1 }
 0x5d2   : > { %9390 = vmatprep.subr.bf16.mxu1 %v10511_v26 }
 0x5d3   : > { %9367 = vmatpush3.bf16.msra.mxu0 %v10511_v26 }
 0x5d4   : > { %9368 = vmatprep.subr.bf16.mxu0 %v10512_v61 }
 0x5d5   : > { %9391 = vmatpush3.bf16.msra.mxu1 %v10511_v26 }
 0x5d6   : > { %9392 = vmatprep.subr.bf16.mxu1 %v10512_v61 }
 0x5d7   : > { %9369 = vmatpush3.bf16.msra.mxu0 %v10512_v61 }
 0x5d8   : > { %9402 = vmatprep.subr.bf16.mxu0 %v10505_v46 }
 0x5d9   : > { %9393 = vmatpush3.bf16.msra.mxu1 %v10512_v61 }
 0x5da   : > { %9371 = vmatmul.mubr.bf16.vlgmr.msra.gmra.mrb[48].mxu0 %v15397_v3  ;;  %9426 = vmatprep.subr.bf16.mxu1 %v10505_v46  ;;  %v15413_v3 = vpack.c.bf16 %v15411_v33, %v15412_v47  ;;  %v15444_v33 = vld [vmem:[#allocation223_spill] sm:$0xff]  ;;  %v15445_v47 = vld [vmem:[#allocation222_spill] sm:$0xff] }
 0x5db   : > { %9374 = vmatprep.mubr.bf16.mxu0 %v15400_v49  ;;  %9403 = vmatpush3.bf16.msra.mxu0 %v10505_v46  ;;  %v15431_v49 = vld [vmem:[#allocation121_spill] sm:$0xff] }
 0x5dc   : > { %9395 = vmatmul.mubr.bf16.vlgmr.msra.gmra.mrb[48].mxu1 %v15403_v62  ;;  %9404 = vmatprep.subr.bf16.mxu0 %v10506_v32  ;;  %v15432_v10 = vpack.c.bf16 %v15430_v60, %v15431_v49  ;;  %v15434_v62 = vld [vmem:[#allocation124_spill] sm:$0xff]  ;;  %v15467_v60 = vld [vmem:[#allocation131_spill] sm:$0xff] }
 0x5dd   : > { %9398 = vmatprep.mubr.bf16.mxu1 %v15406_v28  ;;  %9427 = vmatpush3.bf16.msra.mxu1 %v10505_v46  ;;  %v15414_v46 = vpack.c.bf16 %v12930_v36, %v12918_v34  ;;  %v10514_v36 = vld [vmem:[#allocation8 + $0x188] sm:$0xff]   ;;  %v15416_v34 = vpack.c.bf16 %v13093_v15, %v13069_v31  ;;  %v15435_v38 = vpack.c.bf16 %v15433_v27, %v15434_v62  ;;  %v10525_v27 = vld [vmem:[#allocation8 + $0x1e0] sm:$0xff]   ;;  %v15471_v62 = vld [vmem:[#allocation133_spill] sm:$0xff] }
 0x5de   : > { %9428 = vmatprep.subr.bf16.mxu1 %v10506_v32  ;;  %v15421_v31 = vld [vmem:[#allocation116_spill] sm:$0xff] }
 0x5df   : > { %9405 = vmatpush3.bf16.msra.mxu0 %v10506_v32  ;;  %v15468_v49 = vld [vmem:[#allocation132_spill] sm:$0xff] }
 0x5e0   : > { %9406 = vmatprep.subr.bf16.mxu0 %v10507_v23 }
 0x5e1   : > { %9429 = vmatpush3.bf16.msra.mxu1 %v10506_v32  ;;  %v15417_v32 = vpack.c.bf16 %v13013_v55, %v13001_v43  ;;  %v15420_v55 = vld [vmem:[#allocation115_spill] sm:$0xff] }
 0x5e2   : > { %9375 = vmatmul.mubr.bf16.gmra.mrb[52].mxu0 %v15409_v35  ;;  %9430 = vmatprep.subr.bf16.mxu1 %v10507_v23  ;;  %v15422_v15 = vpack.c.bf16 %v15420_v55, %v15421_v31  ;;  %v10517_v43 = vld [vmem:[#allocation8 + $0x1a0] sm:$0xff]   ;;  %v15456_v31 = vld [vmem:[#allocation229_spill] sm:$0xff] }
 0x5e3   : > { %9407 = vmatpush3.bf16.msra.mxu0 %v10507_v23  ;;  %9418 = vmatprep.mubr.bf16.mxu0 %v15410_v58  ;;  %v15442_v35 = vld [vmem:[#allocation127_spill] sm:$0xff] }
 0x5e4   : > { %9399 = vmatmul.mubr.bf16.gmra.mrb[52].mxu1 %v15413_v3  ;;  %9408 = vmatprep.subr.bf16.mxu0 %v10508_v14  ;;  %v15443_v58 = vpack.c.bf16 %v15441_v12, %v15442_v35  ;;  %v15446_v3 = vpack.c.bf16 %v15444_v33, %v15445_v47  ;;  %v15477_v35 = vld [vmem:[#allocation138_spill] sm:$0xff]  ;;  %v15480_v47 = vld [vmem:[#allocation139_spill] sm:$0xff] }
 0x5e5   : > { %9431 = vmatpush3.bf16.msra.mxu1 %v10507_v23  ;;  %9442 = vmatprep.mubr.bf16.mxu1 %v15414_v46  ;;  %v10515_v23 = vld [vmem:[#allocation8 + $0x190] sm:$0xff]   ;;  %v15447_v46 = vld [vmem:[#allocation130_spill] sm:$0xff] }
 0x5e6   : > { %9432 = vmatprep.subr.bf16.mxu1 %v10508_v14 }
 0x5e7   : > { %9409 = vmatpush3.bf16.msra.mxu0 %v10508_v14 }
 0x5e8   : > { %9410 = vmatprep.subr.bf16.mxu0 %v10509_v18 }
 0x5e9   : > { %9433 = vmatpush3.bf16.msra.mxu1 %v10508_v14  ;;  %v15418_v14 = vpack.c.bf16 %v13100_v54, %v13084_v29  ;;  %v15423_v54 = vpack.c.bf16 %v13190_v22, %v13166_v48  ;;  %v15424_v29 = vld [vmem:[#allocation117_spill] sm:$0xff]  ;;  %v10520_v48 = vld [vmem:[#allocation8 + $0x1b8] sm:$0xff]   ;;  %v14165_v22 = vadd.s32 56, %v12015_v59 }
 0x5ea   : > { %9434 = vmatprep.subr.bf16.mxu1 %v10509_v18  ;;  %v15436_v59 = vld [vmem:[#allocation125_spill] sm:$0xff] }
 0x5eb   : > { %9411 = vmatpush3.bf16.msra.mxu0 %v10509_v18  ;;  %vm5017_vm4 = vcmp.lt.s32.totalorder %v14165_v22, 63  ;;  %v15438_v28 = vpack.c.bf16 %v15436_v59, %v15437_v40  ;;  %v10526_v40 = vld [vmem:[#allocation8 + $0x1e8] sm:$0xff]   ;;  %vm5494_vm7 = vcmp.lt.s32.totalorder %v14165_v22, 62  ;;  %vm5906_vm9 = vcmp.lt.s32.totalorder %v14165_v22, 61 }
 0x5ec   : > { %9412 = vmatprep.subr.bf16.mxu0 %v10510_v1  ;;  %vm14181_vm5 = vmpackc.low %vm5017_vm4, %vm10891_vm6  ;;  %vm6318_vm11 = vcmp.lt.s32.totalorder %v14165_v22, 60  ;;  %vm6730_vm13 = vcmp.lt.s32.totalorder %v14165_v22, 59  ;;  %v15624_v22 = vld [vmem:[#allocation81_spill] sm:$0xff] }
 0x5ed   : > { %9435 = vmatpush3.bf16.msra.mxu1 %v10509_v18  ;;  %v15425_v18 = vld [vmem:[#allocation118_spill] sm:$0xff]  ;;  %vm14243_vm8 = vmpackc.low %vm5494_vm7, %vm10891_vm6 }
 0x5ee   : > { %9436 = vmatprep.subr.bf16.mxu1 %v10510_v1  ;;  %vm14305_vm10 = vmpackc.low %vm5906_vm9, %vm10891_vm6 }
 0x5ef   : > { %9413 = vmatpush3.bf16.msra.mxu0 %v10510_v1  ;;  %vm14367_vm12 = vmpackc.low %vm6318_vm11, %vm10891_vm6 }
 0x5f0   : > { %9414 = vmatprep.subr.bf16.mxu0 %v10511_v26  ;;  %vm14429_vm14 = vmpackc.low %vm6730_vm13, %vm10891_vm6 }
 0x5f1   : > { %9437 = vmatpush3.bf16.msra.mxu1 %v10510_v1  ;;  %v15426_v1 = vpack.c.bf16 %v15424_v29, %v15425_v18  ;;  %v15460_v29 = vld [vmem:[#allocation231_spill] sm:$0xff] }
 0x5f2   : > { %9438 = vmatprep.subr.bf16.mxu1 %v10511_v26 }
 0x5f3   : > { %9415 = vmatpush3.bf16.msra.mxu0 %v10511_v26 }
 0x5f4   : > { %9416 = vmatprep.subr.bf16.mxu0 %v10512_v61 }
 0x5f5   : > { %9439 = vmatpush3.bf16.msra.mxu1 %v10511_v26  ;;  %v15427_v26 = vld [vmem:[#allocation119_spill] sm:$0xff] }
 0x5f6   : > { %9440 = vmatprep.subr.bf16.mxu1 %v10512_v61 }
 0x5f7   : > { %9417 = vmatpush3.bf16.msra.mxu0 %v10512_v61 }
 0x5f8   : > { %9450 = vmatprep.subr.bf16.mxu0 %v10513_v5 }
 0x5f9   : > { %9441 = vmatpush3.bf16.msra.mxu1 %v10512_v61  ;;  %v15428_v61 = vld [vmem:[#allocation120_spill] sm:$0xff] }
 0x5fa   : > { %9419 = vmatmul.mubr.bf16.vlgmr.msra.gmra.mrb[56].mxu0 %v15415_v52  ;;  %9474 = vmatprep.subr.bf16.mxu1 %v10513_v5  ;;  %v15429_v6 = vpack.c.bf16 %v15427_v26, %v15428_v61  ;;  %v15464_v26 = vld [vmem:[#allocation234_spill] sm:$0xff]  ;;  %v15465_v61 = vld [vmem:[#allocation233_spill] sm:$0xff] }
 0x5fb   : > { %9422 = vmatprep.mubr.bf16.mxu0 %v15416_v34  ;;  %9451 = vmatpush3.bf16.msra.mxu0 %v10513_v5  ;;  %v15451_v34 = vld [vmem:[#allocation225_spill] sm:$0xff] }
 0x5fc   : > { %9443 = vmatmul.mubr.bf16.vlgmr.msra.gmra.mrb[56].mxu1 %v15417_v32  ;;  %9452 = vmatprep.subr.bf16.mxu0 %v10514_v36 }
 0x5fd   : > { %9446 = vmatprep.mubr.bf16.mxu1 %v15418_v14  ;;  %9475 = vmatpush3.bf16.msra.mxu1 %v10513_v5  ;;  %v10522_v14 = vld [vmem:[#allocation8 + $0x1c8] sm:$0xff]  }
 0x5fe   : > { %9476 = vmatprep.subr.bf16.mxu1 %v10514_v36 }
 0x5ff   : > { %9453 = vmatpush3.bf16.msra.mxu0 %v10514_v36 }
 0x600   : > { %9454 = vmatprep.subr.bf16.mxu0 %v10515_v23 }
 0x601   : > { %9477 = vmatpush3.bf16.msra.mxu1 %v10514_v36 }
 0x602   : > { %9423 = vmatmul.mubr.bf16.gmra.mrb[60].mxu0 %v15419_v37  ;;  %9478 = vmatprep.subr.bf16.mxu1 %v10515_v23  ;;  %v15453_v37 = vld [vmem:[#allocation226_spill] sm:$0xff] }
 0x603   : > { %9455 = vmatpush3.bf16.msra.mxu0 %v10515_v23  ;;  %9466 = vmatprep.mubr.bf16.mxu0 %v15422_v15  ;;  %v15457_v15 = vld [vmem:[#allocation228_spill] sm:$0xff] }
 0x604   : > { %9447 = vmatmul.mubr.bf16.gmra.mrb[60].mxu1 %v15423_v54  ;;  %9456 = vmatprep.subr.bf16.mxu0 %v10516_v57  ;;  %v15458_v54 = vpack.c.bf16 %v15456_v31, %v15457_v15  ;;  %v15492_v31 = vld [vmem:[#allocation235_spill] sm:$0xff]  ;;  %v15494_v15 = vld [vmem:[#allocation146_spill] sm:$0xff] }
 0x605   : > { %9479 = vmatpush3.bf16.msra.mxu1 %v10515_v23  ;;  %9490 = vmatprep.mubr.bf16.mxu1 %v15426_v1  ;;  %v10523_v1 = vld [vmem:[#allocation8 + $0x1d0] sm:$0xff]  }
 0x606   : > { %9480 = vmatprep.subr.bf16.mxu1 %v10516_v57 }
 0x607   : > { %9457 = vmatpush3.bf16.msra.mxu0 %v10516_v57 }
 0x608   : > { %9458 = vmatprep.subr.bf16.mxu0 %v10517_v43 }
 0x609   : > { %9481 = vmatpush3.bf16.msra.mxu1 %v10516_v57 }
 0x60a   : > { %9482 = vmatprep.subr.bf16.mxu1 %v10517_v43 }
 0x60b   : > { %9459 = vmatpush3.bf16.msra.mxu0 %v10517_v43 }
 0x60c   : > { %9460 = vmatprep.subr.bf16.mxu0 %v10518_v24 }
 0x60d   : > { %9483 = vmatpush3.bf16.msra.mxu1 %v10517_v43 }
 0x60e   : > { %9484 = vmatprep.subr.bf16.mxu1 %v10518_v24 }
 0x60f   : > { %9461 = vmatpush3.bf16.msra.mxu0 %v10518_v24 }
 0x610   : > { %9462 = vmatprep.subr.bf16.mxu0 %v10519_v16 }
 0x611   : > { %9485 = vmatpush3.bf16.msra.mxu1 %v10518_v24 }
 0x612   : > { %9486 = vmatprep.subr.bf16.mxu1 %v10519_v16 }
 0x613   : > { %9463 = vmatpush3.bf16.msra.mxu0 %v10519_v16 }
 0x614   : > { %9464 = vmatprep.subr.bf16.mxu0 %v10520_v48 }
 0x615   : > { %9487 = vmatpush3.bf16.msra.mxu1 %v10519_v16 }
 0x616   : > { %9488 = vmatprep.subr.bf16.mxu1 %v10520_v48 }
 0x617   : > { %9465 = vmatpush3.bf16.msra.mxu0 %v10520_v48 }
 0x618   : > { %9498 = vmatprep.subr.bf16.mxu0 %v10513_v5 }
 0x619   : > { %9489 = vmatpush3.bf16.msra.mxu1 %v10520_v48 }
 0x61a   : > { %9467 = vmatmul.mubr.bf16.vlgmr.msra.gmra.mrb[48].mxu0 %v15429_v6  ;;  %9522 = vmatprep.subr.bf16.mxu1 %v10513_v5  ;;  %v15466_v6 = vpack.c.bf16 %v15464_v26, %v15465_v61  ;;  %v15503_v61 = vld [vmem:[#allocation242_spill] sm:$0xff] }
 0x61b   : > { %9470 = vmatprep.mubr.bf16.mxu0 %v15432_v10  ;;  %9499 = vmatpush3.bf16.msra.mxu0 %v10513_v5  ;;  %v15469_v10 = vpack.c.bf16 %v15467_v60, %v15468_v49  ;;  %v15506_v49 = vpack.c.bf16 %v13806_v7, %v13810_v11  ;;  %v15509_v7 = vld [vmem:[#allocation35_spill] sm:$0xff] }
 0x61c   : > { %9491 = vmatmul.mubr.bf16.vlgmr.msra.gmra.mrb[48].mxu1 %v15435_v38  ;;  %9500 = vmatprep.subr.bf16.mxu0 %v10514_v36  ;;  %v15472_v38 = vld [vmem:[#allocation134_spill] sm:$0xff]  ;;  %v15510_v11 = vld [vmem:[#allocation23_spill] sm:$0xff] }
 0x61d   : > { %9494 = vmatprep.mubr.bf16.mxu1 %v15438_v28  ;;  %9523 = vmatpush3.bf16.msra.mxu1 %v10513_v5  ;;  %v15448_v5 = vld [vmem:[#allocation129_spill] sm:$0xff]  ;;  %v15473_v59 = vpack.c.bf16 %v15471_v62, %v15472_v38  ;;  %v15508_v62 = vpack.c.bf16 %v13845_v30, %v13839_v42  ;;  %v15511_v38 = vpack.c.bf16 %v15509_v7, %v15510_v11  ;;  %v15514_v30 = vld [vmem:[#allocation27_spill] sm:$0xff]  ;;  %v15557_v7 = vld [vmem:[#allocation186_spill] sm:$0xff] }
 0x61e   : > { %9524 = vmatprep.subr.bf16.mxu1 %v10514_v36  ;;  %v15449_v52 = vpack.c.bf16 %v15447_v46, %v15448_v5  ;;  %v10527_v28 = vld [vmem:[#allocation8 + $0x1f0] sm:$0xff]   ;;  %v15483_v5 = vld [vmem:[#allocation142_spill] sm:$0xff] }
 0x61f   : > { %9501 = vmatpush3.bf16.msra.mxu0 %v10514_v36 }
 0x620   : > { %9502 = vmatprep.subr.bf16.mxu0 %v10515_v23 }
 0x621   : > { %9525 = vmatpush3.bf16.msra.mxu1 %v10514_v36  ;;  %v15450_v36 = vld [vmem:[#allocation224_spill] sm:$0xff] }
 0x622   : > { %9471 = vmatmul.mubr.msk.bf16.gmra.mrb[52].mxu0 %vm14181_vm5, %v15443_v58  ;;  %9526 = vmatprep.subr.bf16.mxu1 %v10515_v23  ;;  %v15452_v32 = vpack.c.bf16 %v15450_v36, %v15451_v34  ;;  %v15478_v58 = vld [vmem:[#allocation137_spill] sm:$0xff] }
 0x623   : > { %9503 = vmatpush3.bf16.msra.mxu0 %v10515_v23  ;;  %9514 = vmatprep.mubr.bf16.mxu0 %v15446_v3  ;;  %v15479_v33 = vpack.c.bf16 %v15477_v35, %v15478_v58  ;;  %v15481_v3 = vld [vmem:[#allocation140_spill] sm:$0xff]  ;;  %v15522_v58 = vld [vmem:[#allocation54_spill] sm:$0xff]  ;;  %v15531_v34 = vld [vmem:[#allocation73_spill] sm:$0xff] }
 0x624   : > { %9495 = vmatmul.mubr.msk.bf16.gmra.mrb[52].mxu1 %vm14181_vm5, %v15449_v52  ;;  %9504 = vmatprep.subr.bf16.mxu0 %v10516_v57  ;;  %v15482_v46 = vpack.c.bf16 %v15480_v47, %v15481_v3  ;;  %v15484_v52 = vld [vmem:[#allocation141_spill] sm:$0xff]  ;;  %v15525_v3 = vld [vmem:[#allocation70_spill] sm:$0xff] }
 0x625   : > { %9527 = vmatpush3.bf16.msra.mxu1 %v10515_v23  ;;  %9538 = vmatprep.mubr.bf16.mxu1 %v15452_v32  ;;  %v10521_v23 = vld [vmem:[#allocation8 + $0x1c0] sm:$0xff]   ;;  %v15485_v36 = vpack.c.bf16 %v15483_v5, %v15484_v52  ;;  %v15488_v32 = vld [vmem:[#allocation144_spill] sm:$0xff] }
 0x626   : > { %9528 = vmatprep.subr.bf16.mxu1 %v10516_v57  ;;  %v15577_v52 = vld [vmem:[#allocation75_spill] sm:$0xff] }
 0x627   : > { %9505 = vmatpush3.bf16.msra.mxu0 %v10516_v57 }
 0x628   : > { %9506 = vmatprep.subr.bf16.mxu0 %v10517_v43 }
 0x629   : > { %9529 = vmatpush3.bf16.msra.mxu1 %v10516_v57  ;;  %v15454_v57 = vld [vmem:[#allocation227_spill] sm:$0xff] }
 0x62a   : > { %9530 = vmatprep.subr.bf16.mxu1 %v10517_v43  ;;  %v15455_v55 = vpack.c.bf16 %v15453_v37, %v15454_v57  ;;  %v15489_v37 = vld [vmem:[#allocation143_spill] sm:$0xff] }
 0x62b   : > { %9507 = vmatpush3.bf16.msra.mxu0 %v10517_v43  ;;  %v15490_v57 = vpack.c.bf16 %v15488_v32, %v15489_v37  ;;  %v15533_v37 = vld [vmem:[#allocation153_spill] sm:$0xff] }
 0x62c   : > { %9508 = vmatprep.subr.bf16.mxu0 %v10518_v24 }
 0x62d   : > { %9531 = vmatpush3.bf16.msra.mxu1 %v10517_v43  ;;  %v15459_v43 = vld [vmem:[#allocation230_spill] sm:$0xff] }
 0x62e   : > { %9532 = vmatprep.subr.bf16.mxu1 %v10518_v24  ;;  %v15461_v18 = vpack.c.bf16 %v15459_v43, %v15460_v29  ;;  %v15498_v29 = vld [vmem:[#allocation238_spill] sm:$0xff] }
 0x62f   : > { %9509 = vmatpush3.bf16.msra.mxu0 %v10518_v24 }
 0x630   : > { %9510 = vmatprep.subr.bf16.mxu0 %v10519_v16 }
 0x631   : > { %9533 = vmatpush3.bf16.msra.mxu1 %v10518_v24  ;;  %v15462_v24 = vld [vmem:[#allocation232_spill] sm:$0xff] }
 0x632   : > { %9534 = vmatprep.subr.bf16.mxu1 %v10519_v16 }
 0x633   : > { %9511 = vmatpush3.bf16.msra.mxu0 %v10519_v16 }
 0x634   : > { %9512 = vmatprep.subr.bf16.mxu0 %v10520_v48 }
 0x635   : > { %9535 = vmatpush3.bf16.msra.mxu1 %v10519_v16  ;;  %v15463_v16 = vpack.c.bf16 %v13694_v41, %v15462_v24  ;;  %v15470_v41 = vpack.c.bf16 %v13729_v63, %v13718_v2  ;;  %v10528_v63 = vld [vmem:[#allocation8 + $0x1f8] sm:$0xff]   ;;  %v15474_v2 = vld [vmem:[#allocation136_spill] sm:$0xff] }
 0x636   : > { %9536 = vmatprep.subr.bf16.mxu1 %v10520_v48  ;;  %v15476_v12 = vpack.c.bf16 %v15474_v2, %v15475_v45  ;;  %v10530_v24 = vld [vmem:[#allocation8 + $0x208] sm:$0xff]  }
 0x637   : > { %9513 = vmatpush3.bf16.msra.mxu0 %v10520_v48  ;;  %v15519_v45 = vld [vmem:[#allocation68_spill] sm:$0xff] }
 0x638   : > { %9546 = vmatprep.subr.bf16.mxu0 %v10521_v23 }
 0x639   : > { %9537 = vmatpush3.bf16.msra.mxu1 %v10520_v48  ;;  %v10524_v48 = vld [vmem:[#allocation8 + $0x1d8] sm:$0xff]  }
 0x63a   : > { %9515 = vmatmul.mubr.bf16.vlgmr.msra.gmra.mrb[56].mxu0 %v15455_v55  ;;  %9570 = vmatprep.subr.bf16.mxu1 %v10521_v23  ;;  %v15491_v55 = vld [vmem:[#allocation236_spill] sm:$0xff] }
 0x63b   : > { %9518 = vmatprep.mubr.bf16.mxu0 %v15458_v54  ;;  %9547 = vmatpush3.bf16.msra.mxu0 %v10521_v23  ;;  %v15495_v54 = vld [vmem:[#allocation145_spill] sm:$0xff] }
 0x63c   : > { %9539 = vmatmul.mubr.bf16.vlgmr.msra.gmra.mrb[56].mxu1 %v15461_v18  ;;  %9548 = vmatprep.subr.bf16.mxu0 %v10522_v14  ;;  %v15496_v43 = vpack.c.bf16 %v15494_v15, %v15495_v54  ;;  %v15539_v54 = vpack.c.bf16 %v13028_v56, %v12968_v51  ;;  %v10538_v56 = vld [vmem:[#allocation8 + $0x248] sm:$0xff]   ;;  %v15540_v51 = vld [vmem:[#allocation165_spill] sm:$0xff] }
 0x63d   : > { %9542 = vmatprep.mubr.bf16.mxu1 %v15463_v16  ;;  %9571 = vmatpush3.bf16.msra.mxu1 %v10521_v23  ;;  %v15500_v16 = vld [vmem:[#allocation239_spill] sm:$0xff] }
 0x63e   : > { %9572 = vmatprep.subr.bf16.mxu1 %v10522_v14 }
 0x63f   : > { %9549 = vmatpush3.bf16.msra.mxu0 %v10522_v14 }
 0x640   : > { %9550 = vmatprep.subr.bf16.mxu0 %v10523_v1 }
 0x641   : > { %9573 = vmatpush3.bf16.msra.mxu1 %v10522_v14 }
 0x642   : > { %9519 = vmatmul.mubr.msk.bf16.gmra.mrb[60].mxu0 %vm14181_vm5, %v15466_v6  ;;  %9574 = vmatprep.subr.bf16.mxu1 %v10523_v1  ;;  %v15504_v6 = vld [vmem:[#allocation241_spill] sm:$0xff] }
 0x643   : > { %9551 = vmatpush3.bf16.msra.mxu0 %v10523_v1  ;;  %9562 = vmatprep.mubr.bf16.mxu0 %v15469_v10  ;;  %v15505_v60 = vpack.c.bf16 %v15503_v61, %v15504_v6  ;;  %v10531_v10 = vld [vmem:[#allocation8 + $0x210] sm:$0xff]   ;;  %v15548_v61 = vld [vmem:[#allocation170_spill] sm:$0xff] }
 0x644   : > { %9543 = vmatmul.mubr.msk.bf16.gmra.mrb[60].mxu1 %vm14181_vm5, %v15470_v41  ;;  %9552 = vmatprep.subr.bf16.mxu0 %v10524_v48  ;;  %v15507_v41 = vpack.c.bf16 %v13825_v53, %v13829_v9  ;;  %v15512_v53 = vpack.c.bf16 %v13861_v44, %v13857_v4  ;;  %v10533_v9 = vld [vmem:[#allocation8 + $0x220] sm:$0xff]   ;;  %v10536_v4 = vld [vmem:[#allocation8 + $0x238] sm:$0xff]   ;;  %v15516_v44 = vld [vmem:[#allocation52_spill] sm:$0xff] }
 0x645   : > { %9575 = vmatpush3.bf16.msra.mxu1 %v10523_v1  ;;  %9586 = vmatprep.mubr.bf16.mxu1 %v15473_v59  ;;  %v15513_v59 = vld [vmem:[#allocation37_spill] sm:$0xff] }
 0x646   : > { %9576 = vmatprep.subr.bf16.mxu1 %v10524_v48  ;;  %v15515_v42 = vpack.c.bf16 %v15513_v59, %v15514_v30  ;;  %v10542_v30 = vld [vmem:[#allocation8 + $0x268] sm:$0xff]  }
 0x647   : > { %9553 = vmatpush3.bf16.msra.mxu0 %v10524_v48 }
 0x648   : > { %9554 = vmatprep.subr.bf16.mxu0 %v10525_v27 }
 0x649   : > { %9577 = vmatpush3.bf16.msra.mxu1 %v10524_v48 }
 0x64a   : > { %9578 = vmatprep.subr.bf16.mxu1 %v10525_v27 }
 0x64b   : > { %9555 = vmatpush3.bf16.msra.mxu0 %v10525_v27 }
 0x64c   : > { %9556 = vmatprep.subr.bf16.mxu0 %v10526_v40 }
 0x64d   : > { %9579 = vmatpush3.bf16.msra.mxu1 %v10525_v27 }
 0x64e   : > { %9580 = vmatprep.subr.bf16.mxu1 %v10526_v40 }
 0x64f   : > { %9557 = vmatpush3.bf16.msra.mxu0 %v10526_v40 }
 0x650   : > { %9558 = vmatprep.subr.bf16.mxu0 %v10527_v28 }
 0x651   : > { %9581 = vmatpush3.bf16.msra.mxu1 %v10526_v40 }
 0x652   : > { %9582 = vmatprep.subr.bf16.mxu1 %v10527_v28 }
 0x653   : > { %9559 = vmatpush3.bf16.msra.mxu0 %v10527_v28 }
 0x654   : > { %9560 = vmatprep.subr.bf16.mxu0 %v10528_v63 }
 0x655   : > { %9583 = vmatpush3.bf16.msra.mxu1 %v10527_v28 }
 0x656   : > { %9584 = vmatprep.subr.bf16.mxu1 %v10528_v63 }
 0x657   : > { %9561 = vmatpush3.bf16.msra.mxu0 %v10528_v63 }
 0x658   : > { %9594 = vmatprep.subr.bf16.mxu0 %v10521_v23 }
 0x659   : > { %9585 = vmatpush3.bf16.msra.mxu1 %v10528_v63 }
 0x65a   : > { %9563 = vmatmul.mubr.bf16.vlgmr.msra.gmra.mrb[48].mxu0 %v15476_v12  ;;  %9618 = vmatprep.subr.bf16.mxu1 %v10521_v23  ;;  %v15520_v12 = vld [vmem:[#allocation55_spill] sm:$0xff] }
 0x65b   : > { %9566 = vmatprep.mubr.bf16.mxu0 %v15479_v33  ;;  %9595 = vmatpush3.bf16.msra.mxu0 %v10521_v23  ;;  %v15521_v35 = vpack.c.bf16 %v15519_v45, %v15520_v12  ;;  %v15523_v33 = vld [vmem:[#allocation42_spill] sm:$0xff] }
 0x65c   : > { %9587 = vmatmul.mubr.bf16.vlgmr.msra.gmra.mrb[48].mxu1 %v15482_v46  ;;  %9596 = vmatprep.subr.bf16.mxu0 %v10522_v14  ;;  %v15524_v47 = vpack.c.bf16 %v15522_v58, %v15523_v33  ;;  %v15526_v46 = vld [vmem:[#allocation57_spill] sm:$0xff]  ;;  %v15568_v12 = vld [vmem:[#allocation58_spill] sm:$0xff]  ;;  %v15571_v33 = vld [vmem:[#allocation71_spill] sm:$0xff] }
 0x65d   : > { %9590 = vmatprep.mubr.bf16.mxu1 %v15485_v36  ;;  %9619 = vmatpush3.bf16.msra.mxu1 %v10521_v23  ;;  %v15493_v23 = vpack.c.bf16 %v15491_v55, %v15492_v31  ;;  %v15527_v5 = vpack.c.bf16 %v15525_v3, %v15526_v46  ;;  %v15530_v36 = vld [vmem:[#allocation72_spill] sm:$0xff] }
 0x65e   : > { %9620 = vmatprep.subr.bf16.mxu1 %v10522_v14  ;;  %v15532_v32 = vpack.c.bf16 %v15530_v36, %v15531_v34  ;;  %v15536_v31 = vld [vmem:[#allocation76_spill] sm:$0xff]  ;;  %v15579_v34 = vld [vmem:[#allocation154_spill] sm:$0xff] }
 0x65f   : > { %9597 = vmatpush3.bf16.msra.mxu0 %v10522_v14 }
 0x660   : > { %9598 = vmatprep.subr.bf16.mxu0 %v10523_v1 }
 0x661   : > { %9621 = vmatpush3.bf16.msra.mxu1 %v10522_v14  ;;  %v15497_v14 = vld [vmem:[#allocation237_spill] sm:$0xff] }
 0x662   : > { %9567 = vmatmul.mubr.msk.bf16.gmra.mrb[52].mxu0 %vm14243_vm8, %v15490_v57  ;;  %9622 = vmatprep.subr.bf16.mxu1 %v10523_v1  ;;  %v15499_v18 = vpack.c.bf16 %v15497_v14, %v15498_v29  ;;  %v15534_v57 = vld [vmem:[#allocation147_spill] sm:$0xff]  ;;  %v15541_v14 = vld [vmem:[#allocation156_spill] sm:$0xff] }
 0x663   : > { %9599 = vmatpush3.bf16.msra.mxu0 %v10523_v1  ;;  %9610 = vmatprep.mubr.bf16.mxu0 %v15493_v23  ;;  %v15535_v55 = vpack.c.bf16 %v15533_v37, %v15534_v57  ;;  %v15537_v23 = vld [vmem:[#allocation77_spill] sm:$0xff]  ;;  %v15542_v29 = vpack.c.bf16 %v15540_v51, %v15541_v14  ;;  %v15582_v57 = vld [vmem:[#allocation78_spill] sm:$0xff] }
 0x664   : > { %9591 = vmatmul.mubr.msk.bf16.gmra.mrb[52].mxu1 %vm14243_vm8, %v15496_v43  ;;  %9600 = vmatprep.subr.bf16.mxu0 %v10524_v48  ;;  %v15538_v15 = vpack.c.bf16 %v15536_v31, %v15537_v23  ;;  %v10537_v43 = vld [vmem:[#allocation8 + $0x240] sm:$0xff]   ;;  %v15588_v51 = vld [vmem:[#allocation166_spill] sm:$0xff]  ;;  %v15589_v14 = vld [vmem:[#allocation157_spill] sm:$0xff] }
 0x665   : > { %9623 = vmatpush3.bf16.msra.mxu1 %v10523_v1  ;;  %9634 = vmatprep.mubr.bf16.mxu1 %v15499_v18  ;;  %v10529_v1 = vld [vmem:[#allocation8 + $0x200] sm:$0xff]   ;;  %v15543_v18 = vpack.c.bf16 %v15232_v50, %v15231_v39  ;;  %v15551_v39 = vld [vmem:[#allocation182_spill] sm:$0xff] }
 0x666   : > { %9624 = vmatprep.subr.bf16.mxu1 %v10524_v48  ;;  %v15585_v23 = vld [vmem:[#allocation155_spill] sm:$0xff] }
 0x667   : > { %9601 = vmatpush3.bf16.msra.mxu0 %v10524_v48 }
 0x668   : > { %9602 = vmatprep.subr.bf16.mxu0 %v10525_v27 }
 0x669   : > { %9625 = vmatpush3.bf16.msra.mxu1 %v10524_v48  ;;  %v15501_v48 = vld [vmem:[#allocation240_spill] sm:$0xff] }
 0x66a   : > { %9626 = vmatprep.subr.bf16.mxu1 %v10525_v27  ;;  %v15502_v26 = vpack.c.bf16 %v15500_v16, %v15501_v48  ;;  %v10539_v48 = vld [vmem:[#allocation8 + $0x250] sm:$0xff]  }
 0x66b   : > { %9603 = vmatpush3.bf16.msra.mxu0 %v10525_v27 }
 0x66c   : > { %9604 = vmatprep.subr.bf16.mxu0 %v10526_v40 }
 0x66d   : > { %9627 = vmatpush3.bf16.msra.mxu1 %v10525_v27  ;;  %v10532_v27 = vld [vmem:[#allocation8 + $0x218] sm:$0xff]  }
 0x66e   : > { %9628 = vmatprep.subr.bf16.mxu1 %v10526_v40 }
 0x66f   : > { %9605 = vmatpush3.bf16.msra.mxu0 %v10526_v40 }
 0x670   : > { %9606 = vmatprep.subr.bf16.mxu0 %v10527_v28 }
 0x671   : > { %9629 = vmatpush3.bf16.msra.mxu1 %v10526_v40  ;;  %v10534_v40 = vld [vmem:[#allocation8 + $0x228] sm:$0xff]  }
 0x672   : > { %9630 = vmatprep.subr.bf16.mxu1 %v10527_v28 }
 0x673   : > { %9607 = vmatpush3.bf16.msra.mxu0 %v10527_v28 }
 0x674   : > { %9608 = vmatprep.subr.bf16.mxu0 %v10528_v63 }
 0x675   : > { %9631 = vmatpush3.bf16.msra.mxu1 %v10527_v28  ;;  %v10535_v28 = vld [vmem:[#allocation8 + $0x230] sm:$0xff]  }
 0x676   : > { %9632 = vmatprep.subr.bf16.mxu1 %v10528_v63 }
 0x677   : > { %9609 = vmatpush3.bf16.msra.mxu0 %v10528_v63 }
 0x678   : > { %9642 = vmatprep.subr.bf16.mxu0 %v10529_v1 }
 0x679   : > { %9633 = vmatpush3.bf16.msra.mxu1 %v10528_v63  ;;  %v15517_v63 = vld [vmem:[#allocation39_spill] sm:$0xff] }
 0x67a   : > { %9611 = vmatmul.mubr.bf16.vlgmr.msra.gmra.mrb[56].mxu0 %v15502_v26  ;;  %9666 = vmatprep.subr.bf16.mxu1 %v10529_v1  ;;  %v15518_v2 = vpack.c.bf16 %v15516_v44, %v15517_v63  ;;  %v15547_v26 = vld [vmem:[#allocation179_spill] sm:$0xff]  ;;  %v15565_v63 = vld [vmem:[#allocation69_spill] sm:$0xff] }
 0x67b   : > { %9614 = vmatprep.mubr.bf16.mxu0 %v15505_v60  ;;  %9643 = vmatpush3.bf16.msra.mxu0 %v10529_v1  ;;  %v15549_v6 = vpack.c.bf16 %v15547_v26, %v15548_v61  ;;  %v10540_v60 = vld [vmem:[#allocation8 + $0x258] sm:$0xff]   ;;  %v10547_v61 = vld [vmem:[#allocation8 + $0x290] sm:$0xff]  }
 0x67c   : > { %9635 = vmatmul.mubr.bf16.vlgmr.msra.gmra.mrb[56].mxu1 %v15506_v49  ;;  %9644 = vmatprep.subr.bf16.mxu0 %v10530_v24  ;;  %v15550_v49 = vld [vmem:[#allocation181_spill] sm:$0xff] }
 0x67d   : > { %9638 = vmatprep.mubr.bf16.mxu1 %v15507_v41  ;;  %9667 = vmatpush3.bf16.msra.mxu1 %v10529_v1  ;;  %v15552_v50 = vpack.c.bf16 %v15550_v49, %v15551_v39  ;;  %v15554_v41 = vld [vmem:[#allocation24_spill] sm:$0xff]  ;;  %v10548_v39 = vld [vmem:[#allocation8 + $0x298] sm:$0xff]  }
 0x67e   : > { %9668 = vmatprep.subr.bf16.mxu1 %v10530_v24 }
 0x67f   : > { %9645 = vmatpush3.bf16.msra.mxu0 %v10530_v24 }
 0x680   : > { %9646 = vmatprep.subr.bf16.mxu0 %v10531_v10 }
 0x681   : > { %9669 = vmatpush3.bf16.msra.mxu1 %v10530_v24 }
 0x682   : > { %9615 = vmatmul.mubr.msk.bf16.gmra.mrb[60].mxu0 %vm14243_vm8, %v15508_v62  ;;  %9670 = vmatprep.subr.bf16.mxu1 %v10531_v10  ;;  %v15556_v62 = vld [vmem:[#allocation185_spill] sm:$0xff] }
 0x683   : > { %9647 = vmatpush3.bf16.msra.mxu0 %v10531_v10  ;;  %9658 = vmatprep.mubr.bf16.mxu0 %v15511_v38  ;;  %v15558_v11 = vpack.c.bf16 %v15556_v62, %v15557_v7  ;;  %v10541_v38 = vld [vmem:[#allocation8 + $0x260] sm:$0xff]   ;;  %v15604_v62 = vld [vmem:[#allocation25_spill] sm:$0xff] }
 0x684   : > { %9639 = vmatmul.mubr.msk.bf16.gmra.mrb[60].mxu1 %vm14243_vm8, %v15512_v53  ;;  %9648 = vmatprep.subr.bf16.mxu0 %v10532_v27  ;;  %v15559_v53 = vld [vmem:[#allocation38_spill] sm:$0xff] }
 0x685   : > { %9671 = vmatpush3.bf16.msra.mxu1 %v10531_v10  ;;  %9682 = vmatprep.mubr.bf16.mxu1 %v15515_v42  ;;  %v10543_v42 = vld [vmem:[#allocation8 + $0x270] sm:$0xff]  }
 0x686   : > { %9672 = vmatprep.subr.bf16.mxu1 %v10532_v27 }
 0x687   : > { %9649 = vmatpush3.bf16.msra.mxu0 %v10532_v27 }
 0x688   : > { %9650 = vmatprep.subr.bf16.mxu0 %v10533_v9 }
 0x689   : > { %9673 = vmatpush3.bf16.msra.mxu1 %v10532_v27 }
 0x68a   : > { %9674 = vmatprep.subr.bf16.mxu1 %v10533_v9 }
 0x68b   : > { %9651 = vmatpush3.bf16.msra.mxu0 %v10533_v9 }
 0x68c   : > { %9652 = vmatprep.subr.bf16.mxu0 %v10534_v40 }
 0x68d   : > { %9675 = vmatpush3.bf16.msra.mxu1 %v10533_v9 }
 0x68e   : > { %9676 = vmatprep.subr.bf16.mxu1 %v10534_v40 }
 0x68f   : > { %9653 = vmatpush3.bf16.msra.mxu0 %v10534_v40 }
 0x690   : > { %9654 = vmatprep.subr.bf16.mxu0 %v10535_v28 }
 0x691   : > { %9677 = vmatpush3.bf16.msra.mxu1 %v10534_v40 }
 0x692   : > { %9678 = vmatprep.subr.bf16.mxu1 %v10535_v28 }
 0x693   : > { %9655 = vmatpush3.bf16.msra.mxu0 %v10535_v28 }
 0x694   : > { %9656 = vmatprep.subr.bf16.mxu0 %v10536_v4 }
 0x695   : > { %9679 = vmatpush3.bf16.msra.mxu1 %v10535_v28 }
 0x696   : > { %9680 = vmatprep.subr.bf16.mxu1 %v10536_v4 }
 0x697   : > { %9657 = vmatpush3.bf16.msra.mxu0 %v10536_v4 }
 0x698   : > { %9690 = vmatprep.subr.bf16.mxu0 %v10529_v1 }
 0x699   : > { %9681 = vmatpush3.bf16.msra.mxu1 %v10536_v4 }
 0x69a   : > { %9659 = vmatmul.mubr.bf16.vlgmr.msra.gmra.mrb[48].mxu0 %v15518_v2  ;;  %9714 = vmatprep.subr.bf16.mxu1 %v10529_v1  ;;  %v15566_v2 = vld [vmem:[#allocation56_spill] sm:$0xff] }
 0x69b   : > { %9662 = vmatprep.mubr.bf16.mxu0 %v15521_v35  ;;  %9691 = vmatpush3.bf16.msra.mxu0 %v10529_v1  ;;  %v15567_v45 = vpack.c.bf16 %v15565_v63, %v15566_v2  ;;  %v15569_v35 = vld [vmem:[#allocation43_spill] sm:$0xff]  ;;  %v15614_v63 = vld [vmem:[#allocation49_spill] sm:$0xff] }
 0x69c   : > { %9683 = vmatmul.mubr.bf16.vlgmr.msra.gmra.mrb[48].mxu1 %v15524_v47  ;;  %9692 = vmatprep.subr.bf16.mxu0 %v10530_v24  ;;  %v15570_v58 = vpack.c.bf16 %v15568_v12, %v15569_v35  ;;  %v15572_v47 = vld [vmem:[#allocation59_spill] sm:$0xff]  ;;  %v15615_v2 = vpack.c.bf16 %v15268_v13, %v15614_v63  ;;  %v15625_v35 = vld [vmem:[#allocation84_spill] sm:$0xff] }
 0x69d   : > { %9686 = vmatprep.mubr.bf16.mxu1 %v15527_v5  ;;  %9715 = vmatpush3.bf16.msra.mxu1 %v10529_v1  ;;  %v15544_v1 = vld [vmem:[#allocation167_spill] sm:$0xff]  ;;  %v15573_v3 = vpack.c.bf16 %v15571_v33, %v15572_v47  ;;  %v15576_v5 = vld [vmem:[#allocation74_spill] sm:$0xff]  ;;  %v15628_v47 = vld [vmem:[#allocation152_spill] sm:$0xff] }
 0x69e   : > { %9716 = vmatprep.subr.bf16.mxu1 %v10530_v24  ;;  %v15578_v36 = vpack.c.bf16 %v15576_v5, %v15577_v52  ;;  %v15627_v33 = vld [vmem:[#allocation162_spill] sm:$0xff]  ;;  %v15633_v5 = vld [vmem:[#allocation192_spill] sm:$0xff]  ;;  %v15634_v52 = vld [vmem:[#allocation175_spill] sm:$0xff] }
 0x69f   : > { %9693 = vmatpush3.bf16.msra.mxu0 %v10530_v24 }
 0x6a0   : > { %9694 = vmatprep.subr.bf16.mxu0 %v10531_v10 }
 0x6a1   : > { %9717 = vmatpush3.bf16.msra.mxu1 %v10530_v24  ;;  %v15545_v24 = vld [vmem:[#allocation159_spill] sm:$0xff] }
 0x6a2   : > { %9663 = vmatmul.mubr.msk.bf16.gmra.mrb[52].mxu0 %vm14305_vm10, %v15532_v32  ;;  %9718 = vmatprep.subr.bf16.mxu1 %v10531_v10  ;;  %v15546_v16 = vpack.c.bf16 %v15544_v1, %v15545_v24  ;;  %v15580_v32 = vld [vmem:[#allocation148_spill] sm:$0xff]  ;;  %v15592_v1 = vld [vmem:[#allocation169_spill] sm:$0xff] }
 0x6a3   : > { %9695 = vmatpush3.bf16.msra.mxu0 %v10531_v10  ;;  %9706 = vmatprep.mubr.bf16.mxu0 %v15535_v55  ;;  %v15581_v37 = vpack.c.bf16 %v15579_v34, %v15580_v32  ;;  %v15583_v55 = vld [vmem:[#allocation79_spill] sm:$0xff]  ;;  %v15636_v34 = vld [vmem:[#allocation174_spill] sm:$0xff]  ;;  %v15637_v32 = vld [vmem:[#allocation164_spill] sm:$0xff] }
 0x6a4   : > { %9687 = vmatmul.mubr.msk.bf16.gmra.mrb[52].mxu1 %vm14305_vm10, %v15538_v15  ;;  %9696 = vmatprep.subr.bf16.mxu0 %v10532_v27  ;;  %v15584_v31 = vpack.c.bf16 %v15582_v57, %v15583_v55  ;;  %v15586_v15 = vld [vmem:[#allocation151_spill] sm:$0xff]  ;;  %v15639_v57 = vld [vmem:[#allocation194_spill] sm:$0xff]  ;;  %v15640_v55 = vld [vmem:[#allocation176_spill] sm:$0xff] }
 0x6a5   : > { %9719 = vmatpush3.bf16.msra.mxu1 %v10531_v10  ;;  %9730 = vmatprep.mubr.bf16.mxu1 %v15539_v54  ;;  %v15553_v10 = vld [vmem:[#allocation36_spill] sm:$0xff]  ;;  %v15587_v54 = vpack.c.bf16 %v15585_v23, %v15586_v15  ;;  %v15642_v23 = vld [vmem:[#allocation189_spill] sm:$0xff]  ;;  %v15643_v15 = vld [vmem:[#allocation191_spill] sm:$0xff] }
 0x6a6   : > { %9720 = vmatprep.subr.bf16.mxu1 %v10532_v27 }
 0x6a7   : > { %9697 = vmatpush3.bf16.msra.mxu0 %v10532_v27 }
 0x6a8   : > { %9698 = vmatprep.subr.bf16.mxu0 %v10533_v9 }
 0x6a9   : > { %9721 = vmatpush3.bf16.msra.mxu1 %v10532_v27  ;;  %v15555_v27 = vpack.c.bf16 %v15553_v10, %v15554_v41  ;;  %v15601_v10 = vld [vmem:[#allocation184_spill] sm:$0xff] }
 0x6aa   : > { %9722 = vmatprep.subr.bf16.mxu1 %v10533_v9 }
 0x6ab   : > { %9699 = vmatpush3.bf16.msra.mxu0 %v10533_v9 }
 0x6ac   : > { %9700 = vmatprep.subr.bf16.mxu0 %v10534_v40 }
 0x6ad   : > { %9723 = vmatpush3.bf16.msra.mxu1 %v10533_v9  ;;  %v15560_v9 = vld [vmem:[#allocation28_spill] sm:$0xff] }
 0x6ae   : > { %9724 = vmatprep.subr.bf16.mxu1 %v10534_v40  ;;  %v15561_v59 = vpack.c.bf16 %v15559_v53, %v15560_v9  ;;  %v10549_v9 = vld [vmem:[#allocation8 + $0x2a0] sm:$0xff]  }
 0x6af   : > { %9701 = vmatpush3.bf16.msra.mxu0 %v10534_v40 }
 0x6b0   : > { %9702 = vmatprep.subr.bf16.mxu0 %v10535_v28 }
 0x6b1   : > { %9725 = vmatpush3.bf16.msra.mxu1 %v10534_v40  ;;  %v10544_v40 = vld [vmem:[#allocation8 + $0x278] sm:$0xff]  }
 0x6b2   : > { %9726 = vmatprep.subr.bf16.mxu1 %v10535_v28 }
 0x6b3   : > { %9703 = vmatpush3.bf16.msra.mxu0 %v10535_v28 }
 0x6b4   : > { %9704 = vmatprep.subr.bf16.mxu0 %v10536_v4 }
 0x6b5   : > { %9727 = vmatpush3.bf16.msra.mxu1 %v10535_v28  ;;  %v15562_v28 = vld [vmem:[#allocation53_spill] sm:$0xff] }
 0x6b6   : > { %9728 = vmatprep.subr.bf16.mxu1 %v10536_v4 }
 0x6b7   : > { %9705 = vmatpush3.bf16.msra.mxu0 %v10536_v4 }
 0x6b8   : > { %9738 = vmatprep.subr.bf16.mxu0 %v10537_v43 }
 0x6b9   : > { %9729 = vmatpush3.bf16.msra.mxu1 %v10536_v4  ;;  %v15563_v4 = vld [vmem:[#allocation40_spill] sm:$0xff] }
 0x6ba   : > { %9707 = vmatmul.mubr.bf16.vlgmr.msra.gmra.mrb[56].mxu0 %v15542_v29  ;;  %9762 = vmatprep.subr.bf16.mxu1 %v10537_v43  ;;  %v15564_v44 = vpack.c.bf16 %v15562_v28, %v15563_v4  ;;  %v15590_v29 = vpack.c.bf16 %v15588_v51, %v15589_v14  ;;  %v10552_v28 = vld [vmem:[#allocation8 + $0x2b8] sm:$0xff]   ;;  %v15647_v51 = vld [vmem:[#allocation193_spill] sm:$0xff] }
 0x6bb   : > { %9710 = vmatprep.mubr.bf16.mxu0 %v15543_v18  ;;  %9739 = vmatpush3.bf16.msra.mxu0 %v10537_v43  ;;  %v15591_v18 = vld [vmem:[#allocation178_spill] sm:$0xff] }
 0x6bc   : > { %9731 = vmatmul.mubr.bf16.vlgmr.msra.gmra.mrb[56].mxu1 %v15546_v16  ;;  %9740 = vmatprep.subr.bf16.mxu0 %v10538_v56  ;;  %v15593_v24 = vpack.c.bf16 %v15591_v18, %v15592_v1  ;;  %v15594_v16 = vld [vmem:[#allocation171_spill] sm:$0xff] }
 0x6bd   : > { %9734 = vmatprep.mubr.bf16.mxu1 %v15549_v6  ;;  %9763 = vmatpush3.bf16.msra.mxu1 %v10537_v43  ;;  %v15597_v6 = vld [vmem:[#allocation180_spill] sm:$0xff] }
 0x6be   : > { %9764 = vmatprep.subr.bf16.mxu1 %v10538_v56 }
 0x6bf   : > { %9741 = vmatpush3.bf16.msra.mxu0 %v10538_v56 }
 0x6c0   : > { %9742 = vmatprep.subr.bf16.mxu0 %v10539_v48 }
 0x6c1   : > { %9765 = vmatpush3.bf16.msra.mxu1 %v10538_v56 }
 0x6c2   : > { %9711 = vmatmul.mubr.msk.bf16.gmra.mrb[60].mxu0 %vm14305_vm10, %v15552_v50  ;;  %9766 = vmatprep.subr.bf16.mxu1 %v10539_v48  ;;  %v15600_v50 = vld [vmem:[#allocation183_spill] sm:$0xff] }
 0x6c3   : > { %9743 = vmatpush3.bf16.msra.mxu0 %v10539_v48  ;;  %9754 = vmatprep.mubr.bf16.mxu0 %v15555_v27  ;;  %v15602_v41 = vpack.c.bf16 %v15600_v50, %v15601_v10  ;;  %v15603_v27 = vld [vmem:[#allocation41_spill] sm:$0xff] }
 0x6c4   : > { %9735 = vmatmul.mubr.msk.bf16.gmra.mrb[60].mxu1 %vm14305_vm10, %v15558_v11  ;;  %9744 = vmatprep.subr.bf16.mxu0 %v10540_v60  ;;  %v15605_v7 = vpack.c.bf16 %v15603_v27, %v15604_v62  ;;  %v15606_v11 = vld [vmem:[#allocation187_spill] sm:$0xff] }
 0x6c5   : > { %9767 = vmatpush3.bf16.msra.mxu1 %v10539_v48  ;;  %9778 = vmatprep.mubr.bf16.mxu1 %v15561_v59  ;;  %v15609_v59 = vld [vmem:[#allocation29_spill] sm:$0xff] }
 0x6c6   : > { %9768 = vmatprep.subr.bf16.mxu1 %v10540_v60 }
 0x6c7   : > { %9745 = vmatpush3.bf16.msra.mxu0 %v10540_v60 }
 0x6c8   : > { %9746 = vmatprep.subr.bf16.mxu0 %v10541_v38 }
 0x6c9   : > { %9769 = vmatpush3.bf16.msra.mxu1 %v10540_v60 }
 0x6ca   : > { %9770 = vmatprep.subr.bf16.mxu1 %v10541_v38 }
 0x6cb   : > { %9747 = vmatpush3.bf16.msra.mxu0 %v10541_v38 }
 0x6cc   : > { %9748 = vmatprep.subr.bf16.mxu0 %v10542_v30 }
 0x6cd   : > { %9771 = vmatpush3.bf16.msra.mxu1 %v10541_v38 }
 0x6ce   : > { %9772 = vmatprep.subr.bf16.mxu1 %v10542_v30 }
 0x6cf   : > { %9749 = vmatpush3.bf16.msra.mxu0 %v10542_v30 }
 0x6d0   : > { %9750 = vmatprep.subr.bf16.mxu0 %v10543_v42 }
 0x6d1   : > { %9773 = vmatpush3.bf16.msra.mxu1 %v10542_v30 }
 0x6d2   : > { %9774 = vmatprep.subr.bf16.mxu1 %v10543_v42 }
 0x6d3   : > { %9751 = vmatpush3.bf16.msra.mxu0 %v10543_v42 }
 0x6d4   : > { %9752 = vmatprep.subr.bf16.mxu0 %v10544_v40 }
 0x6d5   : > { %9775 = vmatpush3.bf16.msra.mxu1 %v10543_v42 }
 0x6d6   : > { %9776 = vmatprep.subr.bf16.mxu1 %v10544_v40 }
 0x6d7   : > { %9753 = vmatpush3.bf16.msra.mxu0 %v10544_v40 }
 0x6d8   : > { %9786 = vmatprep.subr.bf16.mxu0 %v10537_v43 }
 0x6d9   : > { %9777 = vmatpush3.bf16.msra.mxu1 %v10544_v40 }
 0x6da   : > { %9755 = vmatmul.mubr.bf16.vlgmr.msra.gmra.mrb[48].mxu0 %v15564_v44  ;;  %9810 = vmatprep.subr.bf16.mxu1 %v10537_v43  ;;  %v15613_v44 = vpack.c.bf16 %v15271_v8, %v15261_v21  ;;  %v15620_v21 = vld [vmem:[#allocation80_spill] sm:$0xff] }
 0x6db   : > { %9758 = vmatprep.mubr.bf16.mxu0 %v15567_v45  ;;  %9787 = vmatpush3.bf16.msra.mxu0 %v10537_v43  ;;  %v15616_v45 = vld [vmem:[#allocation66_spill] sm:$0xff]  ;;  %v15621_v13 = vpack.c.bf16 %v15620_v21, %v15270_v0  ;;  %v15629_v0 = vpack.c.bf16 %v15627_v33, %v15628_v47  ;;  %v10553_v33 = vld [vmem:[#allocation7] sm:$0xff]   ;;  %v10554_v47 = vld [vmem:[#allocation7 + $0x8] sm:$0xff]  }
 0x6dc   : > { %9779 = vmatmul.mubr.bf16.vlgmr.msra.gmra.mrb[48].mxu1 %v15570_v58  ;;  %9788 = vmatprep.subr.bf16.mxu0 %v10538_v56  ;;  %v15617_v12 = vpack.c.bf16 %v15276_v19, %v15616_v45  ;;  %v15622_v19 = vld [vmem:[#allocation149_spill] sm:$0xff]  ;;  %v15626_v58 = vpack.c.bf16 %v15624_v22, %v15625_v35 }
 0x6dd   : > { %9782 = vmatprep.mubr.bf16.mxu1 %v15573_v3  ;;  %9811 = vmatpush3.bf16.msra.mxu1 %v10537_v43  ;;  %v10545_v43 = vld [vmem:[#allocation8 + $0x280] sm:$0xff]   ;;  %v15623_v8 = vpack.c.bf16 %v15237_v17, %v15622_v19  ;;  %v15630_v17 = vld [vmem:[#allocation173_spill] sm:$0xff] }
 0x6de   : > { %9812 = vmatprep.subr.bf16.mxu1 %v10538_v56  ;;  %v15631_v3 = vld [vmem:[#allocation161_spill] sm:$0xff] }
 0x6df   : > { %9789 = vmatpush3.bf16.msra.mxu0 %v10538_v56  ;;  %v15632_v46 = vpack.c.bf16 %v15630_v17, %v15631_v3 }
 0x6e0   : > { %9790 = vmatprep.subr.bf16.mxu0 %v10539_v48 }
 0x6e1   : > { %9813 = vmatpush3.bf16.msra.mxu1 %v10538_v56  ;;  %v10546_v56 = vld [vmem:[#allocation8 + $0x288] sm:$0xff]  }
 0x6e2   : > { %9759 = vmatmul.mubr.msk.bf16.gmra.mrb[52].mxu0 %vm14367_vm12, %v15578_v36  ;;  %9814 = vmatprep.subr.bf16.mxu1 %v10539_v48  ;;  %v15635_v36 = vpack.c.bf16 %v15633_v5, %v15634_v52 }
 0x6e3   : > { %9791 = vmatpush3.bf16.msra.mxu0 %v10539_v48  ;;  %9802 = vmatprep.mubr.bf16.mxu0 %v15581_v37  ;;  %v15638_v37 = vpack.c.bf16 %v15636_v34, %v15637_v32 }
 0x6e4   : > { %9783 = vmatmul.mubr.msk.bf16.gmra.mrb[52].mxu1 %vm14367_vm12, %v15584_v31  ;;  %9792 = vmatprep.subr.bf16.mxu0 %v10540_v60  ;;  %v15641_v31 = vpack.c.bf16 %v15639_v57, %v15640_v55 }
 0x6e5   : > { %9815 = vmatpush3.bf16.msra.mxu1 %v10539_v48  ;;  %9826 = vmatprep.mubr.bf16.mxu1 %v15587_v54  ;;  %v15595_v48 = vld [vmem:[#allocation160_spill] sm:$0xff]  ;;  %v15644_v54 = vpack.c.bf16 %v15642_v23, %v15643_v15 }
 0x6e6   : > { %9816 = vmatprep.subr.bf16.mxu1 %v10540_v60  ;;  %v15596_v26 = vpack.c.bf16 %v15594_v16, %v15595_v48 }
 0x6e7   : > { %9793 = vmatpush3.bf16.msra.mxu0 %v10540_v60 }
 0x6e8   : > { %9794 = vmatprep.subr.bf16.mxu0 %v10541_v38 }
 0x6e9   : > { %9817 = vmatpush3.bf16.msra.mxu1 %v10540_v60  ;;  %v15598_v60 = vld [vmem:[#allocation172_spill] sm:$0xff] }
 0x6ea   : > { %9818 = vmatprep.subr.bf16.mxu1 %v10541_v38  ;;  %v15599_v49 = vpack.c.bf16 %v15597_v6, %v15598_v60 }
 0x6eb   : > { %9795 = vmatpush3.bf16.msra.mxu0 %v10541_v38 }
 0x6ec   : > { %9796 = vmatprep.subr.bf16.mxu0 %v10542_v30 }
 0x6ed   : > { %9819 = vmatpush3.bf16.msra.mxu1 %v10541_v38  ;;  %v15607_v38 = vld [vmem:[#allocation188_spill] sm:$0xff] }
 0x6ee   : > { %9820 = vmatprep.subr.bf16.mxu1 %v10542_v30  ;;  %v15608_v53 = vpack.c.bf16 %v15606_v11, %v15607_v38 }
 0x6ef   : > { %9797 = vmatpush3.bf16.msra.mxu0 %v10542_v30 }
 0x6f0   : > { %9798 = vmatprep.subr.bf16.mxu0 %v10543_v42 }
 0x6f1   : > { %9821 = vmatpush3.bf16.msra.mxu1 %v10542_v30  ;;  %v15610_v30 = vpack.c.bf16 %v15265_v25, %v15609_v59  ;;  %v15611_v25 = vld [vmem:[#allocation44_spill] sm:$0xff] }
 0x6f2   : > { %9822 = vmatprep.subr.bf16.mxu1 %v10543_v42  ;;  %v15612_v4 = vpack.c.bf16 %v15262_v20, %v15611_v25 }
 0x6f3   : > { %9799 = vmatpush3.bf16.msra.mxu0 %v10543_v42 }
 0x6f4   : > { %9800 = vmatprep.subr.bf16.mxu0 %v10544_v40 }
 0x6f5   : > { %9823 = vmatpush3.bf16.msra.mxu1 %v10543_v42  ;;  %v10550_v42 = vld [vmem:[#allocation8 + $0x2a8] sm:$0xff]  }
 0x6f6   : > { %9824 = vmatprep.subr.bf16.mxu1 %v10544_v40 }
 0x6f7   : > { %9801 = vmatpush3.bf16.msra.mxu0 %v10544_v40 }
 0x6f8   : > { %9834 = vmatprep.subr.bf16.mxu0 %v10545_v43 }
 0x6f9   : > { %9825 = vmatpush3.bf16.msra.mxu1 %v10544_v40  ;;  %v10551_v40 = vld [vmem:[#allocation8 + $0x2b0] sm:$0xff]  }
 0x6fa   : > { %9803 = vmatmul.mubr.bf16.vlgmr.msra.gmra.mrb[56].mxu0 %v15590_v29  ;;  %9858 = vmatprep.subr.bf16.mxu1 %v10545_v43  ;;  %v2180_v29 = vld [vmem:[#allocation11 + $0x2] ss:$0 sm:$0xff] }
 0x6fb   : > { %9806 = vmatprep.mubr.bf16.mxu0 %v15593_v24  ;;  %9835 = vmatpush3.bf16.msra.mxu0 %v10545_v43  ;;  %v2182_v24 = vld [vmem:[#allocation11 + $0xa] ss:$0 sm:$0xff] }
 0x6fc   : > { %9827 = vmatmul.mubr.bf16.vlgmr.msra.gmra.mrb[56].mxu1 %v15596_v26  ;;  %9836 = vmatprep.subr.bf16.mxu0 %v10546_v56 }
 0x6fd   : > { %9830 = vmatprep.mubr.bf16.mxu1 %v15599_v49  ;;  %9859 = vmatpush3.bf16.msra.mxu1 %v10545_v43 }
 0x6fe   : > { %9860 = vmatprep.subr.bf16.mxu1 %v10546_v56 }
 0x6ff   : > { %9837 = vmatpush3.bf16.msra.mxu0 %v10546_v56 }
 0x700   : > { %9838 = vmatprep.subr.bf16.mxu0 %v10547_v61 }
 0x701   : > { %9861 = vmatpush3.bf16.msra.mxu1 %v10546_v56 }
 0x702   : > { %9807 = vmatmul.mubr.msk.bf16.gmra.mrb[60].mxu0 %vm14367_vm12, %v15602_v41  ;;  %9862 = vmatprep.subr.bf16.mxu1 %v10547_v61 }
 0x703   : > { %9839 = vmatpush3.bf16.msra.mxu0 %v10547_v61  ;;  %9850 = vmatprep.mubr.bf16.mxu0 %v15605_v7 }
 0x704   : > { %9831 = vmatmul.mubr.msk.bf16.gmra.mrb[60].mxu1 %vm14367_vm12, %v15608_v53  ;;  %9840 = vmatprep.subr.bf16.mxu0 %v10548_v39 }
 0x705   : > { %9863 = vmatpush3.bf16.msra.mxu1 %v10547_v61  ;;  %9874 = vmatprep.mubr.bf16.mxu1 %v15610_v30 }
 0x706   : > { %9864 = vmatprep.subr.bf16.mxu1 %v10548_v39 }
 0x707   : > { %9841 = vmatpush3.bf16.msra.mxu0 %v10548_v39 }
 0x708   : > { %9842 = vmatprep.subr.bf16.mxu0 %v10549_v9 }
 0x709   : > { %9865 = vmatpush3.bf16.msra.mxu1 %v10548_v39 }
 0x70a   : > { %9866 = vmatprep.subr.bf16.mxu1 %v10549_v9 }
 0x70b   : > { %9843 = vmatpush3.bf16.msra.mxu0 %v10549_v9 }
 0x70c   : > { %9844 = vmatprep.subr.bf16.mxu0 %v10550_v42 }
 0x70d   : > { %9867 = vmatpush3.bf16.msra.mxu1 %v10549_v9 }
 0x70e   : > { %9868 = vmatprep.subr.bf16.mxu1 %v10550_v42 }
 0x70f   : > { %9845 = vmatpush3.bf16.msra.mxu0 %v10550_v42 }
 0x710   : > { %9846 = vmatprep.subr.bf16.mxu0 %v10551_v40 }
 0x711   : > { %9869 = vmatpush3.bf16.msra.mxu1 %v10550_v42 }
 0x712   : > { %9870 = vmatprep.subr.bf16.mxu1 %v10551_v40 }
 0x713   : > { %9847 = vmatpush3.bf16.msra.mxu0 %v10551_v40 }
 0x714   : > { %9848 = vmatprep.subr.bf16.mxu0 %v10552_v28 }
 0x715   : > { %9871 = vmatpush3.bf16.msra.mxu1 %v10551_v40 }
 0x716   : > { %9872 = vmatprep.subr.bf16.mxu1 %v10552_v28 }
 0x717   : > { %9849 = vmatpush3.bf16.msra.mxu0 %v10552_v28 }
 0x718   : > { %9882 = vmatprep.subr.bf16.mxu0 %v10545_v43 }
 0x719   : > { %9873 = vmatpush3.bf16.msra.mxu1 %v10552_v28 }
 0x71a   : > { %9851 = vmatmul.mubr.bf16.vlgmr.msra.gmra.mrb[48].mxu0 %v15612_v4  ;;  %9906 = vmatprep.subr.bf16.mxu1 %v10545_v43 }
 0x71b   : > { %9854 = vmatprep.mubr.bf16.mxu0 %v15613_v44  ;;  %9883 = vmatpush3.bf16.msra.mxu0 %v10545_v43 }
 0x71c   : > { %9875 = vmatmul.mubr.bf16.vlgmr.msra.gmra.mrb[48].mxu1 %v15615_v2  ;;  %9884 = vmatprep.subr.bf16.mxu0 %v10546_v56 }
 0x71d   : > { %9878 = vmatprep.mubr.bf16.mxu1 %v15617_v12  ;;  %9907 = vmatpush3.bf16.msra.mxu1 %v10545_v43  ;;  %v15645_v43 = vmov 0  }
 0x71e   : > { %9908 = vmatprep.subr.bf16.mxu1 %v10546_v56 }
 0x71f   : > { %9885 = vmatpush3.bf16.msra.mxu0 %v10546_v56 }
 0x720   : > { %9886 = vmatprep.subr.bf16.mxu0 %v10547_v61 }
 0x721   : > { %9909 = vmatpush3.bf16.msra.mxu1 %v10546_v56  ;;  %v15646_v56 = vld [vmem:[#allocation190_spill] sm:$0xff] }
 0x722   : > { %9855 = vmatmul.mubr.msk.bf16.gmra.mrb[52].mxu0 %vm14429_vm14, %v15621_v13  ;;  %9910 = vmatprep.subr.bf16.mxu1 %v10547_v61  ;;  %v15648_v14 = vpack.c.bf16 %v15646_v56, %v15647_v51 }
 0x723   : > { %9887 = vmatpush3.bf16.msra.mxu0 %v10547_v61  ;;  %9898 = vmatprep.mubr.bf16.mxu0 %v15623_v8 }
 0x724   : > { %9879 = vmatmul.mubr.msk.bf16.gmra.mrb[52].mxu1 %vm14429_vm14, %v15626_v58  ;;  %9888 = vmatprep.subr.bf16.mxu0 %v10548_v39 }
 0x725   : > { %9911 = vmatpush3.bf16.msra.mxu1 %v10547_v61  ;;  %9922 = vmatprep.mubr.bf16.mxu1 %v15629_v0  ;;  %v2184_v0 = vld [vmem:[#allocation11 + $0x12] ss:$0 sm:$0xff] }
 0x726   : > { %9912 = vmatprep.subr.bf16.mxu1 %v10548_v39 }
 0x727   : > { %9889 = vmatpush3.bf16.msra.mxu0 %v10548_v39 }
 0x728   : > { %9890 = vmatprep.subr.bf16.mxu0 %v10549_v9 }
 0x729   : > { %9913 = vmatpush3.bf16.msra.mxu1 %v10548_v39 }
 0x72a   : > { %9914 = vmatprep.subr.bf16.mxu1 %v10549_v9 }
 0x72b   : > { %9891 = vmatpush3.bf16.msra.mxu0 %v10549_v9 }
 0x72c   : > { %9892 = vmatprep.subr.bf16.mxu0 %v10550_v42 }
 0x72d   : > { %9915 = vmatpush3.bf16.msra.mxu1 %v10549_v9 }
 0x72e   : > { %9916 = vmatprep.subr.bf16.mxu1 %v10550_v42 }
 0x72f   : > { %9893 = vmatpush3.bf16.msra.mxu0 %v10550_v42 }
 0x730   : > { %9894 = vmatprep.subr.bf16.mxu0 %v10551_v40 }
 0x731   : > { %9917 = vmatpush3.bf16.msra.mxu1 %v10550_v42 }
 0x732   : > { %9918 = vmatprep.subr.bf16.mxu1 %v10551_v40 }
 0x733   : > { %9895 = vmatpush3.bf16.msra.mxu0 %v10551_v40 }
 0x734   : > { %9896 = vmatprep.subr.bf16.mxu0 %v10552_v28 }
 0x735   : > { %9919 = vmatpush3.bf16.msra.mxu1 %v10551_v40 }
 0x736   : > { %9920 = vmatprep.subr.bf16.mxu1 %v10552_v28 }
 0x737   : > { %9897 = vmatpush3.bf16.msra.mxu0 %v10552_v28 }
 0x739   : > { %9921 = vmatpush3.bf16.msra.mxu1 %v10552_v28 }
 0x73a   : > { %9899 = vmatmul.mubr.bf16.vlgmr.msra.gmra.mrb[56].mxu0 %v15632_v46  ;;  %v2186_v46 = vld [vmem:[#allocation11 + $0x1a] ss:$0 sm:$0xff] }
 0x73b   : > { %9902 = vmatprep.mubr.bf16.mxu0 %v15635_v36 }
 0x73c   : > { %9923 = vmatmul.mubr.bf16.vlgmr.msra.gmra.mrb[56].mxu1 %v15638_v37 }
 0x73d   : > { %9926 = vmatprep.mubr.bf16.mxu1 %v15641_v31 }
 0x742   : > { %9903 = vmatmul.mubr.msk.bf16.gmra.mrb[60].mxu0 %vm14429_vm14, %v15644_v54 }
 0x743   : > { %7223 = vmatprep.mubr.bf16.mxu0 %v15645_v43 }
 0x744   : > { %9927 = vmatmul.mubr.msk.bf16.gmra.mrb[60].mxu1 %vm14429_vm14, %v15648_v14 }
 0x745   : > { %7296 = vmatprep.mubr.bf16.mxu1 %v15645_v43 }
 0x7ed   : > { %v9852_v18 = vpop.f32.mrb[48].mxu0 }
 0x7ee   : > { %v6877_v1 = vpop.f32.mrb[49].mxu0  ;;  %v9930_v26 = vadd.f32 %v9852_v18, %v2180_v29  ;;  %v10555_v18 = vld [vmem:[#allocation7 + $0x10] sm:$0xff]  }
 0x7ef   : > { %v9876_v16 = vpop.f32.mrb[48].mxu1  ;;  %v9853_v48 = vpop.f32.mrb[50].mxu0  ;;  %v9931_v49 = vadd.f32 %v6877_v1, %v2180_v29 }
 0x7f0   : > { %v9932_v61 = vadd.f32 %v9853_v48, %v2180_v29  ;;  %v6950_v6 = vpop.f32.mrb[49].mxu1  ;;  %v6880_v60 = vpop.f32.mrb[51].mxu0  ;;  %v9938_v10 = vadd.f32 %v9876_v16, %v2182_v24 }
 0x7f1   : > { %v9933_v39 = vadd.f32 %v6880_v60, %v2180_v29  ;;  %v9877_v50 = vpop.f32.mrb[50].mxu1  ;;  %v9939_v7 = vadd.f32 %v6950_v6, %v2182_v24 }
 0x7f2   : > { %v7147_v41 = vpack.c.bf16 %v9932_v61, %v9930_v26  ;;  %v9940_v27 = vadd.f32 %v9877_v50, %v2182_v24  ;;  %v6953_v62 = vpop.f32.mrb[51].mxu1 }
 0x7f3   : > { %v7143_v11 = vpack.c.bf16 %v9933_v39, %v9931_v49  ;;  %v9941_v38 = vadd.f32 %v6953_v62, %v2182_v24 }
 0x7f4   : > { %v7148_v53 = vpack.c.bf16 %v9940_v27, %v9938_v10 }
 0x7f5   : > { %v7144_v9 = vpack.c.bf16 %v9941_v38, %v9939_v7  ;;  %v9856_v59 = vpop.f32.mrb[52].mxu0 }
 0x7f6   : > { %v6893_v30 = vpop.f32.mrb[53].mxu0  ;;  %v9934_v28 = vadd.f32 %v9856_v59, %v2180_v29  ;;  %v10556_v59 = vld [vmem:[#allocation7 + $0x18] sm:$0xff]  }
 0x7f7   : > { %v9880_v42 = vpop.f32.mrb[52].mxu1  ;;  %7191 = vmatprep.subr.bf16.mxu0 %v7144_v9  ;;  %v9857_v40 = vpop.f32.mrb[54].mxu0  ;;  %v9935_v63 = vadd.f32 %v6893_v30, %v2180_v29 }
 0x7f8   : > { %v9936_v25 = vadd.f32 %v9857_v40, %v2180_v29  ;;  %v6966_v4 = vpop.f32.mrb[53].mxu1  ;;  %7192 = vmatpush1.bf16.msra.mxu0 %v7143_v11  ;;  %v6896_v44 = vpop.f32.mrb[55].mxu0  ;;  %v9942_v12 = vadd.f32 %v9880_v42, %v2182_v24 }
 0x7f9   : > { %v9937_v2 = vadd.f32 %v6896_v44, %v2180_v29  ;;  %v9881_v45 = vpop.f32.mrb[54].mxu1  ;;  %7193 = vmatprep.subr.bf16.mxu0 %v7148_v53  ;;  %v9943_v19 = vadd.f32 %v6966_v4, %v2182_v24 }
 0x7fa   : > { %v7155_v20 = vpack.c.bf16 %v9936_v25, %v9934_v28  ;;  %v9944_v21 = vadd.f32 %v9881_v45, %v2182_v24  ;;  %v6969_v13 = vpop.f32.mrb[55].mxu1 }
 0x7fb   : > { %v7151_v8 = vpack.c.bf16 %v9937_v2, %v9935_v63  ;;  %v9945_v22 = vadd.f32 %v6969_v13, %v2182_v24 }
 0x7fc   : > { %v7156_v35 = vpack.c.bf16 %v9944_v21, %v9942_v12  ;;  %7194 = vmatpush1.bf16.msra.mxu0 %v7147_v41 }
 0x7fd   : > { %v7152_v58 = vpack.c.bf16 %v9945_v22, %v9943_v19 }
 0x7ff   : > { %7195 = vmatprep.subr.bf16.mxu0 %v7152_v58 }
 0x800   : > { %7196 = vmatpush1.bf16.msra.mxu0 %v7151_v8 }
 0x801   : > { %7197 = vmatprep.subr.bf16.mxu0 %v7156_v35 }
 0x804   : > { %7198 = vmatpush1.bf16.msra.mxu0 %v7155_v20 }
 0x807   : > { %7755 = vmatmul.mubr.msk.bf16.vlgmr.msra.gmra.mrb[64].mxu0 %vm2012_vm0, %v10553_v33 }
 0x808   : > { %7233 = vmatprep.mubr.bf16.mxu0 %v15645_v43 }
 0x80d   : > { %v9900_v17 = vpop.f32.mrb[56].mxu0 }
 0x80e   : > { %v7023_v3 = vpop.f32.mrb[57].mxu0  ;;  %v9946_v36 = vadd.f32 %v9900_v17, %v2184_v0 }
 0x80f   : > { %v9924_v5 = vpop.f32.mrb[56].mxu1  ;;  %v9901_v52 = vpop.f32.mrb[58].mxu0  ;;  %7756 = vmatmul.mubr.msk.bf16.gmra.mrb[68].mxu0 %vm2012_vm0, %v10554_v47  ;;  %v9947_v57 = vadd.f32 %v7023_v3, %v2184_v0 }
 0x810   : > { %v9948_v34 = vadd.f32 %v9901_v52, %v2184_v0  ;;  %v7096_v32 = vpop.f32.mrb[57].mxu1  ;;  %v7026_v37 = vpop.f32.mrb[59].mxu0  ;;  %7243 = vmatprep.mubr.bf16.mxu0 %v15645_v43  ;;  %v9954_v23 = vadd.f32 %v9924_v5, %v2186_v46 }
 0x811   : > { %v9949_v55 = vadd.f32 %v7026_v37, %v2184_v0  ;;  %v9925_v31 = vpop.f32.mrb[58].mxu1  ;;  %v9955_v51 = vadd.f32 %v7096_v32, %v2186_v46 }
 0x812   : > { %v7149_v15 = vpack.c.bf16 %v9948_v34, %v9946_v36  ;;  %v9956_v54 = vadd.f32 %v9925_v31, %v2186_v46  ;;  %v7099_v56 = vpop.f32.mrb[59].mxu1 }
 0x813   : > { %v7145_v14 = vpack.c.bf16 %v9949_v55, %v9947_v57  ;;  %v9957_v29 = vadd.f32 %v7099_v56, %v2186_v46 }
 0x814   : > { %v7150_v1 = vpack.c.bf16 %v9956_v54, %v9954_v23 }
 0x815   : > { %v7146_v24 = vpack.c.bf16 %v9957_v29, %v9955_v51  ;;  %v9904_v16 = vpop.f32.mrb[60].mxu0 }
 0x816   : > { %v7039_v48 = vpop.f32.mrb[61].mxu0  ;;  %v9950_v6 = vadd.f32 %v9904_v16, %v2184_v0 }
 0x817   : > { %v9928_v26 = vpop.f32.mrb[60].mxu1  ;;  %7264 = vmatprep.subr.bf16.mxu1 %v7146_v24  ;;  %v9905_v61 = vpop.f32.mrb[62].mxu0  ;;  %7757 = vmatmul.mubr.msk.bf16.gmra.mrb[72].mxu0 %vm2012_vm0, %v10555_v18  ;;  %v9951_v50 = vadd.f32 %v7039_v48, %v2184_v0 }
 0x818   : > { %v9952_v60 = vadd.f32 %v9905_v61, %v2184_v0  ;;  %v7112_v49 = vpop.f32.mrb[61].mxu1  ;;  %7265 = vmatpush1.bf16.msra.mxu1 %v7145_v14  ;;  %v7042_v39 = vpop.f32.mrb[63].mxu0  ;;  %7253 = vmatprep.mubr.bf16.mxu0 %v15645_v43  ;;  %v9958_v27 = vadd.f32 %v9928_v26, %v2186_v46 }
 0x819   : > { %v9953_v10 = vadd.f32 %v7042_v39, %v2184_v0  ;;  %v9929_v41 = vpop.f32.mrb[62].mxu1  ;;  %7266 = vmatprep.subr.bf16.mxu1 %v7150_v1  ;;  %v9959_v38 = vadd.f32 %v7112_v49, %v2186_v46 }
 0x81a   : > { %v7157_v62 = vpack.c.bf16 %v9952_v60, %v9950_v6  ;;  %v9960_v7 = vadd.f32 %v9929_v41, %v2186_v46  ;;  %v7115_v11 = vpop.f32.mrb[63].mxu1 }
 0x81b   : > { %v7153_v53 = vpack.c.bf16 %v9953_v10, %v9951_v50  ;;  %v9961_v9 = vadd.f32 %v7115_v11, %v2186_v46 }
 0x81c   : > { %v7158_v30 = vpack.c.bf16 %v9960_v7, %v9958_v27  ;;  %7267 = vmatpush1.bf16.msra.mxu1 %v7149_v15 }
 0x81d   : > { %v7154_v42 = vpack.c.bf16 %v9961_v9, %v9959_v38 }
 0x81f   : > { %7268 = vmatprep.subr.bf16.mxu1 %v7154_v42  ;;  %7758 = vmatmul.mubr.msk.bf16.gmra.mrb[76].mxu0 %vm2012_vm0, %v10556_v59 }
 0x820   : > { %7269 = vmatpush1.bf16.msra.mxu1 %v7153_v53 }
 0x821   : > { %7270 = vmatprep.subr.bf16.mxu1 %v7158_v30 }
 0x824   : > { %7271 = vmatpush1.bf16.msra.mxu1 %v7157_v62 }
 0x827   : > { %7759 = vmatmul.mubr.msk.bf16.vlgmr.msra.gmra.mrb[64].mxu1 %vm2012_vm0, %v10553_v33 }
 0x828   : > { %7306 = vmatprep.mubr.bf16.mxu1 %v15645_v43 }
 0x82f   : > { %7760 = vmatmul.mubr.msk.bf16.gmra.mrb[68].mxu1 %vm2012_vm0, %v10554_v47 }
 0x830   : > { %7316 = vmatprep.mubr.bf16.mxu1 %v15645_v43 }
 0x837   : > { %7761 = vmatmul.mubr.msk.bf16.gmra.mrb[72].mxu1 %vm2012_vm0, %v10555_v18 }
 0x838   : > { %7326 = vmatprep.mubr.bf16.mxu1 %v15645_v43 }
 0x83f   : > { %7762 = vmatmul.mubr.msk.bf16.gmra.mrb[76].mxu1 %vm2012_vm0, %v10556_v59 }
 0x8da   : > { %v7225_v40 = vpop.f32.mrb[64].mxu0 }
 0x8db   : > { %7337 = vst [vmem:[%s14489_s27] sm:$0xff] %v7225_v40  ;;  %v7227_v28 = vpop.f32.mrb[65].mxu0 }
 0x8dc   : > { %7338 = vst [vmem:[%s14489_s27 + $0x8] sm:$0xff] %v7227_v28  ;;  %v7229_v43 = vpop.f32.mrb[66].mxu0 }
 0x8dd   : > { %7341 = vst [vmem:[%s14489_s27 + $0x20] sm:$0xff] %v7229_v43  ;;  %v7231_v25 = vpop.f32.mrb[67].mxu0 }
 0x8de   : > { %7342 = vst [vmem:[%s14489_s27 + $0x28] sm:$0xff] %v7231_v25 }
 0x8e2   : > { %v7235_v4 = vpop.f32.mrb[68].mxu0 }
 0x8e3   : > { %7345 = vst [vmem:[%s14489_s27 + $0x40] sm:$0xff] %v7235_v4  ;;  %v7237_v44 = vpop.f32.mrb[69].mxu0 }
 0x8e4   : > { %7346 = vst [vmem:[%s14489_s27 + $0x48] sm:$0xff] %v7237_v44  ;;  %v7239_v63 = vpop.f32.mrb[70].mxu0 }
 0x8e5   : > { %7349 = vst [vmem:[%s14489_s27 + $0x60] sm:$0xff] %v7239_v63  ;;  %v7241_v2 = vpop.f32.mrb[71].mxu0 }
 0x8e6   : > { %7350 = vst [vmem:[%s14489_s27 + $0x68] sm:$0xff] %v7241_v2 }
 0x8ea   : > { %v7245_v45 = vpop.f32.mrb[72].mxu0 }
 0x8eb   : > { %7353 = vst [vmem:[%s14489_s27 + $0x80] sm:$0xff] %v7245_v45  ;;  %v7247_v12 = vpop.f32.mrb[73].mxu0 }
 0x8ec   : > { %7354 = vst [vmem:[%s14489_s27 + $0x88] sm:$0xff] %v7247_v12  ;;  %v7249_v20 = vpop.f32.mrb[74].mxu0 }
 0x8ed   : > { %7357 = vst [vmem:[%s14489_s27 + $0xa0] sm:$0xff] %v7249_v20  ;;  %v7251_v21 = vpop.f32.mrb[75].mxu0 }
 0x8ee   : > { %7358 = vst [vmem:[%s14489_s27 + $0xa8] sm:$0xff] %v7251_v21 }
 0x8f2   : > { %v7255_v13 = vpop.f32.mrb[76].mxu0 }
 0x8f3   : > { %7361 = vst [vmem:[%s14489_s27 + $0xc0] sm:$0xff] %v7255_v13  ;;  %v7257_v19 = vpop.f32.mrb[77].mxu0 }
 0x8f4   : > { %7362 = vst [vmem:[%s14489_s27 + $0xc8] sm:$0xff] %v7257_v19  ;;  %v7259_v8 = vpop.f32.mrb[78].mxu0 }
 0x8f5   : > { %7365 = vst [vmem:[%s14489_s27 + $0xe0] sm:$0xff] %v7259_v8  ;;  %v7261_v22 = vpop.f32.mrb[79].mxu0 }
 0x8f6   : > { %7366 = vst [vmem:[%s14489_s27 + $0xe8] sm:$0xff] %v7261_v22 }
 0x8fa   : > { %v7298_v35 = vpop.f32.mrb[64].mxu1 }
 0x8fb   : > { %7339 = vst [vmem:[%s14489_s27 + $0x10] sm:$0xff] %v7298_v35  ;;  %v7300_v58 = vpop.f32.mrb[65].mxu1 }
 0x8fc   : > { %7340 = vst [vmem:[%s14489_s27 + $0x18] sm:$0xff] %v7300_v58  ;;  %v7302_v33 = vpop.f32.mrb[66].mxu1 }
 0x8fd   : > { %7343 = vst [vmem:[%s14489_s27 + $0x30] sm:$0xff] %v7302_v33  ;;  %v7304_v47 = vpop.f32.mrb[67].mxu1 }
 0x8fe   : > { %7344 = vst [vmem:[%s14489_s27 + $0x38] sm:$0xff] %v7304_v47 }
 0x902   : > { %v7308_v0 = vpop.f32.mrb[68].mxu1 }
 0x903   : > { %7347 = vst [vmem:[%s14489_s27 + $0x50] sm:$0xff] %v7308_v0  ;;  %v7310_v17 = vpop.f32.mrb[69].mxu1 }
 0x904   : > { %7348 = vst [vmem:[%s14489_s27 + $0x58] sm:$0xff] %v7310_v17  ;;  %v7312_v3 = vpop.f32.mrb[70].mxu1 }
 0x905   : > { %7351 = vst [vmem:[%s14489_s27 + $0x70] sm:$0xff] %v7312_v3  ;;  %v7314_v46 = vpop.f32.mrb[71].mxu1 }
 0x906   : > { %7352 = vst [vmem:[%s14489_s27 + $0x78] sm:$0xff] %v7314_v46 }
 0x90a   : > { %v7318_v5 = vpop.f32.mrb[72].mxu1 }
 0x90b   : > { %7355 = vst [vmem:[%s14489_s27 + $0x90] sm:$0xff] %v7318_v5  ;;  %v7320_v52 = vpop.f32.mrb[73].mxu1 }
 0x90c   : > { %7356 = vst [vmem:[%s14489_s27 + $0x98] sm:$0xff] %v7320_v52  ;;  %v7322_v36 = vpop.f32.mrb[74].mxu1 }
 0x90d   : > { %7359 = vst [vmem:[%s14489_s27 + $0xb0] sm:$0xff] %v7322_v36  ;;  %v7324_v34 = vpop.f32.mrb[75].mxu1 }
 0x90e   : > { %7360 = vst [vmem:[%s14489_s27 + $0xb8] sm:$0xff] %v7324_v34 }
 0x912   : > { %v7328_v32 = vpop.f32.mrb[76].mxu1 }
 0x913   : > { %7363 = vst [vmem:[%s14489_s27 + $0xd0] sm:$0xff] %v7328_v32  ;;  %v7330_v37 = vpop.f32.mrb[77].mxu1 }
 0x914   : > { %7364 = vst [vmem:[%s14489_s27 + $0xd8] sm:$0xff] %v7330_v37  ;;  %v7332_v57 = vpop.f32.mrb[78].mxu1 }
 0x915   : > { %7367 = vst [vmem:[%s14489_s27 + $0xf0] sm:$0xff] %v7332_v57  ;;  %v7334_v55 = vpop.f32.mrb[79].mxu1 }
 0x916   : > { %7368 = vst [vmem:[%s14489_s27 + $0xf8] sm:$0xff] %v7334_v55 }
 0x917   : > { %10812 = shalt.err (!%p10809_p0)
}
 0x918   : > { %s10813_s9 = scalar_lea.hbm %s14524_s10, 4096  ;;  %s10817_s16 = scalar_lea.hbm %s14580_s6, 8192 }
 0x919   : > { %p10814_p11 = scmp.ne.s32.totalorder %s14524_s10, %s10813_s9  ;;  %p10818_p6 = scmp.lt.u32.totalorder %s14524_s10, %s14580_s6 }
 0x91a   : > { %p10819_p10 = scmp.lt.u32.totalorder %s10817_s16, %s10813_s9  ;;  %p10821_p7 = scmp.lt.u32.totalorder %s10813_s9, %s14524_s10 }
 0x91b   : > { %p10815_p4 = pnand %p10814_p11, %p11124_p5 }
 0x91c   : > { %p10820_p3 = por %p10819_p10, %p10818_p6 }
 0x91d   : > { %p10816_p8 = pneg %p10815_p4 }
 0x91e   : > { %p10822_p12 = por %p10821_p7, %p10820_p3 }
 0x920   : > { %p10823_p1 = pnand %p10822_p12, %p10816_p8 }
 0x922   : > { %10826 = shalt.err (!%p10823_p1)
}
 0x923   : > { %s10893_s29 = smov 512   ;;  %s10894_s26 = smov 1024  }
 0x924   : > { %s10895_s7 = smov 32  }
 0x925   : > { %10368 = dma.vmem_to_hbm [thread:$0]  (%p11124_p5), %s14527_s19, 4096, %s14524_s10, %s7370_s25, %s10893_s29, %s10894_s26, %s10895_s7  }
 0x926 PF: > { %s7398_s15 = sand.u32 1, %s10865_s21   ;;  %p15649_p2 = scmp.ne.s32.totalorder %s14883_s28, 0 }
 0x927   : > { %p15650_p13 = scmp.ge.s32.totalorder %s10877_s24, 2  ;;  %s7399_s17 = scalar_lea.sflag [#allocation4], %s7398_s15 }
 0x929   : > { %p10391_p9 = pnand %p15650_p13, %p15649_p2 }
 0x92b   : > { %10860 = dma.done.wait (!%p10391_p9), %s7399_s17, 4096  }
 0x92c   : > { %10862 = vsyncadd (!%p10391_p9), %s7399_s17, 4294963200  ;;  %p22_p0 = scmp.ge.s32.totalorder %s11110_s18, 4   ;;  %s15651_s21 = smov %s10869_s22 }
 0x92d   : > { %s15652_s22 = smov %s10873_s23  ;;  %s15653_s23 = smov %s11120_s12 }
 0x92e   : > { %s15654_s24 = smov %s11110_s18  ;;  %24 = sbr.rel (!%p22_p0) target bundleno = 10 (0xa), region = 109 }
 0x935   :  { %7404 = vsyncpa [#allocation3], 1 }
 0x936   :  { %7406 = vsyncpa [#allocation3 + $0x1], 1 }
 0x937   :  { %7407 = vsyncpa [#allocation6], 1 }
 0x938   :  { %7408 = vsyncpa [#allocation9], 1 }
 0x939   :  { %7409 = vsyncpa [#allocation12], 1 }
 0x93a   :  { %7410 = vsyncpa [#allocation4], 1 }
 0x93b   :  { %7412 = vsyncpa [#allocation4 + $0x1], 1 }

</bundles_post_ra>
